<compile_context>
chip_gen: v7x
topology: tpu7x:2x2x1
jax: 0.10.0
libtpu: 0.0.40
codegen_flags: <defaults>
</compile_context>

<pallas_src>
import math

import jax
import jax.numpy as jnp
from jax.experimental import pallas as pl
from jax.experimental.pallas import tpu as pltpu

_VMEM = pl.BlockSpec(memory_space=pltpu.MemorySpace.VMEM)
_SQRT1_2 = 0.7071067811865476

_N_FIXED = 7  # x, fc_in_w, fc_in_b, ln_g, ln_b, fc_out_w, fc_out_b


def _use_fused_recurrence():
    """K=256 block-diagonal fused recurrent matmul only on 256-wide MXUs."""
    try:
        kind = jax.devices()[0].device_kind.lower()
    except Exception:
        return True
    return not any(t in kind for t in ("v2", "v3", "v4", "v5"))


# ----------------------------------------------------------------------------
# Fused forward kernel (factory: S / dims / num_layers / fused are trace-time)
# ----------------------------------------------------------------------------
def _make_fused_kernel(S, num_layers, HP, fused):
    per_block = 12 if fused else 11

    def kernel(*refs):
        n_in = _N_FIXED + per_block * num_layers
        in_refs = refs[:n_in]
        out_refs = refs[n_in:]

        (x_ref, fc_in_w, fc_in_b, ln_g, ln_b, fc_out_w, fc_out_b) = in_refs[:_N_FIXED]
        out_ref = out_refs[0]
        bf = jnp.bfloat16

        # --- fc_in -> LayerNorm(eps=1e-5) -> exact GELU ----------------------
        x = x_ref[...]
        y = jnp.dot(x, fc_in_w[...], preferred_element_type=jnp.float32) + fc_in_b[...]
        mean = jnp.mean(y, axis=-1, keepdims=True)
        var = jnp.mean(jnp.square(y - mean), axis=-1, keepdims=True)
        yn = (y - mean) * jax.lax.rsqrt(var + 1e-5)
        yn = yn * ln_g[...] + ln_b[...]
        y = 0.5 * yn * (1.0 + jax.lax.erf(yn * jnp.float32(_SQRT1_2)))

        def gate_math(g, c_prev):
            # gates packed (i, f, o, g): one wide sigmoid, one tanh
            sig = jax.nn.sigmoid(g[:, 0:3 * HP])
            i = sig[:, 0:HP]
            f = sig[:, HP:2 * HP]
            o = sig[:, 2 * HP:3 * HP]
            gg = jnp.tanh(g[:, 3 * HP:4 * HP])
            c_new = f * c_prev + i * gg
            h_new = o * jnp.tanh(c_new)
            return h_new, c_new

        for blk in range(num_layers):
            base = _N_FIXED + blk * per_block
            if fused:
                (enc_w, enc_b, wih0, b0, whh0, w1_stack, rhs_fused,
                 b1, dec_w, dec_b, h_in, c_in) = in_refs[base:base + per_block]
            else:
                (enc_w, enc_b, wih0, b0, whh0, w1_stack,
                 b1, dec_w, dec_b, h_in, c_in) = in_refs[base:base + per_block]
                rhs_fused = None
            h_out_ref = out_refs[1 + 2 * blk]
            c_out_ref = out_refs[2 + 2 * blk]

            x_blk = y  # residual source, (S, hid_d) f32

            # encoder Linear (dropout = identity in eval)
            emb = jnp.dot(x_blk.astype(bf), enc_w[...],
                          preferred_element_type=jnp.float32) + enc_b[...]

            # hoisted input projection for LSTM layer 0 (off the critical path)
            gates0 = jnp.dot(emb.astype(bf), wih0[...],
                             preferred_element_type=jnp.float32) + b0[...]

            # recurrent weights loaded once per block (weight-stationary)
            whh0_v = whh0[...]
            w1_v = w1_stack[...]
            rhs_v = rhs_fused[...] if fused else None
            b1_v = b1[...]

            h0 = h_in[0:1, :]
            c0 = c_in[0:1, :]
            h1 = h_in[1:2, :]
            c1 = c_in[1:2, :]

            # ---- Wavefront schedule over the 2-layer LSTM --------------------
            # tick 0      : layer-0 step 0
            # tick t=1..S-1: layer-0 step t  +  layer-1 step t-1 (one fused dot)
            # tick S      : layer-1 step S-1
            h1_rows = []

            g0 = gates0[0:1, :] + jnp.dot(h0.astype(bf), whh0_v,
                                          preferred_element_type=jnp.float32)
            h0, c0 = gate_math(g0, c0)

            for t in range(1, S):
                lhs = jnp.concatenate([h0, h1], axis=1).astype(bf)  # (1, 2*HP)
                if fused:
                    prod = jnp.dot(lhs, rhs_v, preferred_element_type=jnp.float32)
                    g0 = gates0[t:t + 1, :] + prod[:, 0:4 * HP]
                    g1 = b1_v + prod[:, 4 * HP:8 * HP]
                else:
                    g0 = gates0[t:t + 1, :] + jnp.dot(
                        h0.astype(bf), whh0_v, preferred_element_type=jnp.float32)
                    g1 = b1_v + jnp.dot(lhs, w1_v,
                                        preferred_element_type=jnp.float32)
                h0_new, c0 = gate_math(g0, c0)
                h1, c1 = gate_math(g1, c1)
                h1_rows.append(h1)
                h0 = h0_new

            # epilogue: last layer-1 step
            lhs = jnp.concatenate([h0, h1], axis=1).astype(bf)
            g1 = b1_v + jnp.dot(lhs, w1_v, preferred_element_type=jnp.float32)
            h1, c1 = gate_math(g1, c1)
            h1_rows.append(h1)

            h1_seq = jnp.concatenate(h1_rows, axis=0)  # (S, HP), value-carried

            # decoder Linear + residual + sigmoid
            dec = jnp.dot(h1_seq.astype(bf), dec_w[...],
                          preferred_element_type=jnp.float32) + dec_b[...]
            y = jax.nn.sigmoid(dec + x_blk)

            # final hidden / cell states of this block
            h_out_ref[0:1, :] = h0
            h_out_ref[1:2, :] = h1
            c_out_ref[0:1, :] = c0
            c_out_ref[1:2, :] = c1

        # fc_out (plain Linear)
        out_ref[...] = (jnp.dot(y, fc_out_w[...], preferred_element_type=jnp.float32)
                        + fc_out_b[...])

    return kernel


# ----------------------------------------------------------------------------
# Parameter packing (host-side):
#  * reorder gate columns (i,f,g,o) -> (i,f,o,g)
#  * lane-pad LSTM hidden width H2 -> HP (multiple of 128), zero padding
#  * stack [wih1; whh1]; optionally block-diag fuse with whh0 for v6e/v7x
#  * cast matmul weights to bf16
# ----------------------------------------------------------------------------
def _pack_gate_cols(w, H2, HP):
    lead = w.shape[:-1]
    w4 = w.reshape(lead + (4, H2))
    gi, gf, gg, go = (w4[..., k, :] for k in range(4))
    w4 = jnp.stack([gi, gf, go, gg], axis=-2)  # (i, f, o, g)
    w4 = jnp.pad(w4, [(0, 0)] * len(lead) + [(0, 0), (0, HP - H2)])
    return w4.reshape(lead + (4 * HP,))


def _pad_rows(w, H2, HP):
    return jnp.pad(w, ((0, HP - H2), (0, 0)))


def _prepare_packed(params, H2, HP, fused):
    bf = jnp.bfloat16
    packed = {
        'fc_in_w': params['fc_in_w'],   # tiny K -> keep f32
        'fc_in_b': params['fc_in_b'],
        'ln_g': params['ln_g'],
        'ln_b': params['ln_b'],
        'fc_out_w': params['fc_out_w'],  # tiny N -> keep f32
        'fc_out_b': params['fc_out_b'],
        'rnnp': [],
    }
    for p in params['rnnp']:
        whh0 = _pad_rows(_pack_gate_cols(p['whh0'], H2, HP), H2, HP).astype(bf)
        wih1 = _pad_rows(_pack_gate_cols(p['wih1'], H2, HP), H2, HP).astype(bf)
        whh1 = _pad_rows(_pack_gate_cols(p['whh1'], H2, HP), H2, HP).astype(bf)
        w1_stack = jnp.concatenate([wih1, whh1], axis=0)        # (2*HP, 4*HP)
        blk = {
            'enc_w': p['enc_w'].astype(bf),
            'enc_b': p['enc_b'],
            'wih0': _pack_gate_cols(p['wih0'], H2, HP).astype(bf),
            'b0': _pack_gate_cols(p['b0'], H2, HP),
            'whh0': whh0,
            'w1_stack': w1_stack,
            'b1': _pack_gate_cols(p['b1'], H2, HP),
            'dec_w': _pad_rows(p['dec_w'], H2, HP).astype(bf),
            'dec_b': p['dec_b'],
        }
        if fused:
            zeros = jnp.zeros((HP, 4 * HP), bf)
            left = jnp.concatenate([whh0, zeros], axis=0)        # (2*HP, 4*HP)
            blk['rhs_fused'] = jnp.concatenate([left, w1_stack], axis=1)  # (2*HP, 8*HP)
        packed['rnnp'].append(blk)
    return packed


# ----------------------------------------------------------------------------
# myRnnP forward (single pallas_call)
# ----------------------------------------------------------------------------
def my_rnnp_forward(x, h, params, fused=None):
    """x: (S, 1, enc_in); h: None or list of (h_i, c_i) each (2, 1, 2*hid_d)."""
    S, B, E = x.shape
    assert B == 1, "RNNPredictor.init_hidden(1) implies batch size 1"
    hid_d = params['fc_in_w'].shape[1]
    c_out = params['fc_out_w'].shape[1]
    num_layers = len(params['rnnp'])
    H2 = 2 * hid_d
    HP = -(-H2 // 128) * 128            # pad hidden width to full 128-lane vregs
    if fused is None:
        fused = _use_fused_recurrence()

    packed = _prepare_packed(params, H2, HP, fused)

    args = [x.reshape(S, E).astype(jnp.float32),
            packed['fc_in_w'], packed['fc_in_b'], packed['ln_g'], packed['ln_b'],
            packed['fc_out_w'], packed['fc_out_b']]
    for i, p in enumerate(packed['rnnp']):
        if h is None:
            h_i = jnp.zeros((2, HP), jnp.float32)
            c_i = jnp.zeros((2, HP), jnp.float32)
        else:  # repackage_hidden: detach only -> just reuse values
            h_i = jnp.pad(h[i][0].reshape(2, H2).astype(jnp.float32),
                          ((0, 0), (0, HP - H2)))
            c_i = jnp.pad(h[i][1].reshape(2, H2).astype(jnp.float32),
                          ((0, 0), (0, HP - H2)))
        blk_args = [p['enc_w'], p['enc_b'], p['wih0'], p['b0'], p['whh0'],
                    p['w1_stack']]
        if fused:
            blk_args.append(p['rhs_fused'])
        blk_args += [p['b1'], p['dec_w'], p['dec_b'], h_i, c_i]
        args.extend(blk_args)

    out_shapes = [jax.ShapeDtypeStruct((S, c_out), jnp.float32)]
    for _ in range(num_layers):
        out_shapes += [jax.ShapeDtypeStruct((2, HP), jnp.float32),
                       jax.ShapeDtypeStruct((2, HP), jnp.float32)]

    in_bytes = sum(int(a.size) * a.dtype.itemsize for a in args)
    out_bytes = sum(math.prod(s.shape) * jnp.dtype(s.dtype).itemsize
                    for s in out_shapes)
    vmem_limit = int(max(16 * 2**20,
                         min(2 * (in_bytes + out_bytes) + (4 << 20), 48 * 2**20)))

    kernel = _make_fused_kernel(S, num_layers, HP, fused)
    outs = pl.pallas_call(
        kernel,
        out_shape=tuple(out_shapes),
        in_specs=[_VMEM] * len(args),
        out_specs=tuple([_VMEM] * len(out_shapes)),
        compiler_params=pltpu.CompilerParams(vmem_limit_bytes=vmem_limit),
    )(*args)

    out = outs[0].reshape(S, 1, c_out)
    new_h = []
    for i in range(num_layers):
        hn = outs[1 + 2 * i][:, :H2].reshape(2, 1, H2)
        cn = outs[2 + 2 * i][:, :H2].reshape(2, 1, H2)
        new_h.append((hn, cn))
    return out, new_h


# ----------------------------------------------------------------------------
# Deterministic parameter initialization (shapes per module __init__)
# ----------------------------------------------------------------------------
def init_params(key, enc_in, c_out, hid_d, num_layers):
    H2 = 2 * hid_d

    def unif(k, shape, a):
        return jax.random.uniform(k, shape, jnp.float32, -a, a)

    keys = jax.random.split(key, 4 + num_layers)
    params = {
        'fc_in_w': unif(keys[0], (enc_in, hid_d), 0.1),
        'fc_in_b': unif(keys[1], (1, hid_d), 0.1),
        'ln_g': jnp.ones((1, hid_d), jnp.float32),     # LayerNorm default affine
        'ln_b': jnp.zeros((1, hid_d), jnp.float32),
        'fc_out_w': unif(keys[2], (hid_d, c_out), 0.1),
        'fc_out_b': unif(keys[3], (1, c_out), 0.1),
        'rnnp': [],
    }
    bound = 1.0 / math.sqrt(H2)   # PyTorch LSTM default init range
    for i in range(num_layers):
        lk = jax.random.split(keys[4 + i], 11)
        p = {
            # RNNPredictor: encoder Linear(hid_d -> 2*hid_d), uniform(-0.1, 0.1)
            'enc_w': unif(lk[0], (hid_d, H2), 0.1),
            'enc_b': unif(lk[1], (1, H2), 0.1),
            # 2-layer LSTM (input 2H, hidden 2H); fused bias = b_ih + b_hh
            'wih0': unif(lk[2], (H2, 4 * H2), bound),
            'whh0': unif(lk[3], (H2, 4 * H2), bound),
            'b0': unif(lk[4], (1, 4 * H2), bound) + unif(lk[5], (1, 4 * H2), bound),
            'wih1': unif(lk[6], (H2, 4 * H2), bound),
            'whh1': unif(lk[7], (H2, 4 * H2), bound),
            'b1': unif(lk[8], (1, 4 * H2), bound) + unif(lk[9], (1, 4 * H2), bound),
            # decoder Linear(2*hid_d -> hid_d), weight uniform(-0.1,0.1), bias 0
            'dec_w': unif(lk[10], (H2, hid_d), 0.1),
            'dec_b': jnp.zeros((1, hid_d), jnp.float32),
        }
        params['rnnp'].append(p)
    return params


if __name__ == "__main__":
    enc_in, c_out, hid_d, num_layers = 4, 4, 32, 2
    S = 8  # sequence length, batch = 1 (seq-first like nn.LSTM default)

    key = jax.random.PRNGKey(0)
    pkey, xkey = jax.random.split(key)
    params = init_params(pkey, enc_in, c_out, hid_d, num_layers)
    x = jax.random.normal(xkey, (S, 1, enc_in), jnp.float32)

    # first call (h=None -> zero-initialized hidden states)
    out, new_h = my_rnnp_forward(x, None, params)
    jax.block_until_ready(out)
    jax.block_until_ready(new_h)

    # second call reusing the returned hidden state (repackage_hidden path)
    out2, new_h2 = my_rnnp_forward(x, new_h, params)
    jax.block_until_ready(out2)
    jax.block_until_ready(new_h2)

    assert out.shape == (S, 1, c_out)
    assert out2.shape == (S, 1, c_out)
    assert len(new_h) == num_layers
    assert new_h[0][0].shape == (2, 1, 2 * hid_d)
    assert new_h[0][1].shape == (2, 1, 2 * hid_d)
    print("KERNEL_OK")
</pallas_src>

<mosaic_0001>
module attributes {stable_mosaic.version = 11 : i64} {
  func.func @kernel(%arg0: memref<8x4xf32, #tpu.memory_space<vmem>>, %arg1: memref<4x32xf32, #tpu.memory_space<vmem>>, %arg2: memref<1x32xf32, #tpu.memory_space<vmem>>, %arg3: memref<1x32xf32, #tpu.memory_space<vmem>>, %arg4: memref<1x32xf32, #tpu.memory_space<vmem>>, %arg5: memref<32x4xf32, #tpu.memory_space<vmem>>, %arg6: memref<1x4xf32, #tpu.memory_space<vmem>>, %arg7: memref<32x64xbf16, #tpu.memory_space<vmem>>, %arg8: memref<1x64xf32, #tpu.memory_space<vmem>>, %arg9: memref<64x512xbf16, #tpu.memory_space<vmem>>, %arg10: memref<1x512xf32, #tpu.memory_space<vmem>>, %arg11: memref<128x512xbf16, #tpu.memory_space<vmem>>, %arg12: memref<256x512xbf16, #tpu.memory_space<vmem>>, %arg13: memref<256x1024xbf16, #tpu.memory_space<vmem>>, %arg14: memref<1x512xf32, #tpu.memory_space<vmem>>, %arg15: memref<128x32xbf16, #tpu.memory_space<vmem>>, %arg16: memref<1x32xf32, #tpu.memory_space<vmem>>, %arg17: memref<2x128xf32, #tpu.memory_space<vmem>>, %arg18: memref<2x128xf32, #tpu.memory_space<vmem>>, %arg19: memref<32x64xbf16, #tpu.memory_space<vmem>>, %arg20: memref<1x64xf32, #tpu.memory_space<vmem>>, %arg21: memref<64x512xbf16, #tpu.memory_space<vmem>>, %arg22: memref<1x512xf32, #tpu.memory_space<vmem>>, %arg23: memref<128x512xbf16, #tpu.memory_space<vmem>>, %arg24: memref<256x512xbf16, #tpu.memory_space<vmem>>, %arg25: memref<256x1024xbf16, #tpu.memory_space<vmem>>, %arg26: memref<1x512xf32, #tpu.memory_space<vmem>>, %arg27: memref<128x32xbf16, #tpu.memory_space<vmem>>, %arg28: memref<1x32xf32, #tpu.memory_space<vmem>>, %arg29: memref<2x128xf32, #tpu.memory_space<vmem>>, %arg30: memref<2x128xf32, #tpu.memory_space<vmem>>, %arg31: memref<8x4xf32, #tpu.memory_space<vmem>>, %arg32: memref<2x128xf32, #tpu.memory_space<vmem>>, %arg33: memref<2x128xf32, #tpu.memory_space<vmem>>, %arg34: memref<2x128xf32, #tpu.memory_space<vmem>>, %arg35: memref<2x128xf32, #tpu.memory_space<vmem>>) attributes {dimension_semantics = [], scalar_prefetch = 0 : i64, scratch_operands = 0 : i64, tpu.core_type = #tpu.core_type<tc>} {
    %c0 = arith.constant 0 : index
    %c0_0 = arith.constant 0 : index
    %0 = vector.load %arg0[%c0, %c0_0] : memref<8x4xf32, #tpu.memory_space<vmem>>, vector<8x4xf32>
    %c0_1 = arith.constant 0 : index
    %c0_2 = arith.constant 0 : index
    %1 = vector.load %arg1[%c0_1, %c0_2] : memref<4x32xf32, #tpu.memory_space<vmem>>, vector<4x32xf32>
    %cst = arith.constant dense<0.000000e+00> : vector<8x32xf32>
    %2 = tpu.matmul %0, %1, %cst {dimension_numbers = #tpu.dot_dimension_numbers<[1], [0], [0], [1], [0, 0, 1, 1], [], []>} : vector<8x4xf32>, vector<4x32xf32>, vector<8x32xf32> -> vector<8x32xf32>
    %c0_3 = arith.constant 0 : index
    %c0_4 = arith.constant 0 : index
    %3 = vector.load %arg2[%c0_3, %c0_4] : memref<1x32xf32, #tpu.memory_space<vmem>>, vector<1x32xf32>
    %4 = vector.broadcast %3 : vector<1x32xf32> to vector<8x32xf32>
    %5 = arith.addf %2, %4 : vector<8x32xf32>
    %cst_5 = arith.constant dense<0.000000e+00> : vector<8xf32>
    %6 = vector.multi_reduction <add>, %5, %cst_5 [1] : vector<8x32xf32> to vector<8xf32>
    %7 = vector.shape_cast %6 : vector<8xf32> to vector<8x1xf32>
    %cst_6 = arith.constant 3.200000e+01 : f32
    %8 = vector.broadcast %cst_6 : f32 to vector<8x1xf32>
    %9 = arith.divf %7, %8 : vector<8x1xf32>
    %10 = vector.broadcast %9 : vector<8x1xf32> to vector<8x32xf32>
    %11 = arith.subf %5, %10 : vector<8x32xf32>
    %12 = arith.mulf %11, %11 : vector<8x32xf32>
    %cst_7 = arith.constant dense<0.000000e+00> : vector<8xf32>
    %13 = vector.multi_reduction <add>, %12, %cst_7 [1] : vector<8x32xf32> to vector<8xf32>
    %14 = vector.shape_cast %13 : vector<8xf32> to vector<8x1xf32>
    %cst_8 = arith.constant 3.200000e+01 : f32
    %15 = vector.broadcast %cst_8 : f32 to vector<8x1xf32>
    %16 = arith.divf %14, %15 : vector<8x1xf32>
    %17 = vector.broadcast %9 : vector<8x1xf32> to vector<8x32xf32>
    %18 = arith.subf %5, %17 : vector<8x32xf32>
    %cst_9 = arith.constant 9.99999974E-6 : f32
    %19 = vector.broadcast %cst_9 : f32 to vector<8x1xf32>
    %20 = arith.addf %16, %19 : vector<8x1xf32>
    %21 = math.rsqrt %20 : vector<8x1xf32>
    %22 = vector.broadcast %21 : vector<8x1xf32> to vector<8x32xf32>
    %23 = arith.mulf %18, %22 : vector<8x32xf32>
    %c0_10 = arith.constant 0 : index
    %c0_11 = arith.constant 0 : index
    %24 = vector.load %arg3[%c0_10, %c0_11] : memref<1x32xf32, #tpu.memory_space<vmem>>, vector<1x32xf32>
    %25 = vector.broadcast %24 : vector<1x32xf32> to vector<8x32xf32>
    %26 = arith.mulf %23, %25 : vector<8x32xf32>
    %c0_12 = arith.constant 0 : index
    %c0_13 = arith.constant 0 : index
    %27 = vector.load %arg4[%c0_12, %c0_13] : memref<1x32xf32, #tpu.memory_space<vmem>>, vector<1x32xf32>
    %28 = vector.broadcast %27 : vector<1x32xf32> to vector<8x32xf32>
    %29 = arith.addf %26, %28 : vector<8x32xf32>
    %cst_14 = arith.constant 5.000000e-01 : f32
    %30 = vector.broadcast %cst_14 : f32 to vector<8x32xf32>
    %31 = arith.mulf %30, %29 : vector<8x32xf32>
    %cst_15 = arith.constant 0.707106769 : f32
    %32 = vector.broadcast %cst_15 : f32 to vector<8x32xf32>
    %33 = arith.mulf %29, %32 : vector<8x32xf32>
    %34 = math.erf %33 : vector<8x32xf32>
    %cst_16 = arith.constant 1.000000e+00 : f32
    %35 = vector.broadcast %cst_16 : f32 to vector<8x32xf32>
    %36 = arith.addf %35, %34 : vector<8x32xf32>
    %37 = arith.mulf %31, %36 : vector<8x32xf32>
    %38 = arith.truncf %37 : vector<8x32xf32> to vector<8x32xbf16>
    %c0_17 = arith.constant 0 : index
    %c0_18 = arith.constant 0 : index
    %39 = vector.load %arg7[%c0_17, %c0_18] : memref<32x64xbf16, #tpu.memory_space<vmem>>, vector<32x64xbf16>
    %cst_19 = arith.constant dense<0.000000e+00> : vector<8x64xf32>
    %40 = tpu.matmul %38, %39, %cst_19 {dimension_numbers = #tpu.dot_dimension_numbers<[1], [0], [0], [1], [0, 0, 1, 1], [], []>} : vector<8x32xbf16>, vector<32x64xbf16>, vector<8x64xf32> -> vector<8x64xf32>
    %c0_20 = arith.constant 0 : index
    %c0_21 = arith.constant 0 : index
    %41 = vector.load %arg8[%c0_20, %c0_21] : memref<1x64xf32, #tpu.memory_space<vmem>>, vector<1x64xf32>
    %42 = vector.broadcast %41 : vector<1x64xf32> to vector<8x64xf32>
    %43 = arith.addf %40, %42 : vector<8x64xf32>
    %44 = arith.truncf %43 : vector<8x64xf32> to vector<8x64xbf16>
    %c0_22 = arith.constant 0 : index
    %c0_23 = arith.constant 0 : index
    %45 = vector.load %arg9[%c0_22, %c0_23] : memref<64x512xbf16, #tpu.memory_space<vmem>>, vector<64x512xbf16>
    %cst_24 = arith.constant dense<0.000000e+00> : vector<8x512xf32>
    %46 = tpu.matmul %44, %45, %cst_24 {dimension_numbers = #tpu.dot_dimension_numbers<[1], [0], [0], [1], [0, 0, 1, 1], [], []>} : vector<8x64xbf16>, vector<64x512xbf16>, vector<8x512xf32> -> vector<8x512xf32>
    %c0_25 = arith.constant 0 : index
    %c0_26 = arith.constant 0 : index
    %47 = vector.load %arg10[%c0_25, %c0_26] : memref<1x512xf32, #tpu.memory_space<vmem>>, vector<1x512xf32>
    %48 = vector.broadcast %47 : vector<1x512xf32> to vector<8x512xf32>
    %49 = arith.addf %46, %48 : vector<8x512xf32>
    %c0_27 = arith.constant 0 : index
    %c0_28 = arith.constant 0 : index
    %50 = vector.load %arg11[%c0_27, %c0_28] : memref<128x512xbf16, #tpu.memory_space<vmem>>, vector<128x512xbf16>
    %c0_29 = arith.constant 0 : index
    %c0_30 = arith.constant 0 : index
    %51 = vector.load %arg12[%c0_29, %c0_30] : memref<256x512xbf16, #tpu.memory_space<vmem>>, vector<256x512xbf16>
    %c0_31 = arith.constant 0 : index
    %c0_32 = arith.constant 0 : index
    %52 = vector.load %arg13[%c0_31, %c0_32] : memref<256x1024xbf16, #tpu.memory_space<vmem>>, vector<256x1024xbf16>
    %c0_33 = arith.constant 0 : index
    %c0_34 = arith.constant 0 : index
    %53 = vector.load %arg14[%c0_33, %c0_34] : memref<1x512xf32, #tpu.memory_space<vmem>>, vector<1x512xf32>
    %c0_35 = arith.constant 0 : index
    %c0_36 = arith.constant 0 : index
    %54 = vector.load %arg17[%c0_35, %c0_36] : memref<2x128xf32, #tpu.memory_space<vmem>>, vector<1x128xf32>
    %c0_37 = arith.constant 0 : index
    %c0_38 = arith.constant 0 : index
    %55 = vector.load %arg18[%c0_37, %c0_38] : memref<2x128xf32, #tpu.memory_space<vmem>>, vector<1x128xf32>
    %c1 = arith.constant 1 : index
    %c0_39 = arith.constant 0 : index
    %56 = vector.load %arg17[%c1, %c0_39] : memref<2x128xf32, #tpu.memory_space<vmem>>, vector<1x128xf32>
    %c1_40 = arith.constant 1 : index
    %c0_41 = arith.constant 0 : index
    %57 = vector.load %arg18[%c1_40, %c0_41] : memref<2x128xf32, #tpu.memory_space<vmem>>, vector<1x128xf32>
    %58 = vector.extract_strided_slice %49 {offsets = [0, 0], sizes = [1, 512], strides = [1, 1]} : vector<8x512xf32> to vector<1x512xf32>
    %59 = arith.truncf %54 : vector<1x128xf32> to vector<1x128xbf16>
    %cst_42 = arith.constant dense<0.000000e+00> : vector<1x512xf32>
    %60 = tpu.matmul %59, %50, %cst_42 {dimension_numbers = #tpu.dot_dimension_numbers<[1], [0], [0], [1], [0, 0, 1, 1], [], []>} : vector<1x128xbf16>, vector<128x512xbf16>, vector<1x512xf32> -> vector<1x512xf32>
    %61 = arith.addf %58, %60 : vector<1x512xf32>
    %62 = vector.extract_strided_slice %61 {offsets = [0, 0], sizes = [1, 384], strides = [1, 1]} : vector<1x512xf32> to vector<1x384xf32>
    %63 = arith.negf %62 : vector<1x384xf32>
    %64 = math.exp %63 : vector<1x384xf32>
    %cst_43 = arith.constant 1.000000e+00 : f32
    %65 = vector.broadcast %cst_43 : f32 to vector<1x384xf32>
    %66 = arith.addf %65, %64 : vector<1x384xf32>
    %67 = arith.divf %65, %66 : vector<1x384xf32>
    %68 = vector.extract_strided_slice %67 {offsets = [0, 0], sizes = [1, 128], strides = [1, 1]} : vector<1x384xf32> to vector<1x128xf32>
    %69 = vector.extract_strided_slice %67 {offsets = [0, 128], sizes = [1, 128], strides = [1, 1]} : vector<1x384xf32> to vector<1x128xf32>
    %70 = vector.extract_strided_slice %67 {offsets = [0, 256], sizes = [1, 128], strides = [1, 1]} : vector<1x384xf32> to vector<1x128xf32>
    %71 = vector.extract_strided_slice %61 {offsets = [0, 384], sizes = [1, 128], strides = [1, 1]} : vector<1x512xf32> to vector<1x128xf32>
    %72 = math.tanh %71 : vector<1x128xf32>
    %73 = arith.mulf %69, %55 : vector<1x128xf32>
    %74 = arith.mulf %68, %72 : vector<1x128xf32>
    %75 = arith.addf %73, %74 : vector<1x128xf32>
    %76 = math.tanh %75 : vector<1x128xf32>
    %77 = arith.mulf %70, %76 : vector<1x128xf32>
    %78 = tpu.concatenate %77, %56 in 1 : vector<1x128xf32>, vector<1x128xf32> -> vector<1x256xf32>
    %79 = arith.truncf %78 : vector<1x256xf32> to vector<1x256xbf16>
    %cst_44 = arith.constant dense<0.000000e+00> : vector<1x1024xf32>
    %80 = tpu.matmul %79, %52, %cst_44 {dimension_numbers = #tpu.dot_dimension_numbers<[1], [0], [0], [1], [0, 0, 1, 1], [], []>} : vector<1x256xbf16>, vector<256x1024xbf16>, vector<1x1024xf32> -> vector<1x1024xf32>
    %81 = vector.extract_strided_slice %49 {offsets = [1, 0], sizes = [1, 512], strides = [1, 1]} : vector<8x512xf32> to vector<1x512xf32>
    %82 = vector.extract_strided_slice %80 {offsets = [0, 0], sizes = [1, 512], strides = [1, 1]} : vector<1x1024xf32> to vector<1x512xf32>
    %83 = arith.addf %81, %82 : vector<1x512xf32>
    %84 = vector.extract_strided_slice %80 {offsets = [0, 512], sizes = [1, 512], strides = [1, 1]} : vector<1x1024xf32> to vector<1x512xf32>
    %85 = arith.addf %53, %84 : vector<1x512xf32>
    %86 = vector.extract_strided_slice %83 {offsets = [0, 0], sizes = [1, 384], strides = [1, 1]} : vector<1x512xf32> to vector<1x384xf32>
    %87 = arith.negf %86 : vector<1x384xf32>
    %88 = math.exp %87 : vector<1x384xf32>
    %cst_45 = arith.constant 1.000000e+00 : f32
    %89 = vector.broadcast %cst_45 : f32 to vector<1x384xf32>
    %90 = arith.addf %89, %88 : vector<1x384xf32>
    %91 = arith.divf %89, %90 : vector<1x384xf32>
    %92 = vector.extract_strided_slice %91 {offsets = [0, 0], sizes = [1, 128], strides = [1, 1]} : vector<1x384xf32> to vector<1x128xf32>
    %93 = vector.extract_strided_slice %91 {offsets = [0, 128], sizes = [1, 128], strides = [1, 1]} : vector<1x384xf32> to vector<1x128xf32>
    %94 = vector.extract_strided_slice %91 {offsets = [0, 256], sizes = [1, 128], strides = [1, 1]} : vector<1x384xf32> to vector<1x128xf32>
    %95 = vector.extract_strided_slice %83 {offsets = [0, 384], sizes = [1, 128], strides = [1, 1]} : vector<1x512xf32> to vector<1x128xf32>
    %96 = math.tanh %95 : vector<1x128xf32>
    %97 = arith.mulf %93, %75 : vector<1x128xf32>
    %98 = arith.mulf %92, %96 : vector<1x128xf32>
    %99 = arith.addf %97, %98 : vector<1x128xf32>
    %100 = math.tanh %99 : vector<1x128xf32>
    %101 = arith.mulf %94, %100 : vector<1x128xf32>
    %102 = vector.extract_strided_slice %85 {offsets = [0, 0], sizes = [1, 384], strides = [1, 1]} : vector<1x512xf32> to vector<1x384xf32>
    %103 = arith.negf %102 : vector<1x384xf32>
    %104 = math.exp %103 : vector<1x384xf32>
    %cst_46 = arith.constant 1.000000e+00 : f32
    %105 = vector.broadcast %cst_46 : f32 to vector<1x384xf32>
    %106 = arith.addf %105, %104 : vector<1x384xf32>
    %107 = arith.divf %105, %106 : vector<1x384xf32>
    %108 = vector.extract_strided_slice %107 {offsets = [0, 0], sizes = [1, 128], strides = [1, 1]} : vector<1x384xf32> to vector<1x128xf32>
    %109 = vector.extract_strided_slice %107 {offsets = [0, 128], sizes = [1, 128], strides = [1, 1]} : vector<1x384xf32> to vector<1x128xf32>
    %110 = vector.extract_strided_slice %107 {offsets = [0, 256], sizes = [1, 128], strides = [1, 1]} : vector<1x384xf32> to vector<1x128xf32>
    %111 = vector.extract_strided_slice %85 {offsets = [0, 384], sizes = [1, 128], strides = [1, 1]} : vector<1x512xf32> to vector<1x128xf32>
    %112 = math.tanh %111 : vector<1x128xf32>
    %113 = arith.mulf %109, %57 : vector<1x128xf32>
    %114 = arith.mulf %108, %112 : vector<1x128xf32>
    %115 = arith.addf %113, %114 : vector<1x128xf32>
    %116 = math.tanh %115 : vector<1x128xf32>
    %117 = arith.mulf %110, %116 : vector<1x128xf32>
    %118 = tpu.concatenate %101, %117 in 1 : vector<1x128xf32>, vector<1x128xf32> -> vector<1x256xf32>
    %119 = arith.truncf %118 : vector<1x256xf32> to vector<1x256xbf16>
    %cst_47 = arith.constant dense<0.000000e+00> : vector<1x1024xf32>
    %120 = tpu.matmul %119, %52, %cst_47 {dimension_numbers = #tpu.dot_dimension_numbers<[1], [0], [0], [1], [0, 0, 1, 1], [], []>} : vector<1x256xbf16>, vector<256x1024xbf16>, vector<1x1024xf32> -> vector<1x1024xf32>
    %121 = vector.extract_strided_slice %49 {offsets = [2, 0], sizes = [1, 512], strides = [1, 1]} : vector<8x512xf32> to vector<1x512xf32>
    %122 = vector.extract_strided_slice %120 {offsets = [0, 0], sizes = [1, 512], strides = [1, 1]} : vector<1x1024xf32> to vector<1x512xf32>
    %123 = arith.addf %121, %122 : vector<1x512xf32>
    %124 = vector.extract_strided_slice %120 {offsets = [0, 512], sizes = [1, 512], strides = [1, 1]} : vector<1x1024xf32> to vector<1x512xf32>
    %125 = arith.addf %53, %124 : vector<1x512xf32>
    %126 = vector.extract_strided_slice %123 {offsets = [0, 0], sizes = [1, 384], strides = [1, 1]} : vector<1x512xf32> to vector<1x384xf32>
    %127 = arith.negf %126 : vector<1x384xf32>
    %128 = math.exp %127 : vector<1x384xf32>
    %cst_48 = arith.constant 1.000000e+00 : f32
    %129 = vector.broadcast %cst_48 : f32 to vector<1x384xf32>
    %130 = arith.addf %129, %128 : vector<1x384xf32>
    %131 = arith.divf %129, %130 : vector<1x384xf32>
    %132 = vector.extract_strided_slice %131 {offsets = [0, 0], sizes = [1, 128], strides = [1, 1]} : vector<1x384xf32> to vector<1x128xf32>
    %133 = vector.extract_strided_slice %131 {offsets = [0, 128], sizes = [1, 128], strides = [1, 1]} : vector<1x384xf32> to vector<1x128xf32>
    %134 = vector.extract_strided_slice %131 {offsets = [0, 256], sizes = [1, 128], strides = [1, 1]} : vector<1x384xf32> to vector<1x128xf32>
    %135 = vector.extract_strided_slice %123 {offsets = [0, 384], sizes = [1, 128], strides = [1, 1]} : vector<1x512xf32> to vector<1x128xf32>
    %136 = math.tanh %135 : vector<1x128xf32>
    %137 = arith.mulf %133, %99 : vector<1x128xf32>
    %138 = arith.mulf %132, %136 : vector<1x128xf32>
    %139 = arith.addf %137, %138 : vector<1x128xf32>
    %140 = math.tanh %139 : vector<1x128xf32>
    %141 = arith.mulf %134, %140 : vector<1x128xf32>
    %142 = vector.extract_strided_slice %125 {offsets = [0, 0], sizes = [1, 384], strides = [1, 1]} : vector<1x512xf32> to vector<1x384xf32>
    %143 = arith.negf %142 : vector<1x384xf32>
    %144 = math.exp %143 : vector<1x384xf32>
    %cst_49 = arith.constant 1.000000e+00 : f32
    %145 = vector.broadcast %cst_49 : f32 to vector<1x384xf32>
    %146 = arith.addf %145, %144 : vector<1x384xf32>
    %147 = arith.divf %145, %146 : vector<1x384xf32>
    %148 = vector.extract_strided_slice %147 {offsets = [0, 0], sizes = [1, 128], strides = [1, 1]} : vector<1x384xf32> to vector<1x128xf32>
    %149 = vector.extract_strided_slice %147 {offsets = [0, 128], sizes = [1, 128], strides = [1, 1]} : vector<1x384xf32> to vector<1x128xf32>
    %150 = vector.extract_strided_slice %147 {offsets = [0, 256], sizes = [1, 128], strides = [1, 1]} : vector<1x384xf32> to vector<1x128xf32>
    %151 = vector.extract_strided_slice %125 {offsets = [0, 384], sizes = [1, 128], strides = [1, 1]} : vector<1x512xf32> to vector<1x128xf32>
    %152 = math.tanh %151 : vector<1x128xf32>
    %153 = arith.mulf %149, %115 : vector<1x128xf32>
    %154 = arith.mulf %148, %152 : vector<1x128xf32>
    %155 = arith.addf %153, %154 : vector<1x128xf32>
    %156 = math.tanh %155 : vector<1x128xf32>
    %157 = arith.mulf %150, %156 : vector<1x128xf32>
    %158 = tpu.concatenate %141, %157 in 1 : vector<1x128xf32>, vector<1x128xf32> -> vector<1x256xf32>
    %159 = arith.truncf %158 : vector<1x256xf32> to vector<1x256xbf16>
    %cst_50 = arith.constant dense<0.000000e+00> : vector<1x1024xf32>
    %160 = tpu.matmul %159, %52, %cst_50 {dimension_numbers = #tpu.dot_dimension_numbers<[1], [0], [0], [1], [0, 0, 1, 1], [], []>} : vector<1x256xbf16>, vector<256x1024xbf16>, vector<1x1024xf32> -> vector<1x1024xf32>
    %161 = vector.extract_strided_slice %49 {offsets = [3, 0], sizes = [1, 512], strides = [1, 1]} : vector<8x512xf32> to vector<1x512xf32>
    %162 = vector.extract_strided_slice %160 {offsets = [0, 0], sizes = [1, 512], strides = [1, 1]} : vector<1x1024xf32> to vector<1x512xf32>
    %163 = arith.addf %161, %162 : vector<1x512xf32>
    %164 = vector.extract_strided_slice %160 {offsets = [0, 512], sizes = [1, 512], strides = [1, 1]} : vector<1x1024xf32> to vector<1x512xf32>
    %165 = arith.addf %53, %164 : vector<1x512xf32>
    %166 = vector.extract_strided_slice %163 {offsets = [0, 0], sizes = [1, 384], strides = [1, 1]} : vector<1x512xf32> to vector<1x384xf32>
    %167 = arith.negf %166 : vector<1x384xf32>
    %168 = math.exp %167 : vector<1x384xf32>
    %cst_51 = arith.constant 1.000000e+00 : f32
    %169 = vector.broadcast %cst_51 : f32 to vector<1x384xf32>
    %170 = arith.addf %169, %168 : vector<1x384xf32>
    %171 = arith.divf %169, %170 : vector<1x384xf32>
    %172 = vector.extract_strided_slice %171 {offsets = [0, 0], sizes = [1, 128], strides = [1, 1]} : vector<1x384xf32> to vector<1x128xf32>
    %173 = vector.extract_strided_slice %171 {offsets = [0, 128], sizes = [1, 128], strides = [1, 1]} : vector<1x384xf32> to vector<1x128xf32>
    %174 = vector.extract_strided_slice %171 {offsets = [0, 256], sizes = [1, 128], strides = [1, 1]} : vector<1x384xf32> to vector<1x128xf32>
    %175 = vector.extract_strided_slice %163 {offsets = [0, 384], sizes = [1, 128], strides = [1, 1]} : vector<1x512xf32> to vector<1x128xf32>
    %176 = math.tanh %175 : vector<1x128xf32>
    %177 = arith.mulf %173, %139 : vector<1x128xf32>
    %178 = arith.mulf %172, %176 : vector<1x128xf32>
    %179 = arith.addf %177, %178 : vector<1x128xf32>
    %180 = math.tanh %179 : vector<1x128xf32>
    %181 = arith.mulf %174, %180 : vector<1x128xf32>
    %182 = vector.extract_strided_slice %165 {offsets = [0, 0], sizes = [1, 384], strides = [1, 1]} : vector<1x512xf32> to vector<1x384xf32>
    %183 = arith.negf %182 : vector<1x384xf32>
    %184 = math.exp %183 : vector<1x384xf32>
    %cst_52 = arith.constant 1.000000e+00 : f32
    %185 = vector.broadcast %cst_52 : f32 to vector<1x384xf32>
    %186 = arith.addf %185, %184 : vector<1x384xf32>
    %187 = arith.divf %185, %186 : vector<1x384xf32>
    %188 = vector.extract_strided_slice %187 {offsets = [0, 0], sizes = [1, 128], strides = [1, 1]} : vector<1x384xf32> to vector<1x128xf32>
    %189 = vector.extract_strided_slice %187 {offsets = [0, 128], sizes = [1, 128], strides = [1, 1]} : vector<1x384xf32> to vector<1x128xf32>
    %190 = vector.extract_strided_slice %187 {offsets = [0, 256], sizes = [1, 128], strides = [1, 1]} : vector<1x384xf32> to vector<1x128xf32>
    %191 = vector.extract_strided_slice %165 {offsets = [0, 384], sizes = [1, 128], strides = [1, 1]} : vector<1x512xf32> to vector<1x128xf32>
    %192 = math.tanh %191 : vector<1x128xf32>
    %193 = arith.mulf %189, %155 : vector<1x128xf32>
    %194 = arith.mulf %188, %192 : vector<1x128xf32>
    %195 = arith.addf %193, %194 : vector<1x128xf32>
    %196 = math.tanh %195 : vector<1x128xf32>
    %197 = arith.mulf %190, %196 : vector<1x128xf32>
    %198 = tpu.concatenate %181, %197 in 1 : vector<1x128xf32>, vector<1x128xf32> -> vector<1x256xf32>
    %199 = arith.truncf %198 : vector<1x256xf32> to vector<1x256xbf16>
    %cst_53 = arith.constant dense<0.000000e+00> : vector<1x1024xf32>
    %200 = tpu.matmul %199, %52, %cst_53 {dimension_numbers = #tpu.dot_dimension_numbers<[1], [0], [0], [1], [0, 0, 1, 1], [], []>} : vector<1x256xbf16>, vector<256x1024xbf16>, vector<1x1024xf32> -> vector<1x1024xf32>
    %201 = vector.extract_strided_slice %49 {offsets = [4, 0], sizes = [1, 512], strides = [1, 1]} : vector<8x512xf32> to vector<1x512xf32>
    %202 = vector.extract_strided_slice %200 {offsets = [0, 0], sizes = [1, 512], strides = [1, 1]} : vector<1x1024xf32> to vector<1x512xf32>
    %203 = arith.addf %201, %202 : vector<1x512xf32>
    %204 = vector.extract_strided_slice %200 {offsets = [0, 512], sizes = [1, 512], strides = [1, 1]} : vector<1x1024xf32> to vector<1x512xf32>
    %205 = arith.addf %53, %204 : vector<1x512xf32>
    %206 = vector.extract_strided_slice %203 {offsets = [0, 0], sizes = [1, 384], strides = [1, 1]} : vector<1x512xf32> to vector<1x384xf32>
    %207 = arith.negf %206 : vector<1x384xf32>
    %208 = math.exp %207 : vector<1x384xf32>
    %cst_54 = arith.constant 1.000000e+00 : f32
    %209 = vector.broadcast %cst_54 : f32 to vector<1x384xf32>
    %210 = arith.addf %209, %208 : vector<1x384xf32>
    %211 = arith.divf %209, %210 : vector<1x384xf32>
    %212 = vector.extract_strided_slice %211 {offsets = [0, 0], sizes = [1, 128], strides = [1, 1]} : vector<1x384xf32> to vector<1x128xf32>
    %213 = vector.extract_strided_slice %211 {offsets = [0, 128], sizes = [1, 128], strides = [1, 1]} : vector<1x384xf32> to vector<1x128xf32>
    %214 = vector.extract_strided_slice %211 {offsets = [0, 256], sizes = [1, 128], strides = [1, 1]} : vector<1x384xf32> to vector<1x128xf32>
    %215 = vector.extract_strided_slice %203 {offsets = [0, 384], sizes = [1, 128], strides = [1, 1]} : vector<1x512xf32> to vector<1x128xf32>
    %216 = math.tanh %215 : vector<1x128xf32>
    %217 = arith.mulf %213, %179 : vector<1x128xf32>
    %218 = arith.mulf %212, %216 : vector<1x128xf32>
    %219 = arith.addf %217, %218 : vector<1x128xf32>
    %220 = math.tanh %219 : vector<1x128xf32>
    %221 = arith.mulf %214, %220 : vector<1x128xf32>
    %222 = vector.extract_strided_slice %205 {offsets = [0, 0], sizes = [1, 384], strides = [1, 1]} : vector<1x512xf32> to vector<1x384xf32>
    %223 = arith.negf %222 : vector<1x384xf32>
    %224 = math.exp %223 : vector<1x384xf32>
    %cst_55 = arith.constant 1.000000e+00 : f32
    %225 = vector.broadcast %cst_55 : f32 to vector<1x384xf32>
    %226 = arith.addf %225, %224 : vector<1x384xf32>
    %227 = arith.divf %225, %226 : vector<1x384xf32>
    %228 = vector.extract_strided_slice %227 {offsets = [0, 0], sizes = [1, 128], strides = [1, 1]} : vector<1x384xf32> to vector<1x128xf32>
    %229 = vector.extract_strided_slice %227 {offsets = [0, 128], sizes = [1, 128], strides = [1, 1]} : vector<1x384xf32> to vector<1x128xf32>
    %230 = vector.extract_strided_slice %227 {offsets = [0, 256], sizes = [1, 128], strides = [1, 1]} : vector<1x384xf32> to vector<1x128xf32>
    %231 = vector.extract_strided_slice %205 {offsets = [0, 384], sizes = [1, 128], strides = [1, 1]} : vector<1x512xf32> to vector<1x128xf32>
    %232 = math.tanh %231 : vector<1x128xf32>
    %233 = arith.mulf %229, %195 : vector<1x128xf32>
    %234 = arith.mulf %228, %232 : vector<1x128xf32>
    %235 = arith.addf %233, %234 : vector<1x128xf32>
    %236 = math.tanh %235 : vector<1x128xf32>
    %237 = arith.mulf %230, %236 : vector<1x128xf32>
    %238 = tpu.concatenate %221, %237 in 1 : vector<1x128xf32>, vector<1x128xf32> -> vector<1x256xf32>
    %239 = arith.truncf %238 : vector<1x256xf32> to vector<1x256xbf16>
    %cst_56 = arith.constant dense<0.000000e+00> : vector<1x1024xf32>
    %240 = tpu.matmul %239, %52, %cst_56 {dimension_numbers = #tpu.dot_dimension_numbers<[1], [0], [0], [1], [0, 0, 1, 1], [], []>} : vector<1x256xbf16>, vector<256x1024xbf16>, vector<1x1024xf32> -> vector<1x1024xf32>
    %241 = vector.extract_strided_slice %49 {offsets = [5, 0], sizes = [1, 512], strides = [1, 1]} : vector<8x512xf32> to vector<1x512xf32>
    %242 = vector.extract_strided_slice %240 {offsets = [0, 0], sizes = [1, 512], strides = [1, 1]} : vector<1x1024xf32> to vector<1x512xf32>
    %243 = arith.addf %241, %242 : vector<1x512xf32>
    %244 = vector.extract_strided_slice %240 {offsets = [0, 512], sizes = [1, 512], strides = [1, 1]} : vector<1x1024xf32> to vector<1x512xf32>
    %245 = arith.addf %53, %244 : vector<1x512xf32>
    %246 = vector.extract_strided_slice %243 {offsets = [0, 0], sizes = [1, 384], strides = [1, 1]} : vector<1x512xf32> to vector<1x384xf32>
    %247 = arith.negf %246 : vector<1x384xf32>
    %248 = math.exp %247 : vector<1x384xf32>
    %cst_57 = arith.constant 1.000000e+00 : f32
    %249 = vector.broadcast %cst_57 : f32 to vector<1x384xf32>
    %250 = arith.addf %249, %248 : vector<1x384xf32>
    %251 = arith.divf %249, %250 : vector<1x384xf32>
    %252 = vector.extract_strided_slice %251 {offsets = [0, 0], sizes = [1, 128], strides = [1, 1]} : vector<1x384xf32> to vector<1x128xf32>
    %253 = vector.extract_strided_slice %251 {offsets = [0, 128], sizes = [1, 128], strides = [1, 1]} : vector<1x384xf32> to vector<1x128xf32>
    %254 = vector.extract_strided_slice %251 {offsets = [0, 256], sizes = [1, 128], strides = [1, 1]} : vector<1x384xf32> to vector<1x128xf32>
    %255 = vector.extract_strided_slice %243 {offsets = [0, 384], sizes = [1, 128], strides = [1, 1]} : vector<1x512xf32> to vector<1x128xf32>
    %256 = math.tanh %255 : vector<1x128xf32>
    %257 = arith.mulf %253, %219 : vector<1x128xf32>
    %258 = arith.mulf %252, %256 : vector<1x128xf32>
    %259 = arith.addf %257, %258 : vector<1x128xf32>
    %260 = math.tanh %259 : vector<1x128xf32>
    %261 = arith.mulf %254, %260 : vector<1x128xf32>
    %262 = vector.extract_strided_slice %245 {offsets = [0, 0], sizes = [1, 384], strides = [1, 1]} : vector<1x512xf32> to vector<1x384xf32>
    %263 = arith.negf %262 : vector<1x384xf32>
    %264 = math.exp %263 : vector<1x384xf32>
    %cst_58 = arith.constant 1.000000e+00 : f32
    %265 = vector.broadcast %cst_58 : f32 to vector<1x384xf32>
    %266 = arith.addf %265, %264 : vector<1x384xf32>
    %267 = arith.divf %265, %266 : vector<1x384xf32>
    %268 = vector.extract_strided_slice %267 {offsets = [0, 0], sizes = [1, 128], strides = [1, 1]} : vector<1x384xf32> to vector<1x128xf32>
    %269 = vector.extract_strided_slice %267 {offsets = [0, 128], sizes = [1, 128], strides = [1, 1]} : vector<1x384xf32> to vector<1x128xf32>
    %270 = vector.extract_strided_slice %267 {offsets = [0, 256], sizes = [1, 128], strides = [1, 1]} : vector<1x384xf32> to vector<1x128xf32>
    %271 = vector.extract_strided_slice %245 {offsets = [0, 384], sizes = [1, 128], strides = [1, 1]} : vector<1x512xf32> to vector<1x128xf32>
    %272 = math.tanh %271 : vector<1x128xf32>
    %273 = arith.mulf %269, %235 : vector<1x128xf32>
    %274 = arith.mulf %268, %272 : vector<1x128xf32>
    %275 = arith.addf %273, %274 : vector<1x128xf32>
    %276 = math.tanh %275 : vector<1x128xf32>
    %277 = arith.mulf %270, %276 : vector<1x128xf32>
    %278 = tpu.concatenate %261, %277 in 1 : vector<1x128xf32>, vector<1x128xf32> -> vector<1x256xf32>
    %279 = arith.truncf %278 : vector<1x256xf32> to vector<1x256xbf16>
    %cst_59 = arith.constant dense<0.000000e+00> : vector<1x1024xf32>
    %280 = tpu.matmul %279, %52, %cst_59 {dimension_numbers = #tpu.dot_dimension_numbers<[1], [0], [0], [1], [0, 0, 1, 1], [], []>} : vector<1x256xbf16>, vector<256x1024xbf16>, vector<1x1024xf32> -> vector<1x1024xf32>
    %281 = vector.extract_strided_slice %49 {offsets = [6, 0], sizes = [1, 512], strides = [1, 1]} : vector<8x512xf32> to vector<1x512xf32>
    %282 = vector.extract_strided_slice %280 {offsets = [0, 0], sizes = [1, 512], strides = [1, 1]} : vector<1x1024xf32> to vector<1x512xf32>
    %283 = arith.addf %281, %282 : vector<1x512xf32>
    %284 = vector.extract_strided_slice %280 {offsets = [0, 512], sizes = [1, 512], strides = [1, 1]} : vector<1x1024xf32> to vector<1x512xf32>
    %285 = arith.addf %53, %284 : vector<1x512xf32>
    %286 = vector.extract_strided_slice %283 {offsets = [0, 0], sizes = [1, 384], strides = [1, 1]} : vector<1x512xf32> to vector<1x384xf32>
    %287 = arith.negf %286 : vector<1x384xf32>
    %288 = math.exp %287 : vector<1x384xf32>
    %cst_60 = arith.constant 1.000000e+00 : f32
    %289 = vector.broadcast %cst_60 : f32 to vector<1x384xf32>
    %290 = arith.addf %289, %288 : vector<1x384xf32>
    %291 = arith.divf %289, %290 : vector<1x384xf32>
    %292 = vector.extract_strided_slice %291 {offsets = [0, 0], sizes = [1, 128], strides = [1, 1]} : vector<1x384xf32> to vector<1x128xf32>
    %293 = vector.extract_strided_slice %291 {offsets = [0, 128], sizes = [1, 128], strides = [1, 1]} : vector<1x384xf32> to vector<1x128xf32>
    %294 = vector.extract_strided_slice %291 {offsets = [0, 256], sizes = [1, 128], strides = [1, 1]} : vector<1x384xf32> to vector<1x128xf32>
    %295 = vector.extract_strided_slice %283 {offsets = [0, 384], sizes = [1, 128], strides = [1, 1]} : vector<1x512xf32> to vector<1x128xf32>
    %296 = math.tanh %295 : vector<1x128xf32>
    %297 = arith.mulf %293, %259 : vector<1x128xf32>
    %298 = arith.mulf %292, %296 : vector<1x128xf32>
    %299 = arith.addf %297, %298 : vector<1x128xf32>
    %300 = math.tanh %299 : vector<1x128xf32>
    %301 = arith.mulf %294, %300 : vector<1x128xf32>
    %302 = vector.extract_strided_slice %285 {offsets = [0, 0], sizes = [1, 384], strides = [1, 1]} : vector<1x512xf32> to vector<1x384xf32>
    %303 = arith.negf %302 : vector<1x384xf32>
    %304 = math.exp %303 : vector<1x384xf32>
    %cst_61 = arith.constant 1.000000e+00 : f32
    %305 = vector.broadcast %cst_61 : f32 to vector<1x384xf32>
    %306 = arith.addf %305, %304 : vector<1x384xf32>
    %307 = arith.divf %305, %306 : vector<1x384xf32>
    %308 = vector.extract_strided_slice %307 {offsets = [0, 0], sizes = [1, 128], strides = [1, 1]} : vector<1x384xf32> to vector<1x128xf32>
    %309 = vector.extract_strided_slice %307 {offsets = [0, 128], sizes = [1, 128], strides = [1, 1]} : vector<1x384xf32> to vector<1x128xf32>
    %310 = vector.extract_strided_slice %307 {offsets = [0, 256], sizes = [1, 128], strides = [1, 1]} : vector<1x384xf32> to vector<1x128xf32>
    %311 = vector.extract_strided_slice %285 {offsets = [0, 384], sizes = [1, 128], strides = [1, 1]} : vector<1x512xf32> to vector<1x128xf32>
    %312 = math.tanh %311 : vector<1x128xf32>
    %313 = arith.mulf %309, %275 : vector<1x128xf32>
    %314 = arith.mulf %308, %312 : vector<1x128xf32>
    %315 = arith.addf %313, %314 : vector<1x128xf32>
    %316 = math.tanh %315 : vector<1x128xf32>
    %317 = arith.mulf %310, %316 : vector<1x128xf32>
    %318 = tpu.concatenate %301, %317 in 1 : vector<1x128xf32>, vector<1x128xf32> -> vector<1x256xf32>
    %319 = arith.truncf %318 : vector<1x256xf32> to vector<1x256xbf16>
    %cst_62 = arith.constant dense<0.000000e+00> : vector<1x1024xf32>
    %320 = tpu.matmul %319, %52, %cst_62 {dimension_numbers = #tpu.dot_dimension_numbers<[1], [0], [0], [1], [0, 0, 1, 1], [], []>} : vector<1x256xbf16>, vector<256x1024xbf16>, vector<1x1024xf32> -> vector<1x1024xf32>
    %321 = vector.extract_strided_slice %49 {offsets = [7, 0], sizes = [1, 512], strides = [1, 1]} : vector<8x512xf32> to vector<1x512xf32>
    %322 = vector.extract_strided_slice %320 {offsets = [0, 0], sizes = [1, 512], strides = [1, 1]} : vector<1x1024xf32> to vector<1x512xf32>
    %323 = arith.addf %321, %322 : vector<1x512xf32>
    %324 = vector.extract_strided_slice %320 {offsets = [0, 512], sizes = [1, 512], strides = [1, 1]} : vector<1x1024xf32> to vector<1x512xf32>
    %325 = arith.addf %53, %324 : vector<1x512xf32>
    %326 = vector.extract_strided_slice %323 {offsets = [0, 0], sizes = [1, 384], strides = [1, 1]} : vector<1x512xf32> to vector<1x384xf32>
    %327 = arith.negf %326 : vector<1x384xf32>
    %328 = math.exp %327 : vector<1x384xf32>
    %cst_63 = arith.constant 1.000000e+00 : f32
    %329 = vector.broadcast %cst_63 : f32 to vector<1x384xf32>
    %330 = arith.addf %329, %328 : vector<1x384xf32>
    %331 = arith.divf %329, %330 : vector<1x384xf32>
    %332 = vector.extract_strided_slice %331 {offsets = [0, 0], sizes = [1, 128], strides = [1, 1]} : vector<1x384xf32> to vector<1x128xf32>
    %333 = vector.extract_strided_slice %331 {offsets = [0, 128], sizes = [1, 128], strides = [1, 1]} : vector<1x384xf32> to vector<1x128xf32>
    %334 = vector.extract_strided_slice %331 {offsets = [0, 256], sizes = [1, 128], strides = [1, 1]} : vector<1x384xf32> to vector<1x128xf32>
    %335 = vector.extract_strided_slice %323 {offsets = [0, 384], sizes = [1, 128], strides = [1, 1]} : vector<1x512xf32> to vector<1x128xf32>
    %336 = math.tanh %335 : vector<1x128xf32>
    %337 = arith.mulf %333, %299 : vector<1x128xf32>
    %338 = arith.mulf %332, %336 : vector<1x128xf32>
    %339 = arith.addf %337, %338 : vector<1x128xf32>
    %340 = math.tanh %339 : vector<1x128xf32>
    %341 = arith.mulf %334, %340 : vector<1x128xf32>
    %342 = vector.extract_strided_slice %325 {offsets = [0, 0], sizes = [1, 384], strides = [1, 1]} : vector<1x512xf32> to vector<1x384xf32>
    %343 = arith.negf %342 : vector<1x384xf32>
    %344 = math.exp %343 : vector<1x384xf32>
    %cst_64 = arith.constant 1.000000e+00 : f32
    %345 = vector.broadcast %cst_64 : f32 to vector<1x384xf32>
    %346 = arith.addf %345, %344 : vector<1x384xf32>
    %347 = arith.divf %345, %346 : vector<1x384xf32>
    %348 = vector.extract_strided_slice %347 {offsets = [0, 0], sizes = [1, 128], strides = [1, 1]} : vector<1x384xf32> to vector<1x128xf32>
    %349 = vector.extract_strided_slice %347 {offsets = [0, 128], sizes = [1, 128], strides = [1, 1]} : vector<1x384xf32> to vector<1x128xf32>
    %350 = vector.extract_strided_slice %347 {offsets = [0, 256], sizes = [1, 128], strides = [1, 1]} : vector<1x384xf32> to vector<1x128xf32>
    %351 = vector.extract_strided_slice %325 {offsets = [0, 384], sizes = [1, 128], strides = [1, 1]} : vector<1x512xf32> to vector<1x128xf32>
    %352 = math.tanh %351 : vector<1x128xf32>
    %353 = arith.mulf %349, %315 : vector<1x128xf32>
    %354 = arith.mulf %348, %352 : vector<1x128xf32>
    %355 = arith.addf %353, %354 : vector<1x128xf32>
    %356 = math.tanh %355 : vector<1x128xf32>
    %357 = arith.mulf %350, %356 : vector<1x128xf32>
    %358 = tpu.concatenate %341, %357 in 1 : vector<1x128xf32>, vector<1x128xf32> -> vector<1x256xf32>
    %359 = arith.truncf %358 : vector<1x256xf32> to vector<1x256xbf16>
    %cst_65 = arith.constant dense<0.000000e+00> : vector<1x512xf32>
    %360 = tpu.matmul %359, %51, %cst_65 {dimension_numbers = #tpu.dot_dimension_numbers<[1], [0], [0], [1], [0, 0, 1, 1], [], []>} : vector<1x256xbf16>, vector<256x512xbf16>, vector<1x512xf32> -> vector<1x512xf32>
    %361 = arith.addf %53, %360 : vector<1x512xf32>
    %362 = vector.extract_strided_slice %361 {offsets = [0, 0], sizes = [1, 384], strides = [1, 1]} : vector<1x512xf32> to vector<1x384xf32>
    %363 = arith.negf %362 : vector<1x384xf32>
    %364 = math.exp %363 : vector<1x384xf32>
    %cst_66 = arith.constant 1.000000e+00 : f32
    %365 = vector.broadcast %cst_66 : f32 to vector<1x384xf32>
    %366 = arith.addf %365, %364 : vector<1x384xf32>
    %367 = arith.divf %365, %366 : vector<1x384xf32>
    %368 = vector.extract_strided_slice %367 {offsets = [0, 0], sizes = [1, 128], strides = [1, 1]} : vector<1x384xf32> to vector<1x128xf32>
    %369 = vector.extract_strided_slice %367 {offsets = [0, 128], sizes = [1, 128], strides = [1, 1]} : vector<1x384xf32> to vector<1x128xf32>
    %370 = vector.extract_strided_slice %367 {offsets = [0, 256], sizes = [1, 128], strides = [1, 1]} : vector<1x384xf32> to vector<1x128xf32>
    %371 = vector.extract_strided_slice %361 {offsets = [0, 384], sizes = [1, 128], strides = [1, 1]} : vector<1x512xf32> to vector<1x128xf32>
    %372 = math.tanh %371 : vector<1x128xf32>
    %373 = arith.mulf %369, %355 : vector<1x128xf32>
    %374 = arith.mulf %368, %372 : vector<1x128xf32>
    %375 = arith.addf %373, %374 : vector<1x128xf32>
    %376 = math.tanh %375 : vector<1x128xf32>
    %377 = arith.mulf %370, %376 : vector<1x128xf32>
    %378 = tpu.concatenate %117, %157, %197, %237, %277, %317, %357, %377 in 0 : vector<1x128xf32>, vector<1x128xf32>, vector<1x128xf32>, vector<1x128xf32>, vector<1x128xf32>, vector<1x128xf32>, vector<1x128xf32>, vector<1x128xf32> -> vector<8x128xf32>
    %379 = arith.truncf %378 : vector<8x128xf32> to vector<8x128xbf16>
    %c0_67 = arith.constant 0 : index
    %c0_68 = arith.constant 0 : index
    %380 = vector.load %arg15[%c0_67, %c0_68] : memref<128x32xbf16, #tpu.memory_space<vmem>>, vector<128x32xbf16>
    %cst_69 = arith.constant dense<0.000000e+00> : vector<8x32xf32>
    %381 = tpu.matmul %379, %380, %cst_69 {dimension_numbers = #tpu.dot_dimension_numbers<[1], [0], [0], [1], [0, 0, 1, 1], [], []>} : vector<8x128xbf16>, vector<128x32xbf16>, vector<8x32xf32> -> vector<8x32xf32>
    %c0_70 = arith.constant 0 : index
    %c0_71 = arith.constant 0 : index
    %382 = vector.load %arg16[%c0_70, %c0_71] : memref<1x32xf32, #tpu.memory_space<vmem>>, vector<1x32xf32>
    %383 = vector.broadcast %382 : vector<1x32xf32> to vector<8x32xf32>
    %384 = arith.addf %381, %383 : vector<8x32xf32>
    %385 = arith.addf %384, %37 : vector<8x32xf32>
    %386 = arith.negf %385 : vector<8x32xf32>
    %387 = math.exp %386 : vector<8x32xf32>
    %cst_72 = arith.constant 1.000000e+00 : f32
    %388 = vector.broadcast %cst_72 : f32 to vector<8x32xf32>
    %389 = arith.addf %388, %387 : vector<8x32xf32>
    %390 = arith.divf %388, %389 : vector<8x32xf32>
    %c0_73 = arith.constant 0 : index
    %c0_74 = arith.constant 0 : index
    %391 = vector.load %arg32[%c0_73, %c0_74] : memref<2x128xf32, #tpu.memory_space<vmem>>, vector<1x128xf32>
    tpu.vector_store %arg32[%c0_73, %c0_74], %341 {strides = array<i32>} : memref<2x128xf32, #tpu.memory_space<vmem>>, vector<1x128xf32>,
    %c1_75 = arith.constant 1 : index
    %c0_76 = arith.constant 0 : index
    %392 = vector.load %arg32[%c1_75, %c0_76] : memref<2x128xf32, #tpu.memory_space<vmem>>, vector<1x128xf32>
    tpu.vector_store %arg32[%c1_75, %c0_76], %377 {strides = array<i32>} : memref<2x128xf32, #tpu.memory_space<vmem>>, vector<1x128xf32>,
    %c0_77 = arith.constant 0 : index
    %c0_78 = arith.constant 0 : index
    %393 = vector.load %arg33[%c0_77, %c0_78] : memref<2x128xf32, #tpu.memory_space<vmem>>, vector<1x128xf32>
    tpu.vector_store %arg33[%c0_77, %c0_78], %339 {strides = array<i32>} : memref<2x128xf32, #tpu.memory_space<vmem>>, vector<1x128xf32>,
    %c1_79 = arith.constant 1 : index
    %c0_80 = arith.constant 0 : index
    %394 = vector.load %arg33[%c1_79, %c0_80] : memref<2x128xf32, #tpu.memory_space<vmem>>, vector<1x128xf32>
    tpu.vector_store %arg33[%c1_79, %c0_80], %375 {strides = array<i32>} : memref<2x128xf32, #tpu.memory_space<vmem>>, vector<1x128xf32>,
    %395 = arith.truncf %390 : vector<8x32xf32> to vector<8x32xbf16>
    %c0_81 = arith.constant 0 : index
    %c0_82 = arith.constant 0 : index
    %396 = vector.load %arg19[%c0_81, %c0_82] : memref<32x64xbf16, #tpu.memory_space<vmem>>, vector<32x64xbf16>
    %cst_83 = arith.constant dense<0.000000e+00> : vector<8x64xf32>
    %397 = tpu.matmul %395, %396, %cst_83 {dimension_numbers = #tpu.dot_dimension_numbers<[1], [0], [0], [1], [0, 0, 1, 1], [], []>} : vector<8x32xbf16>, vector<32x64xbf16>, vector<8x64xf32> -> vector<8x64xf32>
    %c0_84 = arith.constant 0 : index
    %c0_85 = arith.constant 0 : index
    %398 = vector.load %arg20[%c0_84, %c0_85] : memref<1x64xf32, #tpu.memory_space<vmem>>, vector<1x64xf32>
    %399 = vector.broadcast %398 : vector<1x64xf32> to vector<8x64xf32>
    %400 = arith.addf %397, %399 : vector<8x64xf32>
    %401 = arith.truncf %400 : vector<8x64xf32> to vector<8x64xbf16>
    %c0_86 = arith.constant 0 : index
    %c0_87 = arith.constant 0 : index
    %402 = vector.load %arg21[%c0_86, %c0_87] : memref<64x512xbf16, #tpu.memory_space<vmem>>, vector<64x512xbf16>
    %cst_88 = arith.constant dense<0.000000e+00> : vector<8x512xf32>
    %403 = tpu.matmul %401, %402, %cst_88 {dimension_numbers = #tpu.dot_dimension_numbers<[1], [0], [0], [1], [0, 0, 1, 1], [], []>} : vector<8x64xbf16>, vector<64x512xbf16>, vector<8x512xf32> -> vector<8x512xf32>
    %c0_89 = arith.constant 0 : index
    %c0_90 = arith.constant 0 : index
    %404 = vector.load %arg22[%c0_89, %c0_90] : memref<1x512xf32, #tpu.memory_space<vmem>>, vector<1x512xf32>
    %405 = vector.broadcast %404 : vector<1x512xf32> to vector<8x512xf32>
    %406 = arith.addf %403, %405 : vector<8x512xf32>
    %c0_91 = arith.constant 0 : index
    %c0_92 = arith.constant 0 : index
    %407 = vector.load %arg23[%c0_91, %c0_92] : memref<128x512xbf16, #tpu.memory_space<vmem>>, vector<128x512xbf16>
    %c0_93 = arith.constant 0 : index
    %c0_94 = arith.constant 0 : index
    %408 = vector.load %arg24[%c0_93, %c0_94] : memref<256x512xbf16, #tpu.memory_space<vmem>>, vector<256x512xbf16>
    %c0_95 = arith.constant 0 : index
    %c0_96 = arith.constant 0 : index
    %409 = vector.load %arg25[%c0_95, %c0_96] : memref<256x1024xbf16, #tpu.memory_space<vmem>>, vector<256x1024xbf16>
    %c0_97 = arith.constant 0 : index
    %c0_98 = arith.constant 0 : index
    %410 = vector.load %arg26[%c0_97, %c0_98] : memref<1x512xf32, #tpu.memory_space<vmem>>, vector<1x512xf32>
    %c0_99 = arith.constant 0 : index
    %c0_100 = arith.constant 0 : index
    %411 = vector.load %arg29[%c0_99, %c0_100] : memref<2x128xf32, #tpu.memory_space<vmem>>, vector<1x128xf32>
    %c0_101 = arith.constant 0 : index
    %c0_102 = arith.constant 0 : index
    %412 = vector.load %arg30[%c0_101, %c0_102] : memref<2x128xf32, #tpu.memory_space<vmem>>, vector<1x128xf32>
    %c1_103 = arith.constant 1 : index
    %c0_104 = arith.constant 0 : index
    %413 = vector.load %arg29[%c1_103, %c0_104] : memref<2x128xf32, #tpu.memory_space<vmem>>, vector<1x128xf32>
    %c1_105 = arith.constant 1 : index
    %c0_106 = arith.constant 0 : index
    %414 = vector.load %arg30[%c1_105, %c0_106] : memref<2x128xf32, #tpu.memory_space<vmem>>, vector<1x128xf32>
    %415 = vector.extract_strided_slice %406 {offsets = [0, 0], sizes = [1, 512], strides = [1, 1]} : vector<8x512xf32> to vector<1x512xf32>
    %416 = arith.truncf %411 : vector<1x128xf32> to vector<1x128xbf16>
    %cst_107 = arith.constant dense<0.000000e+00> : vector<1x512xf32>
    %417 = tpu.matmul %416, %407, %cst_107 {dimension_numbers = #tpu.dot_dimension_numbers<[1], [0], [0], [1], [0, 0, 1, 1], [], []>} : vector<1x128xbf16>, vector<128x512xbf16>, vector<1x512xf32> -> vector<1x512xf32>
    %418 = arith.addf %415, %417 : vector<1x512xf32>
    %419 = vector.extract_strided_slice %418 {offsets = [0, 0], sizes = [1, 384], strides = [1, 1]} : vector<1x512xf32> to vector<1x384xf32>
    %420 = arith.negf %419 : vector<1x384xf32>
    %421 = math.exp %420 : vector<1x384xf32>
    %cst_108 = arith.constant 1.000000e+00 : f32
    %422 = vector.broadcast %cst_108 : f32 to vector<1x384xf32>
    %423 = arith.addf %422, %421 : vector<1x384xf32>
    %424 = arith.divf %422, %423 : vector<1x384xf32>
    %425 = vector.extract_strided_slice %424 {offsets = [0, 0], sizes = [1, 128], strides = [1, 1]} : vector<1x384xf32> to vector<1x128xf32>
    %426 = vector.extract_strided_slice %424 {offsets = [0, 128], sizes = [1, 128], strides = [1, 1]} : vector<1x384xf32> to vector<1x128xf32>
    %427 = vector.extract_strided_slice %424 {offsets = [0, 256], sizes = [1, 128], strides = [1, 1]} : vector<1x384xf32> to vector<1x128xf32>
    %428 = vector.extract_strided_slice %418 {offsets = [0, 384], sizes = [1, 128], strides = [1, 1]} : vector<1x512xf32> to vector<1x128xf32>
    %429 = math.tanh %428 : vector<1x128xf32>
    %430 = arith.mulf %426, %412 : vector<1x128xf32>
    %431 = arith.mulf %425, %429 : vector<1x128xf32>
    %432 = arith.addf %430, %431 : vector<1x128xf32>
    %433 = math.tanh %432 : vector<1x128xf32>
    %434 = arith.mulf %427, %433 : vector<1x128xf32>
    %435 = tpu.concatenate %434, %413 in 1 : vector<1x128xf32>, vector<1x128xf32> -> vector<1x256xf32>
    %436 = arith.truncf %435 : vector<1x256xf32> to vector<1x256xbf16>
    %cst_109 = arith.constant dense<0.000000e+00> : vector<1x1024xf32>
    %437 = tpu.matmul %436, %409, %cst_109 {dimension_numbers = #tpu.dot_dimension_numbers<[1], [0], [0], [1], [0, 0, 1, 1], [], []>} : vector<1x256xbf16>, vector<256x1024xbf16>, vector<1x1024xf32> -> vector<1x1024xf32>
    %438 = vector.extract_strided_slice %406 {offsets = [1, 0], sizes = [1, 512], strides = [1, 1]} : vector<8x512xf32> to vector<1x512xf32>
    %439 = vector.extract_strided_slice %437 {offsets = [0, 0], sizes = [1, 512], strides = [1, 1]} : vector<1x1024xf32> to vector<1x512xf32>
    %440 = arith.addf %438, %439 : vector<1x512xf32>
    %441 = vector.extract_strided_slice %437 {offsets = [0, 512], sizes = [1, 512], strides = [1, 1]} : vector<1x1024xf32> to vector<1x512xf32>
    %442 = arith.addf %410, %441 : vector<1x512xf32>
    %443 = vector.extract_strided_slice %440 {offsets = [0, 0], sizes = [1, 384], strides = [1, 1]} : vector<1x512xf32> to vector<1x384xf32>
    %444 = arith.negf %443 : vector<1x384xf32>
    %445 = math.exp %444 : vector<1x384xf32>
    %cst_110 = arith.constant 1.000000e+00 : f32
    %446 = vector.broadcast %cst_110 : f32 to vector<1x384xf32>
    %447 = arith.addf %446, %445 : vector<1x384xf32>
    %448 = arith.divf %446, %447 : vector<1x384xf32>
    %449 = vector.extract_strided_slice %448 {offsets = [0, 0], sizes = [1, 128], strides = [1, 1]} : vector<1x384xf32> to vector<1x128xf32>
    %450 = vector.extract_strided_slice %448 {offsets = [0, 128], sizes = [1, 128], strides = [1, 1]} : vector<1x384xf32> to vector<1x128xf32>
    %451 = vector.extract_strided_slice %448 {offsets = [0, 256], sizes = [1, 128], strides = [1, 1]} : vector<1x384xf32> to vector<1x128xf32>
    %452 = vector.extract_strided_slice %440 {offsets = [0, 384], sizes = [1, 128], strides = [1, 1]} : vector<1x512xf32> to vector<1x128xf32>
    %453 = math.tanh %452 : vector<1x128xf32>
    %454 = arith.mulf %450, %432 : vector<1x128xf32>
    %455 = arith.mulf %449, %453 : vector<1x128xf32>
    %456 = arith.addf %454, %455 : vector<1x128xf32>
    %457 = math.tanh %456 : vector<1x128xf32>
    %458 = arith.mulf %451, %457 : vector<1x128xf32>
    %459 = vector.extract_strided_slice %442 {offsets = [0, 0], sizes = [1, 384], strides = [1, 1]} : vector<1x512xf32> to vector<1x384xf32>
    %460 = arith.negf %459 : vector<1x384xf32>
    %461 = math.exp %460 : vector<1x384xf32>
    %cst_111 = arith.constant 1.000000e+00 : f32
    %462 = vector.broadcast %cst_111 : f32 to vector<1x384xf32>
    %463 = arith.addf %462, %461 : vector<1x384xf32>
    %464 = arith.divf %462, %463 : vector<1x384xf32>
    %465 = vector.extract_strided_slice %464 {offsets = [0, 0], sizes = [1, 128], strides = [1, 1]} : vector<1x384xf32> to vector<1x128xf32>
    %466 = vector.extract_strided_slice %464 {offsets = [0, 128], sizes = [1, 128], strides = [1, 1]} : vector<1x384xf32> to vector<1x128xf32>
    %467 = vector.extract_strided_slice %464 {offsets = [0, 256], sizes = [1, 128], strides = [1, 1]} : vector<1x384xf32> to vector<1x128xf32>
    %468 = vector.extract_strided_slice %442 {offsets = [0, 384], sizes = [1, 128], strides = [1, 1]} : vector<1x512xf32> to vector<1x128xf32>
    %469 = math.tanh %468 : vector<1x128xf32>
    %470 = arith.mulf %466, %414 : vector<1x128xf32>
    %471 = arith.mulf %465, %469 : vector<1x128xf32>
    %472 = arith.addf %470, %471 : vector<1x128xf32>
    %473 = math.tanh %472 : vector<1x128xf32>
    %474 = arith.mulf %467, %473 : vector<1x128xf32>
    %475 = tpu.concatenate %458, %474 in 1 : vector<1x128xf32>, vector<1x128xf32> -> vector<1x256xf32>
    %476 = arith.truncf %475 : vector<1x256xf32> to vector<1x256xbf16>
    %cst_112 = arith.constant dense<0.000000e+00> : vector<1x1024xf32>
    %477 = tpu.matmul %476, %409, %cst_112 {dimension_numbers = #tpu.dot_dimension_numbers<[1], [0], [0], [1], [0, 0, 1, 1], [], []>} : vector<1x256xbf16>, vector<256x1024xbf16>, vector<1x1024xf32> -> vector<1x1024xf32>
    %478 = vector.extract_strided_slice %406 {offsets = [2, 0], sizes = [1, 512], strides = [1, 1]} : vector<8x512xf32> to vector<1x512xf32>
    %479 = vector.extract_strided_slice %477 {offsets = [0, 0], sizes = [1, 512], strides = [1, 1]} : vector<1x1024xf32> to vector<1x512xf32>
    %480 = arith.addf %478, %479 : vector<1x512xf32>
    %481 = vector.extract_strided_slice %477 {offsets = [0, 512], sizes = [1, 512], strides = [1, 1]} : vector<1x1024xf32> to vector<1x512xf32>
    %482 = arith.addf %410, %481 : vector<1x512xf32>
    %483 = vector.extract_strided_slice %480 {offsets = [0, 0], sizes = [1, 384], strides = [1, 1]} : vector<1x512xf32> to vector<1x384xf32>
    %484 = arith.negf %483 : vector<1x384xf32>
    %485 = math.exp %484 : vector<1x384xf32>
    %cst_113 = arith.constant 1.000000e+00 : f32
    %486 = vector.broadcast %cst_113 : f32 to vector<1x384xf32>
    %487 = arith.addf %486, %485 : vector<1x384xf32>
    %488 = arith.divf %486, %487 : vector<1x384xf32>
    %489 = vector.extract_strided_slice %488 {offsets = [0, 0], sizes = [1, 128], strides = [1, 1]} : vector<1x384xf32> to vector<1x128xf32>
    %490 = vector.extract_strided_slice %488 {offsets = [0, 128], sizes = [1, 128], strides = [1, 1]} : vector<1x384xf32> to vector<1x128xf32>
    %491 = vector.extract_strided_slice %488 {offsets = [0, 256], sizes = [1, 128], strides = [1, 1]} : vector<1x384xf32> to vector<1x128xf32>
    %492 = vector.extract_strided_slice %480 {offsets = [0, 384], sizes = [1, 128], strides = [1, 1]} : vector<1x512xf32> to vector<1x128xf32>
    %493 = math.tanh %492 : vector<1x128xf32>
    %494 = arith.mulf %490, %456 : vector<1x128xf32>
    %495 = arith.mulf %489, %493 : vector<1x128xf32>
    %496 = arith.addf %494, %495 : vector<1x128xf32>
    %497 = math.tanh %496 : vector<1x128xf32>
    %498 = arith.mulf %491, %497 : vector<1x128xf32>
    %499 = vector.extract_strided_slice %482 {offsets = [0, 0], sizes = [1, 384], strides = [1, 1]} : vector<1x512xf32> to vector<1x384xf32>
    %500 = arith.negf %499 : vector<1x384xf32>
    %501 = math.exp %500 : vector<1x384xf32>
    %cst_114 = arith.constant 1.000000e+00 : f32
    %502 = vector.broadcast %cst_114 : f32 to vector<1x384xf32>
    %503 = arith.addf %502, %501 : vector<1x384xf32>
    %504 = arith.divf %502, %503 : vector<1x384xf32>
    %505 = vector.extract_strided_slice %504 {offsets = [0, 0], sizes = [1, 128], strides = [1, 1]} : vector<1x384xf32> to vector<1x128xf32>
    %506 = vector.extract_strided_slice %504 {offsets = [0, 128], sizes = [1, 128], strides = [1, 1]} : vector<1x384xf32> to vector<1x128xf32>
    %507 = vector.extract_strided_slice %504 {offsets = [0, 256], sizes = [1, 128], strides = [1, 1]} : vector<1x384xf32> to vector<1x128xf32>
    %508 = vector.extract_strided_slice %482 {offsets = [0, 384], sizes = [1, 128], strides = [1, 1]} : vector<1x512xf32> to vector<1x128xf32>
    %509 = math.tanh %508 : vector<1x128xf32>
    %510 = arith.mulf %506, %472 : vector<1x128xf32>
    %511 = arith.mulf %505, %509 : vector<1x128xf32>
    %512 = arith.addf %510, %511 : vector<1x128xf32>
    %513 = math.tanh %512 : vector<1x128xf32>
    %514 = arith.mulf %507, %513 : vector<1x128xf32>
    %515 = tpu.concatenate %498, %514 in 1 : vector<1x128xf32>, vector<1x128xf32> -> vector<1x256xf32>
    %516 = arith.truncf %515 : vector<1x256xf32> to vector<1x256xbf16>
    %cst_115 = arith.constant dense<0.000000e+00> : vector<1x1024xf32>
    %517 = tpu.matmul %516, %409, %cst_115 {dimension_numbers = #tpu.dot_dimension_numbers<[1], [0], [0], [1], [0, 0, 1, 1], [], []>} : vector<1x256xbf16>, vector<256x1024xbf16>, vector<1x1024xf32> -> vector<1x1024xf32>
    %518 = vector.extract_strided_slice %406 {offsets = [3, 0], sizes = [1, 512], strides = [1, 1]} : vector<8x512xf32> to vector<1x512xf32>
    %519 = vector.extract_strided_slice %517 {offsets = [0, 0], sizes = [1, 512], strides = [1, 1]} : vector<1x1024xf32> to vector<1x512xf32>
    %520 = arith.addf %518, %519 : vector<1x512xf32>
    %521 = vector.extract_strided_slice %517 {offsets = [0, 512], sizes = [1, 512], strides = [1, 1]} : vector<1x1024xf32> to vector<1x512xf32>
    %522 = arith.addf %410, %521 : vector<1x512xf32>
    %523 = vector.extract_strided_slice %520 {offsets = [0, 0], sizes = [1, 384], strides = [1, 1]} : vector<1x512xf32> to vector<1x384xf32>
    %524 = arith.negf %523 : vector<1x384xf32>
    %525 = math.exp %524 : vector<1x384xf32>
    %cst_116 = arith.constant 1.000000e+00 : f32
    %526 = vector.broadcast %cst_116 : f32 to vector<1x384xf32>
    %527 = arith.addf %526, %525 : vector<1x384xf32>
    %528 = arith.divf %526, %527 : vector<1x384xf32>
    %529 = vector.extract_strided_slice %528 {offsets = [0, 0], sizes = [1, 128], strides = [1, 1]} : vector<1x384xf32> to vector<1x128xf32>
    %530 = vector.extract_strided_slice %528 {offsets = [0, 128], sizes = [1, 128], strides = [1, 1]} : vector<1x384xf32> to vector<1x128xf32>
    %531 = vector.extract_strided_slice %528 {offsets = [0, 256], sizes = [1, 128], strides = [1, 1]} : vector<1x384xf32> to vector<1x128xf32>
    %532 = vector.extract_strided_slice %520 {offsets = [0, 384], sizes = [1, 128], strides = [1, 1]} : vector<1x512xf32> to vector<1x128xf32>
    %533 = math.tanh %532 : vector<1x128xf32>
    %534 = arith.mulf %530, %496 : vector<1x128xf32>
    %535 = arith.mulf %529, %533 : vector<1x128xf32>
    %536 = arith.addf %534, %535 : vector<1x128xf32>
    %537 = math.tanh %536 : vector<1x128xf32>
    %538 = arith.mulf %531, %537 : vector<1x128xf32>
    %539 = vector.extract_strided_slice %522 {offsets = [0, 0], sizes = [1, 384], strides = [1, 1]} : vector<1x512xf32> to vector<1x384xf32>
    %540 = arith.negf %539 : vector<1x384xf32>
    %541 = math.exp %540 : vector<1x384xf32>
    %cst_117 = arith.constant 1.000000e+00 : f32
    %542 = vector.broadcast %cst_117 : f32 to vector<1x384xf32>
    %543 = arith.addf %542, %541 : vector<1x384xf32>
    %544 = arith.divf %542, %543 : vector<1x384xf32>
    %545 = vector.extract_strided_slice %544 {offsets = [0, 0], sizes = [1, 128], strides = [1, 1]} : vector<1x384xf32> to vector<1x128xf32>
    %546 = vector.extract_strided_slice %544 {offsets = [0, 128], sizes = [1, 128], strides = [1, 1]} : vector<1x384xf32> to vector<1x128xf32>
    %547 = vector.extract_strided_slice %544 {offsets = [0, 256], sizes = [1, 128], strides = [1, 1]} : vector<1x384xf32> to vector<1x128xf32>
    %548 = vector.extract_strided_slice %522 {offsets = [0, 384], sizes = [1, 128], strides = [1, 1]} : vector<1x512xf32> to vector<1x128xf32>
    %549 = math.tanh %548 : vector<1x128xf32>
    %550 = arith.mulf %546, %512 : vector<1x128xf32>
    %551 = arith.mulf %545, %549 : vector<1x128xf32>
    %552 = arith.addf %550, %551 : vector<1x128xf32>
    %553 = math.tanh %552 : vector<1x128xf32>
    %554 = arith.mulf %547, %553 : vector<1x128xf32>
    %555 = tpu.concatenate %538, %554 in 1 : vector<1x128xf32>, vector<1x128xf32> -> vector<1x256xf32>
    %556 = arith.truncf %555 : vector<1x256xf32> to vector<1x256xbf16>
    %cst_118 = arith.constant dense<0.000000e+00> : vector<1x1024xf32>
    %557 = tpu.matmul %556, %409, %cst_118 {dimension_numbers = #tpu.dot_dimension_numbers<[1], [0], [0], [1], [0, 0, 1, 1], [], []>} : vector<1x256xbf16>, vector<256x1024xbf16>, vector<1x1024xf32> -> vector<1x1024xf32>
    %558 = vector.extract_strided_slice %406 {offsets = [4, 0], sizes = [1, 512], strides = [1, 1]} : vector<8x512xf32> to vector<1x512xf32>
    %559 = vector.extract_strided_slice %557 {offsets = [0, 0], sizes = [1, 512], strides = [1, 1]} : vector<1x1024xf32> to vector<1x512xf32>
    %560 = arith.addf %558, %559 : vector<1x512xf32>
    %561 = vector.extract_strided_slice %557 {offsets = [0, 512], sizes = [1, 512], strides = [1, 1]} : vector<1x1024xf32> to vector<1x512xf32>
    %562 = arith.addf %410, %561 : vector<1x512xf32>
    %563 = vector.extract_strided_slice %560 {offsets = [0, 0], sizes = [1, 384], strides = [1, 1]} : vector<1x512xf32> to vector<1x384xf32>
    %564 = arith.negf %563 : vector<1x384xf32>
    %565 = math.exp %564 : vector<1x384xf32>
    %cst_119 = arith.constant 1.000000e+00 : f32
    %566 = vector.broadcast %cst_119 : f32 to vector<1x384xf32>
    %567 = arith.addf %566, %565 : vector<1x384xf32>
    %568 = arith.divf %566, %567 : vector<1x384xf32>
    %569 = vector.extract_strided_slice %568 {offsets = [0, 0], sizes = [1, 128], strides = [1, 1]} : vector<1x384xf32> to vector<1x128xf32>
    %570 = vector.extract_strided_slice %568 {offsets = [0, 128], sizes = [1, 128], strides = [1, 1]} : vector<1x384xf32> to vector<1x128xf32>
    %571 = vector.extract_strided_slice %568 {offsets = [0, 256], sizes = [1, 128], strides = [1, 1]} : vector<1x384xf32> to vector<1x128xf32>
    %572 = vector.extract_strided_slice %560 {offsets = [0, 384], sizes = [1, 128], strides = [1, 1]} : vector<1x512xf32> to vector<1x128xf32>
    %573 = math.tanh %572 : vector<1x128xf32>
    %574 = arith.mulf %570, %536 : vector<1x128xf32>
    %575 = arith.mulf %569, %573 : vector<1x128xf32>
    %576 = arith.addf %574, %575 : vector<1x128xf32>
    %577 = math.tanh %576 : vector<1x128xf32>
    %578 = arith.mulf %571, %577 : vector<1x128xf32>
    %579 = vector.extract_strided_slice %562 {offsets = [0, 0], sizes = [1, 384], strides = [1, 1]} : vector<1x512xf32> to vector<1x384xf32>
    %580 = arith.negf %579 : vector<1x384xf32>
    %581 = math.exp %580 : vector<1x384xf32>
    %cst_120 = arith.constant 1.000000e+00 : f32
    %582 = vector.broadcast %cst_120 : f32 to vector<1x384xf32>
    %583 = arith.addf %582, %581 : vector<1x384xf32>
    %584 = arith.divf %582, %583 : vector<1x384xf32>
    %585 = vector.extract_strided_slice %584 {offsets = [0, 0], sizes = [1, 128], strides = [1, 1]} : vector<1x384xf32> to vector<1x128xf32>
    %586 = vector.extract_strided_slice %584 {offsets = [0, 128], sizes = [1, 128], strides = [1, 1]} : vector<1x384xf32> to vector<1x128xf32>
    %587 = vector.extract_strided_slice %584 {offsets = [0, 256], sizes = [1, 128], strides = [1, 1]} : vector<1x384xf32> to vector<1x128xf32>
    %588 = vector.extract_strided_slice %562 {offsets = [0, 384], sizes = [1, 128], strides = [1, 1]} : vector<1x512xf32> to vector<1x128xf32>
    %589 = math.tanh %588 : vector<1x128xf32>
    %590 = arith.mulf %586, %552 : vector<1x128xf32>
    %591 = arith.mulf %585, %589 : vector<1x128xf32>
    %592 = arith.addf %590, %591 : vector<1x128xf32>
    %593 = math.tanh %592 : vector<1x128xf32>
    %594 = arith.mulf %587, %593 : vector<1x128xf32>
    %595 = tpu.concatenate %578, %594 in 1 : vector<1x128xf32>, vector<1x128xf32> -> vector<1x256xf32>
    %596 = arith.truncf %595 : vector<1x256xf32> to vector<1x256xbf16>
    %cst_121 = arith.constant dense<0.000000e+00> : vector<1x1024xf32>
    %597 = tpu.matmul %596, %409, %cst_121 {dimension_numbers = #tpu.dot_dimension_numbers<[1], [0], [0], [1], [0, 0, 1, 1], [], []>} : vector<1x256xbf16>, vector<256x1024xbf16>, vector<1x1024xf32> -> vector<1x1024xf32>
    %598 = vector.extract_strided_slice %406 {offsets = [5, 0], sizes = [1, 512], strides = [1, 1]} : vector<8x512xf32> to vector<1x512xf32>
    %599 = vector.extract_strided_slice %597 {offsets = [0, 0], sizes = [1, 512], strides = [1, 1]} : vector<1x1024xf32> to vector<1x512xf32>
    %600 = arith.addf %598, %599 : vector<1x512xf32>
    %601 = vector.extract_strided_slice %597 {offsets = [0, 512], sizes = [1, 512], strides = [1, 1]} : vector<1x1024xf32> to vector<1x512xf32>
    %602 = arith.addf %410, %601 : vector<1x512xf32>
    %603 = vector.extract_strided_slice %600 {offsets = [0, 0], sizes = [1, 384], strides = [1, 1]} : vector<1x512xf32> to vector<1x384xf32>
    %604 = arith.negf %603 : vector<1x384xf32>
    %605 = math.exp %604 : vector<1x384xf32>
    %cst_122 = arith.constant 1.000000e+00 : f32
    %606 = vector.broadcast %cst_122 : f32 to vector<1x384xf32>
    %607 = arith.addf %606, %605 : vector<1x384xf32>
    %608 = arith.divf %606, %607 : vector<1x384xf32>
    %609 = vector.extract_strided_slice %608 {offsets = [0, 0], sizes = [1, 128], strides = [1, 1]} : vector<1x384xf32> to vector<1x128xf32>
    %610 = vector.extract_strided_slice %608 {offsets = [0, 128], sizes = [1, 128], strides = [1, 1]} : vector<1x384xf32> to vector<1x128xf32>
    %611 = vector.extract_strided_slice %608 {offsets = [0, 256], sizes = [1, 128], strides = [1, 1]} : vector<1x384xf32> to vector<1x128xf32>
    %612 = vector.extract_strided_slice %600 {offsets = [0, 384], sizes = [1, 128], strides = [1, 1]} : vector<1x512xf32> to vector<1x128xf32>
    %613 = math.tanh %612 : vector<1x128xf32>
    %614 = arith.mulf %610, %576 : vector<1x128xf32>
    %615 = arith.mulf %609, %613 : vector<1x128xf32>
    %616 = arith.addf %614, %615 : vector<1x128xf32>
    %617 = math.tanh %616 : vector<1x128xf32>
    %618 = arith.mulf %611, %617 : vector<1x128xf32>
    %619 = vector.extract_strided_slice %602 {offsets = [0, 0], sizes = [1, 384], strides = [1, 1]} : vector<1x512xf32> to vector<1x384xf32>
    %620 = arith.negf %619 : vector<1x384xf32>
    %621 = math.exp %620 : vector<1x384xf32>
    %cst_123 = arith.constant 1.000000e+00 : f32
    %622 = vector.broadcast %cst_123 : f32 to vector<1x384xf32>
    %623 = arith.addf %622, %621 : vector<1x384xf32>
    %624 = arith.divf %622, %623 : vector<1x384xf32>
    %625 = vector.extract_strided_slice %624 {offsets = [0, 0], sizes = [1, 128], strides = [1, 1]} : vector<1x384xf32> to vector<1x128xf32>
    %626 = vector.extract_strided_slice %624 {offsets = [0, 128], sizes = [1, 128], strides = [1, 1]} : vector<1x384xf32> to vector<1x128xf32>
    %627 = vector.extract_strided_slice %624 {offsets = [0, 256], sizes = [1, 128], strides = [1, 1]} : vector<1x384xf32> to vector<1x128xf32>
    %628 = vector.extract_strided_slice %602 {offsets = [0, 384], sizes = [1, 128], strides = [1, 1]} : vector<1x512xf32> to vector<1x128xf32>
    %629 = math.tanh %628 : vector<1x128xf32>
    %630 = arith.mulf %626, %592 : vector<1x128xf32>
    %631 = arith.mulf %625, %629 : vector<1x128xf32>
    %632 = arith.addf %630, %631 : vector<1x128xf32>
    %633 = math.tanh %632 : vector<1x128xf32>
    %634 = arith.mulf %627, %633 : vector<1x128xf32>
    %635 = tpu.concatenate %618, %634 in 1 : vector<1x128xf32>, vector<1x128xf32> -> vector<1x256xf32>
    %636 = arith.truncf %635 : vector<1x256xf32> to vector<1x256xbf16>
    %cst_124 = arith.constant dense<0.000000e+00> : vector<1x1024xf32>
    %637 = tpu.matmul %636, %409, %cst_124 {dimension_numbers = #tpu.dot_dimension_numbers<[1], [0], [0], [1], [0, 0, 1, 1], [], []>} : vector<1x256xbf16>, vector<256x1024xbf16>, vector<1x1024xf32> -> vector<1x1024xf32>
    %638 = vector.extract_strided_slice %406 {offsets = [6, 0], sizes = [1, 512], strides = [1, 1]} : vector<8x512xf32> to vector<1x512xf32>
    %639 = vector.extract_strided_slice %637 {offsets = [0, 0], sizes = [1, 512], strides = [1, 1]} : vector<1x1024xf32> to vector<1x512xf32>
    %640 = arith.addf %638, %639 : vector<1x512xf32>
    %641 = vector.extract_strided_slice %637 {offsets = [0, 512], sizes = [1, 512], strides = [1, 1]} : vector<1x1024xf32> to vector<1x512xf32>
    %642 = arith.addf %410, %641 : vector<1x512xf32>
    %643 = vector.extract_strided_slice %640 {offsets = [0, 0], sizes = [1, 384], strides = [1, 1]} : vector<1x512xf32> to vector<1x384xf32>
    %644 = arith.negf %643 : vector<1x384xf32>
    %645 = math.exp %644 : vector<1x384xf32>
    %cst_125 = arith.constant 1.000000e+00 : f32
    %646 = vector.broadcast %cst_125 : f32 to vector<1x384xf32>
    %647 = arith.addf %646, %645 : vector<1x384xf32>
    %648 = arith.divf %646, %647 : vector<1x384xf32>
    %649 = vector.extract_strided_slice %648 {offsets = [0, 0], sizes = [1, 128], strides = [1, 1]} : vector<1x384xf32> to vector<1x128xf32>
    %650 = vector.extract_strided_slice %648 {offsets = [0, 128], sizes = [1, 128], strides = [1, 1]} : vector<1x384xf32> to vector<1x128xf32>
    %651 = vector.extract_strided_slice %648 {offsets = [0, 256], sizes = [1, 128], strides = [1, 1]} : vector<1x384xf32> to vector<1x128xf32>
    %652 = vector.extract_strided_slice %640 {offsets = [0, 384], sizes = [1, 128], strides = [1, 1]} : vector<1x512xf32> to vector<1x128xf32>
    %653 = math.tanh %652 : vector<1x128xf32>
    %654 = arith.mulf %650, %616 : vector<1x128xf32>
    %655 = arith.mulf %649, %653 : vector<1x128xf32>
    %656 = arith.addf %654, %655 : vector<1x128xf32>
    %657 = math.tanh %656 : vector<1x128xf32>
    %658 = arith.mulf %651, %657 : vector<1x128xf32>
    %659 = vector.extract_strided_slice %642 {offsets = [0, 0], sizes = [1, 384], strides = [1, 1]} : vector<1x512xf32> to vector<1x384xf32>
    %660 = arith.negf %659 : vector<1x384xf32>
    %661 = math.exp %660 : vector<1x384xf32>
    %cst_126 = arith.constant 1.000000e+00 : f32
    %662 = vector.broadcast %cst_126 : f32 to vector<1x384xf32>
    %663 = arith.addf %662, %661 : vector<1x384xf32>
    %664 = arith.divf %662, %663 : vector<1x384xf32>
    %665 = vector.extract_strided_slice %664 {offsets = [0, 0], sizes = [1, 128], strides = [1, 1]} : vector<1x384xf32> to vector<1x128xf32>
    %666 = vector.extract_strided_slice %664 {offsets = [0, 128], sizes = [1, 128], strides = [1, 1]} : vector<1x384xf32> to vector<1x128xf32>
    %667 = vector.extract_strided_slice %664 {offsets = [0, 256], sizes = [1, 128], strides = [1, 1]} : vector<1x384xf32> to vector<1x128xf32>
    %668 = vector.extract_strided_slice %642 {offsets = [0, 384], sizes = [1, 128], strides = [1, 1]} : vector<1x512xf32> to vector<1x128xf32>
    %669 = math.tanh %668 : vector<1x128xf32>
    %670 = arith.mulf %666, %632 : vector<1x128xf32>
    %671 = arith.mulf %665, %669 : vector<1x128xf32>
    %672 = arith.addf %670, %671 : vector<1x128xf32>
    %673 = math.tanh %672 : vector<1x128xf32>
    %674 = arith.mulf %667, %673 : vector<1x128xf32>
    %675 = tpu.concatenate %658, %674 in 1 : vector<1x128xf32>, vector<1x128xf32> -> vector<1x256xf32>
    %676 = arith.truncf %675 : vector<1x256xf32> to vector<1x256xbf16>
    %cst_127 = arith.constant dense<0.000000e+00> : vector<1x1024xf32>
    %677 = tpu.matmul %676, %409, %cst_127 {dimension_numbers = #tpu.dot_dimension_numbers<[1], [0], [0], [1], [0, 0, 1, 1], [], []>} : vector<1x256xbf16>, vector<256x1024xbf16>, vector<1x1024xf32> -> vector<1x1024xf32>
    %678 = vector.extract_strided_slice %406 {offsets = [7, 0], sizes = [1, 512], strides = [1, 1]} : vector<8x512xf32> to vector<1x512xf32>
    %679 = vector.extract_strided_slice %677 {offsets = [0, 0], sizes = [1, 512], strides = [1, 1]} : vector<1x1024xf32> to vector<1x512xf32>
    %680 = arith.addf %678, %679 : vector<1x512xf32>
    %681 = vector.extract_strided_slice %677 {offsets = [0, 512], sizes = [1, 512], strides = [1, 1]} : vector<1x1024xf32> to vector<1x512xf32>
    %682 = arith.addf %410, %681 : vector<1x512xf32>
    %683 = vector.extract_strided_slice %680 {offsets = [0, 0], sizes = [1, 384], strides = [1, 1]} : vector<1x512xf32> to vector<1x384xf32>
    %684 = arith.negf %683 : vector<1x384xf32>
    %685 = math.exp %684 : vector<1x384xf32>
    %cst_128 = arith.constant 1.000000e+00 : f32
    %686 = vector.broadcast %cst_128 : f32 to vector<1x384xf32>
    %687 = arith.addf %686, %685 : vector<1x384xf32>
    %688 = arith.divf %686, %687 : vector<1x384xf32>
    %689 = vector.extract_strided_slice %688 {offsets = [0, 0], sizes = [1, 128], strides = [1, 1]} : vector<1x384xf32> to vector<1x128xf32>
    %690 = vector.extract_strided_slice %688 {offsets = [0, 128], sizes = [1, 128], strides = [1, 1]} : vector<1x384xf32> to vector<1x128xf32>
    %691 = vector.extract_strided_slice %688 {offsets = [0, 256], sizes = [1, 128], strides = [1, 1]} : vector<1x384xf32> to vector<1x128xf32>
    %692 = vector.extract_strided_slice %680 {offsets = [0, 384], sizes = [1, 128], strides = [1, 1]} : vector<1x512xf32> to vector<1x128xf32>
    %693 = math.tanh %692 : vector<1x128xf32>
    %694 = arith.mulf %690, %656 : vector<1x128xf32>
    %695 = arith.mulf %689, %693 : vector<1x128xf32>
    %696 = arith.addf %694, %695 : vector<1x128xf32>
    %697 = math.tanh %696 : vector<1x128xf32>
    %698 = arith.mulf %691, %697 : vector<1x128xf32>
    %699 = vector.extract_strided_slice %682 {offsets = [0, 0], sizes = [1, 384], strides = [1, 1]} : vector<1x512xf32> to vector<1x384xf32>
    %700 = arith.negf %699 : vector<1x384xf32>
    %701 = math.exp %700 : vector<1x384xf32>
    %cst_129 = arith.constant 1.000000e+00 : f32
    %702 = vector.broadcast %cst_129 : f32 to vector<1x384xf32>
    %703 = arith.addf %702, %701 : vector<1x384xf32>
    %704 = arith.divf %702, %703 : vector<1x384xf32>
    %705 = vector.extract_strided_slice %704 {offsets = [0, 0], sizes = [1, 128], strides = [1, 1]} : vector<1x384xf32> to vector<1x128xf32>
    %706 = vector.extract_strided_slice %704 {offsets = [0, 128], sizes = [1, 128], strides = [1, 1]} : vector<1x384xf32> to vector<1x128xf32>
    %707 = vector.extract_strided_slice %704 {offsets = [0, 256], sizes = [1, 128], strides = [1, 1]} : vector<1x384xf32> to vector<1x128xf32>
    %708 = vector.extract_strided_slice %682 {offsets = [0, 384], sizes = [1, 128], strides = [1, 1]} : vector<1x512xf32> to vector<1x128xf32>
    %709 = math.tanh %708 : vector<1x128xf32>
    %710 = arith.mulf %706, %672 : vector<1x128xf32>
    %711 = arith.mulf %705, %709 : vector<1x128xf32>
    %712 = arith.addf %710, %711 : vector<1x128xf32>
    %713 = math.tanh %712 : vector<1x128xf32>
    %714 = arith.mulf %707, %713 : vector<1x128xf32>
    %715 = tpu.concatenate %698, %714 in 1 : vector<1x128xf32>, vector<1x128xf32> -> vector<1x256xf32>
    %716 = arith.truncf %715 : vector<1x256xf32> to vector<1x256xbf16>
    %cst_130 = arith.constant dense<0.000000e+00> : vector<1x512xf32>
    %717 = tpu.matmul %716, %408, %cst_130 {dimension_numbers = #tpu.dot_dimension_numbers<[1], [0], [0], [1], [0, 0, 1, 1], [], []>} : vector<1x256xbf16>, vector<256x512xbf16>, vector<1x512xf32> -> vector<1x512xf32>
    %718 = arith.addf %410, %717 : vector<1x512xf32>
    %719 = vector.extract_strided_slice %718 {offsets = [0, 0], sizes = [1, 384], strides = [1, 1]} : vector<1x512xf32> to vector<1x384xf32>
    %720 = arith.negf %719 : vector<1x384xf32>
    %721 = math.exp %720 : vector<1x384xf32>
    %cst_131 = arith.constant 1.000000e+00 : f32
    %722 = vector.broadcast %cst_131 : f32 to vector<1x384xf32>
    %723 = arith.addf %722, %721 : vector<1x384xf32>
    %724 = arith.divf %722, %723 : vector<1x384xf32>
    %725 = vector.extract_strided_slice %724 {offsets = [0, 0], sizes = [1, 128], strides = [1, 1]} : vector<1x384xf32> to vector<1x128xf32>
    %726 = vector.extract_strided_slice %724 {offsets = [0, 128], sizes = [1, 128], strides = [1, 1]} : vector<1x384xf32> to vector<1x128xf32>
    %727 = vector.extract_strided_slice %724 {offsets = [0, 256], sizes = [1, 128], strides = [1, 1]} : vector<1x384xf32> to vector<1x128xf32>
    %728 = vector.extract_strided_slice %718 {offsets = [0, 384], sizes = [1, 128], strides = [1, 1]} : vector<1x512xf32> to vector<1x128xf32>
    %729 = math.tanh %728 : vector<1x128xf32>
    %730 = arith.mulf %726, %712 : vector<1x128xf32>
    %731 = arith.mulf %725, %729 : vector<1x128xf32>
    %732 = arith.addf %730, %731 : vector<1x128xf32>
    %733 = math.tanh %732 : vector<1x128xf32>
    %734 = arith.mulf %727, %733 : vector<1x128xf32>
    %735 = tpu.concatenate %474, %514, %554, %594, %634, %674, %714, %734 in 0 : vector<1x128xf32>, vector<1x128xf32>, vector<1x128xf32>, vector<1x128xf32>, vector<1x128xf32>, vector<1x128xf32>, vector<1x128xf32>, vector<1x128xf32> -> vector<8x128xf32>
    %736 = arith.truncf %735 : vector<8x128xf32> to vector<8x128xbf16>
    %c0_132 = arith.constant 0 : index
    %c0_133 = arith.constant 0 : index
    %737 = vector.load %arg27[%c0_132, %c0_133] : memref<128x32xbf16, #tpu.memory_space<vmem>>, vector<128x32xbf16>
    %cst_134 = arith.constant dense<0.000000e+00> : vector<8x32xf32>
    %738 = tpu.matmul %736, %737, %cst_134 {dimension_numbers = #tpu.dot_dimension_numbers<[1], [0], [0], [1], [0, 0, 1, 1], [], []>} : vector<8x128xbf16>, vector<128x32xbf16>, vector<8x32xf32> -> vector<8x32xf32>
    %c0_135 = arith.constant 0 : index
    %c0_136 = arith.constant 0 : index
    %739 = vector.load %arg28[%c0_135, %c0_136] : memref<1x32xf32, #tpu.memory_space<vmem>>, vector<1x32xf32>
    %740 = vector.broadcast %739 : vector<1x32xf32> to vector<8x32xf32>
    %741 = arith.addf %738, %740 : vector<8x32xf32>
    %742 = arith.addf %741, %390 : vector<8x32xf32>
    %743 = arith.negf %742 : vector<8x32xf32>
    %744 = math.exp %743 : vector<8x32xf32>
    %cst_137 = arith.constant 1.000000e+00 : f32
    %745 = vector.broadcast %cst_137 : f32 to vector<8x32xf32>
    %746 = arith.addf %745, %744 : vector<8x32xf32>
    %747 = arith.divf %745, %746 : vector<8x32xf32>
    %c0_138 = arith.constant 0 : index
    %c0_139 = arith.constant 0 : index
    %748 = vector.load %arg34[%c0_138, %c0_139] : memref<2x128xf32, #tpu.memory_space<vmem>>, vector<1x128xf32>
    tpu.vector_store %arg34[%c0_138, %c0_139], %698 {strides = array<i32>} : memref<2x128xf32, #tpu.memory_space<vmem>>, vector<1x128xf32>,
    %c1_140 = arith.constant 1 : index
    %c0_141 = arith.constant 0 : index
    %749 = vector.load %arg34[%c1_140, %c0_141] : memref<2x128xf32, #tpu.memory_space<vmem>>, vector<1x128xf32>
    tpu.vector_store %arg34[%c1_140, %c0_141], %734 {strides = array<i32>} : memref<2x128xf32, #tpu.memory_space<vmem>>, vector<1x128xf32>,
    %c0_142 = arith.constant 0 : index
    %c0_143 = arith.constant 0 : index
    %750 = vector.load %arg35[%c0_142, %c0_143] : memref<2x128xf32, #tpu.memory_space<vmem>>, vector<1x128xf32>
    tpu.vector_store %arg35[%c0_142, %c0_143], %696 {strides = array<i32>} : memref<2x128xf32, #tpu.memory_space<vmem>>, vector<1x128xf32>,
    %c1_144 = arith.constant 1 : index
    %c0_145 = arith.constant 0 : index
    %751 = vector.load %arg35[%c1_144, %c0_145] : memref<2x128xf32, #tpu.memory_space<vmem>>, vector<1x128xf32>
    tpu.vector_store %arg35[%c1_144, %c0_145], %732 {strides = array<i32>} : memref<2x128xf32, #tpu.memory_space<vmem>>, vector<1x128xf32>,
    %c0_146 = arith.constant 0 : index
    %c0_147 = arith.constant 0 : index
    %752 = vector.load %arg5[%c0_146, %c0_147] : memref<32x4xf32, #tpu.memory_space<vmem>>, vector<32x4xf32>
    %cst_148 = arith.constant dense<0.000000e+00> : vector<8x4xf32>
    %753 = tpu.matmul %747, %752, %cst_148 {dimension_numbers = #tpu.dot_dimension_numbers<[1], [0], [0], [1], [0, 0, 1, 1], [], []>} : vector<8x32xf32>, vector<32x4xf32>, vector<8x4xf32> -> vector<8x4xf32>
    %c0_149 = arith.constant 0 : index
    %c0_150 = arith.constant 0 : index
    %754 = vector.load %arg6[%c0_149, %c0_150] : memref<1x4xf32, #tpu.memory_space<vmem>>, vector<1x4xf32>
    %755 = vector.broadcast %754 : vector<1x4xf32> to vector<8x4xf32>
    %756 = arith.addf %753, %755 : vector<8x4xf32>
    %c0_151 = arith.constant 0 : index
    %c0_152 = arith.constant 0 : index
    %757 = vector.load %arg31[%c0_151, %c0_152] : memref<8x4xf32, #tpu.memory_space<vmem>>, vector<8x4xf32>
    tpu.vector_store %arg31[%c0_151, %c0_152], %756 {strides = array<i32>} : memref<8x4xf32, #tpu.memory_space<vmem>>, vector<8x4xf32>,
    return
  }
}

</mosaic_0001>

<bundles_post_ra>
// kernel: tpu_custom_call.1
= control target key start
LH: loop header
LB: loop body
LE: loop exit
PB: predicated region body
PF: predicated region fallthrough
CT: control target
= control target key end

     0   :  { %s10604_s6 = smov 1   ;;  %s10605_s10 = smov 2   ;;  %s13893_s0 = inlined_call_operand.smem [shape: u32[36], index: -1, kind: input, shape index: {}] }
   0x1   :  { %s10680_s5 = sld [smem:[%s13893_s0]]   ;;  %s10606_s14 = smov 3  }
   0x2   :  { %s10685_s9 = sld [smem:[%s13893_s0 + %s10604_s6]]   ;;  %s10607_s18 = smov 4  }
   0x3   :  { %s10690_s13 = sld [smem:[%s13893_s0 + %s10605_s10]]   ;;  %s10608_s22 = smov 5  }
   0x4   :  { %s10695_s17 = sld [smem:[%s13893_s0 + %s10606_s14]]   ;;  %s10609_s26 = smov 6  }
   0x5   :  { %s10700_s21 = sld [smem:[%s13893_s0 + %s10607_s18]]   ;;  %s10610_s30 = smov 7  }
   0x6   :  { %s10705_s25 = sld [smem:[%s13893_s0 + %s10608_s22]]   ;;  %s10611_s4 = smov 8  }
   0x7   :  { %14489 = sst [smem:[#allocation54_spill]] %s10680_s5  ;;  %s10612_s10 = smov 9  }
   0x8   :  { %s10710_s29 = sld [smem:[%s13893_s0 + %s10609_s26]]   ;;  %s10613_s15 = smov 10  }
   0x9   :  { %s10715_s3 = sld [smem:[%s13893_s0 + %s10610_s30]]   ;;  %s10614_s20 = smov 11  }
   0xa   :  { %s10720_s8 = sld [smem:[%s13893_s0 + %s10611_s4]]   ;;  %s10615_s26 = smov 12  }
   0xb   :  { %s10725_s14 = sld [smem:[%s13893_s0 + %s10612_s10]]   ;;  %s10616_s1 = smov 13  }
   0xc   :  { %14490 = sst [smem:[#allocation55_spill]] %s10705_s25  ;;  %s10617_s7 = smov 14  }
   0xd   :  { %s10730_s19 = sld [smem:[%s13893_s0 + %s10613_s15]]   ;;  %s10618_s15 = smov 15  }
   0xe   :  { %s10735_s24 = sld [smem:[%s13893_s0 + %s10614_s20]]   ;;  %s10619_s22 = smov 16  }
   0xf   :  { %14491 = sst [smem:[#allocation56_spill]] %s10715_s3  ;;  %s10620_s28 = smov 17  }
  0x10   :  { %s10740_s30 = sld [smem:[%s13893_s0 + %s10615_s26]]  }
  0x11   :  { %s10745_s6 = sld [smem:[%s13893_s0 + %s10616_s1]]  }
  0x12   :  { %s10750_s12 = sld [smem:[%s13893_s0 + %s10617_s7]]   ;;  %s10621_s7 = smov 18  }
  0x13   :  { %s10755_s20 = sld [smem:[%s13893_s0 + %s10618_s15]]   ;;  %s10622_s15 = smov 19  }
  0x14   :  { %s10760_s27 = sld [smem:[%s13893_s0 + %s10619_s22]]   ;;  %s10623_s22 = smov 20  }
  0x15   :  { %s10765_s4 = sld [smem:[%s13893_s0 + %s10620_s28]]   ;;  %s10624_s28 = smov 21  }
  0x16   :  { %s10770_s25 = sld [smem:[%s13893_s0 + %s10621_s7]]   ;;  %s10625_s7 = smov 22  }
  0x17   :  { %14492 = sst [smem:[#allocation57_spill]] %s10745_s6 }
  0x18   :  { %s10780_s3 = sld [smem:[%s13893_s0 + %s10623_s22]]   ;;  %s10627_s22 = smov 24  }
  0x19   :  { %14493 = sst [smem:[#allocation58_spill]] %s10755_s20 }
  0x1a   :  { %14494 = sst [smem:[#allocation59_spill]] %s10760_s27 }
  0x1b   :  { %14495 = sst [smem:[#allocation60_spill]] %s10765_s4 }
  0x1c   :  { %s10775_s20 = sld [smem:[%s13893_s0 + %s10622_s15]]   ;;  %s10626_s15 = smov 23  }
  0x1d   :  { %s10785_s4 = sld [smem:[%s13893_s0 + %s10624_s28]]   ;;  %s10628_s28 = smov 25  }
  0x1e   :  { %14497 = sst [smem:[#allocation62_spill]] %s10780_s3 }
  0x1f   :  { %s10790_s5 = sld [smem:[%s13893_s0 + %s10625_s7]]   ;;  %s10629_s7 = smov 26  }
  0x20   :  { %s10800_s3 = sld [smem:[%s13893_s0 + %s10627_s22]]   ;;  %s10631_s22 = smov 28  }
  0x21   :  { %s10805_s27 = sld [smem:[%s13893_s0 + %s10628_s28]]   ;;  %s10632_s28 = smov 29  }
  0x22   :  { %14496 = sst [smem:[#allocation61_spill]] %s10775_s20 }
  0x23   :  { %s10795_s20 = sld [smem:[%s13893_s0 + %s10626_s15]]   ;;  %s10630_s15 = smov 27  }
  0x24   :  { %s10820_s6 = sld [smem:[%s13893_s0 + %s10631_s22]]   ;;  %s10635_s22 = smov 32  }
  0x25   :  { %14498 = sst [smem:[#allocation63_spill]] %s10790_s5 }
  0x26   :  { %s10810_s5 = sld [smem:[%s13893_s0 + %s10629_s7]]   ;;  %s10633_s7 = smov 30  }
  0x27   :  { %14500 = sst [smem:[#allocation65_spill]] %s10805_s27 }
  0x28   :  { %s10825_s27 = sld [smem:[%s13893_s0 + %s10632_s28]]   ;;  %s10636_s28 = smov 33  }
  0x29   :  { %14499 = sst [smem:[#allocation64_spill]] %s10795_s20 }
  0x2a   :  { %s10815_s20 = sld [smem:[%s13893_s0 + %s10630_s15]]   ;;  %s10634_s15 = smov 31  }
  0x2b   :  { %14503 = sst [smem:[#allocation68_spill]] %s10820_s6 }
  0x2c   :  { %14501 = sst [smem:[#allocation66_spill]] %s10810_s5 }
  0x2d   :  { %s10830_s5 = sld [smem:[%s13893_s0 + %s10633_s7]]   ;;  %s10637_s7 = smov 34  }
  0x2e   :  { %14504 = sst [smem:[#allocation69_spill]] %s10825_s27 }
  0x2f   :  { %s10840_s6 = sld [smem:[%s13893_s0 + %s10635_s22]]  }
  0x30   :  { %14502 = sst [smem:[#allocation67_spill]] %s10815_s20 }
  0x31   :  { %s10835_s20 = sld [smem:[%s13893_s0 + %s10634_s15]]   ;;  %s10638_s15 = smov 35  }
  0x32   :  { %s10845_s27 = sld [smem:[%s13893_s0 + %s10636_s28]]  }
  0x33   :  { %14505 = sst [smem:[#allocation70_spill]] %s10830_s5 }
  0x34   :  { %s10850_s5 = sld [smem:[%s13893_s0 + %s10637_s7]]  }
  0x37   :  { %14506 = sst [smem:[#allocation71_spill]] %s10835_s20 }
  0x38   :  { %s10855_s20 = sld [smem:[%s13893_s0 + %s10638_s15]]  }
  0x39   :  { %77 = vsyncpa [#allocation3], 0 }
  0x3a   :  { %78 = vsyncpa [#allocation6], 0 }
  0x3b   :  { %79 = vsyncpa [#allocation9], 0 }
  0x3c   :  { %80 = vsyncpa [#allocation12], 0 }
  0x3d   :  { %81 = vsyncpa [#allocation15], 0 }
  0x3e   :  { %82 = vsyncpa [#allocation18], 0 }
  0x3f   :  { %83 = vsyncpa [#allocation21], 0 }
  0x40   :  { %84 = vsyncpa [#allocation24], 0 }
  0x41   :  { %85 = vsyncpa [#allocation27], 0 }
  0x42   :  { %86 = vsyncpa [#allocation30], 0 }
  0x43   :  { %87 = vsyncpa [#allocation33], 0 }
  0x44   :  { %88 = vsyncpa [#allocation4], 0 }
  0x45   :  { %89 = vsyncpa [#allocation36], 0 }
  0x46   :  { %90 = vsyncpa [#allocation39], 0  ;;  %s10639_s22 = smov [#allocation5]   ;;  %s10640_s23 = smov [#allocation8]  }
  0x47   :  { %s109_s0 = sshll.u32 %s10639_s22, 4  ;;  %s129_s26 = sshll.u32 %s10640_s23, 4  ;;  %s110_s0 = int_to_ptr.vmem [resolvable:$true] %s109_s0  ;;  %s130_s26 = int_to_ptr.vmem [resolvable:$true] %s129_s26 }
  0x48   :  { %s10048_s28 = scalar_lea.hbm %s10690_s13, 16 }
  0x49   :  { %p10049_p0 = scmp.ne.s32.totalorder %s10690_s13, %s10048_s28  ;;  %p10052_p1 = scmp.lt.u32.totalorder %s10048_s28, %s10690_s13 }
  0x4b   :  { %p10054_p2 = pnand %p10052_p1, %p10049_p0 }
  0x4d   :  { %10057 = shalt.err (!%p10054_p2)
}
  0x4e   :  { %s10058_s1 = scalar_lea.vmem %s110_s0, 16  ;;  %s10062_s2 = scalar_lea.vmem %s110_s0, 32 }
  0x4f   :  { %p10059_p3 = scmp.ne.s32.totalorder %s110_s0, %s10058_s1  ;;  %p10063_p4 = scmp.lt.s32.totalorder %s110_s0, %s110_s0 }
  0x50   :  { %p10064_p5 = scmp.lt.s32.totalorder %s10062_s2, %s10058_s1 }
  0x52   :  { %p10065_p6 = por %p10064_p5, %p10063_p4 }
  0x54   :  { %p10066_p7 = pnand %p10065_p6, %p10059_p3 }
  0x56   :  { %10069 = shalt.err (!%p10066_p7)
}
  0x57   :  { %112 = dma.hbm_to_vmem [thread:$0]  %s10690_s13, 16, %s110_s0, [#allocation6]  }
  0x58   :  { %s10070_s7 = scalar_lea.hbm %s10700_s21, 16 }
  0x59   :  { %p10071_p8 = scmp.ne.s32.totalorder %s10700_s21, %s10070_s7  ;;  %p10074_p9 = scmp.lt.u32.totalorder %s10070_s7, %s10700_s21 }
  0x5b   :  { %p10076_p10 = pnand %p10074_p9, %p10071_p8 }
  0x5d   :  { %10079 = shalt.err (!%p10076_p10)
}
  0x5e   :  { %s10080_s10 = scalar_lea.vmem %s130_s26, 16  ;;  %s10084_s11 = scalar_lea.vmem %s130_s26, 32 }
  0x5f   :  { %p10081_p11 = scmp.ne.s32.totalorder %s130_s26, %s10080_s10  ;;  %p10085_p12 = scmp.lt.s32.totalorder %s130_s26, %s130_s26 }
  0x60   :  { %p10086_p13 = scmp.lt.s32.totalorder %s10084_s11, %s10080_s10 }
  0x62   :  { %p10087_p0 = por %p10086_p13, %p10085_p12 }
  0x64   :  { %p10088_p1 = pnand %p10087_p0, %p10081_p11 }
  0x66   :  { %10091 = shalt.err (!%p10088_p1)
}
  0x67   :  { %132 = dma.hbm_to_vmem [thread:$0]  %s10700_s21, 16, %s130_s26, [#allocation9]  }
  0x68   :  { %s10641_s15 = smov [#allocation11]   ;;  %s10642_s16 = smov [#allocation14]  }
  0x69   :  { %s153_s13 = sshll.u32 %s10641_s15, 4  ;;  %s175_s18 = sshll.u32 %s10642_s16, 4  ;;  %s154_s13 = int_to_ptr.vmem [resolvable:$true] %s153_s13  ;;  %s176_s18 = int_to_ptr.vmem [resolvable:$true] %s175_s18 }
  0x6a   :  { %s10092_s22 = scalar_lea.hbm %s10720_s8, 16 }
  0x6b   :  { %p10093_p2 = scmp.ne.s32.totalorder %s10720_s8, %s10092_s22  ;;  %p10096_p3 = scmp.lt.u32.totalorder %s10092_s22, %s10720_s8 }
  0x6d   :  { %p10098_p4 = pnand %p10096_p3, %p10093_p2 }
  0x6f   :  { %10101 = shalt.err (!%p10098_p4)
}
  0x70   :  { %s10102_s0 = scalar_lea.vmem %s154_s13, 16  ;;  %s10106_s23 = scalar_lea.vmem %s154_s13, 32 }
  0x71   :  { %p10103_p5 = scmp.ne.s32.totalorder %s154_s13, %s10102_s0  ;;  %p10107_p6 = scmp.lt.s32.totalorder %s154_s13, %s154_s13 }
  0x72   :  { %p10108_p7 = scmp.lt.s32.totalorder %s10106_s23, %s10102_s0 }
  0x74   :  { %p10109_p8 = por %p10108_p7, %p10107_p6 }
  0x76   :  { %p10110_p9 = pnand %p10109_p8, %p10103_p5 }
  0x78   :  { %10113 = shalt.err (!%p10110_p9)
}
  0x79   :  { %156 = dma.hbm_to_vmem [thread:$0]  %s10720_s8, 16, %s154_s13, [#allocation12]  }
  0x7a   :  { %s10114_s21 = scalar_lea.hbm %s10730_s19, 64 }
  0x7b   :  { %p10115_p10 = scmp.ne.s32.totalorder %s10730_s19, %s10114_s21  ;;  %p10118_p11 = scmp.lt.u32.totalorder %s10114_s21, %s10730_s19 }
  0x7d   :  { %p10120_p12 = pnand %p10118_p11, %p10115_p10 }
  0x7f   :  { %10123 = shalt.err (!%p10120_p12)
}
  0x80   :  { %s10124_s26 = scalar_lea.vmem %s176_s18, 64  ;;  %p10129_p0 = scmp.lt.s32.totalorder %s176_s18, %s176_s18 }
  0x81   :  { %p10125_p13 = scmp.ne.s32.totalorder %s176_s18, %s10124_s26  ;;  %p10130_p1 = scmp.lt.s32.totalorder %s10124_s26, %s10124_s26 }
  0x83   :  { %p10131_p2 = por %p10130_p1, %p10129_p0 }
  0x85   :  { %p10132_p3 = pnand %p10131_p2, %p10125_p13 }
  0x87   :  { %10135 = shalt.err (!%p10132_p3)
}
  0x88   :  { %178 = dma.hbm_to_vmem [thread:$0]  %s10730_s19, 64, %s176_s18, [#allocation15]  }
  0x89   :  { %s10643_s28 = smov [#allocation17]   ;;  %s10644_s8 = smov [#allocation20]  }
  0x8a   :  { %s196_s1 = sshll.u32 %s10643_s28, 4  ;;  %s221_s2 = sshll.u32 %s10644_s8, 4  ;;  %s197_s1 = int_to_ptr.vmem [resolvable:$true] %s196_s1  ;;  %s222_s2 = int_to_ptr.vmem [resolvable:$true] %s221_s2 }
  0x8b   :  { %s10136_s7 = scalar_lea.hbm %s10740_s30, 8192 }
  0x8c   :  { %p10137_p4 = scmp.ne.s32.totalorder %s10740_s30, %s10136_s7  ;;  %p10140_p5 = scmp.lt.u32.totalorder %s10136_s7, %s10740_s30 }
  0x8e   :  { %p10142_p6 = pnand %p10140_p5, %p10137_p4 }
  0x90   :  { %10145 = shalt.err (!%p10142_p6)
}
  0x91   :  { %s10146_s10 = scalar_lea.vmem %s197_s1, 8192  ;;  %p10151_p8 = scmp.lt.s32.totalorder %s197_s1, %s197_s1 }
  0x92   :  { %p10147_p7 = scmp.ne.s32.totalorder %s197_s1, %s10146_s10  ;;  %p10152_p9 = scmp.lt.s32.totalorder %s10146_s10, %s10146_s10 }
  0x94   :  { %p10153_p10 = por %p10152_p9, %p10151_p8 }
  0x96   :  { %p10154_p11 = pnand %p10153_p10, %p10147_p7 }
  0x98   :  { %10157 = shalt.err (!%p10154_p11)
}
  0x99   :  { %s10645_s11 = smov 256   ;;  %s10646_s19 = smov 16  }
  0x9a   :  { %202 = dma.hbm_to_vmem [thread:$0]  %s10740_s30, 8192, %s197_s1, [#allocation18], %s10645_s11, %s10645_s11, %s10646_s19  }
  0x9b   :  { %s10158_s15 = scalar_lea.hbm %s10750_s12, 64 }
  0x9c   :  { %p10159_p12 = scmp.ne.s32.totalorder %s10750_s12, %s10158_s15  ;;  %p10162_p13 = scmp.lt.u32.totalorder %s10158_s15, %s10750_s12 }
  0x9e   :  { %p10164_p0 = pnand %p10162_p13, %p10159_p12 }
  0xa0   :  { %10167 = shalt.err (!%p10164_p0)
}
  0xa1   :  { %s10168_s13 = scalar_lea.vmem %s222_s2, 64  ;;  %p10173_p2 = scmp.lt.s32.totalorder %s222_s2, %s222_s2 }
  0xa2   :  { %p10169_p1 = scmp.ne.s32.totalorder %s222_s2, %s10168_s13  ;;  %p10174_p3 = scmp.lt.s32.totalorder %s10168_s13, %s10168_s13 }
  0xa4   :  { %p10175_p4 = por %p10174_p3, %p10173_p2 }
  0xa6   :  { %p10176_p5 = pnand %p10175_p4, %p10169_p1 }
  0xa8   :  { %10179 = shalt.err (!%p10176_p5)
}
  0xa9   :  { %224 = dma.hbm_to_vmem [thread:$0]  %s10750_s12, 64, %s222_s2, [#allocation21]  }
  0xaa   :  { %s10647_s16 = smov [#allocation23]   ;;  %s10648_s30 = smov [#allocation26]  }
  0xab   :  { %s245_s18 = sshll.u32 %s10647_s16, 4  ;;  %s266_s22 = sshll.u32 %s10648_s30, 4  ;;  %s246_s18 = int_to_ptr.vmem [resolvable:$true] %s245_s18  ;;  %s10884_s22 = int_to_ptr.vmem [resolvable:$true] %s266_s22 }
  0xac   :  { %s10180_s0 = scalar_lea.hbm %s10770_s25, 32 }
  0xad   :  { %p10181_p6 = scmp.ne.s32.totalorder %s10770_s25, %s10180_s0  ;;  %p10184_p7 = scmp.lt.u32.totalorder %s10180_s0, %s10770_s25 }
  0xaf   :  { %p10186_p8 = pnand %p10184_p7, %p10181_p6 }
  0xb1   :  { %10189 = shalt.err (!%p10186_p8)
}
  0xb2   :  { %s10190_s23 = scalar_lea.vmem %s246_s18, 32  ;;  %p10195_p10 = scmp.lt.s32.totalorder %s246_s18, %s246_s18 }
  0xb3   :  { %p10191_p9 = scmp.ne.s32.totalorder %s246_s18, %s10190_s23  ;;  %p10196_p11 = scmp.lt.s32.totalorder %s10190_s23, %s10190_s23 }
  0xb5   :  { %p10197_p12 = por %p10196_p11, %p10195_p10 }
  0xb7   :  { %p10198_p13 = pnand %p10197_p12, %p10191_p9 }
  0xb9   :  { %10201 = shalt.err (!%p10198_p13)
}
  0xba   :  { %248 = dma.hbm_to_vmem [thread:$0]  %s10770_s25, 32, %s246_s18, [#allocation24]  }
  0xbb   :  { %s10202_s12 = scalar_lea.hbm %s10785_s4, 2048 }
  0xbc   :  { %p10203_p0 = scmp.ne.s32.totalorder %s10785_s4, %s10202_s12  ;;  %p10206_p1 = scmp.lt.u32.totalorder %s10202_s12, %s10785_s4 }
  0xbe   :  { %p10208_p2 = pnand %p10206_p1, %p10203_p0 }
  0xc0   :  { %10211 = shalt.err (!%p10208_p2)
}
  0xc1   :  { %s10212_s21 = scalar_lea.vmem %s10884_s22, 2048  ;;  %p10217_p4 = scmp.lt.s32.totalorder %s10884_s22, %s10884_s22 }
  0xc2   :  { %p10213_p3 = scmp.ne.s32.totalorder %s10884_s22, %s10212_s21  ;;  %p10218_p5 = scmp.lt.s32.totalorder %s10212_s21, %s10212_s21 }
  0xc4   :  { %p10219_p6 = por %p10218_p5, %p10217_p4 }
  0xc6   :  { %p10220_p7 = pnand %p10219_p6, %p10213_p3 }
  0xc8   :  { %10223 = shalt.err (!%p10220_p7)
}
  0xc9   :  { %272 = dma.hbm_to_vmem [thread:$0]  %s10785_s4, 2048, %s10884_s22, [#allocation27], %s10645_s11, %s10645_s11, %s10646_s19  }
  0xca   :  { %s10649_s25 = smov [#allocation29]   ;;  %s10650_s28 = smov [#allocation2]  }
  0xcb   :  { %s290_s26 = sshll.u32 %s10649_s25, 4  ;;  %s99_s1 = sshll.u32 %s10650_s28, 4  ;;  %s291_s26 = int_to_ptr.vmem [resolvable:$true] %s290_s26  ;;  %s100_s1 = int_to_ptr.vmem [resolvable:$true] %s99_s1 }
  0xcc   :  { %s10224_s8 = scalar_lea.hbm %s10800_s3, 8192 }
  0xcd   :  { %p10225_p8 = scmp.ne.s32.totalorder %s10800_s3, %s10224_s8  ;;  %p10228_p9 = scmp.lt.u32.totalorder %s10224_s8, %s10800_s3 }
  0xcf   :  { %p10230_p10 = pnand %p10228_p9, %p10225_p8 }
  0xd1   :  { %10233 = shalt.err (!%p10230_p10)
}
  0xd2   :  { %s10234_s2 = scalar_lea.vmem %s291_s26, 8192  ;;  %p10239_p12 = scmp.lt.s32.totalorder %s291_s26, %s291_s26 }
  0xd3   :  { %p10235_p11 = scmp.ne.s32.totalorder %s291_s26, %s10234_s2  ;;  %p10240_p13 = scmp.lt.s32.totalorder %s10234_s2, %s10234_s2 }
  0xd5   :  { %p10241_p0 = por %p10240_p13, %p10239_p12 }
  0xd7   :  { %p10242_p1 = pnand %p10241_p0, %p10235_p11 }
  0xd9   :  { %10245 = shalt.err (!%p10242_p1)
}
  0xda   :  { %296 = dma.hbm_to_vmem [thread:$0]  %s10800_s3, 8192, %s291_s26, [#allocation30], %s10645_s11, %s10645_s11, %s10646_s19  }
  0xdb   :  { %s10246_s4 = scalar_lea.hbm %s10685_s9, 64 }
  0xdc   :  { %p10247_p2 = scmp.ne.s32.totalorder %s10685_s9, %s10246_s4  ;;  %p10250_p3 = scmp.lt.u32.totalorder %s10246_s4, %s10685_s9 }
  0xde   :  { %p10252_p4 = pnand %p10250_p3, %p10247_p2 }
  0xe0   :  { %10255 = shalt.err (!%p10252_p4)
}
  0xe1   :  { %s10256_s7 = scalar_lea.vmem %s100_s1, 64  ;;  %p10261_p6 = scmp.lt.s32.totalorder %s100_s1, %s100_s1 }
  0xe2   :  { %p10257_p5 = scmp.ne.s32.totalorder %s100_s1, %s10256_s7  ;;  %p10262_p7 = scmp.lt.s32.totalorder %s10256_s7, %s10256_s7 }
  0xe4   :  { %p10263_p8 = por %p10262_p7, %p10261_p6 }
  0xe6   :  { %p10264_p9 = pnand %p10263_p8, %p10257_p5 }
  0xe8   :  { %10267 = shalt.err (!%p10264_p9)
}
  0xe9   :  { %102 = dma.hbm_to_vmem [thread:$0]  %s10685_s9, 64, %s100_s1, [#allocation3]  }
  0xea   :  { %s10651_s10 = smov [#allocation7]   ;;  %s10652_s3 = smov [#allocation10]  }
  0xeb   :  { %s119_s15 = sshll.u32 %s10651_s10, 4  ;;  %s141_s13 = sshll.u32 %s10652_s3, 4  ;;  %s120_s15 = int_to_ptr.vmem [resolvable:$true] %s119_s15  ;;  %s142_s13 = int_to_ptr.vmem [resolvable:$true] %s141_s13 }
  0xec   :  { %s10268_s16 = scalar_lea.hbm %s10695_s17, 16 }
  0xed   :  { %p10269_p10 = scmp.ne.s32.totalorder %s10695_s17, %s10268_s16  ;;  %p10272_p11 = scmp.lt.u32.totalorder %s10268_s16, %s10695_s17 }
  0xef   :  { %p10274_p12 = pnand %p10272_p11, %p10269_p10 }
  0xf1   :  { %10277 = shalt.err (!%p10274_p12)
}
  0xf2   :  { %s10278_s18 = scalar_lea.vmem %s120_s15, 16  ;;  %s10282_s30 = scalar_lea.vmem %s120_s15, 32 }
  0xf3   :  { %p10279_p13 = scmp.ne.s32.totalorder %s120_s15, %s10278_s18  ;;  %p10283_p0 = scmp.lt.s32.totalorder %s120_s15, %s120_s15 }
  0xf4   :  { %p10284_p1 = scmp.lt.s32.totalorder %s10282_s30, %s10278_s18 }
  0xf6   :  { %p10285_p2 = por %p10284_p1, %p10283_p0 }
  0xf8   :  { %p10286_p3 = pnand %p10285_p2, %p10279_p13 }
  0xfa   :  { %10289 = shalt.err (!%p10286_p3)
}
  0xfb   :  { %122 = dma.hbm_to_vmem [thread:$0]  %s10695_s17, 16, %s120_s15, [#allocation6]  }
  0xfc   :  { %s10290_s9 = scalar_lea.hbm %s10710_s29, 16 }
  0xfd   :  { %p10291_p4 = scmp.ne.s32.totalorder %s10710_s29, %s10290_s9  ;;  %p10294_p5 = scmp.lt.u32.totalorder %s10290_s9, %s10710_s29 }
  0xff   :  { %p10296_p6 = pnand %p10294_p5, %p10291_p4 }
 0x101   :  { %10299 = shalt.err (!%p10296_p6)
}
 0x102   :  { %s10300_s22 = scalar_lea.vmem %s142_s13, 16  ;;  %s10304_s0 = scalar_lea.vmem %s142_s13, 32 }
 0x103   :  { %p10301_p7 = scmp.ne.s32.totalorder %s142_s13, %s10300_s22  ;;  %p10305_p8 = scmp.lt.s32.totalorder %s142_s13, %s142_s13 }
 0x104   :  { %p10306_p9 = scmp.lt.s32.totalorder %s10304_s0, %s10300_s22 }
 0x106   :  { %p10307_p10 = por %p10306_p9, %p10305_p8 }
 0x108   :  { %p10308_p11 = pnand %p10307_p10, %p10301_p7 }
 0x10a   :  { %10311 = shalt.err (!%p10308_p11)
}
 0x10b   :  { %144 = dma.hbm_to_vmem [thread:$0]  %s10710_s29, 16, %s142_s13, [#allocation9]  }
 0x10c   :  { %s10653_s23 = smov [#allocation13]   ;;  %s10654_s12 = smov [#allocation16]  }
 0x10d   :  { %s162_s17 = sshll.u32 %s10653_s23, 4  ;;  %s184_s21 = sshll.u32 %s10654_s12, 4  ;;  %s163_s17 = int_to_ptr.vmem [resolvable:$true] %s162_s17  ;;  %s10921_s21 = int_to_ptr.vmem [resolvable:$true] %s184_s21 }
 0x10e   :  { %s10312_s25 = scalar_lea.hbm %s10725_s14, 2048 }
 0x10f   :  { %p10313_p12 = scmp.ne.s32.totalorder %s10725_s14, %s10312_s25  ;;  %p10316_p13 = scmp.lt.u32.totalorder %s10312_s25, %s10725_s14 }
 0x111   :  { %p10318_p0 = pnand %p10316_p13, %p10313_p12 }
 0x113   :  { %10321 = shalt.err (!%p10318_p0)
}
 0x114   :  { %s10322_s26 = scalar_lea.vmem %s163_s17, 2048  ;;  %p10327_p2 = scmp.lt.s32.totalorder %s163_s17, %s163_s17 }
 0x115   :  { %p10323_p1 = scmp.ne.s32.totalorder %s163_s17, %s10322_s26  ;;  %p10328_p3 = scmp.lt.s32.totalorder %s10322_s26, %s10322_s26 }
 0x117   :  { %p10329_p4 = por %p10328_p3, %p10327_p2 }
 0x119   :  { %p10330_p5 = pnand %p10329_p4, %p10323_p1 }
 0x11b   :  { %10333 = shalt.err (!%p10330_p5)
}
 0x11c   :  { %168 = dma.hbm_to_vmem [thread:$0]  %s10725_s14, 2048, %s163_s17, [#allocation12], %s10645_s11, %s10645_s11, %s10646_s19  }
 0x11d   :  { %s10334_s29 = scalar_lea.hbm %s10735_s24, 4096 }
 0x11e   :  { %p10335_p6 = scmp.ne.s32.totalorder %s10735_s24, %s10334_s29  ;;  %p10338_p7 = scmp.lt.u32.totalorder %s10334_s29, %s10735_s24 }
 0x120   :  { %p10340_p8 = pnand %p10338_p7, %p10335_p6 }
 0x122   :  { %10343 = shalt.err (!%p10340_p8)
}
 0x123   :  { %s10344_s28 = scalar_lea.vmem %s10921_s21, 4096  ;;  %p10349_p10 = scmp.lt.s32.totalorder %s10921_s21, %s10921_s21 }
 0x124   :  { %p10345_p9 = scmp.ne.s32.totalorder %s10921_s21, %s10344_s28  ;;  %p10350_p11 = scmp.lt.s32.totalorder %s10344_s28, %s10344_s28 }
 0x126   :  { %p10351_p12 = por %p10350_p11, %p10349_p10 }
 0x128   :  { %p10352_p13 = pnand %p10351_p12, %p10345_p9 }
 0x12a   :  { %10355 = shalt.err (!%p10352_p13)
}
 0x12b   :  { %s14507_s14 = sld [smem:[#allocation57_spill]]  ;;  %s10655_s1 = smov [#allocation19]  }
 0x12c   :  { %190 = dma.hbm_to_vmem [thread:$0]  %s10735_s24, 4096, %s10921_s21, [#allocation15], %s10645_s11, %s10645_s11, %s10646_s19  }
 0x12d   :  { %s208_s8 = sshll.u32 %s10655_s1, 4  ;;  %s209_s8 = int_to_ptr.vmem [resolvable:$true] %s208_s8 }
 0x131   :  { %s10356_s2 = scalar_lea.hbm %s14507_s14, 16384 }
 0x132   :  { %p10357_p0 = scmp.ne.s32.totalorder %s14507_s14, %s10356_s2  ;;  %p10360_p1 = scmp.lt.u32.totalorder %s10356_s2, %s14507_s14 }
 0x134   :  { %p10362_p2 = pnand %p10360_p1, %p10357_p0 }
 0x136   :  { %10365 = shalt.err (!%p10362_p2)
}
 0x137   :  { %s10366_s4 = scalar_lea.vmem %s209_s8, 16384  ;;  %p10371_p4 = scmp.lt.s32.totalorder %s209_s8, %s209_s8 }
 0x138   :  { %p10367_p3 = scmp.ne.s32.totalorder %s209_s8, %s10366_s4  ;;  %p10372_p5 = scmp.lt.s32.totalorder %s10366_s4, %s10366_s4 }
 0x13a   :  { %p10373_p6 = por %p10372_p5, %p10371_p4 }
 0x13c   :  { %p10374_p7 = pnand %p10373_p6, %p10367_p3 }
 0x13e   :  { %10377 = shalt.err (!%p10374_p7)
}
 0x13f   :  { %s10656_s7 = smov 512   ;;  %s14508_s10 = sld [smem:[#allocation59_spill]] }
 0x140   :  { %s10657_s24 = smov 32   ;;  %s10658_s11 = smov [#allocation22]  }
 0x141   :  { %214 = dma.hbm_to_vmem [thread:$0]  %s14507_s14, 16384, %s209_s8, [#allocation18], %s10656_s7, %s10656_s7, %s10657_s24  }
 0x142   :  { %s233_s19 = sshll.u32 %s10658_s11, 4  ;;  %s10659_s15 = smov [#allocation25]   ;;  %s234_s19 = int_to_ptr.vmem [resolvable:$true] %s233_s19 }
 0x143   :  { %s257_s3 = sshll.u32 %s10659_s15, 4  ;;  %s258_s3 = int_to_ptr.vmem [resolvable:$true] %s257_s3 }
 0x145   :  { %s10378_s13 = scalar_lea.hbm %s14508_s10, 16 }
 0x146   :  { %p10379_p8 = scmp.ne.s32.totalorder %s14508_s10, %s10378_s13  ;;  %p10382_p9 = scmp.lt.u32.totalorder %s10378_s13, %s14508_s10 }
 0x148   :  { %p10384_p10 = pnand %p10382_p9, %p10379_p8 }
 0x14a   :  { %10387 = shalt.err (!%p10384_p10)
}
 0x14b   :  { %s10388_s16 = scalar_lea.vmem %s234_s19, 16  ;;  %s10392_s18 = scalar_lea.vmem %s234_s19, 32 }
 0x14c   :  { %p10389_p11 = scmp.ne.s32.totalorder %s234_s19, %s10388_s16  ;;  %p10393_p12 = scmp.lt.s32.totalorder %s234_s19, %s234_s19 }
 0x14d   :  { %p10394_p13 = scmp.lt.s32.totalorder %s10392_s18, %s10388_s16 }
 0x14f   :  { %p10395_p0 = por %p10394_p13, %p10393_p12 }
 0x151   :  { %p10396_p1 = pnand %p10395_p0, %p10389_p11 }
 0x153   :  { %10399 = shalt.err (!%p10396_p1)
}
 0x154   :  { %s14509_s30 = sld [smem:[#allocation62_spill]] }
 0x155   :  { %236 = dma.hbm_to_vmem [thread:$0]  %s14508_s10, 16, %s234_s19, [#allocation21]  }
 0x15a   :  { %s10400_s9 = scalar_lea.hbm %s14509_s30, 16 }
 0x15b   :  { %p10401_p2 = scmp.ne.s32.totalorder %s14509_s30, %s10400_s9  ;;  %p10404_p3 = scmp.lt.u32.totalorder %s10400_s9, %s14509_s30 }
 0x15d   :  { %p10406_p4 = pnand %p10404_p3, %p10401_p2 }
 0x15f   :  { %10409 = shalt.err (!%p10406_p4)
}
 0x160   :  { %s10410_s22 = scalar_lea.vmem %s258_s3, 16  ;;  %s10414_s0 = scalar_lea.vmem %s258_s3, 32 }
 0x161   :  { %p10411_p5 = scmp.ne.s32.totalorder %s258_s3, %s10410_s22  ;;  %p10415_p6 = scmp.lt.s32.totalorder %s258_s3, %s258_s3 }
 0x162   :  { %p10416_p7 = scmp.lt.s32.totalorder %s10414_s0, %s10410_s22 }
 0x164   :  { %p10417_p8 = por %p10416_p7, %p10415_p6 }
 0x166   :  { %p10418_p9 = pnand %p10417_p8, %p10411_p5 }
 0x168   :  { %10421 = shalt.err (!%p10418_p9)
}
 0x169   :  { %s14510_s23 = sld [smem:[#allocation63_spill]]  ;;  %s10660_s17 = smov [#allocation28]  }
 0x16a   :  { %260 = dma.hbm_to_vmem [thread:$0]  %s14509_s30, 16, %s258_s3, [#allocation24]  }
 0x16b   :  { %s279_s12 = sshll.u32 %s10660_s17, 4  ;;  %s10661_s21 = smov [#allocation31]   ;;  %s280_s12 = int_to_ptr.vmem [resolvable:$true] %s279_s12 }
 0x16c   :  { %s302_s25 = sshll.u32 %s10661_s21, 4  ;;  %s303_s25 = int_to_ptr.vmem [resolvable:$true] %s302_s25 }
 0x16f   :  { %s10422_s26 = scalar_lea.hbm %s14510_s23, 64 }
 0x170   :  { %p10423_p10 = scmp.ne.s32.totalorder %s14510_s23, %s10422_s26  ;;  %p10426_p11 = scmp.lt.u32.totalorder %s10422_s26, %s14510_s23 }
 0x172   :  { %p10428_p12 = pnand %p10426_p11, %p10423_p10 }
 0x174   :  { %10431 = shalt.err (!%p10428_p12)
}
 0x175   :  { %s10432_s29 = scalar_lea.vmem %s280_s12, 64  ;;  %p10437_p0 = scmp.lt.s32.totalorder %s280_s12, %s280_s12 }
 0x176   :  { %p10433_p13 = scmp.ne.s32.totalorder %s280_s12, %s10432_s29  ;;  %p10438_p1 = scmp.lt.s32.totalorder %s10432_s29, %s10432_s29 }
 0x178   :  { %p10439_p2 = por %p10438_p1, %p10437_p0 }
 0x17a   :  { %p10440_p3 = pnand %p10439_p2, %p10433_p13 }
 0x17c   :  { %10443 = shalt.err (!%p10440_p3)
}
 0x17d   :  { %s14511_s28 = sld [smem:[#allocation65_spill]] }
 0x17e   :  { %282 = dma.hbm_to_vmem [thread:$0]  %s14510_s23, 64, %s280_s12, [#allocation27]  }
 0x183   :  { %s10444_s14 = scalar_lea.hbm %s14511_s28, 16384 }
 0x184   :  { %p10445_p4 = scmp.ne.s32.totalorder %s14511_s28, %s10444_s14  ;;  %p10448_p5 = scmp.lt.u32.totalorder %s10444_s14, %s14511_s28 }
 0x186   :  { %p10450_p6 = pnand %p10448_p5, %p10445_p4 }
 0x188   :  { %10453 = shalt.err (!%p10450_p6)
}
 0x189   :  { %s10454_s1 = scalar_lea.vmem %s303_s25, 16384  ;;  %p10459_p8 = scmp.lt.s32.totalorder %s303_s25, %s303_s25 }
 0x18a   :  { %p10455_p7 = scmp.ne.s32.totalorder %s303_s25, %s10454_s1  ;;  %p10460_p9 = scmp.lt.s32.totalorder %s10454_s1, %s10454_s1 }
 0x18c   :  { %p10461_p10 = por %p10460_p9, %p10459_p8 }
 0x18e   :  { %p10462_p11 = pnand %p10461_p10, %p10455_p7 }
 0x190   :  { %10465 = shalt.err (!%p10462_p11)
}
 0x191   :  { %s14512_s8 = sld [smem:[#allocation66_spill]]  ;;  %s10662_s2 = smov [#allocation32]  }
 0x192   :  { %308 = dma.hbm_to_vmem [thread:$0]  %s14511_s28, 16384, %s303_s25, [#allocation30], %s10656_s7, %s10656_s7, %s10657_s24  }
 0x193   :  { %s315_s4 = sshll.u32 %s10662_s2, 4  ;;  %s316_s4 = int_to_ptr.vmem [resolvable:$true] %s315_s4 }
 0x197   :  { %s10466_s10 = scalar_lea.hbm %s14512_s8, 64 }
 0x198   :  { %p10467_p12 = scmp.ne.s32.totalorder %s14512_s8, %s10466_s10  ;;  %p10470_p13 = scmp.lt.u32.totalorder %s10466_s10, %s14512_s8 }
 0x19a   :  { %p10472_p0 = pnand %p10470_p13, %p10467_p12 }
 0x19c   :  { %10475 = shalt.err (!%p10472_p0)
}
 0x19d   :  { %s10476_s11 = scalar_lea.vmem %s316_s4, 64  ;;  %p10481_p2 = scmp.lt.s32.totalorder %s316_s4, %s316_s4 }
 0x19e   :  { %p10477_p1 = scmp.ne.s32.totalorder %s316_s4, %s10476_s11  ;;  %p10482_p3 = scmp.lt.s32.totalorder %s10476_s11, %s10476_s11 }
 0x1a0   :  { %p10483_p4 = por %p10482_p3, %p10481_p2 }
 0x1a2   :  { %p10484_p5 = pnand %p10483_p4, %p10477_p1 }
 0x1a4   :  { %10487 = shalt.err (!%p10484_p5)
}
 0x1a5   :  { %318 = dma.hbm_to_vmem [thread:$0]  %s14512_s8, 64, %s316_s4, [#allocation33]  }
 0x1a6   :  { %10576 = dma.done.wait [#allocation3], 64  }
 0x1a7   :  { %10577 = vsyncadd [#allocation3], 4294967232 }
 0x1a8   :  { %10578 = dma.done.wait [#allocation6], 32  }
 0x1a9   :  { %10579 = vsyncadd [#allocation6], 4294967264 }
 0x1aa   :  { %10580 = dma.done.wait [#allocation9], 32  }
 0x1ab   :  { %10581 = vsyncadd [#allocation9], 4294967264 }
 0x1ac   :  { %10582 = dma.done.wait [#allocation12], 2064  }
 0x1ad   :  { %10583 = vsyncadd [#allocation12], 4294965232 }
 0x1ae   :  { %10584 = dma.done.wait [#allocation15], 4160  }
 0x1af   :  { %10585 = vsyncadd [#allocation15], 4294963136 }
 0x1b0   :  { %10586 = dma.done.wait [#allocation18], 24576  }
 0x1b1   :  { %10587 = vsyncadd [#allocation18], 4294942720 }
 0x1b2   :  { %10588 = dma.done.wait [#allocation21], 80  }
 0x1b3   :  { %10589 = vsyncadd [#allocation21], 4294967216 }
 0x1b4   :  { %10590 = dma.done.wait [#allocation24], 48  }
 0x1b5   :  { %10591 = vsyncadd [#allocation24], 4294967248 }
 0x1b6   :  { %10592 = dma.done.wait [#allocation27], 2112  }
 0x1b7   :  { %10593 = vsyncadd [#allocation27], 4294965184 }
 0x1b8   :  { %10594 = dma.done.wait [#allocation30], 24576  }
 0x1b9   :  { %10595 = vsyncadd [#allocation30], 4294942720 }
 0x1ba   :  { %10596 = dma.done.wait [#allocation33], 64  }
 0x1bb   :  { %10597 = vsyncadd [#allocation33], 4294967232  ;;  %s14513_s7 = sld [smem:[#allocation54_spill]]  ;;  %v13911_v0 = vmov 0.0   ;;  %vm10664_vm0 = vmmov 0   ;;  %vm401_vm1 = vcmask 1043456  }
 0x1bc   :  { %9146 = vmatprep.subr.mxu1 %v13911_v0  ;;  %9148 = vmatprep.mubr.msk.f32.mxu1 %vm10664_vm0, %v13911_v0  ;;  %vm397_vm2 = vcmask 31744   ;;  %v389_v1 = vld [vmem:[#allocation2] sm:$0xf]  ;;  %s14514_s24 = sld [smem:[#allocation56_spill]]  ;;  %v8532_v3 = vld [vmem:[#allocation5] ss:$0 sm:$0xff] }
 0x1bd   :  { %9147 = vmatpush3.msk.msra.mxu1 %vm401_vm1, %v389_v1  ;;  %vm475_vm3 = vcmask 261120   ;;  %v9294_v15 = vld [vmem:[#allocation13 + $0x4] ss:$16 sps:$4 sm:$0xff]   ;;  %v9298_v16 = vld [vmem:[#allocation13 + $0xc] ss:$16 sps:$4 sm:$0xff]   ;;  %v13909_v48 = vmov 0  }
 0x1be   :  { %9151 = vmatprep.subr.bf16.mxu1 %v13911_v0  ;;  %v9299_v17 = vld [vmem:[#allocation13] ss:$16 sps:$4 sm:$0xff]   ;;  %v9300_v18 = vld [vmem:[#allocation13 + $0x24] ss:$16 sps:$4 sm:$0xff]   ;;  %701 = vmatprep.subr.bf16.mxu0 %v9294_v15  ;;  %v8535_v26 = vld [vmem:[#allocation7] ss:$0 sm:$0xff] }
 0x1bf   :  { %702 = vmatpush1.bf16.msra.mxu0 %v9299_v17  ;;  %v9305_v19 = vld [vmem:[#allocation13 + $0x20] ss:$16 sps:$4 sm:$0xff]   ;;  %v9306_v20 = vld [vmem:[#allocation13 + $0x44] ss:$16 sps:$4 sm:$0xff]   ;;  %v8536_v28 = vld [vmem:[#allocation8] ss:$0 sm:$0xff]  ;;  %733 = vmatprep.mubr.bf16.mxu0 %v13909_v48 }
 0x1c0   :  { %703 = vmatprep.subr.bf16.mxu0 %v9300_v18  ;;  %v9311_v21 = vld [vmem:[#allocation13 + $0x40] ss:$16 sps:$4 sm:$0xff]   ;;  %v9296_v36 = vld [vmem:[#allocation13 + $0x8] ss:$16 sps:$4 sm:$0xff]   ;;  %v9304_v38 = vld [vmem:[#allocation13 + $0x2c] ss:$16 sps:$4 sm:$0xff]  }
 0x1c1   :  { %v388_v2 = vld [vmem:[%s14513_s7] sm:$0xff]  ;;  %v9310_v40 = vld [vmem:[#allocation13 + $0x4c] ss:$16 sps:$4 sm:$0xff]   ;;  %vm697_vm4 = vcmask 523264   ;;  %s14516_s19 = sld [smem:[#allocation60_spill]]  ;;  %vm4294_vm5 = vcmask 1040384  }
 0x1c2   :  { %9149 = vmatmul.mubr.msk.f32.vlgmr.msra.gmra.mrb[0].mxu1 %vm397_vm2, %v388_v2  ;;  %v9292_v13 = vld [vmem:[%s14514_s24] sm:$0xff]   ;;  %v9293_v14 = vld [vmem:[%s14514_s24 + $0x8] sm:$0xff]   ;;  %v8537_v49 = vld [vmem:[#allocation11] ss:$0 sm:$0xff]  ;;  %vm4296_vm6 = vcmask 1041408   ;;  %vm4298_vm7 = vcmask 1042432  }
 0x1c3   :  { %9155 = vmatprep.mubr.msk.bf16.mxu1 %vm10664_vm0, %v13911_v0  ;;  %9152 = vmatpush3.bf16.msra.mxu1 %v9292_v13  ;;  %v9302_v39 = vld [vmem:[#allocation13 + $0x28] ss:$16 sps:$4 sm:$0xff]   ;;  %v9312_v42 = vld [vmem:[#allocation13 + $0x64] ss:$16 sps:$4 sm:$0xff]   ;;  %v9316_v43 = vld [vmem:[#allocation13 + $0x6c] ss:$16 sps:$4 sm:$0xff]  }
 0x1c4   :  { %9153 = vmatprep.subr.bf16.mxu1 %v13911_v0  ;;  %704 = vmatpush1.bf16.msra.mxu0 %v9305_v19  ;;  %v9308_v41 = vld [vmem:[#allocation13 + $0x48] ss:$16 sps:$4 sm:$0xff]   ;;  %v9317_v45 = vld [vmem:[#allocation13 + $0x60] ss:$16 sps:$4 sm:$0xff]   ;;  %v9318_v54 = vld [vmem:[#allocation16] ss:$16 sps:$4 sm:$0xff]  }
 0x1c5   :  { %705 = vmatprep.subr.bf16.mxu0 %v9306_v20  ;;  %v9314_v44 = vld [vmem:[#allocation13 + $0x68] ss:$16 sps:$4 sm:$0xff]   ;;  %v9323_v47 = vld [vmem:[#allocation16 + $0xc] ss:$16 sps:$4 sm:$0xff]   ;;  %v9321_v55 = vld [vmem:[#allocation16 + $0x8] ss:$16 sps:$4 sm:$0xff]  }
 0x1c6   :  { %v9320_v46 = vld [vmem:[#allocation16 + $0x4] ss:$16 sps:$4 sm:$0xff]   ;;  %v9329_v59 = vld [vmem:[#allocation16 + $0x2c] ss:$16 sps:$4 sm:$0xff]   ;;  %v9324_v60 = vld [vmem:[#allocation16 + $0x20] ss:$16 sps:$4 sm:$0xff]  }
 0x1c7   :  { %9154 = vmatpush3.bf16.msra.mxu1 %v9293_v14  ;;  %v9326_v58 = vld [vmem:[#allocation16 + $0x24] ss:$16 sps:$4 sm:$0xff]   ;;  %v9327_v61 = vld [vmem:[#allocation16 + $0x28] ss:$16 sps:$4 sm:$0xff]   ;;  %v9335_v63 = vld [vmem:[#allocation16 + $0x4c] ss:$16 sps:$4 sm:$0xff]  }
 0x1c8   :  { %742 = vmatprep.subr.bf16.mxu1 %v9298_v16  ;;  %706 = vmatpush1.bf16.msra.mxu0 %v9311_v21  ;;  %v9332_v62 = vld [vmem:[#allocation16 + $0x44] ss:$16 sps:$4 sm:$0xff]   ;;  %v9330_v1 = vld [vmem:[#allocation16 + $0x40] ss:$16 sps:$4 sm:$0xff]   ;;  %v9333_v2 = vld [vmem:[#allocation16 + $0x48] ss:$16 sps:$4 sm:$0xff]  }
 0x1c9   :  { %707 = vmatprep.subr.bf16.mxu0 %v9312_v42  ;;  %v9348_v13 = vld [vmem:[#allocation16 + $0xa0] ss:$16 sps:$4 sm:$0xff]   ;;  %v9351_v14 = vld [vmem:[#allocation16 + $0xa8] ss:$16 sps:$4 sm:$0xff]   ;;  %v9356_v15 = vld [vmem:[#allocation16 + $0xc4] ss:$16 sps:$4 sm:$0xff]  }
 0x1ca   :  { %v9359_v16 = vld [vmem:[#allocation16 + $0xcc] ss:$16 sps:$4 sm:$0xff]   ;;  %v9354_v17 = vld [vmem:[#allocation16 + $0xc0] ss:$16 sps:$4 sm:$0xff]   ;;  %v9357_v18 = vld [vmem:[#allocation16 + $0xc8] ss:$16 sps:$4 sm:$0xff]  }
 0x1cb   :  { %v9362_v19 = vld [vmem:[#allocation16 + $0xe4] ss:$16 sps:$4 sm:$0xff]   ;;  %v9365_v20 = vld [vmem:[#allocation16 + $0xec] ss:$16 sps:$4 sm:$0xff]   ;;  %v9360_v21 = vld [vmem:[#allocation16 + $0xe0] ss:$16 sps:$4 sm:$0xff]  }
 0x1cc   :  { %708 = vmatpush1.bf16.msra.mxu0 %v9317_v45  ;;  %v896_v42 = vld [vmem:[#allocation19 + $0x88] sm:$0xff]  ;;  %vm4301_vm8 = vcmask 1044480   ;;  %s15179_s15 = sld [smem:[#allocation58_spill]]  ;;  %vm4303_vm9 = vcmask 1045504   ;;  %s15180_s3 = sld [smem:[#allocation61_spill]]  ;;  %vm4305_vm10 = vcmask 1046528  }
 0x1cd   :  { %1173 = vmatprep.subr.bf16.mxu0 %v9320_v46  ;;  %s15181_s13 = sld [smem:[#allocation64_spill]]  ;;  %s15185_s16 = sld [smem:[#allocation69_spill]] }
 0x1ce   :  { %s15258_s18 = sld [smem:[#allocation70_spill]]  ;;  %s15849_s30 = sld [smem:[#allocation67_spill]] }
 0x1cf   :  { %s15850_s9 = sld [smem:[#allocation55_spill]]  ;;  %s15851_s22 = sld [smem:[#allocation68_spill]] }
 0x1d0   :  { %s10668_s0 = smov [#allocation35]   ;;  %s10669_s17 = smov [#allocation34]  }
 0x1d1   :  { %s8445_s23 = sshll.u32 %s10668_s0, 4  ;;  %s8435_s12 = sshll.u32 %s10669_s17, 4  ;;  %s8446_s23 = int_to_ptr.vmem [resolvable:$true] %s8445_s23  ;;  %s8436_s12 = int_to_ptr.vmem [resolvable:$true] %s8435_s12 }
 0x1d2   :  { %s10488_s21 = scalar_lea.vmem %s8446_s23, 32  ;;  %p10493_p7 = scmp.lt.s32.totalorder %s8446_s23, %s8446_s23 }
 0x1d3   :  { %p10489_p6 = scmp.ne.s32.totalorder %s8446_s23, %s10488_s21  ;;  %p10494_p8 = scmp.lt.s32.totalorder %s10488_s21, %s10488_s21 }
 0x1d5   :  { %p10495_p9 = por %p10494_p8, %p10493_p7 }
 0x1d7   :  { %p10496_p10 = pnand %p10495_p9, %p10489_p6 }
 0x295   :  { %v471_v4 = vpop.f32.mrb[0].mxu1 }
 0x296   :  { %v472_v5 = vadd.f32 %v8532_v3, %v471_v4  ;;  %v9150_v6 = vpop.f32.mrb[1].mxu1  ;;  %v9338_v3 = vld [vmem:[#allocation16 + $0x64] ss:$16 sps:$4 sm:$0xff]   ;;  %v9341_v4 = vld [vmem:[#allocation16 + $0x6c] ss:$16 sps:$4 sm:$0xff]  }
 0x297   :  { %v9339_v6 = vld [vmem:[#allocation16 + $0x68] ss:$16 sps:$4 sm:$0xff]  }
 0x298   :  { %v476_v7 = vsel %vm475_vm3, %v472_v5, 0.0 }
 0x299   :  { %477 = vadd.xlane.f32.xlu0 %v476_v7  ;;  %v9344_v7 = vld [vmem:[#allocation16 + $0x84] ss:$16 sps:$4 sm:$0xff]  }
 0x326   :  { %v478_v8 = vpop.xlane.xlu0 %477 }
 0x327   :  { %v480_v9 = vmul.f32 0.03125, %v478_v8  ;;  %v9347_v8 = vld [vmem:[#allocation16 + $0x8c] ss:$16 sps:$4 sm:$0xff]  }
 0x329   :  { %v481_v10 = vsub.f32 %v472_v5, %v480_v9  ;;  %v9336_v5 = vld [vmem:[#allocation16 + $0x60] ss:$16 sps:$4 sm:$0xff]  }
 0x32a   :  { %v9342_v9 = vld [vmem:[#allocation16 + $0x80] ss:$16 sps:$4 sm:$0xff]  }
 0x32b   :  { %v482_v11 = vmul.f32 %v481_v10, %v481_v10 }
 0x32d   :  { %v483_v12 = vsel %vm475_vm3, %v482_v11, 0.0  ;;  %v9350_v11 = vld [vmem:[#allocation16 + $0xa4] ss:$16 sps:$4 sm:$0xff]  }
 0x32e   :  { %484 = vadd.xlane.f32.xlu0 %v483_v12  ;;  %v9353_v12 = vld [vmem:[#allocation16 + $0xac] ss:$16 sps:$4 sm:$0xff]  }
 0x3bb   :  { %v485_v22 = vpop.xlane.xlu0 %484 }
 0x3bc   :  { %v486_v23 = vmul.f32 0.03125, %v485_v22  ;;  %v9363_v22 = vld [vmem:[#allocation16 + $0xe8] ss:$16 sps:$4 sm:$0xff]  }
 0x3be   :  { %v487_v24 = vadd.f32 1e-05, %v486_v23  ;;  %v1008_v23 = vld [vmem:[%s14516_s19] sm:$0x1] }
 0x3c0   :  { %9648 = vrsqrt.f32 %v487_v24  ;;  %v1012_v24 = vpack.c.bf16 %v1008_v23, %v1008_v23 }
 0x3ca   :  { %v9649_v25 = vpop.eup %9648 }
 0x3cb   :  { %v489_v27 = vmul.f32 %v9649_v25, %v481_v10  ;;  %v9345_v10 = vld [vmem:[#allocation16 + $0x88] ss:$16 sps:$4 sm:$0xff]   ;;  %v879_v25 = vld [vmem:[#allocation19] sm:$0xff] }
 0x3cd   :  { %v497_v29 = vmul.f32 %v8535_v26, %v489_v27  ;;  %v883_v26 = vld [vmem:[#allocation19 + $0x20] sm:$0xff]  ;;  %v880_v27 = vld [vmem:[#allocation19 + $0x8] sm:$0xff] }
 0x3cf   :  { %v505_v30 = vadd.f32 %v8536_v28, %v497_v29  ;;  %v10998_v28 = vcombine.high %v879_v25, %v883_v26  ;;  %v884_v29 = vld [vmem:[#allocation19 + $0x28] sm:$0xff] }
 0x3d1   :  { %v507_v31 = vmul.f32 0.70710677, %v505_v30  ;;  %v506_v33 = vmul.f32 0.5, %v505_v30  ;;  %14517 = vst [vmem:[#allocation73_spill] sm:$0xff] %v10998_v28  ;;  %v11000_v30 = vcombine.low %v879_v25, %v883_v26 }
 0x3d3   :  { %9650 = verf.f32 %v507_v31  ;;  %14518 = vst [vmem:[#allocation74_spill] sm:$0xff] %v11000_v30  ;;  %v887_v31 = vld [vmem:[#allocation19 + $0x40] sm:$0xff] }
 0x3dd   :  { %v9651_v32 = vpop.eup %9650 }
 0x3de   :  { %v509_v34 = vadd.f32 1.0, %v9651_v32  ;;  %v891_v32 = vld [vmem:[#allocation19 + $0x60] sm:$0xff] }
 0x3e0   :  { %v10986_v35 = vmul.f32 %v509_v34, %v506_v33  ;;  %v11002_v33 = vcombine.high %v880_v27, %v884_v29  ;;  %v11004_v34 = vcombine.low %v880_v27, %v884_v29  ;;  %v943_v29 = vld [vmem:[#allocation19 + $0x200] sm:$0xff] }
 0x3e2   :  { %14515 = vst [vmem:[#allocation72_spill] sm:$0xff] %v10986_v35  ;;  %v511_v37 = vpack.c.bf16 %v10986_v35, %v10986_v35  ;;  %14519 = vst [vmem:[#allocation75_spill] sm:$0xff] %v11002_v33  ;;  %v992_v35 = vld [vmem:[#allocation19 + $0x388] sm:$0xff] }
 0x3e3   :  { %14520 = vst [vmem:[#allocation76_spill] sm:$0xff] %v11004_v34 }
 0x3e4   :  { %9156 = vmatmul.mubr.msk.bf16.vlgmr.msra.gmra.mrb[4].mxu1 %vm475_vm3, %v511_v37  ;;  %v888_v37 = vld [vmem:[#allocation19 + $0x48] sm:$0xff] }
 0x3e5   :  { %743 = vmatpush1.bf16.msra.mxu1 %v9296_v36  ;;  %774 = vmatprep.mubr.bf16.mxu1 %v13909_v48  ;;  %v11006_v36 = vcombine.high %v887_v31, %v891_v32 }
 0x3e6   :  { %744 = vmatprep.subr.bf16.mxu1 %v9304_v38  ;;  %v892_v38 = vld [vmem:[#allocation19 + $0x68] sm:$0xff] }
 0x3e7   :  { %14521 = vst [vmem:[#allocation77_spill] sm:$0xff] %v11006_v36  ;;  %v11017_v45 = vcombine.low %v888_v37, %v892_v38 }
 0x3e9   :  { %745 = vmatpush1.bf16.msra.mxu1 %v9302_v39  ;;  %v895_v39 = vld [vmem:[#allocation19 + $0x80] sm:$0xff]  ;;  %14524 = vst [vmem:[#allocation80_spill] sm:$0xff] %v11017_v45 }
 0x3ea   :  { %746 = vmatprep.subr.bf16.mxu1 %v9310_v40  ;;  %v11009_v40 = vcombine.high %v888_v37, %v892_v38  ;;  %v948_v38 = vld [vmem:[#allocation19 + $0x228] sm:$0xff] }
 0x3ec   :  { %14522 = vst [vmem:[#allocation78_spill] sm:$0xff] %v11009_v40 }
 0x3ed   :  { %747 = vmatpush1.bf16.msra.mxu1 %v9308_v41  ;;  %v899_v41 = vld [vmem:[#allocation19 + $0xa0] sm:$0xff] }
 0x3ee   :  { %748 = vmatprep.subr.bf16.mxu1 %v9316_v43  ;;  %v900_v43 = vld [vmem:[#allocation19 + $0xa8] sm:$0xff]  ;;  %v11019_v46 = vcombine.high %v895_v39, %v899_v41 }
 0x3f0   :  { %14525 = vst [vmem:[#allocation81_spill] sm:$0xff] %v11019_v46 }
 0x3f1   :  { %749 = vmatpush1.bf16.msra.mxu1 %v9314_v44  ;;  %v11013_v44 = vcombine.low %v887_v31, %v891_v32  ;;  %v947_v31 = vld [vmem:[#allocation19 + $0x220] sm:$0xff]  ;;  %v944_v32 = vld [vmem:[#allocation19 + $0x208] sm:$0xff] }
 0x3f2   :  { %1214 = vmatprep.subr.bf16.mxu1 %v9323_v47  ;;  %v11022_v47 = vcombine.high %v896_v42, %v900_v43  ;;  %v11094_v37 = vcombine.high %v943_v29, %v947_v31 }
 0x3f3   :  { %14523 = vst [vmem:[#allocation79_spill] sm:$0xff] %v11013_v44 }
 0x3f4   :  { %14526 = vst [vmem:[#allocation82_spill] sm:$0xff] %v11022_v47  ;;  %14549 = vst [vmem:[#allocation105_spill] sm:$0xff] %v11094_v37 }
 0x4b7   :  { %v572_v50 = vpop.f32.mrb[4].mxu1 }
 0x4b8   :  { %v573_v51 = vadd.f32 %v8537_v49, %v572_v50  ;;  %v9157_v52 = vpop.f32.mrb[5].mxu1  ;;  %v903_v49 = vld [vmem:[#allocation19 + $0xc0] sm:$0xff] }
 0x4b9   :  { %v575_v53 = vpop.f32.mrb[6].mxu1  ;;  %v907_v50 = vld [vmem:[#allocation19 + $0xe0] sm:$0xff]  ;;  %v908_v52 = vld [vmem:[#allocation19 + $0xe8] sm:$0xff] }
 0x4ba   :  { %v578_v56 = vpack.c.bf16 %v573_v51, %v573_v51  ;;  %v9158_v57 = vpop.f32.mrb[7].mxu1  ;;  %v904_v51 = vld [vmem:[#allocation19 + $0xc8] sm:$0xff]  ;;  %v11025_v53 = vcombine.low %v895_v39, %v899_v41  ;;  %v11096_v39 = vcombine.high %v944_v32, %v948_v38  ;;  %v11098_v41 = vcombine.low %v943_v29, %v947_v31 }
 0x4bb   :  { %v11037_v57 = vcombine.low %v903_v49, %v907_v50 }
 0x4bc   :  { %8557 = vmatmul.mubr.msk.bf16.vlgmr.msra.gmra.mrb[0].mxu0 %vm697_vm4, %v578_v56  ;;  %8558 = vmatmul.mubr.msk.bf16.vlgmr.msra.gmra.mrb[8].mxu1 %vm697_vm4, %v578_v56  ;;  %14527 = vst [vmem:[#allocation83_spill] sm:$0xff] %v11025_v53  ;;  %v11034_v56 = vcombine.high %v904_v51, %v908_v52  ;;  %14550 = vst [vmem:[#allocation106_spill] sm:$0xff] %v11096_v39 }
 0x4bd   :  { %1174 = vmatpush1.bf16.msra.mxu0 %v9318_v54  ;;  %1215 = vmatpush1.bf16.msra.mxu1 %v9321_v55  ;;  %v11029_v54 = vcombine.low %v896_v42, %v900_v43  ;;  %v11031_v55 = vcombine.high %v903_v49, %v907_v50  ;;  %14531 = vst [vmem:[#allocation87_spill] sm:$0xff] %v11037_v57  ;;  %14551 = vst [vmem:[#allocation107_spill] sm:$0xff] %v11098_v41  ;;  %v951_v43 = vld [vmem:[#allocation19 + $0x240] sm:$0xff]  ;;  %v952_v50 = vld [vmem:[#allocation19 + $0x248] sm:$0xff] }
 0x4be   :  { %1175 = vmatprep.subr.bf16.mxu0 %v9326_v58  ;;  %1216 = vmatprep.subr.bf16.mxu1 %v9329_v59  ;;  %14530 = vst [vmem:[#allocation86_spill] sm:$0xff] %v11034_v56  ;;  %v11041_v58 = vcombine.low %v904_v51, %v908_v52  ;;  %v911_v59 = vld [vmem:[#allocation19 + $0x100] sm:$0xff]  ;;  %v11100_v42 = vcombine.low %v944_v32, %v948_v38  ;;  %v956_v52 = vld [vmem:[#allocation19 + $0x268] sm:$0xff] }
 0x4bf   :  { %1205 = vmatprep.mubr.bf16.mxu0 %v13909_v48  ;;  %1246 = vmatprep.mubr.bf16.mxu1 %v13909_v48  ;;  %14528 = vst [vmem:[#allocation84_spill] sm:$0xff] %v11029_v54  ;;  %14529 = vst [vmem:[#allocation85_spill] sm:$0xff] %v11031_v55  ;;  %v955_v49 = vld [vmem:[#allocation19 + $0x260] sm:$0xff] }
 0x4c0   :  { %14532 = vst [vmem:[#allocation88_spill] sm:$0xff] %v11041_v58  ;;  %14552 = vst [vmem:[#allocation108_spill] sm:$0xff] %v11100_v42  ;;  %v11106_v51 = vcombine.high %v951_v43, %v955_v49  ;;  %v975_v38 = vld [vmem:[#allocation19 + $0x300] sm:$0xff] }
 0x4c1   :  { %1176 = vmatpush1.bf16.msra.mxu0 %v9324_v60  ;;  %1217 = vmatpush1.bf16.msra.mxu1 %v9327_v61  ;;  %v915_v60 = vld [vmem:[#allocation19 + $0x120] sm:$0xff]  ;;  %v912_v61 = vld [vmem:[#allocation19 + $0x108] sm:$0xff] }
 0x4c2   :  { %1177 = vmatprep.subr.bf16.mxu0 %v9332_v62  ;;  %1218 = vmatprep.subr.bf16.mxu1 %v9335_v63  ;;  %v11046_v62 = vcombine.high %v911_v59, %v915_v60  ;;  %v916_v63 = vld [vmem:[#allocation19 + $0x128] sm:$0xff]  ;;  %14553 = vst [vmem:[#allocation109_spill] sm:$0xff] %v11106_v51 }
 0x4c4   :  { %14533 = vst [vmem:[#allocation89_spill] sm:$0xff] %v11046_v62 }
 0x4c5   :  { %1178 = vmatpush1.bf16.msra.mxu0 %v9330_v1  ;;  %1219 = vmatpush1.bf16.msra.mxu1 %v9333_v2  ;;  %v11048_v1 = vcombine.high %v912_v61, %v916_v63  ;;  %v11050_v2 = vcombine.low %v911_v59, %v915_v60  ;;  %v11108_v59 = vcombine.high %v952_v50, %v956_v52 }
 0x4c6   :  { %1179 = vmatprep.subr.bf16.mxu0 %v9338_v3  ;;  %1220 = vmatprep.subr.bf16.mxu1 %v9341_v4  ;;  %v11052_v3 = vcombine.low %v912_v61, %v916_v63  ;;  %v919_v4 = vld [vmem:[#allocation19 + $0x140] sm:$0xff]  ;;  %v11110_v60 = vcombine.low %v951_v43, %v955_v49  ;;  %v11112_v61 = vcombine.low %v952_v50, %v956_v52  ;;  %v976_v49 = vld [vmem:[#allocation19 + $0x308] sm:$0xff] }
 0x4c7   :  { %14534 = vst [vmem:[#allocation90_spill] sm:$0xff] %v11048_v1  ;;  %14535 = vst [vmem:[#allocation91_spill] sm:$0xff] %v11050_v2  ;;  %v959_v63 = vld [vmem:[#allocation19 + $0x280] sm:$0xff]  ;;  %v980_v52 = vld [vmem:[#allocation19 + $0x328] sm:$0xff] }
 0x4c8   :  { %14536 = vst [vmem:[#allocation92_spill] sm:$0xff] %v11052_v3  ;;  %14554 = vst [vmem:[#allocation110_spill] sm:$0xff] %v11108_v59  ;;  %v979_v43 = vld [vmem:[#allocation19 + $0x320] sm:$0xff] }
 0x4c9   :  { %1180 = vmatpush1.bf16.msra.mxu0 %v9336_v5  ;;  %1221 = vmatpush1.bf16.msra.mxu1 %v9339_v6  ;;  %v923_v5 = vld [vmem:[#allocation19 + $0x160] sm:$0xff]  ;;  %v920_v6 = vld [vmem:[#allocation19 + $0x148] sm:$0xff]  ;;  %14555 = vst [vmem:[#allocation111_spill] sm:$0xff] %v11110_v60  ;;  %14556 = vst [vmem:[#allocation112_spill] sm:$0xff] %v11112_v61  ;;  %v11142_v50 = vcombine.high %v975_v38, %v979_v43 }
 0x4ca   :  { %1181 = vmatprep.subr.bf16.mxu0 %v9344_v7  ;;  %1222 = vmatprep.subr.bf16.mxu1 %v9347_v8  ;;  %v11058_v7 = vcombine.high %v919_v4, %v923_v5  ;;  %v924_v8 = vld [vmem:[#allocation19 + $0x168] sm:$0xff] }
 0x4cb   :  { %14565 = vst [vmem:[#allocation121_spill] sm:$0xff] %v11142_v50 }
 0x4cc   :  { %14537 = vst [vmem:[#allocation93_spill] sm:$0xff] %v11058_v7 }
 0x4cd   :  { %1182 = vmatpush1.bf16.msra.mxu0 %v9342_v9  ;;  %1223 = vmatpush1.bf16.msra.mxu1 %v9345_v10  ;;  %v11060_v9 = vcombine.high %v920_v6, %v924_v8  ;;  %v11062_v10 = vcombine.low %v919_v4, %v923_v5  ;;  %v963_v4 = vld [vmem:[#allocation19 + $0x2a0] sm:$0xff]  ;;  %v960_v5 = vld [vmem:[#allocation19 + $0x288] sm:$0xff] }
 0x4ce   :  { %1183 = vmatprep.subr.bf16.mxu0 %v9350_v11  ;;  %1224 = vmatprep.subr.bf16.mxu1 %v9353_v12  ;;  %v11064_v11 = vcombine.low %v920_v6, %v924_v8  ;;  %v927_v12 = vld [vmem:[#allocation19 + $0x180] sm:$0xff]  ;;  %v11118_v6 = vcombine.high %v959_v63, %v963_v4  ;;  %v964_v8 = vld [vmem:[#allocation19 + $0x2a8] sm:$0xff] }
 0x4cf   :  { %14538 = vst [vmem:[#allocation94_spill] sm:$0xff] %v11060_v9  ;;  %14539 = vst [vmem:[#allocation95_spill] sm:$0xff] %v11062_v10 }
 0x4d0   :  { %14540 = vst [vmem:[#allocation96_spill] sm:$0xff] %v11064_v11  ;;  %14557 = vst [vmem:[#allocation113_spill] sm:$0xff] %v11118_v6 }
 0x4d1   :  { %1184 = vmatpush1.bf16.msra.mxu0 %v9348_v13  ;;  %1225 = vmatpush1.bf16.msra.mxu1 %v9351_v14  ;;  %v931_v13 = vld [vmem:[#allocation19 + $0x1a0] sm:$0xff]  ;;  %v928_v14 = vld [vmem:[#allocation19 + $0x188] sm:$0xff] }
 0x4d2   :  { %1185 = vmatprep.subr.bf16.mxu0 %v9356_v15  ;;  %1226 = vmatprep.subr.bf16.mxu1 %v9359_v16  ;;  %v11070_v15 = vcombine.high %v927_v12, %v931_v13  ;;  %v932_v16 = vld [vmem:[#allocation19 + $0x1a8] sm:$0xff] }
 0x4d4   :  { %14541 = vst [vmem:[#allocation97_spill] sm:$0xff] %v11070_v15 }
 0x4d5   :  { %1186 = vmatpush1.bf16.msra.mxu0 %v9354_v17  ;;  %1227 = vmatpush1.bf16.msra.mxu1 %v9357_v18  ;;  %v11072_v17 = vcombine.high %v928_v14, %v932_v16  ;;  %v11074_v18 = vcombine.low %v927_v12, %v931_v13  ;;  %v11120_v12 = vcombine.high %v960_v5, %v964_v8 }
 0x4d6   :  { %1187 = vmatprep.subr.bf16.mxu0 %v9362_v19  ;;  %1228 = vmatprep.subr.bf16.mxu1 %v9365_v20  ;;  %v11076_v19 = vcombine.low %v928_v14, %v932_v16  ;;  %v935_v20 = vld [vmem:[#allocation19 + $0x1c0] sm:$0xff]  ;;  %v11122_v13 = vcombine.low %v959_v63, %v963_v4  ;;  %v11124_v14 = vcombine.low %v960_v5, %v964_v8 }
 0x4d7   :  { %14542 = vst [vmem:[#allocation98_spill] sm:$0xff] %v11072_v17  ;;  %14543 = vst [vmem:[#allocation99_spill] sm:$0xff] %v11074_v18  ;;  %v967_v16 = vld [vmem:[#allocation19 + $0x2c0] sm:$0xff]  ;;  %v11144_v63 = vcombine.high %v976_v49, %v980_v52  ;;  %v11146_v4 = vcombine.low %v975_v38, %v979_v43  ;;  %v11148_v5 = vcombine.low %v976_v49, %v980_v52 }
 0x4d8   :  { %14544 = vst [vmem:[#allocation100_spill] sm:$0xff] %v11076_v19  ;;  %14558 = vst [vmem:[#allocation114_spill] sm:$0xff] %v11120_v12  ;;  %v983_v8 = vld [vmem:[#allocation19 + $0x340] sm:$0xff] }
 0x4d9   :  { %1188 = vmatpush1.bf16.msra.mxu0 %v9360_v21  ;;  %1229 = vmatpush1.bf16.msra.mxu1 %v9363_v22  ;;  %v939_v21 = vld [vmem:[#allocation19 + $0x1e0] sm:$0xff]  ;;  %v936_v22 = vld [vmem:[#allocation19 + $0x1c8] sm:$0xff]  ;;  %14559 = vst [vmem:[#allocation115_spill] sm:$0xff] %v11122_v13  ;;  %14560 = vst [vmem:[#allocation116_spill] sm:$0xff] %v11124_v14 }
 0x4da   :  { %1925 = vmatprep.subr.bf16.mxu0 %v10998_v28  ;;  %1966 = vmatprep.subr.bf16.mxu1 %v11002_v33  ;;  %v11082_v23 = vcombine.high %v935_v20, %v939_v21  ;;  %v11086_v26 = vcombine.low %v935_v20, %v939_v21  ;;  %v971_v20 = vld [vmem:[#allocation19 + $0x2e0] sm:$0xff]  ;;  %v968_v21 = vld [vmem:[#allocation19 + $0x2c8] sm:$0xff]  ;;  %14566 = vst [vmem:[#allocation122_spill] sm:$0xff] %v11144_v63  ;;  %14567 = vst [vmem:[#allocation123_spill] sm:$0xff] %v11146_v4 }
 0x4db   :  { %v11134_v31 = vcombine.low %v967_v16, %v971_v20  ;;  %14568 = vst [vmem:[#allocation124_spill] sm:$0xff] %v11148_v5  ;;  %v991_v38 = vld [vmem:[#allocation19 + $0x380] sm:$0xff] }
 0x4dc   :  { %1206 = vmatmul.mubr.bf16.vlgmr.msra.gmra.mrb[4].mxu0 %v1012_v24  ;;  %1247 = vmatmul.mubr.bf16.vlgmr.msra.gmra.mrb[12].mxu1 %v1012_v24  ;;  %14545 = vst [vmem:[#allocation101_spill] sm:$0xff] %v11082_v23  ;;  %v940_v24 = vld [vmem:[#allocation19 + $0x1e8] sm:$0xff]  ;;  %14547 = vst [vmem:[#allocation103_spill] sm:$0xff] %v11086_v26  ;;  %v995_v43 = vld [vmem:[#allocation19 + $0x3a0] sm:$0xff] }
 0x4dd   :  { %1926 = vmatpush1.bf16.msra.mxu0 %v11000_v30  ;;  %1967 = vmatpush1.bf16.msra.mxu1 %v11004_v34  ;;  %v11084_v25 = vcombine.high %v936_v22, %v940_v24  ;;  %v11088_v27 = vcombine.low %v936_v22, %v940_v24  ;;  %v11130_v22 = vcombine.high %v967_v16, %v971_v20  ;;  %v972_v24 = vld [vmem:[#allocation19 + $0x2e8] sm:$0xff]  ;;  %v987_v16 = vld [vmem:[#allocation19 + $0x360] sm:$0xff] }
 0x4de   :  { %1927 = vmatprep.subr.bf16.mxu0 %v11006_v36  ;;  %1968 = vmatprep.subr.bf16.mxu1 %v11009_v40  ;;  %v11132_v29 = vcombine.high %v968_v21, %v972_v24  ;;  %14563 = vst [vmem:[#allocation119_spill] sm:$0xff] %v11134_v31  ;;  %v11136_v32 = vcombine.low %v968_v21, %v972_v24  ;;  %v984_v20 = vld [vmem:[#allocation19 + $0x348] sm:$0xff] }
 0x4df   :  { %14546 = vst [vmem:[#allocation102_spill] sm:$0xff] %v11084_v25  ;;  %14548 = vst [vmem:[#allocation104_spill] sm:$0xff] %v11088_v27  ;;  %v11154_v21 = vcombine.high %v983_v8, %v987_v16  ;;  %v988_v24 = vld [vmem:[#allocation19 + $0x368] sm:$0xff]  ;;  %v11156_v48 = vcombine.low %v983_v8, %v987_v16  ;;  %v11162_v0 = vcombine.high %v991_v38, %v995_v43 }
 0x4e0   :  { %14561 = vst [vmem:[#allocation117_spill] sm:$0xff] %v11130_v22  ;;  %14562 = vst [vmem:[#allocation118_spill] sm:$0xff] %v11132_v29  ;;  %v11158_v49 = vcombine.high %v984_v20, %v988_v24  ;;  %v11160_v52 = vcombine.low %v984_v20, %v988_v24  ;;  %v1004_v8 = vld [vmem:[#allocation19 + $0x3e8] sm:$0xff]  ;;  %v11169_v16 = vcombine.low %v991_v38, %v995_v43  ;;  %v1010_v20 = vld [vmem:[%s14516_s19 + $0x1] sm:$0x1] }
 0x4e1   :  { %1928 = vmatpush1.bf16.msra.mxu0 %v11013_v44  ;;  %1969 = vmatpush1.bf16.msra.mxu1 %v11017_v45  ;;  %14564 = vst [vmem:[#allocation120_spill] sm:$0xff] %v11136_v32  ;;  %14569 = vst [vmem:[#allocation125_spill] sm:$0xff] %v11154_v21  ;;  %v882_v38 = vld [vmem:[#allocation19 + $0x18] sm:$0xff] }
 0x4e2   :  { %1929 = vmatprep.subr.bf16.mxu0 %v11019_v46  ;;  %1970 = vmatprep.subr.bf16.mxu1 %v11022_v47  ;;  %14570 = vst [vmem:[#allocation126_spill] sm:$0xff] %v11156_v48  ;;  %14571 = vst [vmem:[#allocation127_spill] sm:$0xff] %v11158_v49  ;;  %v886_v43 = vld [vmem:[#allocation19 + $0x38] sm:$0xff] }
 0x4e3   :  { %14572 = vst [vmem:[#allocation128_spill] sm:$0xff] %v11160_v52  ;;  %14573 = vst [vmem:[#allocation129_spill] sm:$0xff] %v11162_v0 }
 0x4e4   :  { %14575 = vst [vmem:[#allocation131_spill] sm:$0xff] %v11169_v16 }
 0x4e5   :  { %1930 = vmatpush1.bf16.msra.mxu0 %v11025_v53  ;;  %1971 = vmatpush1.bf16.msra.mxu1 %v11029_v54 }
 0x4e6   :  { %1931 = vmatprep.subr.bf16.mxu0 %v11031_v55  ;;  %1972 = vmatprep.subr.bf16.mxu1 %v11034_v56 }
 0x4e9   :  { %1932 = vmatpush1.bf16.msra.mxu0 %v11037_v57  ;;  %1973 = vmatpush1.bf16.msra.mxu1 %v11041_v58 }
 0x4ea   :  { %1933 = vmatprep.subr.bf16.mxu0 %v11046_v62  ;;  %1974 = vmatprep.subr.bf16.mxu1 %v11048_v1 }
 0x4ed   :  { %1934 = vmatpush1.bf16.msra.mxu0 %v11050_v2  ;;  %1975 = vmatpush1.bf16.msra.mxu1 %v11052_v3 }
 0x4ee   :  { %1935 = vmatprep.subr.bf16.mxu0 %v11058_v7  ;;  %1976 = vmatprep.subr.bf16.mxu1 %v11060_v9 }
 0x4f1   :  { %1936 = vmatpush1.bf16.msra.mxu0 %v11062_v10  ;;  %1977 = vmatpush1.bf16.msra.mxu1 %v11064_v11 }
 0x4f2   :  { %1937 = vmatprep.subr.bf16.mxu0 %v11070_v15  ;;  %1978 = vmatprep.subr.bf16.mxu1 %v11072_v17 }
 0x4f5   :  { %1938 = vmatpush1.bf16.msra.mxu0 %v11074_v18  ;;  %1979 = vmatpush1.bf16.msra.mxu1 %v11076_v19 }
 0x4f6   :  { %1939 = vmatprep.subr.bf16.mxu0 %v11082_v23  ;;  %1980 = vmatprep.subr.bf16.mxu1 %v11084_v25 }
 0x4f9   :  { %1940 = vmatpush1.bf16.msra.mxu0 %v11086_v26  ;;  %1981 = vmatpush1.bf16.msra.mxu1 %v11088_v27 }
 0x4fa   :  { %1941 = vmatprep.subr.bf16.mxu0 %v11094_v37  ;;  %1982 = vmatprep.subr.bf16.mxu1 %v11096_v39 }
 0x4fd   :  { %1942 = vmatpush1.bf16.msra.mxu0 %v11098_v41  ;;  %1983 = vmatpush1.bf16.msra.mxu1 %v11100_v42 }
 0x4fe   :  { %1943 = vmatprep.subr.bf16.mxu0 %v11106_v51  ;;  %1984 = vmatprep.subr.bf16.mxu1 %v11108_v59 }
 0x501   :  { %1944 = vmatpush1.bf16.msra.mxu0 %v11110_v60  ;;  %1985 = vmatpush1.bf16.msra.mxu1 %v11112_v61 }
 0x502   :  { %1945 = vmatprep.subr.bf16.mxu0 %v11118_v6  ;;  %1986 = vmatprep.subr.bf16.mxu1 %v11120_v12 }
 0x505   :  { %1946 = vmatpush1.bf16.msra.mxu0 %v11122_v13  ;;  %1987 = vmatpush1.bf16.msra.mxu1 %v11124_v14 }
 0x506   :  { %1947 = vmatprep.subr.bf16.mxu0 %v11130_v22  ;;  %1988 = vmatprep.subr.bf16.mxu1 %v11132_v29  ;;  %v885_v22 = vld [vmem:[#allocation19 + $0x30] sm:$0xff] }
 0x509   :  { %1948 = vmatpush1.bf16.msra.mxu0 %v11134_v31  ;;  %1989 = vmatpush1.bf16.msra.mxu1 %v11136_v32  ;;  %v1000_v32 = vld [vmem:[#allocation19 + $0x3c8] sm:$0xff] }
 0x50a   :  { %1949 = vmatprep.subr.bf16.mxu0 %v11142_v50  ;;  %1990 = vmatprep.subr.bf16.mxu1 %v11144_v63  ;;  %v999_v63 = vld [vmem:[#allocation19 + $0x3c0] sm:$0xff]  ;;  %v11181_v29 = vcombine.high %v1000_v32, %v1004_v8 }
 0x50b   :  { %v1003_v50 = vld [vmem:[#allocation19 + $0x3e0] sm:$0xff] }
 0x50c   :  { %v11176_v31 = vcombine.high %v999_v63, %v1003_v50  ;;  %14578 = vst [vmem:[#allocation134_spill] sm:$0xff] %v11181_v29 }
 0x50d   :  { %1950 = vmatpush1.bf16.msra.mxu0 %v11146_v4  ;;  %1991 = vmatpush1.bf16.msra.mxu1 %v11148_v5  ;;  %v996_v4 = vld [vmem:[#allocation19 + $0x3a8] sm:$0xff] }
 0x50e   :  { %1951 = vmatprep.subr.bf16.mxu0 %v11154_v21  ;;  %v11165_v5 = vcombine.high %v992_v35, %v996_v4  ;;  %1992 = vmatprep.subr.bf16.mxu1 %v11158_v49  ;;  %v11174_v24 = vcombine.low %v992_v35, %v996_v4  ;;  %14577 = vst [vmem:[#allocation133_spill] sm:$0xff] %v11176_v31  ;;  %v881_v49 = vld [vmem:[#allocation19 + $0x10] sm:$0xff] }
 0x50f   :  { %v11178_v21 = vpack.c.bf16 %v1010_v20, %v1010_v20  ;;  %v11186_v35 = vcombine.low %v999_v63, %v1003_v50  ;;  %v11190_v4 = vcombine.low %v1000_v32, %v1004_v8  ;;  %v11192_v20 = vcombine.high %v881_v49, %v885_v22 }
 0x510   :  { %14574 = vst [vmem:[#allocation130_spill] sm:$0xff] %v11165_v5  ;;  %14576 = vst [vmem:[#allocation132_spill] sm:$0xff] %v11174_v24  ;;  %v11201_v50 = vcombine.low %v881_v49, %v885_v22  ;;  %v11203_v63 = vcombine.low %v882_v38, %v886_v43 }
 0x511   :  { %1952 = vmatpush1.bf16.msra.mxu0 %v11156_v48  ;;  %1993 = vmatpush1.bf16.msra.mxu1 %v11160_v52  ;;  %14579 = vst [vmem:[#allocation135_spill] sm:$0xff] %v11186_v35  ;;  %14580 = vst [vmem:[#allocation136_spill] sm:$0xff] %v11190_v4  ;;  %v597_v48 = vlaneseq }
 0x512   :  { %1953 = vmatprep.subr.bf16.mxu0 %v11162_v0  ;;  %1994 = vmatprep.subr.bf16.mxu1 %v11165_v5  ;;  %14581 = vst [vmem:[#allocation137_spill] sm:$0xff] %v11192_v20  ;;  %v11195_v5 = vcombine.high %v882_v38, %v886_v43  ;;  %14583 = vst [vmem:[#allocation139_spill] sm:$0xff] %v11203_v63 }
 0x513   :  { %1957 = vmatprep.mubr.bf16.mxu0 %v11178_v21  ;;  %1998 = vmatprep.mubr.bf16.mxu1 %v11178_v21 }
 0x514   :  { %14582 = vst [vmem:[#allocation138_spill] sm:$0xff] %v11195_v5 }
 0x515   :  { %1954 = vmatpush1.bf16.msra.mxu0 %v11169_v16  ;;  %1995 = vmatpush1.bf16.msra.mxu1 %v11174_v24 }
 0x516   :  { %1955 = vmatprep.subr.bf16.mxu0 %v11176_v31  ;;  %1996 = vmatprep.subr.bf16.mxu1 %v11181_v29 }
 0x519   :  { %1956 = vmatpush1.bf16.msra.mxu0 %v11186_v35  ;;  %1997 = vmatpush1.bf16.msra.mxu1 %v11190_v4  ;;  %v11205_v35 = vshrl.u32 %v597_v48, 7 }
 0x51a   :  { %2007 = vmatprep.subr.bf16.mxu0 %v11192_v20  ;;  %2048 = vmatprep.subr.bf16.mxu1 %v11195_v5  ;;  %v595_v20 = vld [vmem:[#allocation14] sm:$0xf] }
 0x51b   :  { %14584 = vst [vmem:[#allocation140_spill] sm:$0xff] %v11205_v35  ;;  %v11208_v4 = vsub.s32 0, %v11205_v35  ;;  %v13968_v22 = vsub.s32 1, %v11205_v35  ;;  %v13976_v13 = vsub.s32 3, %v11205_v35 }
 0x51d   :  { %14585 = vst [vmem:[#allocation141_spill] sm:$0xff] %v11208_v4  ;;  %v600_v49 = vrot.slane %v595_v20, %v11208_v4  ;;  %v604_v38 = vrot.slane %v595_v20, %v13968_v22 }
 0x58f   :  { %v735_v32 = vpop.f32.mrb[0].mxu0  ;;  %v776_v8 = vpop.f32.mrb[8].mxu1 }
 0x590   :  { %v737_v31 = vpop.f32.mrb[1].mxu0  ;;  %v778_v24 = vpop.f32.mrb[9].mxu1  ;;  %v11214_v43 = vadd.f32 %v735_v32, %v600_v49 }
 0x591   :  { %v739_v16 = vpop.f32.mrb[2].mxu0  ;;  %v780_v29 = vpop.f32.mrb[10].mxu1 }
 0x592   :  { %v740_v0 = vpop.f32.mrb[3].mxu0  ;;  %v781_v52 = vpop.f32.mrb[11].mxu1  ;;  %14586 = vst [vmem:[#allocation142_spill] sm:$0xff] %v11214_v43  ;;  %v13975_v29 = vsub.s32 2, %v11205_v35  ;;  %v910_v35 = vld [vmem:[#allocation19 + $0xf8] sm:$0xff] }
 0x593   :  { %v11217_v0 = vadd.f32 %v737_v31, %v604_v38  ;;  %v612_v38 = vrot.slane %v595_v20, %v13976_v13  ;;  %v906_v13 = vld [vmem:[#allocation19 + $0xd8] sm:$0xff] }
 0x594   :  { %v608_v32 = vrot.slane %v595_v20, %v13975_v29 }
 0x595   :  { %v11229_v60 = vadd.f32 %v778_v24, %v612_v38 }
 0x597   :  { %14588 = vst [vmem:[#allocation144_spill] sm:$0xff] %v11229_v60 }
 0x5af   :  { %v1207_v52 = vpop.f32.mrb[4].mxu0  ;;  %v1248_v48 = vpop.f32.mrb[12].mxu1 }
 0x5b0   :  { %v1255_v16 = vadd.f32 %v1207_v52, %v11214_v43  ;;  %v1209_v5 = vpop.f32.mrb[5].mxu0  ;;  %v1250_v14 = vpop.f32.mrb[13].mxu1  ;;  %v11226_v52 = vadd.f32 %v776_v8, %v608_v32 }
 0x5b1   :  { %v1256_v12 = vadd.f32 %v1209_v5, %v11217_v0  ;;  %v1211_v4 = vpop.f32.mrb[6].mxu0  ;;  %v1252_v6 = vpop.f32.mrb[14].mxu1 }
 0x5b2   :  { %v8591_v49 = vmul.f32 -1.442695, %v1255_v16  ;;  %v1212_v22 = vpop.f32.mrb[7].mxu0  ;;  %v1253_v61 = vpop.f32.mrb[15].mxu1  ;;  %14587 = vst [vmem:[#allocation143_spill] sm:$0xff] %v11226_v52  ;;  %v1257_v43 = vadd.f32 %v1248_v48, %v11226_v52  ;;  %v1258_v6 = vadd.f32 %v1250_v14, %v11229_v60 }
 0x5b3   :  { %v8592_v31 = vmul.f32 -1.442695, %v1256_v12  ;;  %v1009_v16 = vld [vmem:[#allocation23] sm:$0x1] }
 0x5b4   :  { %9652 = vpow2.f32 %v8591_v49  ;;  %v8593_v5 = vmul.f32 -1.442695, %v1257_v43  ;;  %v889_v43 = vld [vmem:[#allocation19 + $0x50] sm:$0xff] }
 0x5b5   :  { %9654 = vpow2.f32 %v8592_v31 }
 0x5b6   :  { %9656 = vtanh.f32 %v1258_v6  ;;  %v893_v6 = vld [vmem:[#allocation19 + $0x70] sm:$0xff] }
 0x5b7   :  { %9658 = vpow2.f32 %v8593_v5  ;;  %v894_v5 = vld [vmem:[#allocation19 + $0x78] sm:$0xff] }
 0x5be   :  { %v9653_v4 = vpop.eup %9652 }
 0x5bf   :  { %v1268_v29 = vadd.f32 1.0, %v9653_v4  ;;  %v9655_v22 = vpop.eup %9654 }
 0x5c0   :  { %v1269_v61 = vadd.f32 1.0, %v9655_v22  ;;  %v9657_v12 = vpop.eup %9656 }
 0x5c1   :  { %9660 = vrcp.f32 %v1268_v29  ;;  %v9659_v20 = vpop.eup %9658  ;;  %v890_v29 = vld [vmem:[#allocation19 + $0x58] sm:$0xff] }
 0x5c2   :  { %9662 = vrcp.f32 %v1269_v61  ;;  %v1270_v48 = vadd.f32 1.0, %v9659_v20  ;;  %v11237_v61 = vcombine.high %v889_v43, %v893_v6  ;;  %v897_v20 = vld [vmem:[#allocation19 + $0x90] sm:$0xff] }
 0x5c4   :  { %9664 = vrcp.f32 %v1270_v48  ;;  %14589 = vst [vmem:[#allocation145_spill] sm:$0xff] %v11237_v61  ;;  %v11247_v48 = vcombine.low %v890_v29, %v894_v5 }
 0x5c6   :  { %14592 = vst [vmem:[#allocation148_spill] sm:$0xff] %v11247_v48 }
 0x5cb   :  { %v9661_v8 = vpop.eup %9660 }
 0x5cc   :  { %v1279_v32 = vmul.f32 %v9661_v8, %v9657_v12  ;;  %v9663_v49 = vpop.eup %9662  ;;  %v11239_v12 = vcombine.high %v890_v29, %v894_v5  ;;  %v901_v8 = vld [vmem:[#allocation19 + $0xb0] sm:$0xff]  ;;  %v11267_v5 = vcombine.high %v906_v13, %v910_v35 }
 0x5cd   :  { %v1278_v24 = vmul.f32 %v9663_v49, %v1009_v16  ;;  %v898_v16 = vld [vmem:[#allocation19 + $0x98] sm:$0xff]  ;;  %v11245_v49 = vcombine.low %v889_v43, %v893_v6  ;;  %v11259_v43 = vcombine.low %v897_v20, %v901_v8 }
 0x5ce   :  { %v9665_v14 = vpop.eup %9664  ;;  %14590 = vst [vmem:[#allocation146_spill] sm:$0xff] %v11239_v12  ;;  %14598 = vst [vmem:[#allocation154_spill] sm:$0xff] %v11267_v5 }
 0x5cf   :  { %v11232_v31 = vadd.f32 %v1279_v32, %v1278_v24  ;;  %v902_v32 = vld [vmem:[#allocation19 + $0xb8] sm:$0xff]  ;;  %14591 = vst [vmem:[#allocation147_spill] sm:$0xff] %v11245_v49  ;;  %v11251_v24 = vcombine.high %v897_v20, %v901_v8  ;;  %14595 = vst [vmem:[#allocation151_spill] sm:$0xff] %v11259_v43  ;;  %v11273_v8 = vcombine.low %v906_v13, %v910_v35 }
 0x5d0   :  { %v11261_v6 = vcombine.low %v898_v16, %v902_v32 }
 0x5d1   :  { %9666 = vtanh.f32 %v11232_v31  ;;  %14593 = vst [vmem:[#allocation149_spill] sm:$0xff] %v11251_v24  ;;  %14600 = vst [vmem:[#allocation156_spill] sm:$0xff] %v11273_v8 }
 0x5d2   :  { %14596 = vst [vmem:[#allocation152_spill] sm:$0xff] %v11261_v6 }
 0x5db   :  { %v9667_v38 = vpop.eup %9666 }
 0x5dc   :  { %v1282_v4 = vmul.f32 %v9667_v38, %v9665_v14  ;;  %v11253_v14 = vcombine.high %v898_v16, %v902_v32  ;;  %v905_v38 = vld [vmem:[#allocation19 + $0xd0] sm:$0xff] }
 0x5de   :  { %v11235_v22 = vpack.c.bf16 %v1282_v4, %v1282_v4  ;;  %14594 = vst [vmem:[#allocation150_spill] sm:$0xff] %v11253_v14  ;;  %v909_v4 = vld [vmem:[#allocation19 + $0xf0] sm:$0xff] }
 0x5df   :  { %v11265_v29 = vcombine.high %v905_v38, %v909_v4  ;;  %v11271_v20 = vcombine.low %v905_v38, %v909_v4 }
 0x5e0   :  { %1958 = vmatmul.mubr.bf16.vlgmr.msra.gmra.mrb[8].mxu0 %v11235_v22  ;;  %1999 = vmatmul.mubr.bf16.vlgmr.msra.gmra.mrb[16].mxu1 %v11235_v22 }
 0x5e1   :  { %2008 = vmatpush1.bf16.msra.mxu0 %v11201_v50  ;;  %2049 = vmatpush1.bf16.msra.mxu1 %v11203_v63  ;;  %14597 = vst [vmem:[#allocation153_spill] sm:$0xff] %v11265_v29  ;;  %v914_v63 = vld [vmem:[#allocation19 + $0x118] sm:$0xff]  ;;  %14599 = vst [vmem:[#allocation155_spill] sm:$0xff] %v11271_v20 }
 0x5e2   :  { %2009 = vmatprep.subr.bf16.mxu0 %v11237_v61  ;;  %2050 = vmatprep.subr.bf16.mxu1 %v11239_v12  ;;  %v913_v12 = vld [vmem:[#allocation19 + $0x110] sm:$0xff] }
 0x5e3   :  { %2039 = vmatprep.mubr.bf16.mxu0 %v11178_v21  ;;  %2080 = vmatprep.mubr.bf16.mxu1 %v11178_v21  ;;  %v917_v61 = vld [vmem:[#allocation19 + $0x130] sm:$0xff]  ;;  %v918_v21 = vld [vmem:[#allocation19 + $0x138] sm:$0xff] }
 0x5e4   :  { %v11277_v16 = vcombine.high %v913_v12, %v917_v61  ;;  %v11279_v32 = vcombine.high %v914_v63, %v918_v21  ;;  %v11283_v38 = vcombine.low %v913_v12, %v917_v61  ;;  %v11285_v13 = vcombine.low %v914_v63, %v918_v21 }
 0x5e5   :  { %2010 = vmatpush1.bf16.msra.mxu0 %v11245_v49  ;;  %2051 = vmatpush1.bf16.msra.mxu1 %v11247_v48  ;;  %v922_v48 = vld [vmem:[#allocation19 + $0x158] sm:$0xff] }
 0x5e6   :  { %2011 = vmatprep.subr.bf16.mxu0 %v11251_v24  ;;  %2052 = vmatprep.subr.bf16.mxu1 %v11253_v14  ;;  %14601 = vst [vmem:[#allocation157_spill] sm:$0xff] %v11277_v16  ;;  %14602 = vst [vmem:[#allocation158_spill] sm:$0xff] %v11279_v32  ;;  %v921_v14 = vld [vmem:[#allocation19 + $0x150] sm:$0xff]  ;;  %v926_v49 = vld [vmem:[#allocation19 + $0x178] sm:$0xff] }
 0x5e7   :  { %v925_v24 = vld [vmem:[#allocation19 + $0x170] sm:$0xff]  ;;  %14603 = vst [vmem:[#allocation159_spill] sm:$0xff] %v11283_v38  ;;  %14604 = vst [vmem:[#allocation160_spill] sm:$0xff] %v11285_v13  ;;  %v11291_v4 = vcombine.high %v922_v48, %v926_v49  ;;  %v11297_v63 = vcombine.low %v922_v48, %v926_v49 }
 0x5e8   :  { %v11289_v35 = vcombine.high %v921_v14, %v925_v24  ;;  %v11295_v61 = vcombine.low %v921_v14, %v925_v24 }
 0x5e9   :  { %2012 = vmatpush1.bf16.msra.mxu0 %v11259_v43  ;;  %2053 = vmatpush1.bf16.msra.mxu1 %v11261_v6  ;;  %14606 = vst [vmem:[#allocation162_spill] sm:$0xff] %v11291_v4  ;;  %v930_v6 = vld [vmem:[#allocation19 + $0x198] sm:$0xff]  ;;  %14608 = vst [vmem:[#allocation164_spill] sm:$0xff] %v11297_v63 }
 0x5ea   :  { %2013 = vmatprep.subr.bf16.mxu0 %v11265_v29  ;;  %2054 = vmatprep.subr.bf16.mxu1 %v11267_v5  ;;  %14605 = vst [vmem:[#allocation161_spill] sm:$0xff] %v11289_v35  ;;  %v929_v5 = vld [vmem:[#allocation19 + $0x190] sm:$0xff]  ;;  %v934_v43 = vld [vmem:[#allocation19 + $0x1b8] sm:$0xff]  ;;  %14607 = vst [vmem:[#allocation163_spill] sm:$0xff] %v11295_v61 }
 0x5eb   :  { %v933_v29 = vld [vmem:[#allocation19 + $0x1b0] sm:$0xff]  ;;  %v11303_v21 = vcombine.high %v930_v6, %v934_v43  ;;  %v11309_v49 = vcombine.low %v930_v6, %v934_v43 }
 0x5ec   :  { %v11301_v12 = vcombine.high %v929_v5, %v933_v29  ;;  %v11307_v24 = vcombine.low %v929_v5, %v933_v29 }
 0x5ed   :  { %2014 = vmatpush1.bf16.msra.mxu0 %v11271_v20  ;;  %2055 = vmatpush1.bf16.msra.mxu1 %v11273_v8  ;;  %14610 = vst [vmem:[#allocation166_spill] sm:$0xff] %v11303_v21  ;;  %v938_v8 = vld [vmem:[#allocation19 + $0x1d8] sm:$0xff]  ;;  %14612 = vst [vmem:[#allocation168_spill] sm:$0xff] %v11309_v49 }
 0x5ee   :  { %2015 = vmatprep.subr.bf16.mxu0 %v11277_v16  ;;  %2056 = vmatprep.subr.bf16.mxu1 %v11279_v32  ;;  %14609 = vst [vmem:[#allocation165_spill] sm:$0xff] %v11301_v12  ;;  %v937_v32 = vld [vmem:[#allocation19 + $0x1d0] sm:$0xff]  ;;  %v942_v20 = vld [vmem:[#allocation19 + $0x1f8] sm:$0xff]  ;;  %14611 = vst [vmem:[#allocation167_spill] sm:$0xff] %v11307_v24 }
 0x5ef   :  { %v941_v16 = vld [vmem:[#allocation19 + $0x1f0] sm:$0xff]  ;;  %v11315_v14 = vcombine.high %v938_v8, %v942_v20  ;;  %v11321_v43 = vcombine.low %v938_v8, %v942_v20 }
 0x5f0   :  { %v11313_v48 = vcombine.high %v937_v32, %v941_v16  ;;  %v11319_v29 = vcombine.low %v937_v32, %v941_v16 }
 0x5f1   :  { %2016 = vmatpush1.bf16.msra.mxu0 %v11283_v38  ;;  %2057 = vmatpush1.bf16.msra.mxu1 %v11285_v13  ;;  %14614 = vst [vmem:[#allocation170_spill] sm:$0xff] %v11315_v14  ;;  %v946_v13 = vld [vmem:[#allocation19 + $0x218] sm:$0xff]  ;;  %14616 = vst [vmem:[#allocation172_spill] sm:$0xff] %v11321_v43 }
 0x5f2   :  { %2017 = vmatprep.subr.bf16.mxu0 %v11289_v35  ;;  %2058 = vmatprep.subr.bf16.mxu1 %v11291_v4  ;;  %14613 = vst [vmem:[#allocation169_spill] sm:$0xff] %v11313_v48  ;;  %v945_v4 = vld [vmem:[#allocation19 + $0x210] sm:$0xff]  ;;  %v950_v38 = vld [vmem:[#allocation19 + $0x238] sm:$0xff]  ;;  %14615 = vst [vmem:[#allocation171_spill] sm:$0xff] %v11319_v29 }
 0x5f3   :  { %v949_v35 = vld [vmem:[#allocation19 + $0x230] sm:$0xff]  ;;  %v11327_v5 = vcombine.high %v946_v13, %v950_v38  ;;  %v11333_v20 = vcombine.low %v946_v13, %v950_v38 }
 0x5f4   :  { %v11325_v6 = vcombine.high %v945_v4, %v949_v35  ;;  %v11331_v16 = vcombine.low %v945_v4, %v949_v35 }
 0x5f5   :  { %2018 = vmatpush1.bf16.msra.mxu0 %v11295_v61  ;;  %2059 = vmatpush1.bf16.msra.mxu1 %v11297_v63  ;;  %14618 = vst [vmem:[#allocation174_spill] sm:$0xff] %v11327_v5  ;;  %v954_v63 = vld [vmem:[#allocation19 + $0x258] sm:$0xff]  ;;  %14620 = vst [vmem:[#allocation176_spill] sm:$0xff] %v11333_v20 }
 0x5f6   :  { %2019 = vmatprep.subr.bf16.mxu0 %v11301_v12  ;;  %2060 = vmatprep.subr.bf16.mxu1 %v11303_v21  ;;  %14617 = vst [vmem:[#allocation173_spill] sm:$0xff] %v11325_v6  ;;  %v953_v21 = vld [vmem:[#allocation19 + $0x250] sm:$0xff]  ;;  %v958_v61 = vld [vmem:[#allocation19 + $0x278] sm:$0xff]  ;;  %14619 = vst [vmem:[#allocation175_spill] sm:$0xff] %v11331_v16 }
 0x5f7   :  { %v957_v12 = vld [vmem:[#allocation19 + $0x270] sm:$0xff]  ;;  %v11339_v32 = vcombine.high %v954_v63, %v958_v61  ;;  %v11345_v38 = vcombine.low %v954_v63, %v958_v61 }
 0x5f8   :  { %v11337_v8 = vcombine.high %v953_v21, %v957_v12  ;;  %v11343_v35 = vcombine.low %v953_v21, %v957_v12 }
 0x5f9   :  { %2020 = vmatpush1.bf16.msra.mxu0 %v11307_v24  ;;  %2061 = vmatpush1.bf16.msra.mxu1 %v11309_v49  ;;  %14622 = vst [vmem:[#allocation178_spill] sm:$0xff] %v11339_v32  ;;  %v962_v49 = vld [vmem:[#allocation19 + $0x298] sm:$0xff]  ;;  %14624 = vst [vmem:[#allocation180_spill] sm:$0xff] %v11345_v38 }
 0x5fa   :  { %2021 = vmatprep.subr.bf16.mxu0 %v11313_v48  ;;  %2062 = vmatprep.subr.bf16.mxu1 %v11315_v14  ;;  %14621 = vst [vmem:[#allocation177_spill] sm:$0xff] %v11337_v8  ;;  %v961_v14 = vld [vmem:[#allocation19 + $0x290] sm:$0xff]  ;;  %v966_v24 = vld [vmem:[#allocation19 + $0x2b8] sm:$0xff]  ;;  %14623 = vst [vmem:[#allocation179_spill] sm:$0xff] %v11343_v35 }
 0x5fb   :  { %v965_v48 = vld [vmem:[#allocation19 + $0x2b0] sm:$0xff]  ;;  %v11351_v4 = vcombine.high %v962_v49, %v966_v24  ;;  %v11357_v61 = vcombine.low %v962_v49, %v966_v24 }
 0x5fc   :  { %v11349_v13 = vcombine.high %v961_v14, %v965_v48  ;;  %v11355_v12 = vcombine.low %v961_v14, %v965_v48 }
 0x5fd   :  { %2022 = vmatpush1.bf16.msra.mxu0 %v11319_v29  ;;  %2063 = vmatpush1.bf16.msra.mxu1 %v11321_v43  ;;  %14626 = vst [vmem:[#allocation182_spill] sm:$0xff] %v11351_v4  ;;  %v970_v43 = vld [vmem:[#allocation19 + $0x2d8] sm:$0xff]  ;;  %14628 = vst [vmem:[#allocation184_spill] sm:$0xff] %v11357_v61 }
 0x5fe   :  { %2023 = vmatprep.subr.bf16.mxu0 %v11325_v6  ;;  %2064 = vmatprep.subr.bf16.mxu1 %v11327_v5  ;;  %14625 = vst [vmem:[#allocation181_spill] sm:$0xff] %v11349_v13  ;;  %v969_v5 = vld [vmem:[#allocation19 + $0x2d0] sm:$0xff]  ;;  %v974_v29 = vld [vmem:[#allocation19 + $0x2f8] sm:$0xff]  ;;  %14627 = vst [vmem:[#allocation183_spill] sm:$0xff] %v11355_v12 }
 0x5ff   :  { %v973_v6 = vld [vmem:[#allocation19 + $0x2f0] sm:$0xff]  ;;  %v11363_v21 = vcombine.high %v970_v43, %v974_v29  ;;  %v11369_v24 = vcombine.low %v970_v43, %v974_v29 }
 0x600   :  { %v11361_v63 = vcombine.high %v969_v5, %v973_v6  ;;  %v11367_v48 = vcombine.low %v969_v5, %v973_v6 }
 0x601   :  { %2024 = vmatpush1.bf16.msra.mxu0 %v11331_v16  ;;  %2065 = vmatpush1.bf16.msra.mxu1 %v11333_v20  ;;  %14630 = vst [vmem:[#allocation186_spill] sm:$0xff] %v11363_v21  ;;  %v978_v20 = vld [vmem:[#allocation19 + $0x318] sm:$0xff]  ;;  %14632 = vst [vmem:[#allocation188_spill] sm:$0xff] %v11369_v24 }
 0x602   :  { %2025 = vmatprep.subr.bf16.mxu0 %v11337_v8  ;;  %2066 = vmatprep.subr.bf16.mxu1 %v11339_v32  ;;  %14629 = vst [vmem:[#allocation185_spill] sm:$0xff] %v11361_v63  ;;  %v977_v32 = vld [vmem:[#allocation19 + $0x310] sm:$0xff]  ;;  %v982_v16 = vld [vmem:[#allocation19 + $0x338] sm:$0xff]  ;;  %14631 = vst [vmem:[#allocation187_spill] sm:$0xff] %v11367_v48 }
 0x603   :  { %v981_v8 = vld [vmem:[#allocation19 + $0x330] sm:$0xff]  ;;  %v11375_v14 = vcombine.high %v978_v20, %v982_v16  ;;  %v11381_v29 = vcombine.low %v978_v20, %v982_v16 }
 0x604   :  { %v11373_v49 = vcombine.high %v977_v32, %v981_v8  ;;  %v11379_v6 = vcombine.low %v977_v32, %v981_v8 }
 0x605   :  { %2026 = vmatpush1.bf16.msra.mxu0 %v11343_v35  ;;  %2067 = vmatpush1.bf16.msra.mxu1 %v11345_v38  ;;  %14634 = vst [vmem:[#allocation190_spill] sm:$0xff] %v11375_v14  ;;  %v986_v38 = vld [vmem:[#allocation19 + $0x358] sm:$0xff]  ;;  %14636 = vst [vmem:[#allocation192_spill] sm:$0xff] %v11381_v29 }
 0x606   :  { %2027 = vmatprep.subr.bf16.mxu0 %v11349_v13  ;;  %2068 = vmatprep.subr.bf16.mxu1 %v11351_v4  ;;  %14633 = vst [vmem:[#allocation189_spill] sm:$0xff] %v11373_v49  ;;  %v985_v4 = vld [vmem:[#allocation19 + $0x350] sm:$0xff]  ;;  %v990_v35 = vld [vmem:[#allocation19 + $0x378] sm:$0xff]  ;;  %14635 = vst [vmem:[#allocation191_spill] sm:$0xff] %v11379_v6 }
 0x607   :  { %v989_v13 = vld [vmem:[#allocation19 + $0x370] sm:$0xff]  ;;  %v11387_v5 = vcombine.high %v986_v38, %v990_v35  ;;  %v11393_v16 = vcombine.low %v986_v38, %v990_v35 }
 0x608   :  { %v11385_v43 = vcombine.high %v985_v4, %v989_v13  ;;  %v11391_v8 = vcombine.low %v985_v4, %v989_v13 }
 0x609   :  { %2028 = vmatpush1.bf16.msra.mxu0 %v11355_v12  ;;  %2069 = vmatpush1.bf16.msra.mxu1 %v11357_v61  ;;  %14638 = vst [vmem:[#allocation194_spill] sm:$0xff] %v11387_v5  ;;  %v994_v61 = vld [vmem:[#allocation19 + $0x398] sm:$0xff]  ;;  %14640 = vst [vmem:[#allocation196_spill] sm:$0xff] %v11393_v16 }
 0x60a   :  { %2029 = vmatprep.subr.bf16.mxu0 %v11361_v63  ;;  %2070 = vmatprep.subr.bf16.mxu1 %v11363_v21  ;;  %14637 = vst [vmem:[#allocation193_spill] sm:$0xff] %v11385_v43  ;;  %v993_v21 = vld [vmem:[#allocation19 + $0x390] sm:$0xff]  ;;  %v998_v12 = vld [vmem:[#allocation19 + $0x3b8] sm:$0xff]  ;;  %14639 = vst [vmem:[#allocation195_spill] sm:$0xff] %v11391_v8 }
 0x60b   :  { %v997_v63 = vld [vmem:[#allocation19 + $0x3b0] sm:$0xff]  ;;  %v11399_v32 = vcombine.high %v994_v61, %v998_v12  ;;  %v11405_v35 = vcombine.low %v994_v61, %v998_v12  ;;  %v14650_v12 = vld [vmem:[#allocation112_spill] sm:$0xff]  ;;  %v14651_v61 = vld [vmem:[#allocation113_spill] sm:$0xff] }
 0x60c   :  { %v11397_v20 = vcombine.high %v993_v21, %v997_v63  ;;  %v11403_v13 = vcombine.low %v993_v21, %v997_v63  ;;  %v14652_v63 = vld [vmem:[#allocation114_spill] sm:$0xff]  ;;  %v14653_v21 = vld [vmem:[#allocation115_spill] sm:$0xff] }
 0x60d   :  { %2030 = vmatpush1.bf16.msra.mxu0 %v11367_v48  ;;  %2071 = vmatpush1.bf16.msra.mxu1 %v11369_v24  ;;  %14642 = vst [vmem:[#allocation198_spill] sm:$0xff] %v11399_v32  ;;  %v1002_v24 = vld [vmem:[#allocation19 + $0x3d8] sm:$0xff]  ;;  %14644 = vst [vmem:[#allocation200_spill] sm:$0xff] %v11405_v35 }
 0x60e   :  { %2031 = vmatprep.subr.bf16.mxu0 %v11373_v49  ;;  %2072 = vmatprep.subr.bf16.mxu1 %v11375_v14  ;;  %14641 = vst [vmem:[#allocation197_spill] sm:$0xff] %v11397_v20  ;;  %v1001_v14 = vld [vmem:[#allocation19 + $0x3d0] sm:$0xff]  ;;  %v1006_v48 = vld [vmem:[#allocation19 + $0x3f8] sm:$0xff]  ;;  %14643 = vst [vmem:[#allocation199_spill] sm:$0xff] %v11403_v13 }
 0x60f   :  { %v1005_v49 = vld [vmem:[#allocation19 + $0x3f0] sm:$0xff]  ;;  %v11411_v4 = vcombine.high %v1002_v24, %v1006_v48 }
 0x610   :  { %v11409_v38 = vcombine.high %v1001_v14, %v1005_v49 }
 0x611   :  { %2032 = vmatpush1.bf16.msra.mxu0 %v11379_v6  ;;  %2073 = vmatpush1.bf16.msra.mxu1 %v11381_v29  ;;  %14646 = vst [vmem:[#allocation202_spill] sm:$0xff] %v11411_v4 }
 0x612   :  { %2033 = vmatprep.subr.bf16.mxu0 %v11385_v43  ;;  %2074 = vmatprep.subr.bf16.mxu1 %v11387_v5  ;;  %14645 = vst [vmem:[#allocation201_spill] sm:$0xff] %v11409_v38  ;;  %v11415_v5 = vcombine.low %v1001_v14, %v1005_v49  ;;  %v14656_v49 = vld [vmem:[#allocation118_spill] sm:$0xff]  ;;  %v14657_v14 = vld [vmem:[#allocation119_spill] sm:$0xff] }
 0x614   :  { %14647 = vst [vmem:[#allocation203_spill] sm:$0xff] %v11415_v5 }
 0x615   :  { %2034 = vmatpush1.bf16.msra.mxu0 %v11391_v8  ;;  %2075 = vmatpush1.bf16.msra.mxu1 %v11393_v16  ;;  %v11417_v8 = vcombine.low %v1002_v24, %v1006_v48  ;;  %v14654_v48 = vld [vmem:[#allocation116_spill] sm:$0xff]  ;;  %v14655_v24 = vld [vmem:[#allocation117_spill] sm:$0xff] }
 0x616   :  { %2035 = vmatprep.subr.bf16.mxu0 %v11397_v20  ;;  %2076 = vmatprep.subr.bf16.mxu1 %v11399_v32 }
 0x617   :  { %14648 = vst [vmem:[#allocation204_spill] sm:$0xff] %v11417_v8 }
 0x619   :  { %2036 = vmatpush1.bf16.msra.mxu0 %v11403_v13  ;;  %2077 = vmatpush1.bf16.msra.mxu1 %v11405_v35 }
 0x61a   :  { %2037 = vmatprep.subr.bf16.mxu0 %v11409_v38  ;;  %2078 = vmatprep.subr.bf16.mxu1 %v11411_v4 }
 0x61d   :  { %2038 = vmatpush1.bf16.msra.mxu0 %v11415_v5  ;;  %2079 = vmatpush1.bf16.msra.mxu1 %v11417_v8 }
 0x61e   :  { %2198 = vmatprep.subr.bf16.mxu0 %v10998_v28  ;;  %2239 = vmatprep.subr.bf16.mxu1 %v11002_v33 }
 0x620   :  { %2040 = vmatmul.mubr.bf16.vlgmr.msra.gmra.mrb[12].mxu0 %v11235_v22  ;;  %2081 = vmatmul.mubr.bf16.vlgmr.msra.gmra.mrb[20].mxu1 %v11235_v22  ;;  %v14649_v22 = vld [vmem:[#allocation111_spill] sm:$0xff] }
 0x621   :  { %2199 = vmatpush1.bf16.msra.mxu0 %v11000_v30  ;;  %2240 = vmatpush1.bf16.msra.mxu1 %v11004_v34 }
 0x622   :  { %2200 = vmatprep.subr.bf16.mxu0 %v11006_v36  ;;  %2241 = vmatprep.subr.bf16.mxu1 %v11009_v40 }
 0x625   :  { %2201 = vmatpush1.bf16.msra.mxu0 %v11013_v44  ;;  %2242 = vmatpush1.bf16.msra.mxu1 %v11017_v45 }
 0x626   :  { %2202 = vmatprep.subr.bf16.mxu0 %v11019_v46  ;;  %2243 = vmatprep.subr.bf16.mxu1 %v11022_v47 }
 0x629   :  { %2203 = vmatpush1.bf16.msra.mxu0 %v11025_v53  ;;  %2244 = vmatpush1.bf16.msra.mxu1 %v11029_v54 }
 0x62a   :  { %2204 = vmatprep.subr.bf16.mxu0 %v11031_v55  ;;  %2245 = vmatprep.subr.bf16.mxu1 %v11034_v56 }
 0x62d   :  { %2205 = vmatpush1.bf16.msra.mxu0 %v11037_v57  ;;  %2246 = vmatpush1.bf16.msra.mxu1 %v11041_v58 }
 0x62e   :  { %2206 = vmatprep.subr.bf16.mxu0 %v11046_v62  ;;  %2247 = vmatprep.subr.bf16.mxu1 %v11048_v1 }
 0x631   :  { %2207 = vmatpush1.bf16.msra.mxu0 %v11050_v2  ;;  %2248 = vmatpush1.bf16.msra.mxu1 %v11052_v3 }
 0x632   :  { %2208 = vmatprep.subr.bf16.mxu0 %v11058_v7  ;;  %2249 = vmatprep.subr.bf16.mxu1 %v11060_v9 }
 0x635   :  { %2209 = vmatpush1.bf16.msra.mxu0 %v11062_v10  ;;  %2250 = vmatpush1.bf16.msra.mxu1 %v11064_v11 }
 0x636   :  { %2210 = vmatprep.subr.bf16.mxu0 %v11070_v15  ;;  %2251 = vmatprep.subr.bf16.mxu1 %v11072_v17 }
 0x639   :  { %2211 = vmatpush1.bf16.msra.mxu0 %v11074_v18  ;;  %2252 = vmatpush1.bf16.msra.mxu1 %v11076_v19 }
 0x63a   :  { %2212 = vmatprep.subr.bf16.mxu0 %v11082_v23  ;;  %2253 = vmatprep.subr.bf16.mxu1 %v11084_v25 }
 0x63d   :  { %2213 = vmatpush1.bf16.msra.mxu0 %v11086_v26  ;;  %2254 = vmatpush1.bf16.msra.mxu1 %v11088_v27 }
 0x63e   :  { %2214 = vmatprep.subr.bf16.mxu0 %v11094_v37  ;;  %2255 = vmatprep.subr.bf16.mxu1 %v11096_v39  ;;  %v14677_v37 = vld [vmem:[#allocation142_spill] sm:$0xff] }
 0x641   :  { %2215 = vmatpush1.bf16.msra.mxu0 %v11098_v41  ;;  %2256 = vmatpush1.bf16.msra.mxu1 %v11100_v42 }
 0x642   :  { %2216 = vmatprep.subr.bf16.mxu0 %v11106_v51  ;;  %2257 = vmatprep.subr.bf16.mxu1 %v11108_v59  ;;  %v14658_v51 = vld [vmem:[#allocation120_spill] sm:$0xff]  ;;  %v14659_v59 = vld [vmem:[#allocation121_spill] sm:$0xff] }
 0x645   :  { %2217 = vmatpush1.bf16.msra.mxu0 %v14649_v22  ;;  %2258 = vmatpush1.bf16.msra.mxu1 %v14650_v12  ;;  %v14660_v22 = vld [vmem:[#allocation122_spill] sm:$0xff]  ;;  %v14661_v12 = vld [vmem:[#allocation123_spill] sm:$0xff] }
 0x646   :  { %2218 = vmatprep.subr.bf16.mxu0 %v14651_v61  ;;  %2259 = vmatprep.subr.bf16.mxu1 %v14652_v63  ;;  %v14662_v61 = vld [vmem:[#allocation124_spill] sm:$0xff]  ;;  %v14663_v63 = vld [vmem:[#allocation125_spill] sm:$0xff] }
 0x649   :  { %2219 = vmatpush1.bf16.msra.mxu0 %v14653_v21  ;;  %2260 = vmatpush1.bf16.msra.mxu1 %v14654_v48  ;;  %v14664_v21 = vld [vmem:[#allocation127_spill] sm:$0xff]  ;;  %v14665_v48 = vld [vmem:[#allocation126_spill] sm:$0xff] }
 0x64a   :  { %2220 = vmatprep.subr.bf16.mxu0 %v14655_v24  ;;  %2261 = vmatprep.subr.bf16.mxu1 %v14656_v49  ;;  %v14666_v24 = vld [vmem:[#allocation128_spill] sm:$0xff]  ;;  %v14667_v49 = vld [vmem:[#allocation129_spill] sm:$0xff] }
 0x64d   :  { %2221 = vmatpush1.bf16.msra.mxu0 %v14657_v14  ;;  %2262 = vmatpush1.bf16.msra.mxu1 %v14658_v51  ;;  %v14668_v14 = vld [vmem:[#allocation130_spill] sm:$0xff]  ;;  %v14669_v51 = vld [vmem:[#allocation131_spill] sm:$0xff] }
 0x64e   :  { %2222 = vmatprep.subr.bf16.mxu0 %v14659_v59  ;;  %2263 = vmatprep.subr.bf16.mxu1 %v14660_v22  ;;  %v14670_v59 = vld [vmem:[#allocation132_spill] sm:$0xff]  ;;  %v14671_v22 = vld [vmem:[#allocation133_spill] sm:$0xff] }
 0x651   :  { %2223 = vmatpush1.bf16.msra.mxu0 %v14661_v12  ;;  %2264 = vmatpush1.bf16.msra.mxu1 %v14662_v61  ;;  %v14672_v12 = vld [vmem:[#allocation134_spill] sm:$0xff]  ;;  %v14673_v61 = vld [vmem:[#allocation135_spill] sm:$0xff] }
 0x652   :  { %2224 = vmatprep.subr.bf16.mxu0 %v14663_v63  ;;  %2265 = vmatprep.subr.bf16.mxu1 %v14664_v21  ;;  %v14674_v63 = vld [vmem:[#allocation136_spill] sm:$0xff]  ;;  %v14675_v21 = vld [vmem:[#allocation137_spill] sm:$0xff] }
 0x655   :  { %2225 = vmatpush1.bf16.msra.mxu0 %v14665_v48  ;;  %2266 = vmatpush1.bf16.msra.mxu1 %v14666_v24  ;;  %v14676_v48 = vld [vmem:[#allocation138_spill] sm:$0xff] }
 0x656   :  { %2226 = vmatprep.subr.bf16.mxu0 %v14667_v49  ;;  %2267 = vmatprep.subr.bf16.mxu1 %v14668_v14 }
 0x659   :  { %2227 = vmatpush1.bf16.msra.mxu0 %v14669_v51  ;;  %2268 = vmatpush1.bf16.msra.mxu1 %v14670_v59 }
 0x65a   :  { %2228 = vmatprep.subr.bf16.mxu0 %v14671_v22  ;;  %2269 = vmatprep.subr.bf16.mxu1 %v14672_v12 }
 0x65d   :  { %2229 = vmatpush1.bf16.msra.mxu0 %v14673_v61  ;;  %2270 = vmatpush1.bf16.msra.mxu1 %v14674_v63 }
 0x65e   :  { %2280 = vmatprep.subr.bf16.mxu0 %v14675_v21  ;;  %2321 = vmatprep.subr.bf16.mxu1 %v14676_v48 }
 0x6b3   :  { %v1959_v24 = vpop.f32.mrb[8].mxu0  ;;  %v2000_v49 = vpop.f32.mrb[16].mxu1 }
 0x6b4   :  { %v2093_v42 = vrot.slane %v1959_v24, 7  ;;  %v1961_v14 = vpop.f32.mrb[9].mxu0  ;;  %v2002_v41 = vpop.f32.mrb[17].mxu1  ;;  %v2095_v21 = vrot.slane %v2000_v49, 7  ;;  %v10666_v49 = vmov 1966171168  }
 0x6b5   :  { %v2094_v51 = vrot.slane %v1961_v14, 7  ;;  %v1963_v39 = vpop.f32.mrb[10].mxu0  ;;  %v2004_v59 = vpop.f32.mrb[18].mxu1  ;;  %v2096_v48 = vrot.slane %v2002_v41, 7 }
 0x6b6   :  { %v2101_v22 = vadd.f32 %v2093_v42, %v14677_v37  ;;  %v1964_v27 = vpop.f32.mrb[11].mxu0  ;;  %v2005_v12 = vpop.f32.mrb[19].mxu1  ;;  %v2103_v25 = vadd.f32 %v2095_v21, %v11226_v52 }
 0x6b7   :  { %v2102_v61 = vadd.f32 %v2094_v51, %v11217_v0  ;;  %v2104_v24 = vadd.f32 %v2096_v48, %v11229_v60 }
 0x6b8   :  { %v8722_v26 = vmul.f32 -1.442695, %v2101_v22  ;;  %v8724_v23 = vmul.f32 -1.442695, %v2103_v25 }
 0x6b9   :  { %v8723_v63 = vmul.f32 -1.442695, %v2102_v61 }
 0x6ba   :  { %9668 = vpow2.f32 %v8722_v26  ;;  %v2155_v26 = vrot.slane %v11232_v31, 7 }
 0x6bb   :  { %9670 = vpow2.f32 %v8723_v63 }
 0x6bc   :  { %9672 = vtanh.f32 %v2104_v24  ;;  %v2112_v24 = vunpack.c.l.s4 %v10666_v49  ;;  %v11504_v49 = vld [vmem:[#allocation20] sm:$0xf] }
 0x6bd   :  { %9674 = vpow2.f32 %v8724_v23 }
 0x6c4   :  { %v9669_v14 = vpop.eup %9668 }
 0x6c5   :  { %v2144_v39 = vadd.f32 1.0, %v9669_v14  ;;  %v9671_v59 = vpop.eup %9670  ;;  %v2113_v14 = vunpack.c.0.s8 %v2112_v24 }
 0x6c6   :  { %v2145_v27 = vadd.f32 1.0, %v9671_v59  ;;  %v9673_v42 = vpop.eup %9672 }
 0x6c7   :  { %9676 = vrcp.f32 %v2144_v39  ;;  %v9675_v51 = vpop.eup %9674  ;;  %v14679_v39 = vld [vmem:[#allocation140_spill] sm:$0xff] }
 0x6c8   :  { %9678 = vrcp.f32 %v2145_v27  ;;  %v2146_v61 = vadd.f32 1.0, %v9675_v51  ;;  %v11500_v59 = vsub.s32 %v2113_v14, %v14679_v39 }
 0x6ca   :  { %9680 = vrcp.f32 %v2146_v61  ;;  %14680 = vst [vmem:[#allocation205_spill] sm:$0xff] %v11500_v59 }
 0x6d1   :  { %v9677_v22 = vpop.eup %9676 }
 0x6d2   :  { %v2158_v12 = vmul.f32 %v9677_v22, %v9673_v42  ;;  %v9679_v41 = vpop.eup %9678 }
 0x6d3   :  { %v2157_v63 = vmul.f32 %v9679_v41, %v2155_v26 }
 0x6d4   :  { %v9681_v25 = vpop.eup %9680 }
 0x6d5   :  { %v11496_v21 = vadd.f32 %v2158_v12, %v2157_v63 }
 0x6d7   :  { %14678 = vst [vmem:[#allocation142_spill] sm:$0xff] %v11496_v21  ;;  %9682 = vtanh.f32 %v11496_v21 }
 0x6e1   :  { %v9683_v48 = vpop.eup %9682 }
 0x6e2   :  { %v2161_v23 = vmul.f32 %v9683_v48, %v9681_v25 }
 0x6f3   :  { %v2041_v27 = vpop.f32.mrb[12].mxu0  ;;  %v2082_v31 = vpop.f32.mrb[20].mxu1 }
 0x6f4   :  { %v2043_v42 = vpop.f32.mrb[13].mxu0  ;;  %v2084_v22 = vpop.f32.mrb[21].mxu1 }
 0x6f5   :  { %v2109_v51 = vcombine.low %v2041_v27, %v2043_v42  ;;  %v2110_v26 = vcombine.low %v2082_v31, %v2084_v22  ;;  %v2045_v12 = vpop.f32.mrb[14].mxu0  ;;  %v2086_v41 = vpop.f32.mrb[22].mxu1  ;;  %v1011_v22 = vld [vmem:[#allocation23 + $0x1] sm:$0x1] }
 0x6f6   :  { %v2046_v61 = vpop.f32.mrb[15].mxu0  ;;  %v2087_v63 = vpop.f32.mrb[23].mxu1 }
 0x6f7   :  { %v2117_v21 = vrot.slane %v2109_v51, %v11500_v59  ;;  %v2124_v25 = vrot.slane %v2110_v26, %v11500_v59 }
 0x6f9   :  { %v2125_v48 = vcombine.low %v2117_v21, %v2124_v25 }
 0x6fb   :  { %v2132_v24 = vrot.slane %v2125_v48, %v11500_v59  ;;  %v2188_v48 = vpack.c.bf16 %v2161_v23, %v2161_v23  ;;  %v14686_v23 = vld [vmem:[#allocation147_spill] sm:$0xff] }
 0x6fd   :  { %v2134_v14 = vadd.f32 %v2132_v24, %v11504_v49 }
 0x6ff   :  { %v8725_v39 = vmul.f32 -1.442695, %v2134_v14  ;;  %v2169_v31 = vrot.slane %v2134_v14, 3 }
 0x701   :  { %9684 = vpow2.f32 %v8725_v39  ;;  %v14682_v39 = vld [vmem:[#allocation141_spill] sm:$0xff] }
 0x70b   :  { %v9685_v60 = vpop.eup %9684 }
 0x70c   :  { %v2165_v27 = vadd.f32 1.0, %v9685_v60 }
 0x70e   :  { %9686 = vrcp.f32 %v2165_v27  ;;  %v11515_v27 = vshrl.u32 %v2188_v48, 16  ;;  %v14694_v48 = vld [vmem:[#allocation155_spill] sm:$0xff] }
 0x70f   :  { %9688 = vtanh.f32 %v2169_v31  ;;  %v14683_v31 = vld [vmem:[#allocation139_spill] sm:$0xff] }
 0x718   :  { %v9687_v42 = vpop.eup %9686 }
 0x719   :  { %v2173_v12 = vrot.slane %v9687_v42, 1  ;;  %v9689_v51 = vpop.eup %9688  ;;  %v2179_v61 = vrot.slane %v9687_v42, 2 }
 0x71a   :  { %v2176_v41 = vmul.f32 %v9689_v51, %v9687_v42  ;;  %v14684_v42 = vld [vmem:[#allocation145_spill] sm:$0xff] }
 0x71b   :  { %v2175_v26 = vmul.f32 %v2173_v12, %v1011_v22  ;;  %v14685_v22 = vld [vmem:[#allocation146_spill] sm:$0xff]  ;;  %v14687_v12 = vld [vmem:[#allocation148_spill] sm:$0xff]  ;;  %v14688_v51 = vld [vmem:[#allocation149_spill] sm:$0xff] }
 0x71d   :  { %v11508_v21 = vadd.f32 %v2176_v41, %v2175_v26  ;;  %v14689_v41 = vld [vmem:[#allocation150_spill] sm:$0xff]  ;;  %v14690_v26 = vld [vmem:[#allocation151_spill] sm:$0xff] }
 0x71f   :  { %9690 = vtanh.f32 %v11508_v21 }
 0x729   :  { %v9691_v63 = vpop.eup %9690 }
 0x72a   :  { %v11511_v25 = vmul.f32 %v9691_v63, %v2179_v61  ;;  %v14691_v61 = vld [vmem:[#allocation152_spill] sm:$0xff]  ;;  %v14692_v63 = vld [vmem:[#allocation153_spill] sm:$0xff] }
 0x72c   :  { %14681 = vst [vmem:[#allocation206_spill] sm:$0xff] %v11511_v25  ;;  %v2186_v60 = vrot.slane %v11511_v25, %v14682_v39  ;;  %v14697_v25 = vld [vmem:[#allocation158_spill] sm:$0xff] }
 0x72e   :  { %v2189_v24 = vpack.c.bf16 %v2186_v60, %v2186_v60  ;;  %v14693_v60 = vld [vmem:[#allocation154_spill] sm:$0xff] }
 0x730   :  { %v2194_v14 = vshrl.u32 %v2189_v24, 16  ;;  %v14695_v24 = vld [vmem:[#allocation156_spill] sm:$0xff] }
 0x732   :  { %2230 = vmatprep.mubr.bf16.mxu0 %v2194_v14  ;;  %2271 = vmatprep.mubr.bf16.mxu1 %v2194_v14 }
 0x733   :  { %2231 = vmatmul.mubr.bf16.vlgmr.msra.gmra.mrb[16].mxu0 %v11515_v27  ;;  %2272 = vmatmul.mubr.bf16.vlgmr.msra.gmra.mrb[24].mxu1 %v11515_v27 }
 0x734   :  { %2281 = vmatpush1.bf16.msra.mxu0 %v11201_v50  ;;  %2322 = vmatpush1.bf16.msra.mxu1 %v14683_v31 }
 0x735   :  { %2312 = vmatprep.mubr.bf16.mxu0 %v2194_v14  ;;  %2353 = vmatprep.mubr.bf16.mxu1 %v2194_v14  ;;  %v14696_v14 = vld [vmem:[#allocation157_spill] sm:$0xff] }
 0x736   :  { %2282 = vmatprep.subr.bf16.mxu0 %v14684_v42  ;;  %2323 = vmatprep.subr.bf16.mxu1 %v14685_v22 }
 0x738   :  { %2283 = vmatpush1.bf16.msra.mxu0 %v14686_v23  ;;  %2324 = vmatpush1.bf16.msra.mxu1 %v14687_v12  ;;  %v14698_v12 = vld [vmem:[#allocation159_spill] sm:$0xff] }
 0x739   :  { %2284 = vmatprep.subr.bf16.mxu0 %v14688_v51  ;;  %2325 = vmatprep.subr.bf16.mxu1 %v14689_v41  ;;  %v14699_v51 = vld [vmem:[#allocation160_spill] sm:$0xff]  ;;  %v14700_v41 = vld [vmem:[#allocation161_spill] sm:$0xff] }
 0x73c   :  { %2285 = vmatpush1.bf16.msra.mxu0 %v14690_v26  ;;  %2326 = vmatpush1.bf16.msra.mxu1 %v14691_v61  ;;  %v14701_v26 = vld [vmem:[#allocation162_spill] sm:$0xff]  ;;  %v14702_v61 = vld [vmem:[#allocation163_spill] sm:$0xff] }
 0x73d   :  { %2286 = vmatprep.subr.bf16.mxu0 %v14692_v63  ;;  %2327 = vmatprep.subr.bf16.mxu1 %v14693_v60  ;;  %v14703_v63 = vld [vmem:[#allocation164_spill] sm:$0xff]  ;;  %v14704_v60 = vld [vmem:[#allocation165_spill] sm:$0xff] }
 0x740   :  { %2287 = vmatpush1.bf16.msra.mxu0 %v14694_v48  ;;  %2328 = vmatpush1.bf16.msra.mxu1 %v14695_v24  ;;  %v14705_v48 = vld [vmem:[#allocation166_spill] sm:$0xff]  ;;  %v14706_v24 = vld [vmem:[#allocation167_spill] sm:$0xff] }
 0x741   :  { %2288 = vmatprep.subr.bf16.mxu0 %v14696_v14  ;;  %2329 = vmatprep.subr.bf16.mxu1 %v14697_v25  ;;  %v14707_v14 = vld [vmem:[#allocation168_spill] sm:$0xff]  ;;  %v14708_v25 = vld [vmem:[#allocation169_spill] sm:$0xff] }
 0x744   :  { %2289 = vmatpush1.bf16.msra.mxu0 %v14698_v12  ;;  %2330 = vmatpush1.bf16.msra.mxu1 %v14699_v51  ;;  %v14709_v12 = vld [vmem:[#allocation170_spill] sm:$0xff]  ;;  %v14710_v51 = vld [vmem:[#allocation171_spill] sm:$0xff] }
 0x745   :  { %2290 = vmatprep.subr.bf16.mxu0 %v14700_v41  ;;  %2331 = vmatprep.subr.bf16.mxu1 %v14701_v26  ;;  %v14711_v41 = vld [vmem:[#allocation172_spill] sm:$0xff]  ;;  %v14712_v26 = vld [vmem:[#allocation173_spill] sm:$0xff] }
 0x748   :  { %2291 = vmatpush1.bf16.msra.mxu0 %v14702_v61  ;;  %2332 = vmatpush1.bf16.msra.mxu1 %v14703_v63  ;;  %v14713_v61 = vld [vmem:[#allocation174_spill] sm:$0xff]  ;;  %v14714_v63 = vld [vmem:[#allocation175_spill] sm:$0xff] }
 0x749   :  { %2292 = vmatprep.subr.bf16.mxu0 %v14704_v60  ;;  %2333 = vmatprep.subr.bf16.mxu1 %v14705_v48  ;;  %v14715_v60 = vld [vmem:[#allocation176_spill] sm:$0xff]  ;;  %v14716_v48 = vld [vmem:[#allocation177_spill] sm:$0xff] }
 0x74c   :  { %2293 = vmatpush1.bf16.msra.mxu0 %v14706_v24  ;;  %2334 = vmatpush1.bf16.msra.mxu1 %v14707_v14  ;;  %v14717_v24 = vld [vmem:[#allocation178_spill] sm:$0xff]  ;;  %v14718_v14 = vld [vmem:[#allocation179_spill] sm:$0xff] }
 0x74d   :  { %2294 = vmatprep.subr.bf16.mxu0 %v14708_v25  ;;  %2335 = vmatprep.subr.bf16.mxu1 %v14709_v12  ;;  %v14719_v25 = vld [vmem:[#allocation180_spill] sm:$0xff]  ;;  %v14720_v12 = vld [vmem:[#allocation181_spill] sm:$0xff] }
 0x750   :  { %2295 = vmatpush1.bf16.msra.mxu0 %v14710_v51  ;;  %2336 = vmatpush1.bf16.msra.mxu1 %v14711_v41  ;;  %v14721_v51 = vld [vmem:[#allocation182_spill] sm:$0xff]  ;;  %v14722_v41 = vld [vmem:[#allocation183_spill] sm:$0xff] }
 0x751   :  { %2296 = vmatprep.subr.bf16.mxu0 %v14712_v26  ;;  %2337 = vmatprep.subr.bf16.mxu1 %v14713_v61  ;;  %v14723_v26 = vld [vmem:[#allocation184_spill] sm:$0xff]  ;;  %v14724_v61 = vld [vmem:[#allocation185_spill] sm:$0xff] }
 0x754   :  { %2297 = vmatpush1.bf16.msra.mxu0 %v14714_v63  ;;  %2338 = vmatpush1.bf16.msra.mxu1 %v14715_v60  ;;  %v14725_v63 = vld [vmem:[#allocation186_spill] sm:$0xff]  ;;  %v14726_v60 = vld [vmem:[#allocation187_spill] sm:$0xff] }
 0x755   :  { %2298 = vmatprep.subr.bf16.mxu0 %v14716_v48  ;;  %2339 = vmatprep.subr.bf16.mxu1 %v14717_v24  ;;  %v14727_v48 = vld [vmem:[#allocation188_spill] sm:$0xff]  ;;  %v14728_v24 = vld [vmem:[#allocation189_spill] sm:$0xff] }
 0x758   :  { %2299 = vmatpush1.bf16.msra.mxu0 %v14718_v14  ;;  %2340 = vmatpush1.bf16.msra.mxu1 %v14719_v25  ;;  %v14729_v14 = vld [vmem:[#allocation190_spill] sm:$0xff] }
 0x759   :  { %2300 = vmatprep.subr.bf16.mxu0 %v14720_v12  ;;  %2341 = vmatprep.subr.bf16.mxu1 %v14721_v51 }
 0x75c   :  { %2301 = vmatpush1.bf16.msra.mxu0 %v14722_v41  ;;  %2342 = vmatpush1.bf16.msra.mxu1 %v14723_v26  ;;  %v14730_v41 = vld [vmem:[#allocation194_spill] sm:$0xff]  ;;  %v14731_v26 = vld [vmem:[#allocation195_spill] sm:$0xff] }
 0x75d   :  { %2302 = vmatprep.subr.bf16.mxu0 %v14724_v61  ;;  %2343 = vmatprep.subr.bf16.mxu1 %v14725_v63 }
 0x760   :  { %2303 = vmatpush1.bf16.msra.mxu0 %v14726_v60  ;;  %2344 = vmatpush1.bf16.msra.mxu1 %v14727_v48 }
 0x761   :  { %2304 = vmatprep.subr.bf16.mxu0 %v14728_v24  ;;  %2345 = vmatprep.subr.bf16.mxu1 %v14729_v14 }
 0x764   :  { %2305 = vmatpush1.bf16.msra.mxu0 %v11379_v6  ;;  %2346 = vmatpush1.bf16.msra.mxu1 %v11381_v29 }
 0x765   :  { %2306 = vmatprep.subr.bf16.mxu0 %v11385_v43  ;;  %2347 = vmatprep.subr.bf16.mxu1 %v14730_v41 }
 0x768   :  { %2307 = vmatpush1.bf16.msra.mxu0 %v14731_v26  ;;  %2348 = vmatpush1.bf16.msra.mxu1 %v11393_v16 }
 0x769   :  { %2308 = vmatprep.subr.bf16.mxu0 %v11397_v20  ;;  %2349 = vmatprep.subr.bf16.mxu1 %v11399_v32 }
 0x76c   :  { %2309 = vmatpush1.bf16.msra.mxu0 %v11403_v13  ;;  %2350 = vmatpush1.bf16.msra.mxu1 %v11405_v35 }
 0x76d   :  { %2310 = vmatprep.subr.bf16.mxu0 %v11409_v38  ;;  %2351 = vmatprep.subr.bf16.mxu1 %v11411_v4 }
 0x770   :  { %2311 = vmatpush1.bf16.msra.mxu0 %v11415_v5  ;;  %2352 = vmatpush1.bf16.msra.mxu1 %v11417_v8 }
 0x771   :  { %2469 = vmatprep.subr.bf16.mxu0 %v10998_v28  ;;  %2510 = vmatprep.subr.bf16.mxu1 %v11002_v33 }
 0x773   :  { %2313 = vmatmul.mubr.bf16.vlgmr.msra.gmra.mrb[20].mxu0 %v11515_v27  ;;  %2354 = vmatmul.mubr.bf16.vlgmr.msra.gmra.mrb[28].mxu1 %v11515_v27  ;;  %v14732_v27 = vld [vmem:[#allocation101_spill] sm:$0xff] }
 0x774   :  { %2470 = vmatpush1.bf16.msra.mxu0 %v11000_v30  ;;  %2511 = vmatpush1.bf16.msra.mxu1 %v11004_v34 }
 0x775   :  { %2471 = vmatprep.subr.bf16.mxu0 %v11006_v36  ;;  %2512 = vmatprep.subr.bf16.mxu1 %v11009_v40 }
 0x778   :  { %2472 = vmatpush1.bf16.msra.mxu0 %v11013_v44  ;;  %2513 = vmatpush1.bf16.msra.mxu1 %v11017_v45 }
 0x779   :  { %2473 = vmatprep.subr.bf16.mxu0 %v11019_v46  ;;  %2514 = vmatprep.subr.bf16.mxu1 %v11022_v47 }
 0x77c   :  { %2474 = vmatpush1.bf16.msra.mxu0 %v11025_v53  ;;  %2515 = vmatpush1.bf16.msra.mxu1 %v11029_v54 }
 0x77d   :  { %2475 = vmatprep.subr.bf16.mxu0 %v11031_v55  ;;  %2516 = vmatprep.subr.bf16.mxu1 %v11034_v56 }
 0x780   :  { %2476 = vmatpush1.bf16.msra.mxu0 %v11037_v57  ;;  %2517 = vmatpush1.bf16.msra.mxu1 %v11041_v58 }
 0x781   :  { %2477 = vmatprep.subr.bf16.mxu0 %v11046_v62  ;;  %2518 = vmatprep.subr.bf16.mxu1 %v11048_v1 }
 0x784   :  { %2478 = vmatpush1.bf16.msra.mxu0 %v11050_v2  ;;  %2519 = vmatpush1.bf16.msra.mxu1 %v11052_v3  ;;  %v14733_v2 = vld [vmem:[#allocation102_spill] sm:$0xff]  ;;  %v14734_v3 = vld [vmem:[#allocation103_spill] sm:$0xff] }
 0x785   :  { %2479 = vmatprep.subr.bf16.mxu0 %v11058_v7  ;;  %2520 = vmatprep.subr.bf16.mxu1 %v11060_v9  ;;  %v14735_v7 = vld [vmem:[#allocation104_spill] sm:$0xff]  ;;  %v14736_v9 = vld [vmem:[#allocation105_spill] sm:$0xff] }
 0x788   :  { %2480 = vmatpush1.bf16.msra.mxu0 %v11062_v10  ;;  %2521 = vmatpush1.bf16.msra.mxu1 %v11064_v11  ;;  %v14737_v10 = vld [vmem:[#allocation106_spill] sm:$0xff]  ;;  %v14738_v11 = vld [vmem:[#allocation107_spill] sm:$0xff] }
 0x789   :  { %2481 = vmatprep.subr.bf16.mxu0 %v11070_v15  ;;  %2522 = vmatprep.subr.bf16.mxu1 %v11072_v17  ;;  %v14739_v15 = vld [vmem:[#allocation108_spill] sm:$0xff]  ;;  %v14740_v17 = vld [vmem:[#allocation109_spill] sm:$0xff] }
 0x78c   :  { %2482 = vmatpush1.bf16.msra.mxu0 %v11074_v18  ;;  %2523 = vmatpush1.bf16.msra.mxu1 %v11076_v19  ;;  %v14741_v18 = vld [vmem:[#allocation110_spill] sm:$0xff]  ;;  %v14742_v19 = vld [vmem:[#allocation111_spill] sm:$0xff] }
 0x78d   :  { %2483 = vmatprep.subr.bf16.mxu0 %v14732_v27  ;;  %2524 = vmatprep.subr.bf16.mxu1 %v14733_v2  ;;  %v14743_v27 = vld [vmem:[#allocation112_spill] sm:$0xff]  ;;  %v14744_v2 = vld [vmem:[#allocation113_spill] sm:$0xff] }
 0x790   :  { %2484 = vmatpush1.bf16.msra.mxu0 %v14734_v3  ;;  %2525 = vmatpush1.bf16.msra.mxu1 %v14735_v7  ;;  %v14745_v3 = vld [vmem:[#allocation114_spill] sm:$0xff]  ;;  %v14746_v7 = vld [vmem:[#allocation115_spill] sm:$0xff] }
 0x791   :  { %2485 = vmatprep.subr.bf16.mxu0 %v14736_v9  ;;  %2526 = vmatprep.subr.bf16.mxu1 %v14737_v10  ;;  %v14747_v9 = vld [vmem:[#allocation116_spill] sm:$0xff]  ;;  %v14748_v10 = vld [vmem:[#allocation117_spill] sm:$0xff] }
 0x794   :  { %2486 = vmatpush1.bf16.msra.mxu0 %v14738_v11  ;;  %2527 = vmatpush1.bf16.msra.mxu1 %v14739_v15  ;;  %v14749_v11 = vld [vmem:[#allocation118_spill] sm:$0xff]  ;;  %v14750_v15 = vld [vmem:[#allocation119_spill] sm:$0xff] }
 0x795   :  { %2487 = vmatprep.subr.bf16.mxu0 %v14740_v17  ;;  %2528 = vmatprep.subr.bf16.mxu1 %v14741_v18  ;;  %v14751_v17 = vld [vmem:[#allocation120_spill] sm:$0xff]  ;;  %v14752_v18 = vld [vmem:[#allocation121_spill] sm:$0xff] }
 0x798   :  { %2488 = vmatpush1.bf16.msra.mxu0 %v14742_v19  ;;  %2529 = vmatpush1.bf16.msra.mxu1 %v14743_v27  ;;  %v14753_v19 = vld [vmem:[#allocation122_spill] sm:$0xff]  ;;  %v14754_v27 = vld [vmem:[#allocation123_spill] sm:$0xff] }
 0x799   :  { %2489 = vmatprep.subr.bf16.mxu0 %v14744_v2  ;;  %2530 = vmatprep.subr.bf16.mxu1 %v14745_v3  ;;  %v14755_v2 = vld [vmem:[#allocation124_spill] sm:$0xff]  ;;  %v14756_v3 = vld [vmem:[#allocation125_spill] sm:$0xff] }
 0x79c   :  { %2490 = vmatpush1.bf16.msra.mxu0 %v14746_v7  ;;  %2531 = vmatpush1.bf16.msra.mxu1 %v14747_v9  ;;  %v14757_v7 = vld [vmem:[#allocation127_spill] sm:$0xff]  ;;  %v14758_v9 = vld [vmem:[#allocation126_spill] sm:$0xff] }
 0x79d   :  { %2491 = vmatprep.subr.bf16.mxu0 %v14748_v10  ;;  %2532 = vmatprep.subr.bf16.mxu1 %v14749_v11  ;;  %v14759_v10 = vld [vmem:[#allocation128_spill] sm:$0xff]  ;;  %v14760_v11 = vld [vmem:[#allocation129_spill] sm:$0xff] }
 0x7a0   :  { %2492 = vmatpush1.bf16.msra.mxu0 %v14750_v15  ;;  %2533 = vmatpush1.bf16.msra.mxu1 %v14751_v17  ;;  %v14761_v15 = vld [vmem:[#allocation130_spill] sm:$0xff]  ;;  %v14762_v17 = vld [vmem:[#allocation131_spill] sm:$0xff] }
 0x7a1   :  { %2493 = vmatprep.subr.bf16.mxu0 %v14752_v18  ;;  %2534 = vmatprep.subr.bf16.mxu1 %v14753_v19  ;;  %v14763_v18 = vld [vmem:[#allocation132_spill] sm:$0xff]  ;;  %v14764_v19 = vld [vmem:[#allocation133_spill] sm:$0xff] }
 0x7a4   :  { %2494 = vmatpush1.bf16.msra.mxu0 %v14754_v27  ;;  %2535 = vmatpush1.bf16.msra.mxu1 %v14755_v2  ;;  %v14765_v27 = vld [vmem:[#allocation134_spill] sm:$0xff]  ;;  %v14766_v2 = vld [vmem:[#allocation135_spill] sm:$0xff] }
 0x7a5   :  { %2495 = vmatprep.subr.bf16.mxu0 %v14756_v3  ;;  %2536 = vmatprep.subr.bf16.mxu1 %v14757_v7  ;;  %v14767_v3 = vld [vmem:[#allocation136_spill] sm:$0xff]  ;;  %v14768_v7 = vld [vmem:[#allocation137_spill] sm:$0xff] }
 0x7a8   :  { %2496 = vmatpush1.bf16.msra.mxu0 %v14758_v9  ;;  %2537 = vmatpush1.bf16.msra.mxu1 %v14759_v10  ;;  %v14769_v9 = vld [vmem:[#allocation138_spill] sm:$0xff] }
 0x7a9   :  { %2497 = vmatprep.subr.bf16.mxu0 %v14760_v11  ;;  %2538 = vmatprep.subr.bf16.mxu1 %v14761_v15 }
 0x7ac   :  { %2498 = vmatpush1.bf16.msra.mxu0 %v14762_v17  ;;  %2539 = vmatpush1.bf16.msra.mxu1 %v14763_v18 }
 0x7ad   :  { %2499 = vmatprep.subr.bf16.mxu0 %v14764_v19  ;;  %2540 = vmatprep.subr.bf16.mxu1 %v14765_v27 }
 0x7b0   :  { %2500 = vmatpush1.bf16.msra.mxu0 %v14766_v2  ;;  %2541 = vmatpush1.bf16.msra.mxu1 %v14767_v3 }
 0x7b1   :  { %2551 = vmatprep.subr.bf16.mxu0 %v14768_v7  ;;  %2592 = vmatprep.subr.bf16.mxu1 %v14769_v9 }
 0x806   :  { %v2232_v10 = vpop.f32.mrb[16].mxu0  ;;  %v2273_v11 = vpop.f32.mrb[24].mxu1 }
 0x807   :  { %v2366_v1 = vrot.slane %v2232_v10, 6  ;;  %v2234_v15 = vpop.f32.mrb[17].mxu0  ;;  %v2275_v62 = vpop.f32.mrb[25].mxu1  ;;  %v2368_v7 = vrot.slane %v2273_v11, 6  ;;  %v14770_v10 = vld [vmem:[#allocation144_spill] sm:$0xff] }
 0x808   :  { %v2367_v17 = vrot.slane %v2234_v15, 6  ;;  %v2236_v58 = vpop.f32.mrb[18].mxu0  ;;  %v2277_v18 = vpop.f32.mrb[26].mxu1  ;;  %v2369_v9 = vrot.slane %v2275_v62, 6 }
 0x809   :  { %v2374_v19 = vadd.f32 %v2366_v1, %v14677_v37  ;;  %v2237_v57 = vpop.f32.mrb[19].mxu0  ;;  %v2278_v27 = vpop.f32.mrb[27].mxu1  ;;  %v2376_v55 = vadd.f32 %v2368_v7, %v11226_v52 }
 0x80a   :  { %v2375_v2 = vadd.f32 %v2367_v17, %v11217_v0  ;;  %v2377_v54 = vadd.f32 %v2369_v9, %v14770_v10 }
 0x80b   :  { %v8726_v56 = vmul.f32 -1.442695, %v2374_v19  ;;  %v8728_v53 = vmul.f32 -1.442695, %v2376_v55 }
 0x80c   :  { %v8727_v3 = vmul.f32 -1.442695, %v2375_v2 }
 0x80d   :  { %9692 = vpow2.f32 %v8726_v56  ;;  %v14771_v56 = vld [vmem:[#allocation142_spill] sm:$0xff] }
 0x80e   :  { %9694 = vpow2.f32 %v8727_v3  ;;  %v2428_v11 = vrot.slane %v14771_v56, 7 }
 0x80f   :  { %9696 = vtanh.f32 %v2377_v54 }
 0x810   :  { %9698 = vpow2.f32 %v8728_v53 }
 0x817   :  { %v9693_v15 = vpop.eup %9692 }
 0x818   :  { %v2417_v58 = vadd.f32 1.0, %v9693_v15  ;;  %v9695_v18 = vpop.eup %9694 }
 0x819   :  { %v2418_v57 = vadd.f32 1.0, %v9695_v18  ;;  %v9697_v1 = vpop.eup %9696 }
 0x81a   :  { %9700 = vrcp.f32 %v2417_v58  ;;  %v9699_v17 = vpop.eup %9698 }
 0x81b   :  { %9702 = vrcp.f32 %v2418_v57  ;;  %v2419_v19 = vadd.f32 1.0, %v9699_v17 }
 0x81d   :  { %9704 = vrcp.f32 %v2419_v19 }
 0x824   :  { %v9701_v2 = vpop.eup %9700 }
 0x825   :  { %v2431_v3 = vmul.f32 %v9701_v2, %v9697_v1  ;;  %v9703_v62 = vpop.eup %9702 }
 0x826   :  { %v2430_v7 = vmul.f32 %v9703_v62, %v2428_v11 }
 0x827   :  { %v9705_v54 = vpop.eup %9704 }
 0x828   :  { %v11654_v27 = vadd.f32 %v2431_v3, %v2430_v7 }
 0x82a   :  { %14772 = vst [vmem:[#allocation139_spill] sm:$0xff] %v11654_v27  ;;  %9706 = vtanh.f32 %v11654_v27 }
 0x834   :  { %v9707_v55 = vpop.eup %9706 }
 0x835   :  { %v2434_v53 = vmul.f32 %v9707_v55, %v9705_v54 }
 0x846   :  { %v2314_v9 = vpop.f32.mrb[20].mxu0  ;;  %v2355_v15 = vpop.f32.mrb[28].mxu1 }
 0x847   :  { %v2316_v58 = vpop.f32.mrb[21].mxu0  ;;  %v2357_v18 = vpop.f32.mrb[29].mxu1 }
 0x848   :  { %v2382_v57 = vcombine.low %v2314_v9, %v2316_v58  ;;  %v2383_v10 = vcombine.low %v2355_v15, %v2357_v18  ;;  %v2318_v52 = vpop.f32.mrb[22].mxu0  ;;  %v2359_v56 = vpop.f32.mrb[30].mxu1 }
 0x849   :  { %v2319_v1 = vpop.f32.mrb[23].mxu0  ;;  %v2360_v2 = vpop.f32.mrb[31].mxu1 }
 0x84a   :  { %v2390_v17 = vrot.slane %v2382_v57, %v11500_v59  ;;  %v2397_v11 = vrot.slane %v2383_v10, %v11500_v59 }
 0x84c   :  { %v2398_v3 = vcombine.low %v2390_v17, %v2397_v11  ;;  %v2461_v17 = vpack.c.bf16 %v2434_v53, %v2434_v53  ;;  %v14774_v53 = vld [vmem:[#allocation149_spill] sm:$0xff] }
 0x84e   :  { %v2405_v62 = vrot.slane %v2398_v3, %v11500_v59  ;;  %v11670_v3 = vrot.slane %v2461_v17, 1  ;;  %v14788_v17 = vld [vmem:[#allocation163_spill] sm:$0xff] }
 0x850   :  { %v2407_v19 = vadd.f32 %v2405_v62, %v11504_v49  ;;  %v14775_v62 = vld [vmem:[#allocation150_spill] sm:$0xff] }
 0x852   :  { %v8729_v7 = vmul.f32 -1.442695, %v2407_v19  ;;  %v2442_v27 = vrot.slane %v2407_v19, 3  ;;  %v14776_v19 = vld [vmem:[#allocation151_spill] sm:$0xff] }
 0x854   :  { %9708 = vpow2.f32 %v8729_v7  ;;  %v14777_v7 = vld [vmem:[#allocation152_spill] sm:$0xff] }
 0x85e   :  { %v9709_v54 = vpop.eup %9708 }
 0x85f   :  { %v2438_v55 = vadd.f32 1.0, %v9709_v54  ;;  %v14778_v54 = vld [vmem:[#allocation153_spill] sm:$0xff] }
 0x861   :  { %9710 = vrcp.f32 %v2438_v55  ;;  %v14779_v55 = vld [vmem:[#allocation154_spill] sm:$0xff] }
 0x862   :  { %9712 = vtanh.f32 %v2442_v27 }
 0x86b   :  { %v9711_v52 = vpop.eup %9710 }
 0x86c   :  { %v2446_v9 = vrot.slane %v9711_v52, 1  ;;  %v9713_v15 = vpop.eup %9712  ;;  %v2452_v10 = vrot.slane %v9711_v52, 2 }
 0x86d   :  { %v2449_v18 = vmul.f32 %v9713_v15, %v9711_v52  ;;  %v14780_v52 = vld [vmem:[#allocation155_spill] sm:$0xff]  ;;  %v14782_v15 = vld [vmem:[#allocation157_spill] sm:$0xff] }
 0x86e   :  { %v2448_v58 = vmul.f32 %v2446_v9, %v11508_v21  ;;  %v14773_v21 = vld [vmem:[#allocation148_spill] sm:$0xff] }
 0x86f   :  { %v14781_v9 = vld [vmem:[#allocation156_spill] sm:$0xff] }
 0x870   :  { %v11662_v57 = vadd.f32 %v2449_v18, %v2448_v58  ;;  %v14783_v58 = vld [vmem:[#allocation158_spill] sm:$0xff]  ;;  %v14784_v18 = vld [vmem:[#allocation159_spill] sm:$0xff] }
 0x872   :  { %9714 = vtanh.f32 %v11662_v57 }
 0x87c   :  { %v9715_v56 = vpop.eup %9714 }
 0x87d   :  { %v2454_v1 = vmul.f32 %v9715_v56, %v2452_v10  ;;  %v14785_v10 = vld [vmem:[#allocation160_spill] sm:$0xff]  ;;  %v14786_v56 = vld [vmem:[#allocation161_spill] sm:$0xff] }
 0x87f   :  { %v11666_v2 = vrot.slane %v2454_v1, %v14682_v39  ;;  %v14787_v1 = vld [vmem:[#allocation162_spill] sm:$0xff] }
 0x881   :  { %v2462_v27 = vpack.c.bf16 %v11666_v2, %v11666_v2 }
 0x883   :  { %v2466_v11 = vrot.slane %v2462_v27, 1  ;;  %v14789_v27 = vld [vmem:[#allocation164_spill] sm:$0xff] }
 0x885   :  { %2501 = vmatprep.mubr.bf16.mxu0 %v2466_v11  ;;  %2542 = vmatprep.mubr.bf16.mxu1 %v2466_v11 }
 0x886   :  { %2502 = vmatmul.mubr.bf16.vlgmr.msra.gmra.mrb[24].mxu0 %v11670_v3  ;;  %2543 = vmatmul.mubr.bf16.vlgmr.msra.gmra.mrb[32].mxu1 %v11670_v3 }
 0x887   :  { %2552 = vmatpush1.bf16.msra.mxu0 %v11201_v50  ;;  %2593 = vmatpush1.bf16.msra.mxu1 %v14683_v31 }
 0x888   :  { %2583 = vmatprep.mubr.bf16.mxu0 %v2466_v11  ;;  %2624 = vmatprep.mubr.bf16.mxu1 %v2466_v11  ;;  %v14790_v11 = vld [vmem:[#allocation165_spill] sm:$0xff] }
 0x889   :  { %2553 = vmatprep.subr.bf16.mxu0 %v14684_v42  ;;  %2594 = vmatprep.subr.bf16.mxu1 %v14685_v22 }
 0x88b   :  { %2554 = vmatpush1.bf16.msra.mxu0 %v14686_v23  ;;  %2595 = vmatpush1.bf16.msra.mxu1 %v14773_v21 }
 0x88c   :  { %2555 = vmatprep.subr.bf16.mxu0 %v14774_v53  ;;  %2596 = vmatprep.subr.bf16.mxu1 %v14775_v62 }
 0x88f   :  { %2556 = vmatpush1.bf16.msra.mxu0 %v14776_v19  ;;  %2597 = vmatpush1.bf16.msra.mxu1 %v14777_v7 }
 0x890   :  { %2557 = vmatprep.subr.bf16.mxu0 %v14778_v54  ;;  %2598 = vmatprep.subr.bf16.mxu1 %v14779_v55 }
 0x893   :  { %2558 = vmatpush1.bf16.msra.mxu0 %v14780_v52  ;;  %2599 = vmatpush1.bf16.msra.mxu1 %v14781_v9  ;;  %v14791_v52 = vld [vmem:[#allocation166_spill] sm:$0xff]  ;;  %v14792_v9 = vld [vmem:[#allocation167_spill] sm:$0xff] }
 0x894   :  { %2559 = vmatprep.subr.bf16.mxu0 %v14782_v15  ;;  %2600 = vmatprep.subr.bf16.mxu1 %v14783_v58  ;;  %v14793_v15 = vld [vmem:[#allocation168_spill] sm:$0xff]  ;;  %v14794_v58 = vld [vmem:[#allocation169_spill] sm:$0xff] }
 0x897   :  { %2560 = vmatpush1.bf16.msra.mxu0 %v14784_v18  ;;  %2601 = vmatpush1.bf16.msra.mxu1 %v14785_v10  ;;  %v14795_v18 = vld [vmem:[#allocation170_spill] sm:$0xff]  ;;  %v14796_v10 = vld [vmem:[#allocation171_spill] sm:$0xff] }
 0x898   :  { %2561 = vmatprep.subr.bf16.mxu0 %v14786_v56  ;;  %2602 = vmatprep.subr.bf16.mxu1 %v14787_v1  ;;  %v14797_v56 = vld [vmem:[#allocation172_spill] sm:$0xff]  ;;  %v14798_v1 = vld [vmem:[#allocation173_spill] sm:$0xff] }
 0x89b   :  { %2562 = vmatpush1.bf16.msra.mxu0 %v14788_v17  ;;  %2603 = vmatpush1.bf16.msra.mxu1 %v14789_v27  ;;  %v14799_v17 = vld [vmem:[#allocation174_spill] sm:$0xff]  ;;  %v14800_v27 = vld [vmem:[#allocation175_spill] sm:$0xff] }
 0x89c   :  { %2563 = vmatprep.subr.bf16.mxu0 %v14790_v11  ;;  %2604 = vmatprep.subr.bf16.mxu1 %v14791_v52  ;;  %v14801_v11 = vld [vmem:[#allocation176_spill] sm:$0xff]  ;;  %v14802_v52 = vld [vmem:[#allocation177_spill] sm:$0xff] }
 0x89f   :  { %2564 = vmatpush1.bf16.msra.mxu0 %v14792_v9  ;;  %2605 = vmatpush1.bf16.msra.mxu1 %v14793_v15  ;;  %v14803_v9 = vld [vmem:[#allocation178_spill] sm:$0xff]  ;;  %v14804_v15 = vld [vmem:[#allocation179_spill] sm:$0xff] }
 0x8a0   :  { %2565 = vmatprep.subr.bf16.mxu0 %v14794_v58  ;;  %2606 = vmatprep.subr.bf16.mxu1 %v14795_v18 }
 0x8a3   :  { %2566 = vmatpush1.bf16.msra.mxu0 %v14796_v10  ;;  %2607 = vmatpush1.bf16.msra.mxu1 %v14797_v56  ;;  %v14805_v56 = vld [vmem:[#allocation183_spill] sm:$0xff] }
 0x8a4   :  { %2567 = vmatprep.subr.bf16.mxu0 %v14798_v1  ;;  %2608 = vmatprep.subr.bf16.mxu1 %v14799_v17  ;;  %v14806_v1 = vld [vmem:[#allocation184_spill] sm:$0xff] }
 0x8a7   :  { %2568 = vmatpush1.bf16.msra.mxu0 %v14800_v27  ;;  %2609 = vmatpush1.bf16.msra.mxu1 %v14801_v11 }
 0x8a8   :  { %2569 = vmatprep.subr.bf16.mxu0 %v14802_v52  ;;  %2610 = vmatprep.subr.bf16.mxu1 %v14803_v9 }
 0x8ab   :  { %2570 = vmatpush1.bf16.msra.mxu0 %v14804_v15  ;;  %2611 = vmatpush1.bf16.msra.mxu1 %v14719_v25 }
 0x8ac   :  { %2571 = vmatprep.subr.bf16.mxu0 %v14720_v12  ;;  %2612 = vmatprep.subr.bf16.mxu1 %v14721_v51 }
 0x8af   :  { %2572 = vmatpush1.bf16.msra.mxu0 %v14805_v56  ;;  %2613 = vmatpush1.bf16.msra.mxu1 %v14806_v1 }
 0x8b0   :  { %2573 = vmatprep.subr.bf16.mxu0 %v14724_v61  ;;  %2614 = vmatprep.subr.bf16.mxu1 %v14725_v63 }
 0x8b3   :  { %2574 = vmatpush1.bf16.msra.mxu0 %v14726_v60  ;;  %2615 = vmatpush1.bf16.msra.mxu1 %v14727_v48 }
 0x8b4   :  { %2575 = vmatprep.subr.bf16.mxu0 %v14728_v24  ;;  %2616 = vmatprep.subr.bf16.mxu1 %v14729_v14 }
 0x8b7   :  { %2576 = vmatpush1.bf16.msra.mxu0 %v11379_v6  ;;  %2617 = vmatpush1.bf16.msra.mxu1 %v11381_v29 }
 0x8b8   :  { %2577 = vmatprep.subr.bf16.mxu0 %v11385_v43  ;;  %2618 = vmatprep.subr.bf16.mxu1 %v14730_v41 }
 0x8bb   :  { %2578 = vmatpush1.bf16.msra.mxu0 %v14731_v26  ;;  %2619 = vmatpush1.bf16.msra.mxu1 %v11393_v16 }
 0x8bc   :  { %2579 = vmatprep.subr.bf16.mxu0 %v11397_v20  ;;  %2620 = vmatprep.subr.bf16.mxu1 %v11399_v32 }
 0x8bf   :  { %2580 = vmatpush1.bf16.msra.mxu0 %v11403_v13  ;;  %2621 = vmatpush1.bf16.msra.mxu1 %v11405_v35  ;;  %v14863_v13 = vld [vmem:[#allocation143_spill] sm:$0xff] }
 0x8c0   :  { %2581 = vmatprep.subr.bf16.mxu0 %v11409_v38  ;;  %2622 = vmatprep.subr.bf16.mxu1 %v11411_v4 }
 0x8c3   :  { %2582 = vmatpush1.bf16.msra.mxu0 %v11415_v5  ;;  %2623 = vmatpush1.bf16.msra.mxu1 %v11417_v8 }
 0x8c4   :  { %2744 = vmatprep.subr.bf16.mxu0 %v10998_v28  ;;  %2785 = vmatprep.subr.bf16.mxu1 %v11002_v33  ;;  %v14807_v33 = vld [vmem:[#allocation83_spill] sm:$0xff]  ;;  %v14808_v28 = vld [vmem:[#allocation84_spill] sm:$0xff] }
 0x8c6   :  { %2584 = vmatmul.mubr.bf16.vlgmr.msra.gmra.mrb[28].mxu0 %v11670_v3  ;;  %2625 = vmatmul.mubr.bf16.vlgmr.msra.gmra.mrb[36].mxu1 %v11670_v3  ;;  %v14809_v3 = vld [vmem:[#allocation85_spill] sm:$0xff] }
 0x8c7   :  { %2745 = vmatpush1.bf16.msra.mxu0 %v11000_v30  ;;  %2786 = vmatpush1.bf16.msra.mxu1 %v11004_v34  ;;  %v14810_v30 = vld [vmem:[#allocation86_spill] sm:$0xff]  ;;  %v14811_v34 = vld [vmem:[#allocation87_spill] sm:$0xff] }
 0x8c8   :  { %2746 = vmatprep.subr.bf16.mxu0 %v11006_v36  ;;  %2787 = vmatprep.subr.bf16.mxu1 %v11009_v40  ;;  %v14812_v36 = vld [vmem:[#allocation88_spill] sm:$0xff]  ;;  %v14813_v40 = vld [vmem:[#allocation89_spill] sm:$0xff] }
 0x8cb   :  { %2747 = vmatpush1.bf16.msra.mxu0 %v11013_v44  ;;  %2788 = vmatpush1.bf16.msra.mxu1 %v11017_v45  ;;  %v14814_v44 = vld [vmem:[#allocation90_spill] sm:$0xff]  ;;  %v14815_v45 = vld [vmem:[#allocation91_spill] sm:$0xff] }
 0x8cc   :  { %2748 = vmatprep.subr.bf16.mxu0 %v11019_v46  ;;  %2789 = vmatprep.subr.bf16.mxu1 %v11022_v47  ;;  %v14816_v46 = vld [vmem:[#allocation92_spill] sm:$0xff]  ;;  %v14817_v47 = vld [vmem:[#allocation93_spill] sm:$0xff] }
 0x8cf   :  { %2749 = vmatpush1.bf16.msra.mxu0 %v14807_v33  ;;  %2790 = vmatpush1.bf16.msra.mxu1 %v14808_v28  ;;  %v14818_v33 = vld [vmem:[#allocation94_spill] sm:$0xff]  ;;  %v14819_v28 = vld [vmem:[#allocation95_spill] sm:$0xff] }
 0x8d0   :  { %2750 = vmatprep.subr.bf16.mxu0 %v14809_v3  ;;  %2791 = vmatprep.subr.bf16.mxu1 %v14810_v30  ;;  %v14820_v3 = vld [vmem:[#allocation96_spill] sm:$0xff]  ;;  %v14821_v30 = vld [vmem:[#allocation97_spill] sm:$0xff] }
 0x8d3   :  { %2751 = vmatpush1.bf16.msra.mxu0 %v14811_v34  ;;  %2792 = vmatpush1.bf16.msra.mxu1 %v14812_v36  ;;  %v14822_v34 = vld [vmem:[#allocation98_spill] sm:$0xff]  ;;  %v14823_v36 = vld [vmem:[#allocation99_spill] sm:$0xff] }
 0x8d4   :  { %2752 = vmatprep.subr.bf16.mxu0 %v14813_v40  ;;  %2793 = vmatprep.subr.bf16.mxu1 %v14814_v44  ;;  %v14824_v40 = vld [vmem:[#allocation100_spill] sm:$0xff]  ;;  %v14825_v44 = vld [vmem:[#allocation101_spill] sm:$0xff] }
 0x8d7   :  { %2753 = vmatpush1.bf16.msra.mxu0 %v14815_v45  ;;  %2794 = vmatpush1.bf16.msra.mxu1 %v14816_v46  ;;  %v14826_v45 = vld [vmem:[#allocation102_spill] sm:$0xff]  ;;  %v14827_v46 = vld [vmem:[#allocation103_spill] sm:$0xff] }
 0x8d8   :  { %2754 = vmatprep.subr.bf16.mxu0 %v14817_v47  ;;  %2795 = vmatprep.subr.bf16.mxu1 %v14818_v33  ;;  %v14828_v47 = vld [vmem:[#allocation104_spill] sm:$0xff]  ;;  %v14829_v33 = vld [vmem:[#allocation105_spill] sm:$0xff] }
 0x8db   :  { %2755 = vmatpush1.bf16.msra.mxu0 %v14819_v28  ;;  %2796 = vmatpush1.bf16.msra.mxu1 %v14820_v3  ;;  %v14830_v28 = vld [vmem:[#allocation106_spill] sm:$0xff]  ;;  %v14831_v3 = vld [vmem:[#allocation107_spill] sm:$0xff] }
 0x8dc   :  { %2756 = vmatprep.subr.bf16.mxu0 %v14821_v30  ;;  %2797 = vmatprep.subr.bf16.mxu1 %v14822_v34  ;;  %v14832_v30 = vld [vmem:[#allocation108_spill] sm:$0xff]  ;;  %v14833_v34 = vld [vmem:[#allocation109_spill] sm:$0xff] }
 0x8df   :  { %2757 = vmatpush1.bf16.msra.mxu0 %v14823_v36  ;;  %2798 = vmatpush1.bf16.msra.mxu1 %v14824_v40  ;;  %v14834_v36 = vld [vmem:[#allocation110_spill] sm:$0xff]  ;;  %v14835_v40 = vld [vmem:[#allocation111_spill] sm:$0xff] }
 0x8e0   :  { %2758 = vmatprep.subr.bf16.mxu0 %v14825_v44  ;;  %2799 = vmatprep.subr.bf16.mxu1 %v14826_v45  ;;  %v14836_v44 = vld [vmem:[#allocation112_spill] sm:$0xff]  ;;  %v14837_v45 = vld [vmem:[#allocation113_spill] sm:$0xff] }
 0x8e3   :  { %2759 = vmatpush1.bf16.msra.mxu0 %v14827_v46  ;;  %2800 = vmatpush1.bf16.msra.mxu1 %v14828_v47  ;;  %v14838_v46 = vld [vmem:[#allocation114_spill] sm:$0xff]  ;;  %v14839_v47 = vld [vmem:[#allocation115_spill] sm:$0xff] }
 0x8e4   :  { %2760 = vmatprep.subr.bf16.mxu0 %v14829_v33  ;;  %2801 = vmatprep.subr.bf16.mxu1 %v14830_v28  ;;  %v14840_v33 = vld [vmem:[#allocation116_spill] sm:$0xff]  ;;  %v14841_v28 = vld [vmem:[#allocation117_spill] sm:$0xff] }
 0x8e7   :  { %2761 = vmatpush1.bf16.msra.mxu0 %v14831_v3  ;;  %2802 = vmatpush1.bf16.msra.mxu1 %v14832_v30  ;;  %v14842_v3 = vld [vmem:[#allocation118_spill] sm:$0xff]  ;;  %v14843_v30 = vld [vmem:[#allocation119_spill] sm:$0xff] }
 0x8e8   :  { %2762 = vmatprep.subr.bf16.mxu0 %v14833_v34  ;;  %2803 = vmatprep.subr.bf16.mxu1 %v14834_v36  ;;  %v14844_v34 = vld [vmem:[#allocation120_spill] sm:$0xff]  ;;  %v14845_v36 = vld [vmem:[#allocation121_spill] sm:$0xff] }
 0x8eb   :  { %2763 = vmatpush1.bf16.msra.mxu0 %v14835_v40  ;;  %2804 = vmatpush1.bf16.msra.mxu1 %v14836_v44  ;;  %v14846_v40 = vld [vmem:[#allocation122_spill] sm:$0xff]  ;;  %v14847_v44 = vld [vmem:[#allocation123_spill] sm:$0xff] }
 0x8ec   :  { %2764 = vmatprep.subr.bf16.mxu0 %v14837_v45  ;;  %2805 = vmatprep.subr.bf16.mxu1 %v14838_v46  ;;  %v14848_v45 = vld [vmem:[#allocation124_spill] sm:$0xff]  ;;  %v14849_v46 = vld [vmem:[#allocation125_spill] sm:$0xff] }
 0x8ef   :  { %2765 = vmatpush1.bf16.msra.mxu0 %v14839_v47  ;;  %2806 = vmatpush1.bf16.msra.mxu1 %v14840_v33  ;;  %v14850_v47 = vld [vmem:[#allocation127_spill] sm:$0xff]  ;;  %v14851_v33 = vld [vmem:[#allocation126_spill] sm:$0xff] }
 0x8f0   :  { %2766 = vmatprep.subr.bf16.mxu0 %v14841_v28  ;;  %2807 = vmatprep.subr.bf16.mxu1 %v14842_v3  ;;  %v14852_v28 = vld [vmem:[#allocation128_spill] sm:$0xff]  ;;  %v14853_v3 = vld [vmem:[#allocation129_spill] sm:$0xff] }
 0x8f3   :  { %2767 = vmatpush1.bf16.msra.mxu0 %v14843_v30  ;;  %2808 = vmatpush1.bf16.msra.mxu1 %v14844_v34  ;;  %v14854_v30 = vld [vmem:[#allocation130_spill] sm:$0xff]  ;;  %v14855_v34 = vld [vmem:[#allocation131_spill] sm:$0xff] }
 0x8f4   :  { %2768 = vmatprep.subr.bf16.mxu0 %v14845_v36  ;;  %2809 = vmatprep.subr.bf16.mxu1 %v14846_v40  ;;  %v14856_v36 = vld [vmem:[#allocation132_spill] sm:$0xff]  ;;  %v14857_v40 = vld [vmem:[#allocation133_spill] sm:$0xff] }
 0x8f7   :  { %2769 = vmatpush1.bf16.msra.mxu0 %v14847_v44  ;;  %2810 = vmatpush1.bf16.msra.mxu1 %v14848_v45  ;;  %v14858_v44 = vld [vmem:[#allocation134_spill] sm:$0xff]  ;;  %v14859_v45 = vld [vmem:[#allocation135_spill] sm:$0xff] }
 0x8f8   :  { %2770 = vmatprep.subr.bf16.mxu0 %v14849_v46  ;;  %2811 = vmatprep.subr.bf16.mxu1 %v14850_v47  ;;  %v14860_v46 = vld [vmem:[#allocation136_spill] sm:$0xff]  ;;  %v14861_v47 = vld [vmem:[#allocation137_spill] sm:$0xff] }
 0x8fb   :  { %2771 = vmatpush1.bf16.msra.mxu0 %v14851_v33  ;;  %2812 = vmatpush1.bf16.msra.mxu1 %v14852_v28  ;;  %v14862_v33 = vld [vmem:[#allocation138_spill] sm:$0xff] }
 0x8fc   :  { %2772 = vmatprep.subr.bf16.mxu0 %v14853_v3  ;;  %2813 = vmatprep.subr.bf16.mxu1 %v14854_v30 }
 0x8ff   :  { %2773 = vmatpush1.bf16.msra.mxu0 %v14855_v34  ;;  %2814 = vmatpush1.bf16.msra.mxu1 %v14856_v36 }
 0x900   :  { %2774 = vmatprep.subr.bf16.mxu0 %v14857_v40  ;;  %2815 = vmatprep.subr.bf16.mxu1 %v14858_v44 }
 0x903   :  { %2775 = vmatpush1.bf16.msra.mxu0 %v14859_v45  ;;  %2816 = vmatpush1.bf16.msra.mxu1 %v14860_v46 }
 0x904   :  { %2826 = vmatprep.subr.bf16.mxu0 %v14861_v47  ;;  %2867 = vmatprep.subr.bf16.mxu1 %v14862_v33 }
 0x959   :  { %v2503_v28 = vpop.f32.mrb[24].mxu0  ;;  %v2544_v3 = vpop.f32.mrb[32].mxu1 }
 0x95a   :  { %v2637_v8 = vrot.slane %v2503_v28, 5  ;;  %v2505_v30 = vpop.f32.mrb[25].mxu0  ;;  %v2546_v5 = vpop.f32.mrb[33].mxu1  ;;  %v2639_v47 = vrot.slane %v2544_v3, 5  ;;  %v14864_v28 = vld [vmem:[#allocation144_spill] sm:$0xff] }
 0x95b   :  { %v2638_v34 = vrot.slane %v2505_v30, 5  ;;  %v2507_v4 = vpop.f32.mrb[26].mxu0  ;;  %v2548_v36 = vpop.f32.mrb[34].mxu1  ;;  %v2640_v33 = vrot.slane %v2546_v5, 5 }
 0x95c   :  { %v2645_v40 = vadd.f32 %v2637_v8, %v14677_v37  ;;  %v2508_v38 = vpop.f32.mrb[27].mxu0  ;;  %v2549_v44 = vpop.f32.mrb[35].mxu1  ;;  %v2647_v32 = vadd.f32 %v2639_v47, %v14863_v13  ;;  %v14865_v8 = vld [vmem:[#allocation139_spill] sm:$0xff] }
 0x95d   :  { %v2646_v45 = vadd.f32 %v2638_v34, %v11217_v0  ;;  %v2648_v20 = vadd.f32 %v2640_v33, %v14864_v28 }
 0x95e   :  { %v8730_v35 = vmul.f32 -1.442695, %v2645_v40  ;;  %v8732_v16 = vmul.f32 -1.442695, %v2647_v32 }
 0x95f   :  { %v8731_v46 = vmul.f32 -1.442695, %v2646_v45 }
 0x960   :  { %9716 = vpow2.f32 %v8730_v35  ;;  %v2699_v35 = vrot.slane %v14865_v8, 7 }
 0x961   :  { %9718 = vpow2.f32 %v8731_v46 }
 0x962   :  { %9720 = vtanh.f32 %v2648_v20 }
 0x963   :  { %9722 = vpow2.f32 %v8732_v16 }
 0x96a   :  { %v9717_v30 = vpop.eup %9716 }
 0x96b   :  { %v2688_v4 = vadd.f32 1.0, %v9717_v30  ;;  %v9719_v36 = vpop.eup %9718 }
 0x96c   :  { %v2689_v44 = vadd.f32 1.0, %v9719_v36  ;;  %v9721_v34 = vpop.eup %9720 }
 0x96d   :  { %9724 = vrcp.f32 %v2688_v4  ;;  %v9723_v40 = vpop.eup %9722 }
 0x96e   :  { %9726 = vrcp.f32 %v2689_v44  ;;  %v2690_v38 = vadd.f32 1.0, %v9723_v40 }
 0x970   :  { %9728 = vrcp.f32 %v2690_v38 }
 0x977   :  { %v9725_v45 = vpop.eup %9724 }
 0x978   :  { %v2702_v46 = vmul.f32 %v9725_v45, %v9721_v34  ;;  %v9727_v5 = vpop.eup %9726 }
 0x979   :  { %v2701_v47 = vmul.f32 %v9727_v5, %v2699_v35 }
 0x97a   :  { %v9729_v33 = vpop.eup %9728 }
 0x97b   :  { %v11809_v3 = vadd.f32 %v2702_v46, %v2701_v47 }
 0x97d   :  { %14866 = vst [vmem:[#allocation145_spill] sm:$0xff] %v11809_v3  ;;  %9730 = vtanh.f32 %v11809_v3 }
 0x987   :  { %v9731_v20 = vpop.eup %9730 }
 0x988   :  { %v2705_v16 = vmul.f32 %v9731_v20, %v9729_v33 }
 0x999   :  { %v2585_v32 = vpop.f32.mrb[28].mxu0  ;;  %v2626_v30 = vpop.f32.mrb[36].mxu1 }
 0x99a   :  { %v2587_v4 = vpop.f32.mrb[29].mxu0  ;;  %v2628_v36 = vpop.f32.mrb[37].mxu1 }
 0x99b   :  { %v2653_v44 = vcombine.low %v2585_v32, %v2587_v4  ;;  %v2654_v28 = vcombine.low %v2626_v30, %v2628_v36  ;;  %v2589_v13 = vpop.f32.mrb[30].mxu0  ;;  %v2630_v8 = vpop.f32.mrb[38].mxu1 }
 0x99c   :  { %v2590_v34 = vpop.f32.mrb[31].mxu0  ;;  %v2631_v45 = vpop.f32.mrb[39].mxu1 }
 0x99d   :  { %v2661_v40 = vrot.slane %v2653_v44, %v11500_v59  ;;  %v2668_v35 = vrot.slane %v2654_v28, %v11500_v59  ;;  %v2732_v34 = vpack.c.bf16 %v2705_v16, %v2705_v16  ;;  %v14869_v16 = vld [vmem:[#allocation156_spill] sm:$0xff] }
 0x99f   :  { %v2669_v46 = vcombine.low %v2661_v40, %v2668_v35 }
 0x9a1   :  { %v2676_v5 = vrot.slane %v2669_v46, %v11500_v59  ;;  %v2735_v46 = vshrl.u32 %v2732_v34, 16  ;;  %v14880_v34 = vld [vmem:[#allocation167_spill] sm:$0xff] }
 0x9a3   :  { %v2678_v38 = vadd.f32 %v2676_v5, %v11504_v49 }
 0x9a5   :  { %v8733_v47 = vmul.f32 -1.442695, %v2678_v38  ;;  %v2713_v3 = vrot.slane %v2678_v38, 3 }
 0x9a7   :  { %9732 = vpow2.f32 %v8733_v47  ;;  %v11827_v47 = vrot.slane %v2735_v46, 1  ;;  %v14885_v46 = vld [vmem:[#allocation197_spill] sm:$0xff] }
 0x9b1   :  { %v9733_v33 = vpop.eup %9732 }
 0x9b2   :  { %v2709_v20 = vadd.f32 1.0, %v9733_v33  ;;  %v14870_v33 = vld [vmem:[#allocation157_spill] sm:$0xff] }
 0x9b4   :  { %9734 = vrcp.f32 %v2709_v20  ;;  %v14871_v20 = vld [vmem:[#allocation158_spill] sm:$0xff] }
 0x9b5   :  { %9736 = vtanh.f32 %v2713_v3  ;;  %v14867_v3 = vld [vmem:[#allocation206_spill] sm:$0xff] }
 0x9b6   :  { %v4295_v40 = vsel %vm4294_vm5, %v14867_v3, %v11666_v2  ;;  %v14868_v2 = vld [vmem:[#allocation155_spill] sm:$0xff]  ;;  %v14882_v3 = vld [vmem:[#allocation172_spill] sm:$0xff] }
 0x9be   :  { %v9735_v13 = vpop.eup %9734 }
 0x9bf   :  { %v2717_v32 = vrot.slane %v9735_v13, 1  ;;  %v9737_v30 = vpop.eup %9736  ;;  %v2723_v28 = vrot.slane %v9735_v13, 2 }
 0x9c0   :  { %v2720_v36 = vmul.f32 %v9737_v30, %v9735_v13  ;;  %v14872_v13 = vld [vmem:[#allocation159_spill] sm:$0xff]  ;;  %v14874_v30 = vld [vmem:[#allocation161_spill] sm:$0xff] }
 0x9c1   :  { %v2719_v4 = vmul.f32 %v2717_v32, %v11662_v57  ;;  %v14873_v32 = vld [vmem:[#allocation160_spill] sm:$0xff] }
 0x9c3   :  { %v11817_v44 = vadd.f32 %v2720_v36, %v2719_v4  ;;  %v14875_v4 = vld [vmem:[#allocation162_spill] sm:$0xff]  ;;  %v14876_v36 = vld [vmem:[#allocation163_spill] sm:$0xff] }
 0x9c5   :  { %9738 = vtanh.f32 %v11817_v44 }
 0x9cf   :  { %v9739_v8 = vpop.eup %9738 }
 0x9d0   :  { %v2725_v49 = vmul.f32 %v9739_v8, %v2723_v28  ;;  %v14877_v28 = vld [vmem:[#allocation164_spill] sm:$0xff]  ;;  %v14878_v8 = vld [vmem:[#allocation165_spill] sm:$0xff] }
 0x9d2   :  { %v2730_v45 = vrot.slane %v2725_v49, %v14682_v39  ;;  %v14879_v49 = vld [vmem:[#allocation166_spill] sm:$0xff] }
 0x9d4   :  { %v2733_v35 = vpack.c.bf16 %v2730_v45, %v2730_v45  ;;  %v11825_v57 = vsel %vm4296_vm6, %v4295_v40, %v2730_v45  ;;  %v14881_v45 = vld [vmem:[#allocation168_spill] sm:$0xff]  ;;  %v14883_v40 = vld [vmem:[#allocation173_spill] sm:$0xff] }
 0x9d6   :  { %v2739_v5 = vshrl.u32 %v2733_v35, 16  ;;  %v14884_v35 = vld [vmem:[#allocation196_spill] sm:$0xff] }
 0x9d8   :  { %v2741_v38 = vrot.slane %v2739_v5, 1  ;;  %v14886_v5 = vld [vmem:[#allocation198_spill] sm:$0xff] }
 0x9da   :  { %2776 = vmatprep.mubr.bf16.mxu0 %v2741_v38  ;;  %2817 = vmatprep.mubr.bf16.mxu1 %v2741_v38 }
 0x9db   :  { %2777 = vmatmul.mubr.bf16.vlgmr.msra.gmra.mrb[32].mxu0 %v11827_v47  ;;  %2818 = vmatmul.mubr.bf16.vlgmr.msra.gmra.mrb[40].mxu1 %v11827_v47 }
 0x9dc   :  { %2827 = vmatpush1.bf16.msra.mxu0 %v11201_v50  ;;  %2868 = vmatpush1.bf16.msra.mxu1 %v14683_v31 }
 0x9dd   :  { %2858 = vmatprep.mubr.bf16.mxu0 %v2741_v38  ;;  %2899 = vmatprep.mubr.bf16.mxu1 %v2741_v38  ;;  %v14887_v38 = vld [vmem:[#allocation199_spill] sm:$0xff] }
 0x9de   :  { %2828 = vmatprep.subr.bf16.mxu0 %v14684_v42  ;;  %2869 = vmatprep.subr.bf16.mxu1 %v14685_v22 }
 0x9e0   :  { %2829 = vmatpush1.bf16.msra.mxu0 %v14686_v23  ;;  %2870 = vmatpush1.bf16.msra.mxu1 %v14773_v21 }
 0x9e1   :  { %2830 = vmatprep.subr.bf16.mxu0 %v14774_v53  ;;  %2871 = vmatprep.subr.bf16.mxu1 %v14775_v62 }
 0x9e4   :  { %2831 = vmatpush1.bf16.msra.mxu0 %v14776_v19  ;;  %2872 = vmatpush1.bf16.msra.mxu1 %v14777_v7 }
 0x9e5   :  { %2832 = vmatprep.subr.bf16.mxu0 %v14778_v54  ;;  %2873 = vmatprep.subr.bf16.mxu1 %v14779_v55 }
 0x9e8   :  { %2833 = vmatpush1.bf16.msra.mxu0 %v14868_v2  ;;  %2874 = vmatpush1.bf16.msra.mxu1 %v14869_v16 }
 0x9e9   :  { %2834 = vmatprep.subr.bf16.mxu0 %v14870_v33  ;;  %2875 = vmatprep.subr.bf16.mxu1 %v14871_v20 }
 0x9ec   :  { %2835 = vmatpush1.bf16.msra.mxu0 %v14872_v13  ;;  %2876 = vmatpush1.bf16.msra.mxu1 %v14873_v32 }
 0x9ed   :  { %2836 = vmatprep.subr.bf16.mxu0 %v14874_v30  ;;  %2877 = vmatprep.subr.bf16.mxu1 %v14875_v4 }
 0x9f0   :  { %2837 = vmatpush1.bf16.msra.mxu0 %v14876_v36  ;;  %2878 = vmatpush1.bf16.msra.mxu1 %v14877_v28 }
 0x9f1   :  { %2838 = vmatprep.subr.bf16.mxu0 %v14878_v8  ;;  %2879 = vmatprep.subr.bf16.mxu1 %v14879_v49 }
 0x9f4   :  { %2839 = vmatpush1.bf16.msra.mxu0 %v14880_v34  ;;  %2880 = vmatpush1.bf16.msra.mxu1 %v14881_v45 }
 0x9f5   :  { %2840 = vmatprep.subr.bf16.mxu0 %v14794_v58  ;;  %2881 = vmatprep.subr.bf16.mxu1 %v14795_v18 }
 0x9f8   :  { %2841 = vmatpush1.bf16.msra.mxu0 %v14796_v10  ;;  %2882 = vmatpush1.bf16.msra.mxu1 %v14882_v3 }
 0x9f9   :  { %2842 = vmatprep.subr.bf16.mxu0 %v14883_v40  ;;  %2883 = vmatprep.subr.bf16.mxu1 %v14799_v17 }
 0x9fc   :  { %2843 = vmatpush1.bf16.msra.mxu0 %v14800_v27  ;;  %2884 = vmatpush1.bf16.msra.mxu1 %v14801_v11 }
 0x9fd   :  { %2844 = vmatprep.subr.bf16.mxu0 %v14802_v52  ;;  %2885 = vmatprep.subr.bf16.mxu1 %v14803_v9 }
 0xa00   :  { %2845 = vmatpush1.bf16.msra.mxu0 %v14804_v15  ;;  %2886 = vmatpush1.bf16.msra.mxu1 %v14719_v25 }
 0xa01   :  { %2846 = vmatprep.subr.bf16.mxu0 %v14720_v12  ;;  %2887 = vmatprep.subr.bf16.mxu1 %v14721_v51 }
 0xa04   :  { %2847 = vmatpush1.bf16.msra.mxu0 %v14805_v56  ;;  %2888 = vmatpush1.bf16.msra.mxu1 %v14806_v1  ;;  %v14959_v1 = vld [vmem:[#allocation143_spill] sm:$0xff] }
 0xa05   :  { %2848 = vmatprep.subr.bf16.mxu0 %v14724_v61  ;;  %2889 = vmatprep.subr.bf16.mxu1 %v14725_v63 }
 0xa08   :  { %2849 = vmatpush1.bf16.msra.mxu0 %v14726_v60  ;;  %2890 = vmatpush1.bf16.msra.mxu1 %v14727_v48 }
 0xa09   :  { %2850 = vmatprep.subr.bf16.mxu0 %v14728_v24  ;;  %2891 = vmatprep.subr.bf16.mxu1 %v14729_v14  ;;  %v14888_v24 = vld [vmem:[#allocation200_spill] sm:$0xff]  ;;  %v14889_v14 = vld [vmem:[#allocation201_spill] sm:$0xff] }
 0xa0c   :  { %2851 = vmatpush1.bf16.msra.mxu0 %v11379_v6  ;;  %2892 = vmatpush1.bf16.msra.mxu1 %v11381_v29  ;;  %v14890_v6 = vld [vmem:[#allocation202_spill] sm:$0xff]  ;;  %v14891_v29 = vld [vmem:[#allocation203_spill] sm:$0xff] }
 0xa0d   :  { %2852 = vmatprep.subr.bf16.mxu0 %v11385_v43  ;;  %2893 = vmatprep.subr.bf16.mxu1 %v14730_v41  ;;  %v14892_v43 = vld [vmem:[#allocation204_spill] sm:$0xff]  ;;  %v14893_v41 = vld [vmem:[#allocation73_spill] sm:$0xff] }
 0xa10   :  { %2853 = vmatpush1.bf16.msra.mxu0 %v14731_v26  ;;  %2894 = vmatpush1.bf16.msra.mxu1 %v14884_v35  ;;  %v14894_v26 = vld [vmem:[#allocation75_spill] sm:$0xff] }
 0xa11   :  { %2854 = vmatprep.subr.bf16.mxu0 %v14885_v46  ;;  %2895 = vmatprep.subr.bf16.mxu1 %v14886_v5  ;;  %v14895_v5 = vld [vmem:[#allocation74_spill] sm:$0xff]  ;;  %v14904_v46 = vld [vmem:[#allocation84_spill] sm:$0xff] }
 0xa14   :  { %2855 = vmatpush1.bf16.msra.mxu0 %v14887_v38  ;;  %2896 = vmatpush1.bf16.msra.mxu1 %v14888_v24  ;;  %v14896_v38 = vld [vmem:[#allocation76_spill] sm:$0xff]  ;;  %v14897_v24 = vld [vmem:[#allocation77_spill] sm:$0xff] }
 0xa15   :  { %2856 = vmatprep.subr.bf16.mxu0 %v14889_v14  ;;  %2897 = vmatprep.subr.bf16.mxu1 %v14890_v6  ;;  %v14898_v14 = vld [vmem:[#allocation78_spill] sm:$0xff]  ;;  %v14899_v6 = vld [vmem:[#allocation79_spill] sm:$0xff] }
 0xa18   :  { %2857 = vmatpush1.bf16.msra.mxu0 %v14891_v29  ;;  %2898 = vmatpush1.bf16.msra.mxu1 %v14892_v43  ;;  %v14900_v29 = vld [vmem:[#allocation80_spill] sm:$0xff]  ;;  %v14901_v43 = vld [vmem:[#allocation81_spill] sm:$0xff] }
 0xa19   :  { %3015 = vmatprep.subr.bf16.mxu0 %v14893_v41  ;;  %3056 = vmatprep.subr.bf16.mxu1 %v14894_v26  ;;  %v14902_v41 = vld [vmem:[#allocation82_spill] sm:$0xff]  ;;  %v14903_v26 = vld [vmem:[#allocation83_spill] sm:$0xff] }
 0xa1b   :  { %2859 = vmatmul.mubr.bf16.vlgmr.msra.gmra.mrb[36].mxu0 %v11827_v47  ;;  %2900 = vmatmul.mubr.bf16.vlgmr.msra.gmra.mrb[44].mxu1 %v11827_v47  ;;  %v14905_v47 = vld [vmem:[#allocation85_spill] sm:$0xff] }
 0xa1c   :  { %3016 = vmatpush1.bf16.msra.mxu0 %v14895_v5  ;;  %3057 = vmatpush1.bf16.msra.mxu1 %v14896_v38  ;;  %v14906_v5 = vld [vmem:[#allocation86_spill] sm:$0xff]  ;;  %v14907_v38 = vld [vmem:[#allocation87_spill] sm:$0xff] }
 0xa1d   :  { %3017 = vmatprep.subr.bf16.mxu0 %v14897_v24  ;;  %3058 = vmatprep.subr.bf16.mxu1 %v14898_v14  ;;  %v14908_v24 = vld [vmem:[#allocation88_spill] sm:$0xff]  ;;  %v14909_v14 = vld [vmem:[#allocation89_spill] sm:$0xff] }
 0xa20   :  { %3018 = vmatpush1.bf16.msra.mxu0 %v14899_v6  ;;  %3059 = vmatpush1.bf16.msra.mxu1 %v14900_v29  ;;  %v14910_v6 = vld [vmem:[#allocation90_spill] sm:$0xff]  ;;  %v14911_v29 = vld [vmem:[#allocation91_spill] sm:$0xff] }
 0xa21   :  { %3019 = vmatprep.subr.bf16.mxu0 %v14901_v43  ;;  %3060 = vmatprep.subr.bf16.mxu1 %v14902_v41  ;;  %v14912_v43 = vld [vmem:[#allocation92_spill] sm:$0xff]  ;;  %v14913_v41 = vld [vmem:[#allocation93_spill] sm:$0xff] }
 0xa24   :  { %3020 = vmatpush1.bf16.msra.mxu0 %v14903_v26  ;;  %3061 = vmatpush1.bf16.msra.mxu1 %v14904_v46  ;;  %v14914_v26 = vld [vmem:[#allocation94_spill] sm:$0xff]  ;;  %v14915_v46 = vld [vmem:[#allocation95_spill] sm:$0xff] }
 0xa25   :  { %3021 = vmatprep.subr.bf16.mxu0 %v14905_v47  ;;  %3062 = vmatprep.subr.bf16.mxu1 %v14906_v5  ;;  %v14916_v47 = vld [vmem:[#allocation96_spill] sm:$0xff]  ;;  %v14917_v5 = vld [vmem:[#allocation97_spill] sm:$0xff] }
 0xa28   :  { %3022 = vmatpush1.bf16.msra.mxu0 %v14907_v38  ;;  %3063 = vmatpush1.bf16.msra.mxu1 %v14908_v24  ;;  %v14918_v38 = vld [vmem:[#allocation98_spill] sm:$0xff]  ;;  %v14919_v24 = vld [vmem:[#allocation99_spill] sm:$0xff] }
 0xa29   :  { %3023 = vmatprep.subr.bf16.mxu0 %v14909_v14  ;;  %3064 = vmatprep.subr.bf16.mxu1 %v14910_v6  ;;  %v14920_v14 = vld [vmem:[#allocation100_spill] sm:$0xff]  ;;  %v14921_v6 = vld [vmem:[#allocation101_spill] sm:$0xff] }
 0xa2c   :  { %3024 = vmatpush1.bf16.msra.mxu0 %v14911_v29  ;;  %3065 = vmatpush1.bf16.msra.mxu1 %v14912_v43  ;;  %v14922_v29 = vld [vmem:[#allocation102_spill] sm:$0xff]  ;;  %v14923_v43 = vld [vmem:[#allocation103_spill] sm:$0xff] }
 0xa2d   :  { %3025 = vmatprep.subr.bf16.mxu0 %v14913_v41  ;;  %3066 = vmatprep.subr.bf16.mxu1 %v14914_v26  ;;  %v14924_v41 = vld [vmem:[#allocation104_spill] sm:$0xff]  ;;  %v14925_v26 = vld [vmem:[#allocation105_spill] sm:$0xff] }
 0xa30   :  { %3026 = vmatpush1.bf16.msra.mxu0 %v14915_v46  ;;  %3067 = vmatpush1.bf16.msra.mxu1 %v14916_v47  ;;  %v14926_v46 = vld [vmem:[#allocation106_spill] sm:$0xff]  ;;  %v14927_v47 = vld [vmem:[#allocation107_spill] sm:$0xff] }
 0xa31   :  { %3027 = vmatprep.subr.bf16.mxu0 %v14917_v5  ;;  %3068 = vmatprep.subr.bf16.mxu1 %v14918_v38  ;;  %v14928_v5 = vld [vmem:[#allocation108_spill] sm:$0xff]  ;;  %v14929_v38 = vld [vmem:[#allocation109_spill] sm:$0xff] }
 0xa34   :  { %3028 = vmatpush1.bf16.msra.mxu0 %v14919_v24  ;;  %3069 = vmatpush1.bf16.msra.mxu1 %v14920_v14  ;;  %v14930_v24 = vld [vmem:[#allocation110_spill] sm:$0xff]  ;;  %v14931_v14 = vld [vmem:[#allocation111_spill] sm:$0xff] }
 0xa35   :  { %3029 = vmatprep.subr.bf16.mxu0 %v14921_v6  ;;  %3070 = vmatprep.subr.bf16.mxu1 %v14922_v29  ;;  %v14932_v6 = vld [vmem:[#allocation112_spill] sm:$0xff]  ;;  %v14933_v29 = vld [vmem:[#allocation113_spill] sm:$0xff] }
 0xa38   :  { %3030 = vmatpush1.bf16.msra.mxu0 %v14923_v43  ;;  %3071 = vmatpush1.bf16.msra.mxu1 %v14924_v41  ;;  %v14934_v43 = vld [vmem:[#allocation114_spill] sm:$0xff]  ;;  %v14935_v41 = vld [vmem:[#allocation115_spill] sm:$0xff] }
 0xa39   :  { %3031 = vmatprep.subr.bf16.mxu0 %v14925_v26  ;;  %3072 = vmatprep.subr.bf16.mxu1 %v14926_v46  ;;  %v14936_v26 = vld [vmem:[#allocation116_spill] sm:$0xff]  ;;  %v14937_v46 = vld [vmem:[#allocation117_spill] sm:$0xff] }
 0xa3c   :  { %3032 = vmatpush1.bf16.msra.mxu0 %v14927_v47  ;;  %3073 = vmatpush1.bf16.msra.mxu1 %v14928_v5  ;;  %v14938_v47 = vld [vmem:[#allocation118_spill] sm:$0xff]  ;;  %v14939_v5 = vld [vmem:[#allocation119_spill] sm:$0xff] }
 0xa3d   :  { %3033 = vmatprep.subr.bf16.mxu0 %v14929_v38  ;;  %3074 = vmatprep.subr.bf16.mxu1 %v14930_v24  ;;  %v14940_v38 = vld [vmem:[#allocation120_spill] sm:$0xff]  ;;  %v14941_v24 = vld [vmem:[#allocation121_spill] sm:$0xff] }
 0xa40   :  { %3034 = vmatpush1.bf16.msra.mxu0 %v14931_v14  ;;  %3075 = vmatpush1.bf16.msra.mxu1 %v14932_v6  ;;  %v14942_v14 = vld [vmem:[#allocation122_spill] sm:$0xff]  ;;  %v14943_v6 = vld [vmem:[#allocation123_spill] sm:$0xff] }
 0xa41   :  { %3035 = vmatprep.subr.bf16.mxu0 %v14933_v29  ;;  %3076 = vmatprep.subr.bf16.mxu1 %v14934_v43  ;;  %v14944_v29 = vld [vmem:[#allocation124_spill] sm:$0xff]  ;;  %v14945_v43 = vld [vmem:[#allocation125_spill] sm:$0xff] }
 0xa44   :  { %3036 = vmatpush1.bf16.msra.mxu0 %v14935_v41  ;;  %3077 = vmatpush1.bf16.msra.mxu1 %v14936_v26  ;;  %v14946_v41 = vld [vmem:[#allocation127_spill] sm:$0xff]  ;;  %v14947_v26 = vld [vmem:[#allocation126_spill] sm:$0xff] }
 0xa45   :  { %3037 = vmatprep.subr.bf16.mxu0 %v14937_v46  ;;  %3078 = vmatprep.subr.bf16.mxu1 %v14938_v47  ;;  %v14948_v46 = vld [vmem:[#allocation128_spill] sm:$0xff]  ;;  %v14949_v47 = vld [vmem:[#allocation129_spill] sm:$0xff] }
 0xa48   :  { %3038 = vmatpush1.bf16.msra.mxu0 %v14939_v5  ;;  %3079 = vmatpush1.bf16.msra.mxu1 %v14940_v38  ;;  %v14950_v5 = vld [vmem:[#allocation130_spill] sm:$0xff]  ;;  %v14951_v38 = vld [vmem:[#allocation131_spill] sm:$0xff] }
 0xa49   :  { %3039 = vmatprep.subr.bf16.mxu0 %v14941_v24  ;;  %3080 = vmatprep.subr.bf16.mxu1 %v14942_v14  ;;  %v14952_v24 = vld [vmem:[#allocation132_spill] sm:$0xff]  ;;  %v14953_v14 = vld [vmem:[#allocation133_spill] sm:$0xff] }
 0xa4c   :  { %3040 = vmatpush1.bf16.msra.mxu0 %v14943_v6  ;;  %3081 = vmatpush1.bf16.msra.mxu1 %v14944_v29  ;;  %v14954_v6 = vld [vmem:[#allocation134_spill] sm:$0xff]  ;;  %v14955_v29 = vld [vmem:[#allocation135_spill] sm:$0xff] }
 0xa4d   :  { %3041 = vmatprep.subr.bf16.mxu0 %v14945_v43  ;;  %3082 = vmatprep.subr.bf16.mxu1 %v14946_v41  ;;  %v14956_v43 = vld [vmem:[#allocation136_spill] sm:$0xff]  ;;  %v14957_v41 = vld [vmem:[#allocation137_spill] sm:$0xff] }
 0xa50   :  { %3042 = vmatpush1.bf16.msra.mxu0 %v14947_v26  ;;  %3083 = vmatpush1.bf16.msra.mxu1 %v14948_v46  ;;  %v14958_v26 = vld [vmem:[#allocation138_spill] sm:$0xff] }
 0xa51   :  { %3043 = vmatprep.subr.bf16.mxu0 %v14949_v47  ;;  %3084 = vmatprep.subr.bf16.mxu1 %v14950_v5 }
 0xa54   :  { %3044 = vmatpush1.bf16.msra.mxu0 %v14951_v38  ;;  %3085 = vmatpush1.bf16.msra.mxu1 %v14952_v24 }
 0xa55   :  { %3045 = vmatprep.subr.bf16.mxu0 %v14953_v14  ;;  %3086 = vmatprep.subr.bf16.mxu1 %v14954_v6 }
 0xa58   :  { %3046 = vmatpush1.bf16.msra.mxu0 %v14955_v29  ;;  %3087 = vmatpush1.bf16.msra.mxu1 %v14956_v43 }
 0xa59   :  { %3097 = vmatprep.subr.bf16.mxu0 %v14957_v41  ;;  %3138 = vmatprep.subr.bf16.mxu1 %v14958_v26 }
 0xaae   :  { %v2778_v46 = vpop.f32.mrb[32].mxu0  ;;  %v2819_v47 = vpop.f32.mrb[40].mxu1 }
 0xaaf   :  { %v2912_v35 = vrot.slane %v2778_v46, 4  ;;  %v2780_v5 = vpop.f32.mrb[33].mxu0  ;;  %v2821_v48 = vpop.f32.mrb[41].mxu1  ;;  %v2914_v41 = vrot.slane %v2819_v47, 4  ;;  %v14960_v46 = vld [vmem:[#allocation144_spill] sm:$0xff] }
 0xab0   :  { %v2913_v38 = vrot.slane %v2780_v5, 4  ;;  %v2782_v60 = vpop.f32.mrb[34].mxu0  ;;  %v2823_v24 = vpop.f32.mrb[42].mxu1  ;;  %v2915_v26 = vrot.slane %v2821_v48, 4 }
 0xab1   :  { %v2920_v14 = vadd.f32 %v2912_v35, %v14677_v37  ;;  %v2783_v63 = vpop.f32.mrb[35].mxu0  ;;  %v2824_v6 = vpop.f32.mrb[43].mxu1  ;;  %v2922_v56 = vadd.f32 %v2914_v41, %v14959_v1 }
 0xab2   :  { %v2921_v29 = vadd.f32 %v2913_v38, %v11217_v0  ;;  %v2923_v51 = vadd.f32 %v2915_v26, %v14960_v46 }
 0xab3   :  { %v8734_v61 = vmul.f32 -1.442695, %v2920_v14  ;;  %v8736_v12 = vmul.f32 -1.442695, %v2922_v56 }
 0xab4   :  { %v8735_v43 = vmul.f32 -1.442695, %v2921_v29 }
 0xab5   :  { %9740 = vpow2.f32 %v8734_v61  ;;  %v14961_v61 = vld [vmem:[#allocation145_spill] sm:$0xff] }
 0xab6   :  { %9742 = vpow2.f32 %v8735_v43  ;;  %v2974_v35 = vrot.slane %v14961_v61, 7 }
 0xab7   :  { %9744 = vtanh.f32 %v2923_v51 }
 0xab8   :  { %9746 = vpow2.f32 %v8736_v12 }
 0xabf   :  { %v9741_v5 = vpop.eup %9740 }
 0xac0   :  { %v2963_v60 = vadd.f32 1.0, %v9741_v5  ;;  %v9743_v24 = vpop.eup %9742 }
 0xac1   :  { %v2964_v6 = vadd.f32 1.0, %v9743_v24  ;;  %v9745_v63 = vpop.eup %9744 }
 0xac2   :  { %9748 = vrcp.f32 %v2963_v60  ;;  %v9747_v14 = vpop.eup %9746 }
 0xac3   :  { %9750 = vrcp.f32 %v2964_v6  ;;  %v2965_v38 = vadd.f32 1.0, %v9747_v14 }
 0xac5   :  { %9752 = vrcp.f32 %v2965_v38  ;;  %v11972_v38 = vld [vmem:[#allocation20] sm:$0xf] }
 0xacc   :  { %v9749_v29 = vpop.eup %9748 }
 0xacd   :  { %v2977_v43 = vmul.f32 %v9749_v29, %v9745_v63  ;;  %v9751_v48 = vpop.eup %9750 }
 0xace   :  { %v2976_v41 = vmul.f32 %v9751_v48, %v2974_v35 }
 0xacf   :  { %v9753_v51 = vpop.eup %9752 }
 0xad0   :  { %v11966_v47 = vadd.f32 %v2977_v43, %v2976_v41 }
 0xad2   :  { %9754 = vtanh.f32 %v11966_v47 }
 0xadc   :  { %v9755_v26 = vpop.eup %9754 }
 0xadd   :  { %v2980_v12 = vmul.f32 %v9755_v26, %v9753_v51 }
 0xaee   :  { %v2860_v56 = vpop.f32.mrb[36].mxu0  ;;  %v2901_v5 = vpop.f32.mrb[44].mxu1 }
 0xaef   :  { %v2862_v60 = vpop.f32.mrb[37].mxu0  ;;  %v2903_v24 = vpop.f32.mrb[45].mxu1 }
 0xaf0   :  { %v2928_v6 = vcombine.low %v2860_v56, %v2862_v60  ;;  %v2929_v46 = vcombine.low %v2901_v5, %v2903_v24  ;;  %v2864_v1 = vpop.f32.mrb[38].mxu0  ;;  %v2905_v61 = vpop.f32.mrb[46].mxu1 }
 0xaf1   :  { %v2865_v63 = vpop.f32.mrb[39].mxu0  ;;  %v2906_v29 = vpop.f32.mrb[47].mxu1 }
 0xaf2   :  { %v2936_v14 = vrot.slane %v2928_v6, %v11500_v59  ;;  %v2943_v35 = vrot.slane %v2929_v46, %v11500_v59 }
 0xaf4   :  { %v2944_v43 = vcombine.low %v2936_v14, %v2943_v35 }
 0xaf6   :  { %v2951_v48 = vrot.slane %v2944_v43, %v11500_v59  ;;  %v3007_v43 = vpack.c.bf16 %v2980_v12, %v2980_v12  ;;  %v14964_v12 = vld [vmem:[#allocation183_spill] sm:$0xff] }
 0xaf8   :  { %v2953_v41 = vadd.f32 %v11972_v38, %v2951_v48 }
 0xafa   :  { %v8737_v51 = vmul.f32 -1.442695, %v2953_v41  ;;  %v2988_v5 = vrot.slane %v2953_v41, 3 }
 0xafc   :  { %9756 = vpow2.f32 %v8737_v51 }
 0xb06   :  { %v9757_v26 = vpop.eup %9756 }
 0xb07   :  { %v2984_v56 = vadd.f32 1.0, %v9757_v26  ;;  %v11984_v26 = vrot.slane %v3007_v43, 2  ;;  %v14976_v43 = vld [vmem:[#allocation195_spill] sm:$0xff] }
 0xb09   :  { %9758 = vrcp.f32 %v2984_v56  ;;  %v14965_v56 = vld [vmem:[#allocation184_spill] sm:$0xff] }
 0xb0a   :  { %9760 = vtanh.f32 %v2988_v5  ;;  %v14966_v5 = vld [vmem:[#allocation185_spill] sm:$0xff] }
 0xb13   :  { %v9759_v1 = vpop.eup %9758 }
 0xb14   :  { %v2992_v60 = vrot.slane %v9759_v1, 1  ;;  %v9761_v24 = vpop.eup %9760  ;;  %v2998_v63 = vrot.slane %v9759_v1, 2 }
 0xb15   :  { %v2995_v46 = vmul.f32 %v9761_v24, %v9759_v1  ;;  %v14967_v1 = vld [vmem:[#allocation186_spill] sm:$0xff]  ;;  %v14969_v24 = vld [vmem:[#allocation188_spill] sm:$0xff] }
 0xb16   :  { %v2994_v6 = vmul.f32 %v2992_v60, %v11817_v44  ;;  %v14962_v44 = vld [vmem:[#allocation181_spill] sm:$0xff]  ;;  %v14968_v60 = vld [vmem:[#allocation187_spill] sm:$0xff] }
 0xb18   :  { %v11976_v61 = vadd.f32 %v2995_v46, %v2994_v6  ;;  %v14970_v6 = vld [vmem:[#allocation189_spill] sm:$0xff]  ;;  %v14971_v46 = vld [vmem:[#allocation190_spill] sm:$0xff] }
 0xb1a   :  { %9762 = vtanh.f32 %v11976_v61 }
 0xb24   :  { %v9763_v29 = vpop.eup %9762 }
 0xb25   :  { %v3000_v14 = vmul.f32 %v9763_v29, %v2998_v63  ;;  %v14972_v63 = vld [vmem:[#allocation191_spill] sm:$0xff]  ;;  %v14973_v29 = vld [vmem:[#allocation192_spill] sm:$0xff] }
 0xb27   :  { %v3005_v35 = vrot.slane %v3000_v14, %v14682_v39  ;;  %v14974_v14 = vld [vmem:[#allocation193_spill] sm:$0xff] }
 0xb29   :  { %v3008_v48 = vpack.c.bf16 %v3005_v35, %v3005_v35  ;;  %v11982_v41 = vsel %vm4298_vm7, %v11825_v57, %v3005_v35  ;;  %v14963_v57 = vld [vmem:[#allocation182_spill] sm:$0xff] }
 0xb2a   :  { %v14975_v35 = vld [vmem:[#allocation194_spill] sm:$0xff] }
 0xb2b   :  { %v3012_v51 = vrot.slane %v3008_v48, 2  ;;  %v14977_v48 = vld [vmem:[#allocation196_spill] sm:$0xff] }
 0xb2d   :  { %3047 = vmatprep.mubr.bf16.mxu0 %v3012_v51  ;;  %3088 = vmatprep.mubr.bf16.mxu1 %v3012_v51 }
 0xb2e   :  { %3048 = vmatmul.mubr.bf16.vlgmr.msra.gmra.mrb[40].mxu0 %v11984_v26  ;;  %3089 = vmatmul.mubr.bf16.vlgmr.msra.gmra.mrb[48].mxu1 %v11984_v26 }
 0xb2f   :  { %3098 = vmatpush1.bf16.msra.mxu0 %v11201_v50  ;;  %3139 = vmatpush1.bf16.msra.mxu1 %v14683_v31 }
 0xb30   :  { %3129 = vmatprep.mubr.bf16.mxu0 %v3012_v51  ;;  %3170 = vmatprep.mubr.bf16.mxu1 %v3012_v51  ;;  %v14978_v51 = vld [vmem:[#allocation197_spill] sm:$0xff] }
 0xb31   :  { %3099 = vmatprep.subr.bf16.mxu0 %v14684_v42  ;;  %3140 = vmatprep.subr.bf16.mxu1 %v14685_v22 }
 0xb33   :  { %3100 = vmatpush1.bf16.msra.mxu0 %v14686_v23  ;;  %3141 = vmatpush1.bf16.msra.mxu1 %v14773_v21 }
 0xb34   :  { %3101 = vmatprep.subr.bf16.mxu0 %v14774_v53  ;;  %3142 = vmatprep.subr.bf16.mxu1 %v14775_v62 }
 0xb37   :  { %3102 = vmatpush1.bf16.msra.mxu0 %v14776_v19  ;;  %3143 = vmatpush1.bf16.msra.mxu1 %v14777_v7 }
 0xb38   :  { %3103 = vmatprep.subr.bf16.mxu0 %v14778_v54  ;;  %3144 = vmatprep.subr.bf16.mxu1 %v14779_v55 }
 0xb3b   :  { %3104 = vmatpush1.bf16.msra.mxu0 %v14868_v2  ;;  %3145 = vmatpush1.bf16.msra.mxu1 %v14869_v16 }
 0xb3c   :  { %3105 = vmatprep.subr.bf16.mxu0 %v14870_v33  ;;  %3146 = vmatprep.subr.bf16.mxu1 %v14871_v20 }
 0xb3f   :  { %3106 = vmatpush1.bf16.msra.mxu0 %v14872_v13  ;;  %3147 = vmatpush1.bf16.msra.mxu1 %v14873_v32 }
 0xb40   :  { %3107 = vmatprep.subr.bf16.mxu0 %v14874_v30  ;;  %3148 = vmatprep.subr.bf16.mxu1 %v14875_v4 }
 0xb43   :  { %3108 = vmatpush1.bf16.msra.mxu0 %v14876_v36  ;;  %3149 = vmatpush1.bf16.msra.mxu1 %v14877_v28 }
 0xb44   :  { %3109 = vmatprep.subr.bf16.mxu0 %v14878_v8  ;;  %3150 = vmatprep.subr.bf16.mxu1 %v14879_v49 }
 0xb47   :  { %3110 = vmatpush1.bf16.msra.mxu0 %v14880_v34  ;;  %3151 = vmatpush1.bf16.msra.mxu1 %v14881_v45 }
 0xb48   :  { %3111 = vmatprep.subr.bf16.mxu0 %v14794_v58  ;;  %3152 = vmatprep.subr.bf16.mxu1 %v14795_v18 }
 0xb4b   :  { %3112 = vmatpush1.bf16.msra.mxu0 %v14796_v10  ;;  %3153 = vmatpush1.bf16.msra.mxu1 %v14882_v3 }
 0xb4c   :  { %3113 = vmatprep.subr.bf16.mxu0 %v14883_v40  ;;  %3154 = vmatprep.subr.bf16.mxu1 %v14799_v17 }
 0xb4f   :  { %3114 = vmatpush1.bf16.msra.mxu0 %v14800_v27  ;;  %3155 = vmatpush1.bf16.msra.mxu1 %v14801_v11 }
 0xb50   :  { %3115 = vmatprep.subr.bf16.mxu0 %v14802_v52  ;;  %3156 = vmatprep.subr.bf16.mxu1 %v14803_v9 }
 0xb53   :  { %3116 = vmatpush1.bf16.msra.mxu0 %v14804_v15  ;;  %3157 = vmatpush1.bf16.msra.mxu1 %v14719_v25 }
 0xb54   :  { %3117 = vmatprep.subr.bf16.mxu0 %v14962_v44  ;;  %3158 = vmatprep.subr.bf16.mxu1 %v14963_v57  ;;  %v15052_v57 = vld [vmem:[#allocation143_spill] sm:$0xff] }
 0xb57   :  { %3118 = vmatpush1.bf16.msra.mxu0 %v14964_v12  ;;  %3159 = vmatpush1.bf16.msra.mxu1 %v14965_v56 }
 0xb58   :  { %3119 = vmatprep.subr.bf16.mxu0 %v14966_v5  ;;  %3160 = vmatprep.subr.bf16.mxu1 %v14967_v1 }
 0xb5b   :  { %3120 = vmatpush1.bf16.msra.mxu0 %v14968_v60  ;;  %3161 = vmatpush1.bf16.msra.mxu1 %v14969_v24  ;;  %v14979_v60 = vld [vmem:[#allocation198_spill] sm:$0xff]  ;;  %v14980_v24 = vld [vmem:[#allocation199_spill] sm:$0xff] }
 0xb5c   :  { %3121 = vmatprep.subr.bf16.mxu0 %v14970_v6  ;;  %3162 = vmatprep.subr.bf16.mxu1 %v14971_v46  ;;  %v14981_v6 = vld [vmem:[#allocation200_spill] sm:$0xff]  ;;  %v14982_v46 = vld [vmem:[#allocation201_spill] sm:$0xff] }
 0xb5f   :  { %3122 = vmatpush1.bf16.msra.mxu0 %v14972_v63  ;;  %3163 = vmatpush1.bf16.msra.mxu1 %v14973_v29  ;;  %v14983_v63 = vld [vmem:[#allocation202_spill] sm:$0xff]  ;;  %v14984_v29 = vld [vmem:[#allocation203_spill] sm:$0xff] }
 0xb60   :  { %3123 = vmatprep.subr.bf16.mxu0 %v14974_v14  ;;  %3164 = vmatprep.subr.bf16.mxu1 %v14975_v35  ;;  %v14985_v14 = vld [vmem:[#allocation204_spill] sm:$0xff]  ;;  %v14986_v35 = vld [vmem:[#allocation73_spill] sm:$0xff] }
 0xb63   :  { %3124 = vmatpush1.bf16.msra.mxu0 %v14976_v43  ;;  %3165 = vmatpush1.bf16.msra.mxu1 %v14977_v48  ;;  %v14987_v43 = vld [vmem:[#allocation75_spill] sm:$0xff] }
 0xb64   :  { %3125 = vmatprep.subr.bf16.mxu0 %v14978_v51  ;;  %3166 = vmatprep.subr.bf16.mxu1 %v14979_v60  ;;  %v14988_v60 = vld [vmem:[#allocation74_spill] sm:$0xff]  ;;  %v14997_v51 = vld [vmem:[#allocation84_spill] sm:$0xff] }
 0xb67   :  { %3126 = vmatpush1.bf16.msra.mxu0 %v14980_v24  ;;  %3167 = vmatpush1.bf16.msra.mxu1 %v14981_v6  ;;  %v14989_v24 = vld [vmem:[#allocation76_spill] sm:$0xff]  ;;  %v14990_v6 = vld [vmem:[#allocation77_spill] sm:$0xff] }
 0xb68   :  { %3127 = vmatprep.subr.bf16.mxu0 %v14982_v46  ;;  %3168 = vmatprep.subr.bf16.mxu1 %v14983_v63  ;;  %v14991_v46 = vld [vmem:[#allocation78_spill] sm:$0xff]  ;;  %v14992_v63 = vld [vmem:[#allocation79_spill] sm:$0xff] }
 0xb6b   :  { %3128 = vmatpush1.bf16.msra.mxu0 %v14984_v29  ;;  %3169 = vmatpush1.bf16.msra.mxu1 %v14985_v14  ;;  %v14993_v29 = vld [vmem:[#allocation80_spill] sm:$0xff]  ;;  %v14994_v14 = vld [vmem:[#allocation81_spill] sm:$0xff] }
 0xb6c   :  { %3290 = vmatprep.subr.bf16.mxu0 %v14986_v35  ;;  %3331 = vmatprep.subr.bf16.mxu1 %v14987_v43  ;;  %v14995_v35 = vld [vmem:[#allocation82_spill] sm:$0xff]  ;;  %v14996_v43 = vld [vmem:[#allocation83_spill] sm:$0xff] }
 0xb6e   :  { %3130 = vmatmul.mubr.bf16.vlgmr.msra.gmra.mrb[44].mxu0 %v11984_v26  ;;  %3171 = vmatmul.mubr.bf16.vlgmr.msra.gmra.mrb[52].mxu1 %v11984_v26  ;;  %v14998_v26 = vld [vmem:[#allocation85_spill] sm:$0xff] }
 0xb6f   :  { %3291 = vmatpush1.bf16.msra.mxu0 %v14988_v60  ;;  %3332 = vmatpush1.bf16.msra.mxu1 %v14989_v24  ;;  %v14999_v60 = vld [vmem:[#allocation86_spill] sm:$0xff]  ;;  %v15000_v24 = vld [vmem:[#allocation87_spill] sm:$0xff] }
 0xb70   :  { %3292 = vmatprep.subr.bf16.mxu0 %v14990_v6  ;;  %3333 = vmatprep.subr.bf16.mxu1 %v14991_v46  ;;  %v15001_v6 = vld [vmem:[#allocation88_spill] sm:$0xff]  ;;  %v15002_v46 = vld [vmem:[#allocation89_spill] sm:$0xff] }
 0xb73   :  { %3293 = vmatpush1.bf16.msra.mxu0 %v14992_v63  ;;  %3334 = vmatpush1.bf16.msra.mxu1 %v14993_v29  ;;  %v15003_v63 = vld [vmem:[#allocation90_spill] sm:$0xff]  ;;  %v15004_v29 = vld [vmem:[#allocation91_spill] sm:$0xff] }
 0xb74   :  { %3294 = vmatprep.subr.bf16.mxu0 %v14994_v14  ;;  %3335 = vmatprep.subr.bf16.mxu1 %v14995_v35  ;;  %v15005_v14 = vld [vmem:[#allocation92_spill] sm:$0xff]  ;;  %v15006_v35 = vld [vmem:[#allocation93_spill] sm:$0xff] }
 0xb77   :  { %3295 = vmatpush1.bf16.msra.mxu0 %v14996_v43  ;;  %3336 = vmatpush1.bf16.msra.mxu1 %v14997_v51  ;;  %v15007_v43 = vld [vmem:[#allocation94_spill] sm:$0xff]  ;;  %v15008_v51 = vld [vmem:[#allocation95_spill] sm:$0xff] }
 0xb78   :  { %3296 = vmatprep.subr.bf16.mxu0 %v14998_v26  ;;  %3337 = vmatprep.subr.bf16.mxu1 %v14999_v60  ;;  %v15009_v26 = vld [vmem:[#allocation96_spill] sm:$0xff]  ;;  %v15010_v60 = vld [vmem:[#allocation97_spill] sm:$0xff] }
 0xb7b   :  { %3297 = vmatpush1.bf16.msra.mxu0 %v15000_v24  ;;  %3338 = vmatpush1.bf16.msra.mxu1 %v15001_v6  ;;  %v15011_v24 = vld [vmem:[#allocation98_spill] sm:$0xff]  ;;  %v15012_v6 = vld [vmem:[#allocation99_spill] sm:$0xff] }
 0xb7c   :  { %3298 = vmatprep.subr.bf16.mxu0 %v15002_v46  ;;  %3339 = vmatprep.subr.bf16.mxu1 %v15003_v63  ;;  %v15013_v46 = vld [vmem:[#allocation100_spill] sm:$0xff]  ;;  %v15014_v63 = vld [vmem:[#allocation101_spill] sm:$0xff] }
 0xb7f   :  { %3299 = vmatpush1.bf16.msra.mxu0 %v15004_v29  ;;  %3340 = vmatpush1.bf16.msra.mxu1 %v15005_v14  ;;  %v15015_v29 = vld [vmem:[#allocation102_spill] sm:$0xff]  ;;  %v15016_v14 = vld [vmem:[#allocation103_spill] sm:$0xff] }
 0xb80   :  { %3300 = vmatprep.subr.bf16.mxu0 %v15006_v35  ;;  %3341 = vmatprep.subr.bf16.mxu1 %v15007_v43  ;;  %v15017_v35 = vld [vmem:[#allocation104_spill] sm:$0xff]  ;;  %v15018_v43 = vld [vmem:[#allocation105_spill] sm:$0xff] }
 0xb83   :  { %3301 = vmatpush1.bf16.msra.mxu0 %v15008_v51  ;;  %3342 = vmatpush1.bf16.msra.mxu1 %v15009_v26  ;;  %v15019_v51 = vld [vmem:[#allocation106_spill] sm:$0xff]  ;;  %v15020_v26 = vld [vmem:[#allocation107_spill] sm:$0xff] }
 0xb84   :  { %3302 = vmatprep.subr.bf16.mxu0 %v15010_v60  ;;  %3343 = vmatprep.subr.bf16.mxu1 %v15011_v24  ;;  %v15021_v60 = vld [vmem:[#allocation108_spill] sm:$0xff]  ;;  %v15022_v24 = vld [vmem:[#allocation109_spill] sm:$0xff] }
 0xb87   :  { %3303 = vmatpush1.bf16.msra.mxu0 %v15012_v6  ;;  %3344 = vmatpush1.bf16.msra.mxu1 %v15013_v46  ;;  %v15023_v6 = vld [vmem:[#allocation110_spill] sm:$0xff]  ;;  %v15024_v46 = vld [vmem:[#allocation111_spill] sm:$0xff] }
 0xb88   :  { %3304 = vmatprep.subr.bf16.mxu0 %v15014_v63  ;;  %3345 = vmatprep.subr.bf16.mxu1 %v15015_v29  ;;  %v15025_v63 = vld [vmem:[#allocation112_spill] sm:$0xff]  ;;  %v15026_v29 = vld [vmem:[#allocation113_spill] sm:$0xff] }
 0xb8b   :  { %3305 = vmatpush1.bf16.msra.mxu0 %v15016_v14  ;;  %3346 = vmatpush1.bf16.msra.mxu1 %v15017_v35  ;;  %v15027_v14 = vld [vmem:[#allocation114_spill] sm:$0xff]  ;;  %v15028_v35 = vld [vmem:[#allocation115_spill] sm:$0xff] }
 0xb8c   :  { %3306 = vmatprep.subr.bf16.mxu0 %v15018_v43  ;;  %3347 = vmatprep.subr.bf16.mxu1 %v15019_v51  ;;  %v15029_v43 = vld [vmem:[#allocation116_spill] sm:$0xff]  ;;  %v15030_v51 = vld [vmem:[#allocation117_spill] sm:$0xff] }
 0xb8f   :  { %3307 = vmatpush1.bf16.msra.mxu0 %v15020_v26  ;;  %3348 = vmatpush1.bf16.msra.mxu1 %v15021_v60  ;;  %v15031_v26 = vld [vmem:[#allocation118_spill] sm:$0xff]  ;;  %v15032_v60 = vld [vmem:[#allocation119_spill] sm:$0xff] }
 0xb90   :  { %3308 = vmatprep.subr.bf16.mxu0 %v15022_v24  ;;  %3349 = vmatprep.subr.bf16.mxu1 %v15023_v6  ;;  %v15033_v24 = vld [vmem:[#allocation120_spill] sm:$0xff]  ;;  %v15034_v6 = vld [vmem:[#allocation121_spill] sm:$0xff] }
 0xb93   :  { %3309 = vmatpush1.bf16.msra.mxu0 %v15024_v46  ;;  %3350 = vmatpush1.bf16.msra.mxu1 %v15025_v63  ;;  %v15035_v46 = vld [vmem:[#allocation122_spill] sm:$0xff]  ;;  %v15036_v63 = vld [vmem:[#allocation123_spill] sm:$0xff] }
 0xb94   :  { %3310 = vmatprep.subr.bf16.mxu0 %v15026_v29  ;;  %3351 = vmatprep.subr.bf16.mxu1 %v15027_v14  ;;  %v15037_v29 = vld [vmem:[#allocation124_spill] sm:$0xff]  ;;  %v15038_v14 = vld [vmem:[#allocation125_spill] sm:$0xff] }
 0xb97   :  { %3311 = vmatpush1.bf16.msra.mxu0 %v15028_v35  ;;  %3352 = vmatpush1.bf16.msra.mxu1 %v15029_v43  ;;  %v15039_v35 = vld [vmem:[#allocation127_spill] sm:$0xff]  ;;  %v15040_v43 = vld [vmem:[#allocation126_spill] sm:$0xff] }
 0xb98   :  { %3312 = vmatprep.subr.bf16.mxu0 %v15030_v51  ;;  %3353 = vmatprep.subr.bf16.mxu1 %v15031_v26  ;;  %v15041_v51 = vld [vmem:[#allocation128_spill] sm:$0xff]  ;;  %v15042_v26 = vld [vmem:[#allocation129_spill] sm:$0xff] }
 0xb9b   :  { %3313 = vmatpush1.bf16.msra.mxu0 %v15032_v60  ;;  %3354 = vmatpush1.bf16.msra.mxu1 %v15033_v24  ;;  %v15043_v60 = vld [vmem:[#allocation130_spill] sm:$0xff]  ;;  %v15044_v24 = vld [vmem:[#allocation131_spill] sm:$0xff] }
 0xb9c   :  { %3314 = vmatprep.subr.bf16.mxu0 %v15034_v6  ;;  %3355 = vmatprep.subr.bf16.mxu1 %v15035_v46  ;;  %v15045_v6 = vld [vmem:[#allocation132_spill] sm:$0xff]  ;;  %v15046_v46 = vld [vmem:[#allocation133_spill] sm:$0xff] }
 0xb9f   :  { %3315 = vmatpush1.bf16.msra.mxu0 %v15036_v63  ;;  %3356 = vmatpush1.bf16.msra.mxu1 %v15037_v29  ;;  %v15047_v63 = vld [vmem:[#allocation134_spill] sm:$0xff]  ;;  %v15048_v29 = vld [vmem:[#allocation135_spill] sm:$0xff] }
 0xba0   :  { %3316 = vmatprep.subr.bf16.mxu0 %v15038_v14  ;;  %3357 = vmatprep.subr.bf16.mxu1 %v15039_v35  ;;  %v15049_v14 = vld [vmem:[#allocation136_spill] sm:$0xff]  ;;  %v15050_v35 = vld [vmem:[#allocation137_spill] sm:$0xff] }
 0xba3   :  { %3317 = vmatpush1.bf16.msra.mxu0 %v15040_v43  ;;  %3358 = vmatpush1.bf16.msra.mxu1 %v15041_v51  ;;  %v15051_v43 = vld [vmem:[#allocation138_spill] sm:$0xff] }
 0xba4   :  { %3318 = vmatprep.subr.bf16.mxu0 %v15042_v26  ;;  %3359 = vmatprep.subr.bf16.mxu1 %v15043_v60 }
 0xba7   :  { %3319 = vmatpush1.bf16.msra.mxu0 %v15044_v24  ;;  %3360 = vmatpush1.bf16.msra.mxu1 %v15045_v6 }
 0xba8   :  { %3320 = vmatprep.subr.bf16.mxu0 %v15046_v46  ;;  %3361 = vmatprep.subr.bf16.mxu1 %v15047_v63 }
 0xbab   :  { %3321 = vmatpush1.bf16.msra.mxu0 %v15048_v29  ;;  %3362 = vmatpush1.bf16.msra.mxu1 %v15049_v14 }
 0xbac   :  { %3372 = vmatprep.subr.bf16.mxu0 %v15050_v35  ;;  %3413 = vmatprep.subr.bf16.mxu1 %v15051_v43 }
 0xc01   :  { %v3049_v51 = vpop.f32.mrb[40].mxu0  ;;  %v3090_v26 = vpop.f32.mrb[48].mxu1 }
 0xc02   :  { %v3183_v48 = vrot.slane %v3049_v51, 3  ;;  %v3051_v60 = vpop.f32.mrb[41].mxu0  ;;  %v3092_v1 = vpop.f32.mrb[49].mxu1  ;;  %v3185_v35 = vrot.slane %v3090_v26, 3  ;;  %v15053_v51 = vld [vmem:[#allocation144_spill] sm:$0xff] }
 0xc03   :  { %v3184_v24 = vrot.slane %v3051_v60, 3  ;;  %v3053_v5 = vpop.f32.mrb[42].mxu0  ;;  %v3094_v6 = vpop.f32.mrb[50].mxu1  ;;  %v3186_v43 = vrot.slane %v3092_v1, 3 }
 0xc04   :  { %v3191_v46 = vadd.f32 %v3183_v48, %v14677_v37  ;;  %v3054_v56 = vpop.f32.mrb[43].mxu0  ;;  %v3095_v63 = vpop.f32.mrb[51].mxu1  ;;  %v3193_v44 = vadd.f32 %v3185_v35, %v15052_v57 }
 0xc05   :  { %v3192_v29 = vadd.f32 %v3184_v24, %v11217_v0  ;;  %v3194_v25 = vadd.f32 %v3186_v43, %v15053_v51 }
 0xc06   :  { %v8738_v12 = vmul.f32 -1.442695, %v3191_v46  ;;  %v8740_v15 = vmul.f32 -1.442695, %v3193_v44 }
 0xc07   :  { %v8739_v14 = vmul.f32 -1.442695, %v3192_v29 }
 0xc08   :  { %9764 = vpow2.f32 %v8738_v12  ;;  %v3245_v12 = vrot.slane %v11966_v47, 7 }
 0xc09   :  { %9766 = vpow2.f32 %v8739_v14 }
 0xc0a   :  { %9768 = vtanh.f32 %v3194_v25 }
 0xc0b   :  { %9770 = vpow2.f32 %v8740_v15 }
 0xc12   :  { %v9765_v60 = vpop.eup %9764 }
 0xc13   :  { %v3234_v5 = vadd.f32 1.0, %v9765_v60  ;;  %v9767_v6 = vpop.eup %9766 }
 0xc14   :  { %v3235_v56 = vadd.f32 1.0, %v9767_v6  ;;  %v9769_v24 = vpop.eup %9768 }
 0xc15   :  { %9772 = vrcp.f32 %v3234_v5  ;;  %v9771_v46 = vpop.eup %9770 }
 0xc16   :  { %9774 = vrcp.f32 %v3235_v56  ;;  %v3236_v14 = vadd.f32 1.0, %v9771_v46 }
 0xc18   :  { %9776 = vrcp.f32 %v3236_v14 }
 0xc1f   :  { %v9773_v63 = vpop.eup %9772 }
 0xc20   :  { %v3248_v29 = vmul.f32 %v9773_v63, %v9769_v24  ;;  %v9775_v1 = vpop.eup %9774 }
 0xc21   :  { %v3247_v35 = vmul.f32 %v9775_v1, %v3245_v12 }
 0xc22   :  { %v9777_v25 = vpop.eup %9776 }
 0xc23   :  { %v12123_v48 = vadd.f32 %v3248_v29, %v3247_v35 }
 0xc25   :  { %15054 = vst [vmem:[#allocation146_spill] sm:$0xff] %v12123_v48  ;;  %9778 = vtanh.f32 %v12123_v48 }
 0xc2f   :  { %v9779_v44 = vpop.eup %9778 }
 0xc30   :  { %v3251_v15 = vmul.f32 %v9779_v44, %v9777_v25 }
 0xc41   :  { %v3131_v43 = vpop.f32.mrb[44].mxu0  ;;  %v3172_v26 = vpop.f32.mrb[52].mxu1 }
 0xc42   :  { %v3133_v60 = vpop.f32.mrb[45].mxu0  ;;  %v3174_v5 = vpop.f32.mrb[53].mxu1 }
 0xc43   :  { %v3199_v6 = vcombine.low %v3131_v43, %v3133_v60  ;;  %v3200_v56 = vcombine.low %v3172_v26, %v3174_v5  ;;  %v3135_v51 = vpop.f32.mrb[46].mxu0  ;;  %v3176_v47 = vpop.f32.mrb[54].mxu1 }
 0xc44   :  { %v3136_v24 = vpop.f32.mrb[47].mxu0  ;;  %v3177_v63 = vpop.f32.mrb[55].mxu1 }
 0xc45   :  { %v3207_v46 = vrot.slane %v3199_v6, %v11500_v59  ;;  %v3214_v12 = vrot.slane %v3200_v56, %v11500_v59  ;;  %v3278_v63 = vpack.c.bf16 %v3251_v15, %v3251_v15  ;;  %v15056_v15 = vld [vmem:[#allocation180_spill] sm:$0xff] }
 0xc47   :  { %v3215_v29 = vcombine.low %v3207_v46, %v3214_v12 }
 0xc49   :  { %v3222_v1 = vrot.slane %v3215_v29, %v11500_v59  ;;  %v3281_v29 = vshrl.u32 %v3278_v63, 16  ;;  %v15068_v63 = vld [vmem:[#allocation192_spill] sm:$0xff] }
 0xc4b   :  { %v3224_v14 = vadd.f32 %v11972_v38, %v3222_v1 }
 0xc4d   :  { %v8741_v35 = vmul.f32 -1.442695, %v3224_v14  ;;  %v3259_v48 = vrot.slane %v3224_v14, 3 }
 0xc4f   :  { %9780 = vpow2.f32 %v8741_v35  ;;  %v15057_v35 = vld [vmem:[#allocation181_spill] sm:$0xff] }
 0xc59   :  { %v9781_v25 = vpop.eup %9780 }
 0xc5a   :  { %v3255_v44 = vadd.f32 1.0, %v9781_v25  ;;  %v15058_v25 = vld [vmem:[#allocation182_spill] sm:$0xff] }
 0xc5c   :  { %9782 = vrcp.f32 %v3255_v44  ;;  %v15059_v44 = vld [vmem:[#allocation183_spill] sm:$0xff] }
 0xc5d   :  { %9784 = vtanh.f32 %v3259_v48 }
 0xc66   :  { %v9783_v51 = vpop.eup %9782 }
 0xc67   :  { %v3263_v43 = vrot.slane %v9783_v51, 1  ;;  %v9785_v26 = vpop.eup %9784  ;;  %v3269_v56 = vrot.slane %v9783_v51, 2 }
 0xc68   :  { %v3266_v5 = vmul.f32 %v9785_v26, %v9783_v51  ;;  %v15060_v51 = vld [vmem:[#allocation184_spill] sm:$0xff]  ;;  %v15062_v26 = vld [vmem:[#allocation186_spill] sm:$0xff] }
 0xc69   :  { %v3265_v60 = vmul.f32 %v3263_v43, %v11976_v61  ;;  %v12139_v61 = vrot.slane %v3281_v29, 2  ;;  %v15061_v43 = vld [vmem:[#allocation185_spill] sm:$0xff]  ;;  %v15071_v29 = vld [vmem:[#allocation195_spill] sm:$0xff] }
 0xc6b   :  { %v12131_v6 = vadd.f32 %v3266_v5, %v3265_v60  ;;  %v15063_v60 = vld [vmem:[#allocation187_spill] sm:$0xff]  ;;  %v15064_v5 = vld [vmem:[#allocation188_spill] sm:$0xff] }
 0xc6d   :  { %9786 = vtanh.f32 %v12131_v6 }
 0xc77   :  { %v9787_v47 = vpop.eup %9786 }
 0xc78   :  { %v3271_v24 = vmul.f32 %v9787_v47, %v3269_v56  ;;  %v15065_v56 = vld [vmem:[#allocation189_spill] sm:$0xff]  ;;  %v15066_v47 = vld [vmem:[#allocation190_spill] sm:$0xff] }
 0xc7a   :  { %v3276_v46 = vrot.slane %v3271_v24, %v14682_v39  ;;  %v15067_v24 = vld [vmem:[#allocation191_spill] sm:$0xff] }
 0xc7c   :  { %v3279_v12 = vpack.c.bf16 %v3276_v46, %v3276_v46  ;;  %v12137_v48 = vsel %vm401_vm1, %v11982_v41, %v3276_v46  ;;  %v15055_v41 = vld [vmem:[#allocation179_spill] sm:$0xff]  ;;  %v15069_v46 = vld [vmem:[#allocation193_spill] sm:$0xff] }
 0xc7e   :  { %v3285_v1 = vshrl.u32 %v3279_v12, 16  ;;  %v15070_v12 = vld [vmem:[#allocation194_spill] sm:$0xff] }
 0xc80   :  { %v3287_v14 = vrot.slane %v3285_v1, 2  ;;  %v15072_v1 = vld [vmem:[#allocation196_spill] sm:$0xff] }
 0xc82   :  { %3322 = vmatprep.mubr.bf16.mxu0 %v3287_v14  ;;  %3363 = vmatprep.mubr.bf16.mxu1 %v3287_v14 }
 0xc83   :  { %3323 = vmatmul.mubr.bf16.vlgmr.msra.gmra.mrb[48].mxu0 %v12139_v61  ;;  %3364 = vmatmul.mubr.bf16.vlgmr.msra.gmra.mrb[56].mxu1 %v12139_v61 }
 0xc84   :  { %3373 = vmatpush1.bf16.msra.mxu0 %v11201_v50  ;;  %3414 = vmatpush1.bf16.msra.mxu1 %v14683_v31 }
 0xc85   :  { %3404 = vmatprep.mubr.bf16.mxu0 %v3287_v14  ;;  %3445 = vmatprep.mubr.bf16.mxu1 %v3287_v14  ;;  %v15073_v14 = vld [vmem:[#allocation197_spill] sm:$0xff] }
 0xc86   :  { %3374 = vmatprep.subr.bf16.mxu0 %v14684_v42  ;;  %3415 = vmatprep.subr.bf16.mxu1 %v14685_v22 }
 0xc88   :  { %3375 = vmatpush1.bf16.msra.mxu0 %v14686_v23  ;;  %3416 = vmatpush1.bf16.msra.mxu1 %v14773_v21 }
 0xc89   :  { %3376 = vmatprep.subr.bf16.mxu0 %v14774_v53  ;;  %3417 = vmatprep.subr.bf16.mxu1 %v14775_v62 }
 0xc8c   :  { %3377 = vmatpush1.bf16.msra.mxu0 %v14776_v19  ;;  %3418 = vmatpush1.bf16.msra.mxu1 %v14777_v7 }
 0xc8d   :  { %3378 = vmatprep.subr.bf16.mxu0 %v14778_v54  ;;  %3419 = vmatprep.subr.bf16.mxu1 %v14779_v55 }
 0xc90   :  { %3379 = vmatpush1.bf16.msra.mxu0 %v14868_v2  ;;  %3420 = vmatpush1.bf16.msra.mxu1 %v14869_v16 }
 0xc91   :  { %3380 = vmatprep.subr.bf16.mxu0 %v14870_v33  ;;  %3421 = vmatprep.subr.bf16.mxu1 %v14871_v20 }
 0xc94   :  { %3381 = vmatpush1.bf16.msra.mxu0 %v14872_v13  ;;  %3422 = vmatpush1.bf16.msra.mxu1 %v14873_v32 }
 0xc95   :  { %3382 = vmatprep.subr.bf16.mxu0 %v14874_v30  ;;  %3423 = vmatprep.subr.bf16.mxu1 %v14875_v4 }
 0xc98   :  { %3383 = vmatpush1.bf16.msra.mxu0 %v14876_v36  ;;  %3424 = vmatpush1.bf16.msra.mxu1 %v14877_v28 }
 0xc99   :  { %3384 = vmatprep.subr.bf16.mxu0 %v14878_v8  ;;  %3425 = vmatprep.subr.bf16.mxu1 %v14879_v49 }
 0xc9c   :  { %3385 = vmatpush1.bf16.msra.mxu0 %v14880_v34  ;;  %3426 = vmatpush1.bf16.msra.mxu1 %v14881_v45 }
 0xc9d   :  { %3386 = vmatprep.subr.bf16.mxu0 %v14794_v58  ;;  %3427 = vmatprep.subr.bf16.mxu1 %v14795_v18 }
 0xca0   :  { %3387 = vmatpush1.bf16.msra.mxu0 %v14796_v10  ;;  %3428 = vmatpush1.bf16.msra.mxu1 %v14882_v3 }
 0xca1   :  { %3388 = vmatprep.subr.bf16.mxu0 %v14883_v40  ;;  %3429 = vmatprep.subr.bf16.mxu1 %v14799_v17 }
 0xca4   :  { %3389 = vmatpush1.bf16.msra.mxu0 %v14800_v27  ;;  %3430 = vmatpush1.bf16.msra.mxu1 %v14801_v11 }
 0xca5   :  { %3390 = vmatprep.subr.bf16.mxu0 %v14802_v52  ;;  %3431 = vmatprep.subr.bf16.mxu1 %v14803_v9 }
 0xca8   :  { %3391 = vmatpush1.bf16.msra.mxu0 %v15055_v41  ;;  %3432 = vmatpush1.bf16.msra.mxu1 %v15056_v15 }
 0xca9   :  { %3392 = vmatprep.subr.bf16.mxu0 %v15057_v35  ;;  %3433 = vmatprep.subr.bf16.mxu1 %v15058_v25 }
 0xcac   :  { %3393 = vmatpush1.bf16.msra.mxu0 %v15059_v44  ;;  %3434 = vmatpush1.bf16.msra.mxu1 %v15060_v51 }
 0xcad   :  { %3394 = vmatprep.subr.bf16.mxu0 %v15061_v43  ;;  %3435 = vmatprep.subr.bf16.mxu1 %v15062_v26 }
 0xcb0   :  { %3395 = vmatpush1.bf16.msra.mxu0 %v15063_v60  ;;  %3436 = vmatpush1.bf16.msra.mxu1 %v15064_v5  ;;  %v15074_v60 = vld [vmem:[#allocation198_spill] sm:$0xff]  ;;  %v15075_v5 = vld [vmem:[#allocation199_spill] sm:$0xff] }
 0xcb1   :  { %3396 = vmatprep.subr.bf16.mxu0 %v15065_v56  ;;  %3437 = vmatprep.subr.bf16.mxu1 %v15066_v47  ;;  %v15076_v56 = vld [vmem:[#allocation200_spill] sm:$0xff]  ;;  %v15077_v47 = vld [vmem:[#allocation201_spill] sm:$0xff] }
 0xcb4   :  { %3397 = vmatpush1.bf16.msra.mxu0 %v15067_v24  ;;  %3438 = vmatpush1.bf16.msra.mxu1 %v15068_v63  ;;  %v15078_v24 = vld [vmem:[#allocation202_spill] sm:$0xff]  ;;  %v15079_v63 = vld [vmem:[#allocation203_spill] sm:$0xff] }
 0xcb5   :  { %3398 = vmatprep.subr.bf16.mxu0 %v15069_v46  ;;  %3439 = vmatprep.subr.bf16.mxu1 %v15070_v12  ;;  %v15080_v46 = vld [vmem:[#allocation204_spill] sm:$0xff]  ;;  %v15081_v12 = vld [vmem:[#allocation73_spill] sm:$0xff] }
 0xcb8   :  { %3399 = vmatpush1.bf16.msra.mxu0 %v15071_v29  ;;  %3440 = vmatpush1.bf16.msra.mxu1 %v15072_v1  ;;  %v15082_v29 = vld [vmem:[#allocation75_spill] sm:$0xff] }
 0xcb9   :  { %3400 = vmatprep.subr.bf16.mxu0 %v15073_v14  ;;  %3441 = vmatprep.subr.bf16.mxu1 %v15074_v60  ;;  %v15083_v60 = vld [vmem:[#allocation74_spill] sm:$0xff]  ;;  %v15092_v14 = vld [vmem:[#allocation84_spill] sm:$0xff] }
 0xcbc   :  { %3401 = vmatpush1.bf16.msra.mxu0 %v15075_v5  ;;  %3442 = vmatpush1.bf16.msra.mxu1 %v15076_v56  ;;  %v15084_v5 = vld [vmem:[#allocation76_spill] sm:$0xff]  ;;  %v15085_v56 = vld [vmem:[#allocation77_spill] sm:$0xff] }
 0xcbd   :  { %3402 = vmatprep.subr.bf16.mxu0 %v15077_v47  ;;  %3443 = vmatprep.subr.bf16.mxu1 %v15078_v24  ;;  %v15086_v47 = vld [vmem:[#allocation78_spill] sm:$0xff]  ;;  %v15087_v24 = vld [vmem:[#allocation79_spill] sm:$0xff] }
 0xcc0   :  { %3403 = vmatpush1.bf16.msra.mxu0 %v15079_v63  ;;  %3444 = vmatpush1.bf16.msra.mxu1 %v15080_v46  ;;  %v15088_v63 = vld [vmem:[#allocation80_spill] sm:$0xff]  ;;  %v15089_v46 = vld [vmem:[#allocation81_spill] sm:$0xff] }
 0xcc1   :  { %3561 = vmatprep.subr.bf16.mxu0 %v15081_v12  ;;  %3602 = vmatprep.subr.bf16.mxu1 %v15082_v29  ;;  %v15090_v12 = vld [vmem:[#allocation82_spill] sm:$0xff]  ;;  %v15091_v29 = vld [vmem:[#allocation83_spill] sm:$0xff] }
 0xcc3   :  { %3405 = vmatmul.mubr.bf16.vlgmr.msra.gmra.mrb[52].mxu0 %v12139_v61  ;;  %3446 = vmatmul.mubr.bf16.vlgmr.msra.gmra.mrb[60].mxu1 %v12139_v61  ;;  %v15093_v61 = vld [vmem:[#allocation85_spill] sm:$0xff] }
 0xcc4   :  { %3562 = vmatpush1.bf16.msra.mxu0 %v15083_v60  ;;  %3603 = vmatpush1.bf16.msra.mxu1 %v15084_v5  ;;  %v15094_v60 = vld [vmem:[#allocation86_spill] sm:$0xff]  ;;  %v15095_v5 = vld [vmem:[#allocation87_spill] sm:$0xff] }
 0xcc5   :  { %3563 = vmatprep.subr.bf16.mxu0 %v15085_v56  ;;  %3604 = vmatprep.subr.bf16.mxu1 %v15086_v47  ;;  %v15096_v56 = vld [vmem:[#allocation88_spill] sm:$0xff]  ;;  %v15097_v47 = vld [vmem:[#allocation89_spill] sm:$0xff] }
 0xcc8   :  { %3564 = vmatpush1.bf16.msra.mxu0 %v15087_v24  ;;  %3605 = vmatpush1.bf16.msra.mxu1 %v15088_v63  ;;  %v15098_v24 = vld [vmem:[#allocation90_spill] sm:$0xff]  ;;  %v15099_v63 = vld [vmem:[#allocation91_spill] sm:$0xff] }
 0xcc9   :  { %3565 = vmatprep.subr.bf16.mxu0 %v15089_v46  ;;  %3606 = vmatprep.subr.bf16.mxu1 %v15090_v12  ;;  %v15100_v46 = vld [vmem:[#allocation92_spill] sm:$0xff]  ;;  %v15101_v12 = vld [vmem:[#allocation93_spill] sm:$0xff] }
 0xccc   :  { %3566 = vmatpush1.bf16.msra.mxu0 %v15091_v29  ;;  %3607 = vmatpush1.bf16.msra.mxu1 %v15092_v14  ;;  %v15102_v29 = vld [vmem:[#allocation94_spill] sm:$0xff]  ;;  %v15103_v14 = vld [vmem:[#allocation95_spill] sm:$0xff] }
 0xccd   :  { %3567 = vmatprep.subr.bf16.mxu0 %v15093_v61  ;;  %3608 = vmatprep.subr.bf16.mxu1 %v15094_v60  ;;  %v15104_v61 = vld [vmem:[#allocation96_spill] sm:$0xff]  ;;  %v15105_v60 = vld [vmem:[#allocation97_spill] sm:$0xff] }
 0xcd0   :  { %3568 = vmatpush1.bf16.msra.mxu0 %v15095_v5  ;;  %3609 = vmatpush1.bf16.msra.mxu1 %v15096_v56  ;;  %v15106_v5 = vld [vmem:[#allocation98_spill] sm:$0xff]  ;;  %v15107_v56 = vld [vmem:[#allocation99_spill] sm:$0xff] }
 0xcd1   :  { %3569 = vmatprep.subr.bf16.mxu0 %v15097_v47  ;;  %3610 = vmatprep.subr.bf16.mxu1 %v15098_v24  ;;  %v15108_v47 = vld [vmem:[#allocation100_spill] sm:$0xff]  ;;  %v15109_v24 = vld [vmem:[#allocation101_spill] sm:$0xff] }
 0xcd4   :  { %3570 = vmatpush1.bf16.msra.mxu0 %v15099_v63  ;;  %3611 = vmatpush1.bf16.msra.mxu1 %v15100_v46  ;;  %v15110_v63 = vld [vmem:[#allocation102_spill] sm:$0xff]  ;;  %v15111_v46 = vld [vmem:[#allocation103_spill] sm:$0xff] }
 0xcd5   :  { %3571 = vmatprep.subr.bf16.mxu0 %v15101_v12  ;;  %3612 = vmatprep.subr.bf16.mxu1 %v15102_v29  ;;  %v15112_v12 = vld [vmem:[#allocation104_spill] sm:$0xff]  ;;  %v15113_v29 = vld [vmem:[#allocation105_spill] sm:$0xff] }
 0xcd8   :  { %3572 = vmatpush1.bf16.msra.mxu0 %v15103_v14  ;;  %3613 = vmatpush1.bf16.msra.mxu1 %v15104_v61  ;;  %v15114_v14 = vld [vmem:[#allocation106_spill] sm:$0xff]  ;;  %v15115_v61 = vld [vmem:[#allocation107_spill] sm:$0xff] }
 0xcd9   :  { %3573 = vmatprep.subr.bf16.mxu0 %v15105_v60  ;;  %3614 = vmatprep.subr.bf16.mxu1 %v15106_v5  ;;  %v15116_v60 = vld [vmem:[#allocation108_spill] sm:$0xff]  ;;  %v15117_v5 = vld [vmem:[#allocation109_spill] sm:$0xff] }
 0xcdc   :  { %3574 = vmatpush1.bf16.msra.mxu0 %v15107_v56  ;;  %3615 = vmatpush1.bf16.msra.mxu1 %v15108_v47  ;;  %v15118_v56 = vld [vmem:[#allocation110_spill] sm:$0xff]  ;;  %v15119_v47 = vld [vmem:[#allocation111_spill] sm:$0xff] }
 0xcdd   :  { %3575 = vmatprep.subr.bf16.mxu0 %v15109_v24  ;;  %3616 = vmatprep.subr.bf16.mxu1 %v15110_v63  ;;  %v15120_v24 = vld [vmem:[#allocation112_spill] sm:$0xff]  ;;  %v15121_v63 = vld [vmem:[#allocation113_spill] sm:$0xff] }
 0xce0   :  { %3576 = vmatpush1.bf16.msra.mxu0 %v15111_v46  ;;  %3617 = vmatpush1.bf16.msra.mxu1 %v15112_v12  ;;  %v15122_v46 = vld [vmem:[#allocation114_spill] sm:$0xff]  ;;  %v15123_v12 = vld [vmem:[#allocation115_spill] sm:$0xff] }
 0xce1   :  { %3577 = vmatprep.subr.bf16.mxu0 %v15113_v29  ;;  %3618 = vmatprep.subr.bf16.mxu1 %v15114_v14  ;;  %v15124_v29 = vld [vmem:[#allocation116_spill] sm:$0xff]  ;;  %v15125_v14 = vld [vmem:[#allocation117_spill] sm:$0xff] }
 0xce4   :  { %3578 = vmatpush1.bf16.msra.mxu0 %v15115_v61  ;;  %3619 = vmatpush1.bf16.msra.mxu1 %v15116_v60  ;;  %v15126_v61 = vld [vmem:[#allocation118_spill] sm:$0xff]  ;;  %v15127_v60 = vld [vmem:[#allocation119_spill] sm:$0xff] }
 0xce5   :  { %3579 = vmatprep.subr.bf16.mxu0 %v15117_v5  ;;  %3620 = vmatprep.subr.bf16.mxu1 %v15118_v56  ;;  %v15128_v5 = vld [vmem:[#allocation120_spill] sm:$0xff]  ;;  %v15129_v56 = vld [vmem:[#allocation121_spill] sm:$0xff] }
 0xce8   :  { %3580 = vmatpush1.bf16.msra.mxu0 %v15119_v47  ;;  %3621 = vmatpush1.bf16.msra.mxu1 %v15120_v24  ;;  %v15130_v47 = vld [vmem:[#allocation122_spill] sm:$0xff]  ;;  %v15131_v24 = vld [vmem:[#allocation123_spill] sm:$0xff] }
 0xce9   :  { %3581 = vmatprep.subr.bf16.mxu0 %v15121_v63  ;;  %3622 = vmatprep.subr.bf16.mxu1 %v15122_v46  ;;  %v15132_v63 = vld [vmem:[#allocation124_spill] sm:$0xff]  ;;  %v15133_v46 = vld [vmem:[#allocation125_spill] sm:$0xff] }
 0xcec   :  { %3582 = vmatpush1.bf16.msra.mxu0 %v15123_v12  ;;  %3623 = vmatpush1.bf16.msra.mxu1 %v15124_v29  ;;  %v15134_v12 = vld [vmem:[#allocation127_spill] sm:$0xff]  ;;  %v15135_v29 = vld [vmem:[#allocation126_spill] sm:$0xff] }
 0xced   :  { %3583 = vmatprep.subr.bf16.mxu0 %v15125_v14  ;;  %3624 = vmatprep.subr.bf16.mxu1 %v15126_v61  ;;  %v15136_v14 = vld [vmem:[#allocation128_spill] sm:$0xff]  ;;  %v15137_v61 = vld [vmem:[#allocation129_spill] sm:$0xff] }
 0xcf0   :  { %3584 = vmatpush1.bf16.msra.mxu0 %v15127_v60  ;;  %3625 = vmatpush1.bf16.msra.mxu1 %v15128_v5  ;;  %v15138_v60 = vld [vmem:[#allocation130_spill] sm:$0xff]  ;;  %v15139_v5 = vld [vmem:[#allocation131_spill] sm:$0xff] }
 0xcf1   :  { %3585 = vmatprep.subr.bf16.mxu0 %v15129_v56  ;;  %3626 = vmatprep.subr.bf16.mxu1 %v15130_v47  ;;  %v15140_v56 = vld [vmem:[#allocation132_spill] sm:$0xff]  ;;  %v15141_v47 = vld [vmem:[#allocation133_spill] sm:$0xff] }
 0xcf4   :  { %3586 = vmatpush1.bf16.msra.mxu0 %v15131_v24  ;;  %3627 = vmatpush1.bf16.msra.mxu1 %v15132_v63  ;;  %v15142_v24 = vld [vmem:[#allocation134_spill] sm:$0xff]  ;;  %v15143_v63 = vld [vmem:[#allocation135_spill] sm:$0xff] }
 0xcf5   :  { %3587 = vmatprep.subr.bf16.mxu0 %v15133_v46  ;;  %3628 = vmatprep.subr.bf16.mxu1 %v15134_v12  ;;  %v15144_v46 = vld [vmem:[#allocation136_spill] sm:$0xff]  ;;  %v15145_v12 = vld [vmem:[#allocation137_spill] sm:$0xff] }
 0xcf8   :  { %3588 = vmatpush1.bf16.msra.mxu0 %v15135_v29  ;;  %3629 = vmatpush1.bf16.msra.mxu1 %v15136_v14  ;;  %v15146_v29 = vld [vmem:[#allocation138_spill] sm:$0xff] }
 0xcf9   :  { %3589 = vmatprep.subr.bf16.mxu0 %v15137_v61  ;;  %3630 = vmatprep.subr.bf16.mxu1 %v15138_v60 }
 0xcfc   :  { %3590 = vmatpush1.bf16.msra.mxu0 %v15139_v5  ;;  %3631 = vmatpush1.bf16.msra.mxu1 %v15140_v56 }
 0xcfd   :  { %3591 = vmatprep.subr.bf16.mxu0 %v15141_v47  ;;  %3632 = vmatprep.subr.bf16.mxu1 %v15142_v24 }
 0xd00   :  { %3592 = vmatpush1.bf16.msra.mxu0 %v15143_v63  ;;  %3633 = vmatpush1.bf16.msra.mxu1 %v15144_v46 }
 0xd01   :  { %3643 = vmatprep.subr.bf16.mxu0 %v15145_v12  ;;  %3684 = vmatprep.subr.bf16.mxu1 %v15146_v29 }
 0xd56   :  { %v3324_v14 = vpop.f32.mrb[48].mxu0  ;;  %v3365_v61 = vpop.f32.mrb[56].mxu1 }
 0xd57   :  { %v3458_v1 = vrot.slane %v3324_v14, 2  ;;  %v3326_v60 = vpop.f32.mrb[49].mxu0  ;;  %v3367_v26 = vpop.f32.mrb[57].mxu1  ;;  %v3460_v12 = vrot.slane %v3365_v61, 2  ;;  %v15147_v14 = vld [vmem:[#allocation144_spill] sm:$0xff] }
 0xd58   :  { %v3459_v5 = vrot.slane %v3326_v60, 2  ;;  %v3328_v43 = vpop.f32.mrb[50].mxu0  ;;  %v3369_v56 = vpop.f32.mrb[58].mxu1  ;;  %v3461_v29 = vrot.slane %v3367_v26, 2 }
 0xd59   :  { %v3466_v47 = vadd.f32 %v3458_v1, %v14677_v37  ;;  %v3329_v51 = vpop.f32.mrb[51].mxu0  ;;  %v3370_v24 = vpop.f32.mrb[59].mxu1  ;;  %v3468_v25 = vadd.f32 %v3460_v12, %v15052_v57 }
 0xd5a   :  { %v3467_v63 = vadd.f32 %v3459_v5, %v11217_v0  ;;  %v3469_v35 = vadd.f32 %v3461_v29, %v15147_v14 }
 0xd5b   :  { %v8742_v44 = vmul.f32 -1.442695, %v3466_v47  ;;  %v8744_v15 = vmul.f32 -1.442695, %v3468_v25 }
 0xd5c   :  { %v8743_v46 = vmul.f32 -1.442695, %v3467_v63 }
 0xd5d   :  { %9788 = vpow2.f32 %v8742_v44  ;;  %v15148_v44 = vld [vmem:[#allocation146_spill] sm:$0xff] }
 0xd5e   :  { %9790 = vpow2.f32 %v8743_v46  ;;  %v3520_v61 = vrot.slane %v15148_v44, 7 }
 0xd5f   :  { %9792 = vtanh.f32 %v3469_v35 }
 0xd60   :  { %9794 = vpow2.f32 %v8744_v15 }
 0xd67   :  { %v9789_v60 = vpop.eup %9788 }
 0xd68   :  { %v3509_v43 = vadd.f32 1.0, %v9789_v60  ;;  %v9791_v56 = vpop.eup %9790 }
 0xd69   :  { %v3510_v51 = vadd.f32 1.0, %v9791_v56  ;;  %v9793_v1 = vpop.eup %9792 }
 0xd6a   :  { %9796 = vrcp.f32 %v3509_v43  ;;  %v9795_v5 = vpop.eup %9794 }
 0xd6b   :  { %9798 = vrcp.f32 %v3510_v51  ;;  %v3511_v63 = vadd.f32 1.0, %v9795_v5 }
 0xd6d   :  { %9800 = vrcp.f32 %v3511_v63 }
 0xd74   :  { %v9797_v47 = vpop.eup %9796 }
 0xd75   :  { %v3523_v24 = vmul.f32 %v9797_v47, %v9793_v1  ;;  %v9799_v26 = vpop.eup %9798 }
 0xd76   :  { %v3522_v46 = vmul.f32 %v9799_v26, %v3520_v61 }
 0xd77   :  { %v9801_v35 = vpop.eup %9800 }
 0xd78   :  { %v12278_v12 = vadd.f32 %v3523_v24, %v3522_v46 }
 0xd7a   :  { %15149 = vst [vmem:[#allocation147_spill] sm:$0xff] %v12278_v12  ;;  %9802 = vtanh.f32 %v12278_v12 }
 0xd84   :  { %v9803_v25 = vpop.eup %9802 }
 0xd85   :  { %v3526_v15 = vmul.f32 %v9803_v25, %v9801_v35 }
 0xd96   :  { %v3406_v29 = vpop.f32.mrb[52].mxu0  ;;  %v3447_v60 = vpop.f32.mrb[60].mxu1 }
 0xd97   :  { %v3408_v43 = vpop.f32.mrb[53].mxu0  ;;  %v3449_v56 = vpop.f32.mrb[61].mxu1 }
 0xd98   :  { %v3474_v51 = vcombine.low %v3406_v29, %v3408_v43  ;;  %v3475_v14 = vcombine.low %v3447_v60, %v3449_v56  ;;  %v3410_v57 = vpop.f32.mrb[54].mxu0  ;;  %v3451_v44 = vpop.f32.mrb[62].mxu1 }
 0xd99   :  { %v3411_v1 = vpop.f32.mrb[55].mxu0  ;;  %v3452_v47 = vpop.f32.mrb[63].mxu1 }
 0xd9a   :  { %v3482_v5 = vrot.slane %v3474_v51, %v11500_v59  ;;  %v3489_v61 = vrot.slane %v3475_v14, %v11500_v59  ;;  %v3553_v47 = vpack.c.bf16 %v3526_v15, %v3526_v15  ;;  %v9384_v15 = vld [vmem:[#allocation17 + $0x60] ss:$16 sps:$4 sm:$0xff]  }
 0xd9c   :  { %v3490_v24 = vcombine.low %v3482_v5, %v3489_v61 }
 0xd9e   :  { %v3497_v26 = vrot.slane %v3490_v24, %v11500_v59  ;;  %v12294_v24 = vrot.slane %v3553_v47, 3  ;;  %v9413_v47 = vld [vmem:[#allocation17 + $0xec] ss:$16 sps:$4 sm:$0xff]  }
 0xda0   :  { %v3499_v63 = vadd.f32 %v11972_v38, %v3497_v26  ;;  %v9387_v26 = vld [vmem:[#allocation17 + $0x68] ss:$16 sps:$4 sm:$0xff]  }
 0xda2   :  { %v8745_v46 = vmul.f32 -1.442695, %v3499_v63  ;;  %v3534_v12 = vrot.slane %v3499_v63, 3  ;;  %v9392_v63 = vld [vmem:[#allocation17 + $0x84] ss:$16 sps:$4 sm:$0xff]  }
 0xda4   :  { %9804 = vpow2.f32 %v8745_v46  ;;  %v9395_v46 = vld [vmem:[#allocation17 + $0x8c] ss:$16 sps:$4 sm:$0xff]  }
 0xdae   :  { %v9805_v35 = vpop.eup %9804 }
 0xdaf   :  { %v3530_v25 = vadd.f32 1.0, %v9805_v35  ;;  %v9390_v35 = vld [vmem:[#allocation17 + $0x80] ss:$16 sps:$4 sm:$0xff]  }
 0xdb1   :  { %9806 = vrcp.f32 %v3530_v25  ;;  %v9393_v25 = vld [vmem:[#allocation17 + $0x88] ss:$16 sps:$4 sm:$0xff]  }
 0xdb2   :  { %9808 = vtanh.f32 %v3534_v12 }
 0xdbb   :  { %v9807_v57 = vpop.eup %9806 }
 0xdbc   :  { %v3538_v29 = vrot.slane %v9807_v57, 1  ;;  %v9809_v60 = vpop.eup %9808  ;;  %v3544_v14 = vrot.slane %v9807_v57, 2 }
 0xdbd   :  { %v3541_v56 = vmul.f32 %v9809_v60, %v9807_v57  ;;  %v9398_v57 = vld [vmem:[#allocation17 + $0xa4] ss:$16 sps:$4 sm:$0xff]   ;;  %v9396_v60 = vld [vmem:[#allocation17 + $0xa0] ss:$16 sps:$4 sm:$0xff]  }
 0xdbe   :  { %v3540_v43 = vmul.f32 %v3538_v29, %v12131_v6  ;;  %v9381_v6 = vld [vmem:[#allocation17 + $0x48] ss:$16 sps:$4 sm:$0xff]   ;;  %v9401_v29 = vld [vmem:[#allocation17 + $0xac] ss:$16 sps:$4 sm:$0xff]  }
 0xdc0   :  { %v12286_v51 = vadd.f32 %v3541_v56, %v3540_v43  ;;  %v9399_v43 = vld [vmem:[#allocation17 + $0xa8] ss:$16 sps:$4 sm:$0xff]   ;;  %v9404_v56 = vld [vmem:[#allocation17 + $0xc4] ss:$16 sps:$4 sm:$0xff]  }
 0xdc2   :  { %9810 = vtanh.f32 %v12286_v51 }
 0xdcc   :  { %v9811_v44 = vpop.eup %9810 }
 0xdcd   :  { %v3546_v38 = vmul.f32 %v9811_v44, %v3544_v14  ;;  %v9407_v14 = vld [vmem:[#allocation17 + $0xcc] ss:$16 sps:$4 sm:$0xff]   ;;  %v9402_v44 = vld [vmem:[#allocation17 + $0xc0] ss:$16 sps:$4 sm:$0xff]  }
 0xdcf   :  { %v3551_v1 = vrot.slane %v3546_v38, %v14682_v39  ;;  %v9405_v38 = vld [vmem:[#allocation17 + $0xc8] ss:$16 sps:$4 sm:$0xff]  }
 0xdd1   :  { %v3554_v5 = vpack.c.bf16 %v3551_v1, %v3551_v1  ;;  %v12292_v12 = vsel %vm4301_vm8, %v12137_v48, %v3551_v1  ;;  %v9386_v48 = vld [vmem:[#allocation17 + $0x64] ss:$16 sps:$4 sm:$0xff]  }
 0xdd2   :  { %v9410_v1 = vld [vmem:[#allocation17 + $0xe4] ss:$16 sps:$4 sm:$0xff]  }
 0xdd3   :  { %v3558_v61 = vrot.slane %v3554_v5, 3  ;;  %v9408_v5 = vld [vmem:[#allocation17 + $0xe0] ss:$16 sps:$4 sm:$0xff]  }
 0xdd5   :  { %3593 = vmatprep.mubr.bf16.mxu0 %v3558_v61  ;;  %3634 = vmatprep.mubr.bf16.mxu1 %v3558_v61 }
 0xdd6   :  { %3594 = vmatmul.mubr.bf16.vlgmr.msra.gmra.mrb[56].mxu0 %v12294_v24  ;;  %3635 = vmatmul.mubr.bf16.vlgmr.msra.gmra.mrb[64].mxu1 %v12294_v24 }
 0xdd7   :  { %3644 = vmatpush1.bf16.msra.mxu0 %v11201_v50  ;;  %3685 = vmatpush1.bf16.msra.mxu1 %v14683_v31  ;;  %v15150_v50 = vld [vmem:[#allocation180_spill] sm:$0xff]  ;;  %v15151_v31 = vld [vmem:[#allocation181_spill] sm:$0xff] }
 0xdd8   :  { %3675 = vmatprep.mubr.bf16.mxu0 %v3558_v61  ;;  %3716 = vmatprep.mubr.bf16.mxu1 %v3558_v61  ;;  %v9411_v61 = vld [vmem:[#allocation17 + $0xe8] ss:$16 sps:$4 sm:$0xff]  }
 0xdd9   :  { %3645 = vmatprep.subr.bf16.mxu0 %v14684_v42  ;;  %3686 = vmatprep.subr.bf16.mxu1 %v14685_v22  ;;  %v15152_v42 = vld [vmem:[#allocation182_spill] sm:$0xff]  ;;  %v15153_v22 = vld [vmem:[#allocation183_spill] sm:$0xff] }
 0xddb   :  { %3646 = vmatpush1.bf16.msra.mxu0 %v14686_v23  ;;  %3687 = vmatpush1.bf16.msra.mxu1 %v14773_v21  ;;  %v15154_v23 = vld [vmem:[#allocation184_spill] sm:$0xff]  ;;  %v15155_v21 = vld [vmem:[#allocation185_spill] sm:$0xff] }
 0xddc   :  { %3647 = vmatprep.subr.bf16.mxu0 %v14774_v53  ;;  %3688 = vmatprep.subr.bf16.mxu1 %v14775_v62  ;;  %v15156_v53 = vld [vmem:[#allocation186_spill] sm:$0xff]  ;;  %v15157_v62 = vld [vmem:[#allocation187_spill] sm:$0xff] }
 0xddf   :  { %3648 = vmatpush1.bf16.msra.mxu0 %v14776_v19  ;;  %3689 = vmatpush1.bf16.msra.mxu1 %v14777_v7  ;;  %v15158_v19 = vld [vmem:[#allocation188_spill] sm:$0xff]  ;;  %v15159_v7 = vld [vmem:[#allocation189_spill] sm:$0xff] }
 0xde0   :  { %3649 = vmatprep.subr.bf16.mxu0 %v14778_v54  ;;  %3690 = vmatprep.subr.bf16.mxu1 %v14779_v55  ;;  %v15160_v54 = vld [vmem:[#allocation190_spill] sm:$0xff]  ;;  %v15161_v55 = vld [vmem:[#allocation191_spill] sm:$0xff] }
 0xde3   :  { %3650 = vmatpush1.bf16.msra.mxu0 %v14868_v2  ;;  %3691 = vmatpush1.bf16.msra.mxu1 %v14869_v16  ;;  %v15170_v2 = vld [vmem:[#allocation200_spill] sm:$0xff]  ;;  %v15171_v16 = vld [vmem:[#allocation201_spill] sm:$0xff] }
 0xde4   :  { %3651 = vmatprep.subr.bf16.mxu0 %v14870_v33  ;;  %3692 = vmatprep.subr.bf16.mxu1 %v14871_v20  ;;  %v15172_v33 = vld [vmem:[#allocation202_spill] sm:$0xff]  ;;  %v15173_v20 = vld [vmem:[#allocation203_spill] sm:$0xff] }
 0xde7   :  { %3652 = vmatpush1.bf16.msra.mxu0 %v14872_v13  ;;  %3693 = vmatpush1.bf16.msra.mxu1 %v14873_v32  ;;  %v15174_v13 = vld [vmem:[#allocation204_spill] sm:$0xff]  ;;  %v9368_v32 = vld [vmem:[#allocation17 + $0x4] ss:$16 sps:$4 sm:$0xff]  }
 0xde8   :  { %3653 = vmatprep.subr.bf16.mxu0 %v14874_v30  ;;  %3694 = vmatprep.subr.bf16.mxu1 %v14875_v4  ;;  %v9371_v30 = vld [vmem:[#allocation17 + $0xc] ss:$16 sps:$4 sm:$0xff]   ;;  %v9366_v4 = vld [vmem:[#allocation17] ss:$16 sps:$4 sm:$0xff]  }
 0xdeb   :  { %3654 = vmatpush1.bf16.msra.mxu0 %v14876_v36  ;;  %3695 = vmatpush1.bf16.msra.mxu1 %v14877_v28  ;;  %v9369_v36 = vld [vmem:[#allocation17 + $0x8] ss:$16 sps:$4 sm:$0xff]   ;;  %v9374_v28 = vld [vmem:[#allocation17 + $0x24] ss:$16 sps:$4 sm:$0xff]  }
 0xdec   :  { %3655 = vmatprep.subr.bf16.mxu0 %v14878_v8  ;;  %3696 = vmatprep.subr.bf16.mxu1 %v14879_v49  ;;  %v9377_v8 = vld [vmem:[#allocation17 + $0x2c] ss:$16 sps:$4 sm:$0xff]   ;;  %v9372_v49 = vld [vmem:[#allocation17 + $0x20] ss:$16 sps:$4 sm:$0xff]  }
 0xdef   :  { %3656 = vmatpush1.bf16.msra.mxu0 %v14880_v34  ;;  %3697 = vmatpush1.bf16.msra.mxu1 %v14881_v45  ;;  %v9375_v34 = vld [vmem:[#allocation17 + $0x28] ss:$16 sps:$4 sm:$0xff]   ;;  %v9380_v45 = vld [vmem:[#allocation17 + $0x44] ss:$16 sps:$4 sm:$0xff]  }
 0xdf0   :  { %3657 = vmatprep.subr.bf16.mxu0 %v14794_v58  ;;  %3698 = vmatprep.subr.bf16.mxu1 %v14795_v18  ;;  %v15164_v58 = vld [vmem:[#allocation194_spill] sm:$0xff]  ;;  %v15165_v18 = vld [vmem:[#allocation195_spill] sm:$0xff] }
 0xdf3   :  { %3658 = vmatpush1.bf16.msra.mxu0 %v14796_v10  ;;  %3699 = vmatpush1.bf16.msra.mxu1 %v14882_v3  ;;  %v15166_v10 = vld [vmem:[#allocation196_spill] sm:$0xff] }
 0xdf4   :  { %3659 = vmatprep.subr.bf16.mxu0 %v14883_v40  ;;  %3700 = vmatprep.subr.bf16.mxu1 %v14799_v17  ;;  %v15167_v17 = vld [vmem:[#allocation197_spill] sm:$0xff]  ;;  %v9383_v3 = vld [vmem:[#allocation17 + $0x4c] ss:$16 sps:$4 sm:$0xff]  }
 0xdf5   :  { %v9378_v40 = vld [vmem:[#allocation17 + $0x40] ss:$16 sps:$4 sm:$0xff]  }
 0xdf7   :  { %3660 = vmatpush1.bf16.msra.mxu0 %v14800_v27  ;;  %3701 = vmatpush1.bf16.msra.mxu1 %v14801_v11  ;;  %v15168_v27 = vld [vmem:[#allocation198_spill] sm:$0xff]  ;;  %v15169_v11 = vld [vmem:[#allocation199_spill] sm:$0xff] }
 0xdf8   :  { %3661 = vmatprep.subr.bf16.mxu0 %v14802_v52  ;;  %3702 = vmatprep.subr.bf16.mxu1 %v14803_v9  ;;  %v15162_v52 = vld [vmem:[#allocation192_spill] sm:$0xff]  ;;  %v15163_v9 = vld [vmem:[#allocation193_spill] sm:$0xff] }
 0xdfb   :  { %3662 = vmatpush1.bf16.msra.mxu0 %v15055_v41  ;;  %3703 = vmatpush1.bf16.msra.mxu1 %v15150_v50  ;;  %v9389_v41 = vld [vmem:[#allocation17 + $0x6c] ss:$16 sps:$4 sm:$0xff]  }
 0xdfc   :  { %3663 = vmatprep.subr.bf16.mxu0 %v15151_v31  ;;  %3704 = vmatprep.subr.bf16.mxu1 %v15152_v42  ;;  %v9419_v50 = vld [vmem:[#allocation17 + $0x10c] ss:$16 sps:$4 sm:$0xff]   ;;  %v9414_v31 = vld [vmem:[#allocation17 + $0x100] ss:$16 sps:$4 sm:$0xff]   ;;  %v9417_v42 = vld [vmem:[#allocation17 + $0x108] ss:$16 sps:$4 sm:$0xff]  }
 0xdff   :  { %3664 = vmatpush1.bf16.msra.mxu0 %v15153_v22  ;;  %3705 = vmatpush1.bf16.msra.mxu1 %v15154_v23  ;;  %v9422_v22 = vld [vmem:[#allocation17 + $0x124] ss:$16 sps:$4 sm:$0xff]   ;;  %v9425_v23 = vld [vmem:[#allocation17 + $0x12c] ss:$16 sps:$4 sm:$0xff]  }
 0xe00   :  { %3665 = vmatprep.subr.bf16.mxu0 %v15155_v21  ;;  %3706 = vmatprep.subr.bf16.mxu1 %v15156_v53  ;;  %v9420_v21 = vld [vmem:[#allocation17 + $0x120] ss:$16 sps:$4 sm:$0xff]   ;;  %v9423_v53 = vld [vmem:[#allocation17 + $0x128] ss:$16 sps:$4 sm:$0xff]  }
 0xe03   :  { %3666 = vmatpush1.bf16.msra.mxu0 %v15157_v62  ;;  %3707 = vmatpush1.bf16.msra.mxu1 %v15158_v19  ;;  %v9428_v62 = vld [vmem:[#allocation17 + $0x144] ss:$16 sps:$4 sm:$0xff]   ;;  %v9431_v19 = vld [vmem:[#allocation17 + $0x14c] ss:$16 sps:$4 sm:$0xff]  }
 0xe04   :  { %3667 = vmatprep.subr.bf16.mxu0 %v15159_v7  ;;  %3708 = vmatprep.subr.bf16.mxu1 %v15160_v54  ;;  %v9426_v7 = vld [vmem:[#allocation17 + $0x140] ss:$16 sps:$4 sm:$0xff]   ;;  %v9429_v54 = vld [vmem:[#allocation17 + $0x148] ss:$16 sps:$4 sm:$0xff]  }
 0xe07   :  { %3668 = vmatpush1.bf16.msra.mxu0 %v15161_v55  ;;  %3709 = vmatpush1.bf16.msra.mxu1 %v15162_v52  ;;  %v9434_v55 = vld [vmem:[#allocation17 + $0x164] ss:$16 sps:$4 sm:$0xff]   ;;  %v9437_v52 = vld [vmem:[#allocation17 + $0x16c] ss:$16 sps:$4 sm:$0xff]  }
 0xe08   :  { %3669 = vmatprep.subr.bf16.mxu0 %v15163_v9  ;;  %3710 = vmatprep.subr.bf16.mxu1 %v15164_v58  ;;  %v9432_v9 = vld [vmem:[#allocation17 + $0x160] ss:$16 sps:$4 sm:$0xff]   ;;  %v9435_v58 = vld [vmem:[#allocation17 + $0x168] ss:$16 sps:$4 sm:$0xff]  }
 0xe0b   :  { %3670 = vmatpush1.bf16.msra.mxu0 %v15165_v18  ;;  %3711 = vmatpush1.bf16.msra.mxu1 %v15166_v10  ;;  %v9440_v18 = vld [vmem:[#allocation17 + $0x184] ss:$16 sps:$4 sm:$0xff]   ;;  %v9443_v10 = vld [vmem:[#allocation17 + $0x18c] ss:$16 sps:$4 sm:$0xff]  }
 0xe0c   :  { %3671 = vmatprep.subr.bf16.mxu0 %v15167_v17  ;;  %3712 = vmatprep.subr.bf16.mxu1 %v15168_v27  ;;  %v9438_v17 = vld [vmem:[#allocation17 + $0x180] ss:$16 sps:$4 sm:$0xff]   ;;  %v9441_v27 = vld [vmem:[#allocation17 + $0x188] ss:$16 sps:$4 sm:$0xff]  }
 0xe0f   :  { %3672 = vmatpush1.bf16.msra.mxu0 %v15169_v11  ;;  %3713 = vmatpush1.bf16.msra.mxu1 %v15170_v2  ;;  %v9446_v11 = vld [vmem:[#allocation17 + $0x1a4] ss:$16 sps:$4 sm:$0xff]   ;;  %v9449_v2 = vld [vmem:[#allocation17 + $0x1ac] ss:$16 sps:$4 sm:$0xff]  }
 0xe10   :  { %3673 = vmatprep.subr.bf16.mxu0 %v15171_v16  ;;  %3714 = vmatprep.subr.bf16.mxu1 %v15172_v33  ;;  %v9444_v16 = vld [vmem:[#allocation17 + $0x1a0] ss:$16 sps:$4 sm:$0xff]   ;;  %v9447_v33 = vld [vmem:[#allocation17 + $0x1a8] ss:$16 sps:$4 sm:$0xff]  }
 0xe13   :  { %3674 = vmatpush1.bf16.msra.mxu0 %v15173_v20  ;;  %3715 = vmatpush1.bf16.msra.mxu1 %v15174_v13  ;;  %v9452_v20 = vld [vmem:[#allocation17 + $0x1c4] ss:$16 sps:$4 sm:$0xff]   ;;  %v9455_v13 = vld [vmem:[#allocation17 + $0x1cc] ss:$16 sps:$4 sm:$0xff]  }
 0xe14   :  { %4156 = vmatprep.subr.bf16.mxu0 %v9368_v32  ;;  %4197 = vmatprep.subr.bf16.mxu1 %v9371_v30  ;;  %v9450_v32 = vld [vmem:[#allocation17 + $0x1c0] ss:$16 sps:$4 sm:$0xff]   ;;  %v9453_v30 = vld [vmem:[#allocation17 + $0x1c8] ss:$16 sps:$4 sm:$0xff]  }
 0xe16   :  { %3676 = vmatmul.mubr.bf16.vlgmr.msra.gmra.mrb[60].mxu0 %v12294_v24  ;;  %3717 = vmatmul.mubr.bf16.vlgmr.msra.gmra.mrb[68].mxu1 %v12294_v24  ;;  %v9416_v24 = vld [vmem:[#allocation17 + $0x104] ss:$16 sps:$4 sm:$0xff]  }
 0xe17   :  { %4157 = vmatpush1.bf16.msra.mxu0 %v9366_v4  ;;  %4198 = vmatpush1.bf16.msra.mxu1 %v9369_v36  ;;  %v9458_v4 = vld [vmem:[#allocation17 + $0x1e4] ss:$16 sps:$4 sm:$0xff]   ;;  %v9461_v36 = vld [vmem:[#allocation17 + $0x1ec] ss:$16 sps:$4 sm:$0xff]  }
 0xe18   :  { %4158 = vmatprep.subr.bf16.mxu0 %v9374_v28  ;;  %4199 = vmatprep.subr.bf16.mxu1 %v9377_v8  ;;  %v9456_v28 = vld [vmem:[#allocation17 + $0x1e0] ss:$16 sps:$4 sm:$0xff]   ;;  %v9459_v8 = vld [vmem:[#allocation17 + $0x1e8] ss:$16 sps:$4 sm:$0xff]  }
 0xe1b   :  { %4159 = vmatpush1.bf16.msra.mxu0 %v9372_v49  ;;  %4200 = vmatpush1.bf16.msra.mxu1 %v9375_v34 }
 0xe1c   :  { %4160 = vmatprep.subr.bf16.mxu0 %v9380_v45  ;;  %4201 = vmatprep.subr.bf16.mxu1 %v9383_v3 }
 0xe1f   :  { %4161 = vmatpush1.bf16.msra.mxu0 %v9378_v40  ;;  %4202 = vmatpush1.bf16.msra.mxu1 %v9381_v6  ;;  %v15175_v6 = vmov 0.0  }
 0xe20   :  { %4162 = vmatprep.subr.bf16.mxu0 %v9386_v48  ;;  %4203 = vmatprep.subr.bf16.mxu1 %v9389_v41 }
 0xe23   :  { %4163 = vmatpush1.bf16.msra.mxu0 %v9384_v15  ;;  %4204 = vmatpush1.bf16.msra.mxu1 %v9387_v26 }
 0xe24   :  { %4164 = vmatprep.subr.bf16.mxu0 %v9392_v63  ;;  %4205 = vmatprep.subr.bf16.mxu1 %v9395_v46 }
 0xe27   :  { %4165 = vmatpush1.bf16.msra.mxu0 %v9390_v35  ;;  %4206 = vmatpush1.bf16.msra.mxu1 %v9393_v25 }
 0xe28   :  { %4166 = vmatprep.subr.bf16.mxu0 %v9398_v57  ;;  %4207 = vmatprep.subr.bf16.mxu1 %v9401_v29 }
 0xe2b   :  { %4167 = vmatpush1.bf16.msra.mxu0 %v9396_v60  ;;  %4208 = vmatpush1.bf16.msra.mxu1 %v9399_v43  ;;  %v15176_v43 = vld [vmem:[#allocation143_spill] sm:$0xff] }
 0xe2c   :  { %4168 = vmatprep.subr.bf16.mxu0 %v9404_v56  ;;  %4209 = vmatprep.subr.bf16.mxu1 %v9407_v14  ;;  %v15177_v14 = vld [vmem:[#allocation144_spill] sm:$0xff] }
 0xe2f   :  { %4169 = vmatpush1.bf16.msra.mxu0 %v9402_v44  ;;  %4210 = vmatpush1.bf16.msra.mxu1 %v9405_v38 }
 0xe30   :  { %4170 = vmatprep.subr.bf16.mxu0 %v9410_v1  ;;  %4211 = vmatprep.subr.bf16.mxu1 %v9413_v47 }
 0xe33   :  { %4171 = vmatpush1.bf16.msra.mxu0 %v9408_v5  ;;  %4212 = vmatpush1.bf16.msra.mxu1 %v9411_v61 }
 0xe34   :  { %4172 = vmatprep.subr.bf16.mxu0 %v9416_v24  ;;  %4213 = vmatprep.subr.bf16.mxu1 %v9419_v50  ;;  %v15178_v50 = vld [vmem:[#allocation147_spill] sm:$0xff] }
 0xe37   :  { %4173 = vmatpush1.bf16.msra.mxu0 %v9414_v31  ;;  %4214 = vmatpush1.bf16.msra.mxu1 %v9417_v42  ;;  %v3791_v31 = vrot.slane %v15178_v50, 7 }
 0xe38   :  { %4174 = vmatprep.subr.bf16.mxu0 %v9422_v22  ;;  %4215 = vmatprep.subr.bf16.mxu1 %v9425_v23 }
 0xe3b   :  { %4175 = vmatpush1.bf16.msra.mxu0 %v9420_v21  ;;  %4216 = vmatpush1.bf16.msra.mxu1 %v9423_v53 }
 0xe3c   :  { %4176 = vmatprep.subr.bf16.mxu0 %v9428_v62  ;;  %4217 = vmatprep.subr.bf16.mxu1 %v9431_v19 }
 0xe3f   :  { %4177 = vmatpush1.bf16.msra.mxu0 %v9426_v7  ;;  %4218 = vmatpush1.bf16.msra.mxu1 %v9429_v54 }
 0xe40   :  { %4178 = vmatprep.subr.bf16.mxu0 %v9434_v55  ;;  %4219 = vmatprep.subr.bf16.mxu1 %v9437_v52 }
 0xe43   :  { %4179 = vmatpush1.bf16.msra.mxu0 %v9432_v9  ;;  %4220 = vmatpush1.bf16.msra.mxu1 %v9435_v58 }
 0xe44   :  { %4180 = vmatprep.subr.bf16.mxu0 %v9440_v18  ;;  %4221 = vmatprep.subr.bf16.mxu1 %v9443_v10 }
 0xe47   :  { %4181 = vmatpush1.bf16.msra.mxu0 %v9438_v17  ;;  %4222 = vmatpush1.bf16.msra.mxu1 %v9441_v27 }
 0xe48   :  { %4182 = vmatprep.subr.bf16.mxu0 %v9446_v11  ;;  %4223 = vmatprep.subr.bf16.mxu1 %v9449_v2 }
 0xe4b   :  { %4183 = vmatpush1.bf16.msra.mxu0 %v9444_v16  ;;  %4224 = vmatpush1.bf16.msra.mxu1 %v9447_v33 }
 0xe4c   :  { %4184 = vmatprep.subr.bf16.mxu0 %v9452_v20  ;;  %4225 = vmatprep.subr.bf16.mxu1 %v9455_v13  ;;  %v12372_v13 = vld [vmem:[#allocation20] sm:$0xf] }
 0xe4f   :  { %4185 = vmatpush1.bf16.msra.mxu0 %v9450_v32  ;;  %4226 = vmatpush1.bf16.msra.mxu1 %v9453_v30 }
 0xe50   :  { %4186 = vmatprep.subr.bf16.mxu0 %v9458_v4  ;;  %4227 = vmatprep.subr.bf16.mxu1 %v9461_v36 }
 0xe53   :  { %4187 = vmatpush1.bf16.msra.mxu0 %v9456_v28  ;;  %4228 = vmatpush1.bf16.msra.mxu1 %v9459_v8 }
 0xe54   :  { %9159 = vmatprep.subr.bf16.mxu0 %v15175_v6  ;;  %9179 = vmatprep.subr.bf16.mxu1 %v15175_v6 }
 0xea9   :  { %v3595_v49 = vpop.f32.mrb[56].mxu0  ;;  %v3636_v34 = vpop.f32.mrb[64].mxu1 }
 0xeaa   :  { %v3729_v45 = vrot.slane %v3595_v49, 1  ;;  %v3597_v3 = vpop.f32.mrb[57].mxu0  ;;  %v3638_v40 = vpop.f32.mrb[65].mxu1  ;;  %v3731_v29 = vrot.slane %v3636_v34, 1 }
 0xeab   :  { %v3730_v48 = vrot.slane %v3597_v3, 1  ;;  %v3599_v41 = vpop.f32.mrb[58].mxu0  ;;  %v3640_v15 = vpop.f32.mrb[66].mxu1  ;;  %v3732_v60 = vrot.slane %v3638_v40, 1 }
 0xeac   :  { %v3737_v26 = vadd.f32 %v3729_v45, %v14677_v37  ;;  %v3600_v63 = vpop.f32.mrb[59].mxu0  ;;  %v3641_v46 = vpop.f32.mrb[67].mxu1  ;;  %v3739_v56 = vadd.f32 %v3731_v29, %v15176_v43  ;;  %v9464_v43 = vld [vmem:[%s15179_s15 + $0x10] sm:$0xff]  }
 0xead   :  { %v3738_v35 = vadd.f32 %v3730_v48, %v11217_v0  ;;  %v3740_v44 = vadd.f32 %v3732_v60, %v15177_v14  ;;  %v9463_v60 = vld [vmem:[%s15179_s15 + $0x8] sm:$0xff]   ;;  %v9466_v14 = vld [vmem:[%s15179_s15 + $0x20] sm:$0xff]  }
 0xeae   :  { %v8746_v25 = vmul.f32 -1.442695, %v3737_v26  ;;  %v8748_v38 = vmul.f32 -1.442695, %v3739_v56  ;;  %v9465_v56 = vld [vmem:[%s15179_s15 + $0x18] sm:$0xff]  }
 0xeaf   :  { %v8747_v57 = vmul.f32 -1.442695, %v3738_v35 }
 0xeb0   :  { %9812 = vpow2.f32 %v8746_v25 }
 0xeb1   :  { %9814 = vpow2.f32 %v8747_v57 }
 0xeb2   :  { %9816 = vtanh.f32 %v3740_v44  ;;  %v9467_v44 = vld [vmem:[%s15179_s15 + $0x28] sm:$0xff]  }
 0xeb3   :  { %9818 = vpow2.f32 %v8748_v38  ;;  %v9468_v38 = vld [vmem:[%s15179_s15 + $0x30] sm:$0xff]  }
 0xeba   :  { %v9813_v1 = vpop.eup %9812 }
 0xebb   :  { %v3780_v47 = vadd.f32 1.0, %v9813_v1  ;;  %v9815_v5 = vpop.eup %9814  ;;  %v9469_v1 = vld [vmem:[%s15179_s15 + $0x38] sm:$0xff]  }
 0xebc   :  { %v3781_v37 = vadd.f32 1.0, %v9815_v5  ;;  %v9817_v0 = vpop.eup %9816 }
 0xebd   :  { %9820 = vrcp.f32 %v3780_v47  ;;  %v9819_v61 = vpop.eup %9818 }
 0xebe   :  { %9822 = vrcp.f32 %v3781_v37  ;;  %v3782_v23 = vadd.f32 1.0, %v9819_v61 }
 0xec0   :  { %9824 = vrcp.f32 %v3782_v23 }
 0xec7   :  { %v9821_v24 = vpop.eup %9820 }
 0xec8   :  { %v3794_v42 = vmul.f32 %v9821_v24, %v9817_v0  ;;  %v9823_v22 = vpop.eup %9822 }
 0xec9   :  { %v3793_v21 = vmul.f32 %v9823_v22, %v3791_v31 }
 0xeca   :  { %v9825_v62 = vpop.eup %9824 }
 0xecb   :  { %v3795_v53 = vadd.f32 %v3794_v42, %v3793_v21 }
 0xecd   :  { %9826 = vtanh.f32 %v3795_v53  ;;  %4428 = vst [vmem:[#allocation35 - $0x7] sm:$0x80] %v3795_v53 }
 0xed7   :  { %v9827_v19 = vpop.eup %9826 }
 0xed8   :  { %v3797_v7 = vmul.f32 %v9827_v19, %v9825_v62 }
 0xeda   :  { %4426 = vst [vmem:[#allocation34 - $0x7] sm:$0x80] %v3797_v7  ;;  %v3824_v26 = vpack.c.bf16 %v3797_v7, %v3797_v7 }
 0xedc   :  { %v3827_v25 = vshrl.u32 %v3824_v26, 16  ;;  %v9495_v26 = vld [vmem:[%s15181_s13 + $0xa4] ss:$16 sps:$4 sm:$0xff]  }
 0xede   :  { %v3829_v29 = vrot.slane %v3827_v25, 3  ;;  %v8815_v25 = vld [vmem:[#allocation22] ss:$0 sm:$0xff] }
 0xee9   :  { %v3677_v54 = vpop.f32.mrb[60].mxu0  ;;  %v3718_v55 = vpop.f32.mrb[68].mxu1 }
 0xeea   :  { %v3679_v52 = vpop.f32.mrb[61].mxu0  ;;  %v3720_v9 = vpop.f32.mrb[69].mxu1 }
 0xeeb   :  { %v3745_v58 = vcombine.low %v3677_v54, %v3679_v52  ;;  %v3746_v18 = vcombine.low %v3718_v55, %v3720_v9  ;;  %v3681_v10 = vpop.f32.mrb[62].mxu0  ;;  %v3722_v17 = vpop.f32.mrb[70].mxu1 }
 0xeec   :  { %v3682_v27 = vpop.f32.mrb[63].mxu0  ;;  %v3723_v11 = vpop.f32.mrb[71].mxu1 }
 0xeed   :  { %v3753_v2 = vrot.slane %v3745_v58, %v11500_v59  ;;  %v3760_v16 = vrot.slane %v3746_v18, %v11500_v59 }
 0xeef   :  { %v3761_v33 = vcombine.low %v3753_v2, %v3760_v16 }
 0xef1   :  { %v3768_v20 = vrot.slane %v3761_v33, %v11500_v59 }
 0xef3   :  { %v3770_v32 = vadd.f32 %v12372_v13, %v3768_v20 }
 0xef5   :  { %v8749_v30 = vmul.f32 -1.442695, %v3770_v32  ;;  %v3805_v28 = vrot.slane %v3770_v32, 3  ;;  %v15182_v32 = vmov 0  }
 0xef7   :  { %9828 = vpow2.f32 %v8749_v30  ;;  %v9470_v30 = vld [vmem:[%s15180_s3] sm:$0xff]  }
 0xf01   :  { %v9829_v4 = vpop.eup %9828 }
 0xf02   :  { %v3801_v36 = vadd.f32 1.0, %v9829_v4  ;;  %v9471_v4 = vld [vmem:[%s15180_s3 + $0x8] sm:$0xff]  }
 0xf04   :  { %9830 = vrcp.f32 %v3801_v36  ;;  %v9472_v36 = vld [vmem:[%s15181_s13] ss:$16 sps:$4 sm:$0xff]  }
 0xf05   :  { %9832 = vtanh.f32 %v3805_v28  ;;  %v9474_v28 = vld [vmem:[%s15181_s13 + $0x4] ss:$16 sps:$4 sm:$0xff]  }
 0xf0e   :  { %v9831_v8 = vpop.eup %9830 }
 0xf0f   :  { %v3809_v49 = vrot.slane %v9831_v8, 1  ;;  %v9833_v34 = vpop.eup %9832  ;;  %v3815_v48 = vrot.slane %v9831_v8, 2 }
 0xf10   :  { %v3812_v45 = vmul.f32 %v9833_v34, %v9831_v8  ;;  %v9477_v8 = vld [vmem:[%s15181_s13 + $0x24] ss:$16 sps:$4 sm:$0xff]   ;;  %v9486_v34 = vld [vmem:[#allocation26 + $0x4] ss:$16 sps:$4 sm:$0xff]  }
 0xf11   :  { %v3811_v3 = vmul.f32 %v3809_v49, %v12286_v51  ;;  %v9475_v49 = vld [vmem:[%s15181_s13 + $0x20] ss:$16 sps:$4 sm:$0xff]  }
 0xf13   :  { %v12376_v40 = vadd.f32 %v3812_v45, %v3811_v3  ;;  %v9480_v45 = vld [vmem:[%s15181_s13 + $0x44] ss:$16 sps:$4 sm:$0xff]   ;;  %v9478_v3 = vld [vmem:[%s15181_s13 + $0x40] ss:$16 sps:$4 sm:$0xff]  }
 0xf15   :  { %9834 = vtanh.f32 %v12376_v40 }
 0xf1f   :  { %v9835_v41 = vpop.eup %9834 }
 0xf20   :  { %v3817_v15 = vmul.f32 %v9835_v41, %v3815_v48  ;;  %v9481_v48 = vld [vmem:[%s15181_s13 + $0x60] ss:$16 sps:$4 sm:$0xff]   ;;  %v9489_v41 = vld [vmem:[%s15181_s13 + $0x84] ss:$16 sps:$4 sm:$0xff]  }
 0xf22   :  { %v3822_v63 = vrot.slane %v3817_v15, %v14682_v39  ;;  %v9487_v15 = vld [vmem:[%s15181_s13 + $0x80] ss:$16 sps:$4 sm:$0xff]  }
 0xf24   :  { %v3825_v46 = vpack.c.bf16 %v3822_v63, %v3822_v63  ;;  %v12382_v35 = vsel %vm4303_vm9, %v12292_v12, %v3822_v63  ;;  %v9462_v12 = vld [vmem:[%s15179_s15] sm:$0xff]  }
 0xf25   :  { %v9493_v63 = vld [vmem:[%s15181_s13 + $0xa0] ss:$16 sps:$4 sm:$0xff]  }
 0xf26   :  { %v3831_v51 = vshrl.u32 %v3825_v46, 16  ;;  %v9501_v46 = vld [vmem:[%s15181_s13 + $0xc4] ss:$16 sps:$4 sm:$0xff]  }
 0xf28   :  { %v3833_v57 = vrot.slane %v3831_v51, 3 }
 0xf2a   :  { %4188 = vmatprep.mubr.bf16.mxu0 %v3833_v57  ;;  %4229 = vmatprep.mubr.bf16.mxu1 %v3833_v57 }
 0xf2b   :  { %4189 = vmatmul.mubr.bf16.vlgmr.msra.gmra.mrb[64].mxu0 %v3829_v29  ;;  %4230 = vmatmul.mubr.bf16.vlgmr.msra.gmra.mrb[72].mxu1 %v3829_v29 }
 0xf2c   :  { %9175 = vmatprep.mubr.msk.bf16.mxu0 %vm10664_vm0, %v15175_v6  ;;  %9183 = vmatprep.mubr.msk.bf16.mxu1 %vm10664_vm0, %v15175_v6 }
 0xf2d   :  { %9160 = vmatpush3.bf16.msra.mxu0 %v9462_v12  ;;  %9180 = vmatpush3.bf16.msra.mxu1 %v9470_v30  ;;  %v9528_v30 = vld [vmem:[%s15181_s13 + $0x4c] ss:$16 sps:$4 sm:$0xff]  }
 0xf2e   :  { %9161 = vmatprep.subr.bf16.mxu0 %v15175_v6  ;;  %9181 = vmatprep.subr.bf16.mxu1 %v15175_v6 }
 0xf31   :  { %9162 = vmatpush3.bf16.msra.mxu0 %v9463_v60  ;;  %9182 = vmatpush3.bf16.msra.mxu1 %v9471_v4  ;;  %v15183_v60 = vld [vmem:[#allocation72_spill] sm:$0xff]  ;;  %v9526_v4 = vld [vmem:[%s15181_s13 + $0x48] ss:$16 sps:$4 sm:$0xff]  }
 0xf32   :  { %9163 = vmatprep.subr.bf16.mxu0 %v15175_v6  ;;  %4619 = vmatprep.subr.bf16.mxu1 %v9486_v34  ;;  %v9537_v34 = vld [vmem:[%s15181_s13 + $0xac] ss:$16 sps:$4 sm:$0xff]  }
 0xf35   :  { %9164 = vmatpush3.bf16.msra.mxu0 %v9464_v43 }
 0xf36   :  { %9165 = vmatprep.subr.bf16.mxu0 %v15175_v6 }
 0xf39   :  { %9166 = vmatpush3.bf16.msra.mxu0 %v9465_v56 }
 0xf3a   :  { %9167 = vmatprep.subr.bf16.mxu0 %v15175_v6 }
 0xf3d   :  { %9168 = vmatpush3.bf16.msra.mxu0 %v9466_v14 }
 0xf3e   :  { %9169 = vmatprep.subr.bf16.mxu0 %v15175_v6 }
 0xf41   :  { %9170 = vmatpush3.bf16.msra.mxu0 %v9467_v44 }
 0xf42   :  { %9171 = vmatprep.subr.bf16.mxu0 %v15175_v6 }
 0xf45   :  { %9172 = vmatpush3.bf16.msra.mxu0 %v9468_v38 }
 0xf46   :  { %9173 = vmatprep.subr.bf16.mxu0 %v15175_v6 }
 0xf49   :  { %9174 = vmatpush3.bf16.msra.mxu0 %v9469_v1 }
 0xf4a   :  { %5091 = vmatprep.subr.bf16.mxu0 %v9474_v28  ;;  %v9529_v28 = vld [vmem:[%s15181_s13 + $0x68] ss:$16 sps:$4 sm:$0xff]  }
 0xffe   :  { %v4190_v47 = vpop.f32.mrb[64].mxu0  ;;  %v4231_v5 = vpop.f32.mrb[72].mxu1 }
 0xfff   :  { %v4192_v37 = vpop.f32.mrb[65].mxu0  ;;  %v4233_v0 = vpop.f32.mrb[73].mxu1 }
0x1000   :  { %v4242_v61 = vcombine.low %v4190_v47, %v4192_v37  ;;  %v4243_v24 = vcombine.low %v4231_v5, %v4233_v0  ;;  %v4194_v50 = vpop.f32.mrb[66].mxu0  ;;  %v4235_v31 = vpop.f32.mrb[74].mxu1  ;;  %v9484_v47 = vld [vmem:[#allocation26] ss:$16 sps:$4 sm:$0xff]   ;;  %v9492_v37 = vld [vmem:[#allocation26 + $0x24] ss:$16 sps:$4 sm:$0xff]  }
0x1001   :  { %v4195_v42 = vpop.f32.mrb[67].mxu0  ;;  %v4236_v22 = vpop.f32.mrb[75].mxu1  ;;  %v9490_v0 = vld [vmem:[#allocation26 + $0x20] ss:$16 sps:$4 sm:$0xff]   ;;  %v9504_v50 = vld [vmem:[#allocation26 + $0x64] ss:$16 sps:$4 sm:$0xff]  }
0x1002   :  { %v4250_v23 = vrot.slane %v4242_v61, %v11500_v59  ;;  %v4257_v21 = vrot.slane %v4243_v24, %v11500_v59  ;;  %v9498_v61 = vld [vmem:[#allocation26 + $0x44] ss:$16 sps:$4 sm:$0xff]   ;;  %v9496_v24 = vld [vmem:[#allocation26 + $0x40] ss:$16 sps:$4 sm:$0xff]   ;;  %v9507_v42 = vld [vmem:[%s15181_s13 + $0xe4] ss:$16 sps:$4 sm:$0xff]  }
0x1003   :  { %v9502_v31 = vld [vmem:[#allocation26 + $0x60] ss:$16 sps:$4 sm:$0xff]   ;;  %v9505_v22 = vld [vmem:[%s15181_s13 + $0xe0] ss:$16 sps:$4 sm:$0xff]  }
0x1004   :  { %v4258_v53 = vcombine.low %v4250_v23, %v4257_v21  ;;  %v9510_v23 = vld [vmem:[#allocation26 + $0xc] ss:$16 sps:$4 sm:$0xff]   ;;  %v4926_v21 = vld [vmem:[%s15185_s16] sm:$0x1] }
0x1006   :  { %v4265_v62 = vrot.slane %v4258_v53, %v11500_v59  ;;  %v4930_v53 = vpack.c.bf16 %v4926_v21, %v4926_v21  ;;  %v4821_v21 = vld [vmem:[#allocation31 + $0xc0] sm:$0xff]  ;;  %v4906_v59 = vld [vmem:[#allocation31 + $0x368] sm:$0xff] }
0x1008   :  { %v4267_v19 = vadd.f32 %v12372_v13, %v4265_v62  ;;  %v8825_v62 = vld [vmem:[#allocation25] ss:$0 sm:$0xff] }
0x100a   :  { %v8814_v7 = vmul.f32 -1.442695, %v4267_v19  ;;  %v4275_v52 = vrot.slane %v4267_v19, 3 }
0x100c   :  { %9836 = vpow2.f32 %v8814_v7 }
0x1016   :  { %v9837_v54 = vpop.eup %9836 }
0x1017   :  { %v4271_v55 = vadd.f32 1.0, %v9837_v54 }
0x1019   :  { %9838 = vrcp.f32 %v4271_v55 }
0x101a   :  { %9840 = vtanh.f32 %v4275_v52  ;;  %v9508_v52 = vld [vmem:[#allocation26 + $0x8] ss:$16 sps:$4 sm:$0xff]  }
0x1023   :  { %v9839_v9 = vpop.eup %9838 }
0x1024   :  { %v4279_v58 = vrot.slane %v9839_v9, 1  ;;  %v9841_v18 = vpop.eup %9840  ;;  %v4285_v11 = vrot.slane %v9839_v9, 2 }
0x1025   :  { %v4282_v17 = vmul.f32 %v9841_v18, %v9839_v9  ;;  %v9513_v18 = vld [vmem:[#allocation26 + $0x2c] ss:$16 sps:$4 sm:$0xff]  }
0x1026   :  { %v4281_v10 = vmul.f32 %v4279_v58, %v12376_v40  ;;  %v9483_v40 = vld [vmem:[%s15181_s13 + $0x64] ss:$16 sps:$4 sm:$0xff]  }
0x1028   :  { %v4283_v27 = vadd.f32 %v4282_v17, %v4281_v10  ;;  %v9511_v10 = vld [vmem:[#allocation26 + $0x28] ss:$16 sps:$4 sm:$0xff]   ;;  %v9516_v17 = vld [vmem:[#allocation26 + $0x4c] ss:$16 sps:$4 sm:$0xff]  }
0x102a   :  { %4429 = vst [vmem:[#allocation35 + $0x1] sm:$0x1] %v4283_v27  ;;  %9842 = vtanh.f32 %v4283_v27  ;;  %v9514_v27 = vld [vmem:[#allocation26 + $0x48] ss:$16 sps:$4 sm:$0xff]  }
0x1034   :  { %v9843_v2 = vpop.eup %9842 }
0x1035   :  { %v4287_v16 = vmul.f32 %v9843_v2, %v4285_v11  ;;  %v9519_v11 = vld [vmem:[#allocation26 + $0x6c] ss:$16 sps:$4 sm:$0xff]   ;;  %v9517_v2 = vld [vmem:[#allocation26 + $0x68] ss:$16 sps:$4 sm:$0xff]  }
0x1037   :  { %v4292_v33 = vrot.slane %v4287_v16, %v14682_v39  ;;  %4427 = vst [vmem:[#allocation34 + $0x1] sm:$0x1] %v4287_v16  ;;  %v9522_v16 = vld [vmem:[%s15181_s13 + $0xc] ss:$16 sps:$4 sm:$0xff]  }
0x1039   :  { %v4306_v20 = vsel %vm4305_vm10, %v12382_v35, %v4292_v33  ;;  %v9499_v35 = vld [vmem:[%s15181_s13 + $0xc0] ss:$16 sps:$4 sm:$0xff]   ;;  %v9520_v33 = vld [vmem:[%s15181_s13 + $0x8] ss:$16 sps:$4 sm:$0xff]  }
0x103a   :  { %v4307_v13 = vpack.c.bf16 %v4306_v20, %v4306_v20  ;;  %v9525_v20 = vld [vmem:[%s15181_s13 + $0x2c] ss:$16 sps:$4 sm:$0xff]  }
0x103c   :  { %9176 = vmatmul.mubr.bf16.vlgmr.msra.gmra.mrb[68].mxu0 %v4307_v13  ;;  %v9523_v13 = vld [vmem:[%s15181_s13 + $0x28] ss:$16 sps:$4 sm:$0xff]  }
0x103d   :  { %5123 = vmatprep.mubr.bf16.mxu0 %v15182_v32  ;;  %5092 = vmatpush1.bf16.msra.mxu0 %v9472_v36  ;;  %v9531_v36 = vld [vmem:[%s15181_s13 + $0x6c] ss:$16 sps:$4 sm:$0xff]  }
0x103e   :  { %5093 = vmatprep.subr.bf16.mxu0 %v9477_v8  ;;  %v9534_v8 = vld [vmem:[%s15181_s13 + $0x8c] ss:$16 sps:$4 sm:$0xff]  }
0x1041   :  { %5094 = vmatpush1.bf16.msra.mxu0 %v9475_v49  ;;  %v9532_v49 = vld [vmem:[%s15181_s13 + $0x88] ss:$16 sps:$4 sm:$0xff]  }
0x1042   :  { %5095 = vmatprep.subr.bf16.mxu0 %v9480_v45  ;;  %v9540_v45 = vld [vmem:[%s15181_s13 + $0xcc] ss:$16 sps:$4 sm:$0xff]  }
0x1045   :  { %5096 = vmatpush1.bf16.msra.mxu0 %v9478_v3  ;;  %v9538_v3 = vld [vmem:[%s15181_s13 + $0xc8] ss:$16 sps:$4 sm:$0xff]  }
0x1046   :  { %5097 = vmatprep.subr.bf16.mxu0 %v9483_v40  ;;  %v9543_v40 = vld [vmem:[%s15181_s13 + $0xec] ss:$16 sps:$4 sm:$0xff]  }
0x1049   :  { %5098 = vmatpush1.bf16.msra.mxu0 %v9481_v48  ;;  %v9541_v48 = vld [vmem:[%s15181_s13 + $0xe8] ss:$16 sps:$4 sm:$0xff]  }
0x104a   :  { %5099 = vmatprep.subr.bf16.mxu0 %v9489_v41 }
0x104d   :  { %5100 = vmatpush1.bf16.msra.mxu0 %v9487_v15 }
0x104e   :  { %5101 = vmatprep.subr.bf16.mxu0 %v9495_v26 }
0x1051   :  { %5102 = vmatpush1.bf16.msra.mxu0 %v9493_v63 }
0x1052   :  { %5103 = vmatprep.subr.bf16.mxu0 %v9501_v46  ;;  %v4797_v46 = vld [vmem:[#allocation31] sm:$0xff] }
0x1055   :  { %5104 = vmatpush1.bf16.msra.mxu0 %v9499_v35  ;;  %v4801_v35 = vld [vmem:[#allocation31 + $0x20] sm:$0xff] }
0x1056   :  { %5105 = vmatprep.subr.bf16.mxu0 %v9507_v42 }
0x1059   :  { %5106 = vmatpush1.bf16.msra.mxu0 %v9505_v22 }
0x105c   :  { %5124 = vmatmul.mubr.bf16.vlgmr.msra.gmra.mrb[72].mxu0 %v4930_v53 }
0x110f   :  { %v4413_v51 = vpop.f32.mrb[68].mxu0 }
0x1110   :  { %v4414_v57 = vadd.f32 %v8815_v25, %v4413_v51  ;;  %v9177_v29 = vpop.f32.mrb[69].mxu0  ;;  %v4798_v25 = vld [vmem:[#allocation31 + $0x8] sm:$0xff]  ;;  %v12463_v51 = vcombine.high %v4797_v46, %v4801_v35 }
0x1111   :  { %v4416_v12 = vpop.f32.mrb[70].mxu0 }
0x1112   :  { %v4419_v43 = vadd.f32 %v4414_v57, %v15183_v60  ;;  %v9178_v56 = vpop.f32.mrb[71].mxu0  ;;  %15186 = vst [vmem:[#allocation148_spill] sm:$0xff] %v12463_v51  ;;  %v4802_v57 = vld [vmem:[#allocation31 + $0x28] sm:$0xff]  ;;  %v12467_v12 = vcombine.low %v4797_v46, %v4801_v35  ;;  %5843 = vmatprep.subr.bf16.mxu0 %v12463_v51 }
0x1113   :  { %v12465_v29 = vcombine.high %v4798_v25, %v4802_v57  ;;  %v12469_v60 = vcombine.low %v4798_v25, %v4802_v57  ;;  %v4809_v56 = vld [vmem:[#allocation31 + $0x60] sm:$0xff] }
0x1114   :  { %v8824_v14 = vmul.f32 -1.442695, %v4419_v43  ;;  %15188 = vst [vmem:[#allocation150_spill] sm:$0xff] %v12467_v12  ;;  %5844 = vmatpush1.bf16.msra.mxu0 %v12467_v12  ;;  %v4805_v43 = vld [vmem:[#allocation31 + $0x40] sm:$0xff] }
0x1115   :  { %15187 = vst [vmem:[#allocation149_spill] sm:$0xff] %v12465_v29  ;;  %15189 = vst [vmem:[#allocation151_spill] sm:$0xff] %v12469_v60 }
0x1116   :  { %9844 = vpow2.f32 %v8824_v14  ;;  %v4806_v14 = vld [vmem:[#allocation31 + $0x48] sm:$0xff] }
0x1120   :  { %v9845_v44 = vpop.eup %9844 }
0x1121   :  { %v4423_v38 = vadd.f32 1.0, %v9845_v44  ;;  %v12475_v44 = vcombine.high %v4805_v43, %v4809_v56 }
0x1123   :  { %9846 = vrcp.f32 %v4423_v38  ;;  %15190 = vst [vmem:[#allocation152_spill] sm:$0xff] %v12475_v44  ;;  %v4810_v38 = vld [vmem:[#allocation31 + $0x68] sm:$0xff]  ;;  %5845 = vmatprep.subr.bf16.mxu0 %v12475_v44 }
0x112d   :  { %v12430_v1 = vpop.eup %9846 }
0x112e   :  { %15184 = vst [vmem:[#allocation142_spill] sm:$0xff] %v12430_v1  ;;  %v4430_v5 = vpack.c.bf16 %v12430_v1, %v12430_v1  ;;  %v4902_v1 = vld [vmem:[#allocation31 + $0x348] sm:$0xff] }
0x112f   :  { %v12459_v41 = vpop.f32.mrb[72].mxu0 }
0x1130   :  { %9184 = vmatmul.mubr.msk.bf16.vlgmr.msra.gmra.mrb[76].mxu1 %vm475_vm3, %v4430_v5  ;;  %v12461_v15 = vpop.f32.mrb[73].mxu0  ;;  %v12479_v5 = vcombine.low %v4805_v43, %v4809_v56 }
0x1131   :  { %4620 = vmatpush1.bf16.msra.mxu1 %v9484_v47  ;;  %4651 = vmatprep.mubr.bf16.mxu1 %v15182_v32  ;;  %v5129_v26 = vpop.f32.mrb[74].mxu0  ;;  %v12477_v47 = vcombine.high %v4806_v14, %v4810_v38 }
0x1132   :  { %4621 = vmatprep.subr.bf16.mxu1 %v9492_v37  ;;  %v5130_v63 = vpop.f32.mrb[75].mxu0  ;;  %15192 = vst [vmem:[#allocation154_spill] sm:$0xff] %v12479_v5  ;;  %v12481_v37 = vcombine.low %v4806_v14, %v4810_v38  ;;  %5846 = vmatpush1.bf16.msra.mxu0 %v12479_v5  ;;  %v4854_v26 = vld [vmem:[#allocation31 + $0x1c8] sm:$0xff]  ;;  %v4861_v14 = vld [vmem:[#allocation31 + $0x200] sm:$0xff] }
0x1133   :  { %15191 = vst [vmem:[#allocation153_spill] sm:$0xff] %v12477_v47  ;;  %v4858_v63 = vld [vmem:[#allocation31 + $0x1e8] sm:$0xff]  ;;  %v4865_v38 = vld [vmem:[#allocation31 + $0x220] sm:$0xff] }
0x1134   :  { %15193 = vst [vmem:[#allocation169_spill] sm:$0xff] %v12481_v37  ;;  %v12547_v57 = vcombine.high %v4854_v26, %v4858_v63  ;;  %v12554_v56 = vcombine.low %v4854_v26, %v4858_v63  ;;  %v4885_v26 = vld [vmem:[#allocation31 + $0x2c0] sm:$0xff] }
0x1135   :  { %4622 = vmatpush1.bf16.msra.mxu1 %v9490_v0  ;;  %v4813_v0 = vld [vmem:[#allocation31 + $0x80] sm:$0xff] }
0x1136   :  { %4623 = vmatprep.subr.bf16.mxu1 %v9498_v61  ;;  %v4817_v61 = vld [vmem:[#allocation31 + $0xa0] sm:$0xff]  ;;  %15215 = vst [vmem:[#allocation167_spill] sm:$0xff] %v12547_v57  ;;  %15217 = vst [vmem:[#allocation172_spill] sm:$0xff] %v12554_v56 }
0x1137   :  { %v12491_v22 = vcombine.low %v4813_v0, %v4817_v61  ;;  %v4889_v63 = vld [vmem:[#allocation31 + $0x2e0] sm:$0xff] }
0x1139   :  { %4624 = vmatpush1.bf16.msra.mxu1 %v9496_v24  ;;  %v4814_v24 = vld [vmem:[#allocation31 + $0x88] sm:$0xff]  ;;  %15196 = vst [vmem:[#allocation174_spill] sm:$0xff] %v12491_v22 }
0x113a   :  { %4625 = vmatprep.subr.bf16.mxu1 %v9504_v50  ;;  %v12487_v50 = vcombine.high %v4813_v0, %v4817_v61  ;;  %v4862_v0 = vld [vmem:[#allocation31 + $0x208] sm:$0xff]  ;;  %v12559_v61 = vcombine.high %v4861_v14, %v4865_v38 }
0x113c   :  { %15194 = vst [vmem:[#allocation170_spill] sm:$0xff] %v12487_v50  ;;  %5847 = vmatprep.subr.bf16.mxu0 %v12487_v50  ;;  %15218 = vst [vmem:[#allocation173_spill] sm:$0xff] %v12559_v61 }
0x113d   :  { %4626 = vmatpush1.bf16.msra.mxu1 %v9502_v31  ;;  %v4818_v31 = vld [vmem:[#allocation31 + $0xa8] sm:$0xff]  ;;  %5848 = vmatpush1.bf16.msra.mxu0 %v12491_v22 }
0x113e   :  { %4660 = vmatprep.subr.bf16.mxu1 %v9510_v23  ;;  %v12489_v42 = vcombine.high %v4814_v24, %v4818_v31  ;;  %v12493_v23 = vcombine.low %v4814_v24, %v4818_v31  ;;  %v4866_v24 = vld [vmem:[#allocation31 + $0x228] sm:$0xff] }
0x113f   :  { %v12561_v31 = vcombine.high %v4862_v0, %v4866_v24 }
0x1140   :  { %15195 = vst [vmem:[#allocation171_spill] sm:$0xff] %v12489_v42  ;;  %15197 = vst [vmem:[#allocation175_spill] sm:$0xff] %v12493_v23 }
0x1141   :  { %15219 = vst [vmem:[#allocation145_spill] sm:$0xff] %v12561_v31 }
0x1203   :  { %v4491_v19 = vpop.f32.mrb[76].mxu1 }
0x1204   :  { %v4492_v7 = vadd.f32 %v8825_v62, %v4491_v19  ;;  %v9185_v54 = vpop.f32.mrb[77].mxu1  ;;  %v4822_v62 = vld [vmem:[#allocation31 + $0xc8] sm:$0xff] }
0x1205   :  { %v4494_v55 = vpop.f32.mrb[78].mxu1 }
0x1206   :  { %v4497_v9 = vpack.c.bf16 %v4492_v7, %v4492_v7  ;;  %v9186_v58 = vpop.f32.mrb[79].mxu1  ;;  %v4826_v7 = vld [vmem:[#allocation31 + $0xe8] sm:$0xff] }
0x1207   :  { %v12501_v54 = vcombine.high %v4822_v62, %v4826_v7  ;;  %v4833_v58 = vld [vmem:[#allocation31 + $0x120] sm:$0xff] }
0x1208   :  { %8845 = vmatmul.mubr.msk.bf16.vlgmr.msra.gmra.mrb[80].mxu1 %vm697_vm4, %v4497_v9 }
0x1209   :  { %4661 = vmatpush1.bf16.msra.mxu1 %v9508_v52  ;;  %4692 = vmatprep.mubr.bf16.mxu1 %v15182_v32  ;;  %15199 = vst [vmem:[#allocation177_spill] sm:$0xff] %v12501_v54  ;;  %v12505_v52 = vcombine.low %v4822_v62, %v4826_v7  ;;  %v4869_v62 = vld [vmem:[#allocation31 + $0x240] sm:$0xff] }
0x120a   :  { %4662 = vmatprep.subr.bf16.mxu1 %v9513_v18  ;;  %v4830_v18 = vld [vmem:[#allocation31 + $0x108] sm:$0xff]  ;;  %v4873_v7 = vld [vmem:[#allocation31 + $0x260] sm:$0xff] }
0x120b   :  { %15201 = vst [vmem:[#allocation139_spill] sm:$0xff] %v12505_v52 }
0x120d   :  { %4663 = vmatpush1.bf16.msra.mxu1 %v9511_v10 }
0x120e   :  { %4664 = vmatprep.subr.bf16.mxu1 %v9516_v17  ;;  %v4834_v17 = vld [vmem:[#allocation31 + $0x128] sm:$0xff] }
0x1211   :  { %4665 = vmatpush1.bf16.msra.mxu1 %v9514_v27  ;;  %v12513_v27 = vcombine.high %v4830_v18, %v4834_v17 }
0x1212   :  { %4666 = vmatprep.subr.bf16.mxu1 %v9519_v11 }
0x1213   :  { %15203 = vst [vmem:[#allocation155_spill] sm:$0xff] %v12513_v27 }
0x1215   :  { %4667 = vmatpush1.bf16.msra.mxu1 %v9517_v2  ;;  %v12517_v2 = vcombine.low %v4830_v18, %v4834_v17  ;;  %v4874_v18 = vld [vmem:[#allocation31 + $0x268] sm:$0xff] }
0x1216   :  { %5132 = vmatprep.subr.bf16.mxu1 %v9522_v16  ;;  %v4837_v16 = vld [vmem:[#allocation31 + $0x140] sm:$0xff] }
0x1217   :  { %15205 = vst [vmem:[#allocation157_spill] sm:$0xff] %v12517_v2 }
0x1218   :  { %8846 = vmatmul.mubr.msk.bf16.vlgmr.msra.gmra.mrb[84].mxu1 %vm697_vm4, %v4497_v9  ;;  %v4829_v9 = vld [vmem:[#allocation31 + $0x100] sm:$0xff] }
0x1219   :  { %5133 = vmatpush1.bf16.msra.mxu1 %v9520_v33  ;;  %5164 = vmatprep.mubr.bf16.mxu1 %v15182_v32  ;;  %v9535_v32 = vld [vmem:[%s15181_s13 + $0xa8] ss:$16 sps:$4 sm:$0xff]   ;;  %v12511_v10 = vcombine.high %v4829_v9, %v4833_v58  ;;  %v12515_v11 = vcombine.low %v4829_v9, %v4833_v58  ;;  %v4841_v33 = vld [vmem:[#allocation31 + $0x160] sm:$0xff]  ;;  %v12571_v58 = vcombine.high %v4869_v62, %v4873_v7 }
0x121a   :  { %5134 = vmatprep.subr.bf16.mxu1 %v9525_v20  ;;  %v4838_v20 = vld [vmem:[#allocation31 + $0x148] sm:$0xff] }
0x121b   :  { %15202 = vst [vmem:[#allocation206_spill] sm:$0xff] %v12511_v10  ;;  %15204 = vst [vmem:[#allocation156_spill] sm:$0xff] %v12515_v11  ;;  %v4870_v9 = vld [vmem:[#allocation31 + $0x248] sm:$0xff] }
0x121c   :  { %15222 = vst [vmem:[#allocation75_spill] sm:$0xff] %v12571_v58  ;;  %v12573_v17 = vcombine.high %v4870_v9, %v4874_v18 }
0x121d   :  { %5135 = vmatpush1.bf16.msra.mxu1 %v9523_v13  ;;  %v12520_v13 = vcombine.high %v4837_v16, %v4841_v33 }
0x121e   :  { %5136 = vmatprep.subr.bf16.mxu1 %v9528_v30  ;;  %v4842_v30 = vld [vmem:[#allocation31 + $0x168] sm:$0xff]  ;;  %15223 = vst [vmem:[#allocation74_spill] sm:$0xff] %v12573_v17 }
0x121f   :  { %15206 = vst [vmem:[#allocation158_spill] sm:$0xff] %v12520_v13 }
0x1221   :  { %5137 = vmatpush1.bf16.msra.mxu1 %v9526_v4  ;;  %v4845_v4 = vld [vmem:[#allocation31 + $0x180] sm:$0xff] }
0x1222   :  { %5138 = vmatprep.subr.bf16.mxu1 %v9531_v36  ;;  %v4849_v36 = vld [vmem:[#allocation31 + $0x1a0] sm:$0xff] }
0x1223   :  { %v12538_v46 = vcombine.low %v4845_v4, %v4849_v36 }
0x1225   :  { %5139 = vmatpush1.bf16.msra.mxu1 %v9529_v28  ;;  %v12524_v28 = vcombine.high %v4838_v20, %v4842_v30  ;;  %15212 = vst [vmem:[#allocation164_spill] sm:$0xff] %v12538_v46 }
0x1226   :  { %5140 = vmatprep.subr.bf16.mxu1 %v9534_v8  ;;  %v12526_v8 = vcombine.low %v4837_v16, %v4841_v33  ;;  %v12575_v16 = vcombine.low %v4869_v62, %v4873_v7  ;;  %v12577_v33 = vcombine.low %v4870_v9, %v4874_v18  ;;  %v12599_v62 = vcombine.low %v4885_v26, %v4889_v63  ;;  %v4893_v9 = vld [vmem:[#allocation31 + $0x300] sm:$0xff] }
0x1227   :  { %15207 = vst [vmem:[#allocation159_spill] sm:$0xff] %v12524_v28  ;;  %v4897_v18 = vld [vmem:[#allocation31 + $0x320] sm:$0xff] }
0x1228   :  { %15208 = vst [vmem:[#allocation160_spill] sm:$0xff] %v12526_v8  ;;  %15224 = vst [vmem:[#allocation76_spill] sm:$0xff] %v12575_v16 }
0x1229   :  { %5141 = vmatpush1.bf16.msra.mxu1 %v9532_v49  ;;  %v4846_v49 = vld [vmem:[#allocation31 + $0x188] sm:$0xff]  ;;  %15225 = vst [vmem:[#allocation77_spill] sm:$0xff] %v12577_v33  ;;  %15232 = vst [vmem:[#allocation84_spill] sm:$0xff] %v12599_v62 }
0x122a   :  { %5142 = vmatprep.subr.bf16.mxu1 %v9537_v34  ;;  %v4850_v34 = vld [vmem:[#allocation31 + $0x1a8] sm:$0xff] }
0x122b   :  { %v12542_v35 = vcombine.low %v4846_v49, %v4850_v34 }
0x122d   :  { %5143 = vmatpush1.bf16.msra.mxu1 %v9535_v32  ;;  %v12530_v32 = vcombine.low %v4838_v20, %v4842_v30  ;;  %15213 = vst [vmem:[#allocation165_spill] sm:$0xff] %v12542_v35  ;;  %v4877_v20 = vld [vmem:[#allocation31 + $0x280] sm:$0xff] }
0x122e   :  { %5144 = vmatprep.subr.bf16.mxu1 %v9540_v45  ;;  %v12532_v45 = vcombine.high %v4845_v4, %v4849_v36  ;;  %v4881_v30 = vld [vmem:[#allocation31 + $0x2a0] sm:$0xff]  ;;  %v4878_v4 = vld [vmem:[#allocation31 + $0x288] sm:$0xff] }
0x122f   :  { %15209 = vst [vmem:[#allocation161_spill] sm:$0xff] %v12530_v32  ;;  %v12583_v36 = vcombine.high %v4877_v20, %v4881_v30 }
0x1230   :  { %15210 = vst [vmem:[#allocation162_spill] sm:$0xff] %v12532_v45 }
0x1231   :  { %5145 = vmatpush1.bf16.msra.mxu1 %v9538_v3  ;;  %v12535_v3 = vcombine.high %v4846_v49, %v4850_v34  ;;  %15226 = vst [vmem:[#allocation78_spill] sm:$0xff] %v12583_v36  ;;  %v4882_v49 = vld [vmem:[#allocation31 + $0x2a8] sm:$0xff] }
0x1232   :  { %5146 = vmatprep.subr.bf16.mxu1 %v9543_v40  ;;  %v4853_v40 = vld [vmem:[#allocation31 + $0x1c0] sm:$0xff]  ;;  %v12585_v34 = vcombine.high %v4878_v4, %v4882_v49 }
0x1233   :  { %15211 = vst [vmem:[#allocation163_spill] sm:$0xff] %v12535_v3 }
0x1234   :  { %15227 = vst [vmem:[#allocation79_spill] sm:$0xff] %v12585_v34 }
0x1235   :  { %5147 = vmatpush1.bf16.msra.mxu1 %v9541_v48  ;;  %v4857_v48 = vld [vmem:[#allocation31 + $0x1e0] sm:$0xff] }
0x1236   :  { %5884 = vmatprep.subr.bf16.mxu1 %v12465_v29  ;;  %v12544_v25 = vcombine.high %v4853_v40, %v4857_v48  ;;  %v12550_v43 = vcombine.low %v4853_v40, %v4857_v48  ;;  %v12587_v40 = vcombine.low %v4877_v20, %v4881_v30  ;;  %v12589_v48 = vcombine.low %v4878_v4, %v4882_v49  ;;  %v4894_v20 = vld [vmem:[#allocation31 + $0x308] sm:$0xff] }
0x1237   :  { %v12607_v30 = vcombine.high %v4893_v9, %v4897_v18  ;;  %v4898_v4 = vld [vmem:[#allocation31 + $0x328] sm:$0xff] }
0x1238   :  { %5165 = vmatmul.mubr.bf16.vlgmr.msra.gmra.mrb[88].mxu1 %v4930_v53  ;;  %v4825_v53 = vld [vmem:[#allocation31 + $0xe0] sm:$0xff]  ;;  %15214 = vst [vmem:[#allocation166_spill] sm:$0xff] %v12544_v25  ;;  %15216 = vst [vmem:[#allocation168_spill] sm:$0xff] %v12550_v43  ;;  %v12609_v49 = vcombine.high %v4894_v20, %v4898_v4 }
0x1239   :  { %5885 = vmatpush1.bf16.msra.mxu1 %v12469_v60  ;;  %v12499_v19 = vcombine.high %v4821_v21, %v4825_v53  ;;  %v12503_v55 = vcombine.low %v4821_v21, %v4825_v53  ;;  %v12563_v21 = vcombine.low %v4861_v14, %v4865_v38  ;;  %v12565_v53 = vcombine.low %v4862_v0, %v4866_v24  ;;  %v4886_v14 = vld [vmem:[#allocation31 + $0x2c8] sm:$0xff] }
0x123a   :  { %5886 = vmatprep.subr.bf16.mxu1 %v12477_v47  ;;  %15228 = vst [vmem:[#allocation80_spill] sm:$0xff] %v12587_v40  ;;  %15229 = vst [vmem:[#allocation81_spill] sm:$0xff] %v12589_v48  ;;  %v12595_v38 = vcombine.high %v4885_v26, %v4889_v63  ;;  %v4890_v0 = vld [vmem:[#allocation31 + $0x2e8] sm:$0xff]  ;;  %v12611_v26 = vcombine.low %v4893_v9, %v4897_v18  ;;  %v12613_v63 = vcombine.low %v4894_v20, %v4898_v4  ;;  %v4909_v9 = vld [vmem:[#allocation31 + $0x380] sm:$0xff] }
0x123b   :  { %15198 = vst [vmem:[#allocation176_spill] sm:$0xff] %v12499_v19  ;;  %15200 = vst [vmem:[#allocation178_spill] sm:$0xff] %v12503_v55  ;;  %5849 = vmatprep.subr.bf16.mxu0 %v12499_v19  ;;  %v12597_v24 = vcombine.high %v4886_v14, %v4890_v0  ;;  %v12601_v7 = vcombine.low %v4886_v14, %v4890_v0  ;;  %v4901_v14 = vld [vmem:[#allocation31 + $0x340] sm:$0xff]  ;;  %v12623_v20 = vcombine.high %v4902_v1, %v4906_v59 }
0x123c   :  { %5850 = vmatpush1.bf16.msra.mxu0 %v12503_v55  ;;  %15220 = vst [vmem:[#allocation179_spill] sm:$0xff] %v12563_v21  ;;  %15221 = vst [vmem:[#allocation73_spill] sm:$0xff] %v12565_v53  ;;  %v4905_v0 = vld [vmem:[#allocation31 + $0x360] sm:$0xff]  ;;  %v12625_v4 = vcombine.low %v4902_v1, %v4906_v59  ;;  %v4928_v59 = vld [vmem:[%s15185_s16 + $0x1] sm:$0x1] }
0x123d   :  { %5887 = vmatpush1.bf16.msra.mxu1 %v12481_v37  ;;  %5851 = vmatprep.subr.bf16.mxu0 %v12511_v10  ;;  %15230 = vst [vmem:[#allocation82_spill] sm:$0xff] %v12595_v38  ;;  %15231 = vst [vmem:[#allocation83_spill] sm:$0xff] %v12597_v24  ;;  %v12619_v6 = vcombine.high %v4901_v14, %v4905_v0  ;;  %v4913_v18 = vld [vmem:[#allocation31 + $0x3a0] sm:$0xff] }
0x123e   :  { %5888 = vmatprep.subr.bf16.mxu1 %v12489_v42  ;;  %15233 = vst [vmem:[#allocation85_spill] sm:$0xff] %v12601_v7  ;;  %15234 = vst [vmem:[#allocation86_spill] sm:$0xff] %v12607_v30 }
0x123f   :  { %15235 = vst [vmem:[#allocation87_spill] sm:$0xff] %v12609_v49  ;;  %15236 = vst [vmem:[#allocation88_spill] sm:$0xff] %v12611_v26 }
0x1240   :  { %5852 = vmatpush1.bf16.msra.mxu0 %v12515_v11  ;;  %15237 = vst [vmem:[#allocation89_spill] sm:$0xff] %v12613_v63  ;;  %15238 = vst [vmem:[#allocation90_spill] sm:$0xff] %v12619_v6 }
0x1241   :  { %5889 = vmatpush1.bf16.msra.mxu1 %v12493_v23  ;;  %5853 = vmatprep.subr.bf16.mxu0 %v12520_v13  ;;  %15240 = vst [vmem:[#allocation92_spill] sm:$0xff] %v12623_v20  ;;  %15241 = vst [vmem:[#allocation93_spill] sm:$0xff] %v12625_v4 }
0x1242   :  { %5890 = vmatprep.subr.bf16.mxu1 %v12501_v54 }
0x1244   :  { %5854 = vmatpush1.bf16.msra.mxu0 %v12526_v8 }
0x1245   :  { %5891 = vmatpush1.bf16.msra.mxu1 %v12505_v52  ;;  %5855 = vmatprep.subr.bf16.mxu0 %v12532_v45 }
0x1246   :  { %5892 = vmatprep.subr.bf16.mxu1 %v12513_v27 }
0x1248   :  { %5856 = vmatpush1.bf16.msra.mxu0 %v12538_v46 }
0x1249   :  { %5893 = vmatpush1.bf16.msra.mxu1 %v12517_v2  ;;  %5857 = vmatprep.subr.bf16.mxu0 %v12544_v25 }
0x124a   :  { %5894 = vmatprep.subr.bf16.mxu1 %v12524_v28 }
0x124c   :  { %5858 = vmatpush1.bf16.msra.mxu0 %v12550_v43 }
0x124d   :  { %5895 = vmatpush1.bf16.msra.mxu1 %v12530_v32  ;;  %5859 = vmatprep.subr.bf16.mxu0 %v12559_v61 }
0x124e   :  { %5896 = vmatprep.subr.bf16.mxu1 %v12535_v3 }
0x1250   :  { %5860 = vmatpush1.bf16.msra.mxu0 %v12563_v21 }
0x1251   :  { %5897 = vmatpush1.bf16.msra.mxu1 %v12542_v35  ;;  %5861 = vmatprep.subr.bf16.mxu0 %v12571_v58 }
0x1252   :  { %5898 = vmatprep.subr.bf16.mxu1 %v12547_v57 }
0x1254   :  { %5862 = vmatpush1.bf16.msra.mxu0 %v12575_v16 }
0x1255   :  { %5899 = vmatpush1.bf16.msra.mxu1 %v12554_v56  ;;  %5863 = vmatprep.subr.bf16.mxu0 %v12583_v36 }
0x1256   :  { %5900 = vmatprep.subr.bf16.mxu1 %v12561_v31 }
0x1258   :  { %5864 = vmatpush1.bf16.msra.mxu0 %v12587_v40 }
0x1259   :  { %5901 = vmatpush1.bf16.msra.mxu1 %v12565_v53  ;;  %5865 = vmatprep.subr.bf16.mxu0 %v12595_v38  ;;  %v4918_v38 = vld [vmem:[#allocation31 + $0x3c8] sm:$0xff] }
0x125a   :  { %5902 = vmatprep.subr.bf16.mxu1 %v12573_v17 }
0x125c   :  { %5866 = vmatpush1.bf16.msra.mxu0 %v12599_v62  ;;  %v4917_v62 = vld [vmem:[#allocation31 + $0x3c0] sm:$0xff] }
0x125d   :  { %5903 = vmatpush1.bf16.msra.mxu1 %v12577_v33  ;;  %5867 = vmatprep.subr.bf16.mxu0 %v12607_v30  ;;  %v4914_v30 = vld [vmem:[#allocation31 + $0x3a8] sm:$0xff] }
0x125e   :  { %5904 = vmatprep.subr.bf16.mxu1 %v12585_v34  ;;  %v4803_v34 = vld [vmem:[#allocation31 + $0x30] sm:$0xff] }
0x1260   :  { %5868 = vmatpush1.bf16.msra.mxu0 %v12611_v26  ;;  %v4910_v26 = vld [vmem:[#allocation31 + $0x388] sm:$0xff] }
0x1261   :  { %5905 = vmatpush1.bf16.msra.mxu1 %v12589_v48  ;;  %5869 = vmatprep.subr.bf16.mxu0 %v12619_v6  ;;  %v12639_v1 = vcombine.low %v4910_v26, %v4914_v30  ;;  %v12643_v6 = vpack.c.bf16 %v4928_v59, %v4928_v59 }
0x1262   :  { %5906 = vmatprep.subr.bf16.mxu1 %v12597_v24  ;;  %v4921_v24 = vld [vmem:[#allocation31 + $0x3e0] sm:$0xff] }
0x1263   :  { %15245 = vst [vmem:[#allocation97_spill] sm:$0xff] %v12639_v1  ;;  %v12641_v48 = vcombine.high %v4917_v62, %v4921_v24  ;;  %5875 = vmatprep.mubr.bf16.mxu0 %v12643_v6  ;;  %5916 = vmatprep.mubr.bf16.mxu1 %v12643_v6 }
0x1265   :  { %5907 = vmatpush1.bf16.msra.mxu1 %v12601_v7  ;;  %v12621_v7 = vcombine.low %v4901_v14, %v4905_v0  ;;  %v4922_v14 = vld [vmem:[#allocation31 + $0x3e8] sm:$0xff]  ;;  %v12634_v0 = vcombine.low %v4909_v9, %v4913_v18  ;;  %15246 = vst [vmem:[#allocation98_spill] sm:$0xff] %v12641_v48 }
0x1266   :  { %5908 = vmatprep.subr.bf16.mxu1 %v12609_v49  ;;  %v12627_v49 = vcombine.high %v4909_v9, %v4913_v18  ;;  %v12646_v40 = vcombine.high %v4918_v38, %v4922_v14  ;;  %v4800_v9 = vld [vmem:[#allocation31 + $0x18] sm:$0xff] }
0x1267   :  { %15239 = vst [vmem:[#allocation91_spill] sm:$0xff] %v12621_v7  ;;  %5870 = vmatpush1.bf16.msra.mxu0 %v12621_v7  ;;  %15244 = vst [vmem:[#allocation96_spill] sm:$0xff] %v12634_v0  ;;  %v4804_v18 = vld [vmem:[#allocation31 + $0x38] sm:$0xff] }
0x1268   :  { %15242 = vst [vmem:[#allocation94_spill] sm:$0xff] %v12627_v49  ;;  %5871 = vmatprep.subr.bf16.mxu0 %v12627_v49  ;;  %15247 = vst [vmem:[#allocation99_spill] sm:$0xff] %v12646_v40  ;;  %v15253_v49 = vld [vmem:[#allocation140_spill] sm:$0xff] }
0x1269   :  { %5909 = vmatpush1.bf16.msra.mxu1 %v12613_v63  ;;  %v12630_v63 = vcombine.high %v4910_v26, %v4914_v30  ;;  %v12651_v30 = vcombine.low %v4917_v62, %v4921_v24  ;;  %v12655_v26 = vcombine.low %v4918_v38, %v4922_v14  ;;  %v12668_v62 = vcombine.low %v4800_v9, %v4804_v18 }
0x126a   :  { %5910 = vmatprep.subr.bf16.mxu1 %v12623_v20  ;;  %v4799_v20 = vld [vmem:[#allocation31 + $0x10] sm:$0xff] }
0x126b   :  { %15243 = vst [vmem:[#allocation95_spill] sm:$0xff] %v12630_v63  ;;  %5872 = vmatpush1.bf16.msra.mxu0 %v12634_v0  ;;  %15248 = vst [vmem:[#allocation100_spill] sm:$0xff] %v12651_v30  ;;  %v12657_v59 = vcombine.high %v4799_v20, %v4803_v34  ;;  %v12666_v24 = vcombine.low %v4799_v20, %v4803_v34  ;;  %v4514_v0 = vld [vmem:[#allocation28] sm:$0xf] }
0x126c   :  { %5873 = vmatprep.subr.bf16.mxu0 %v12641_v48  ;;  %15249 = vst [vmem:[#allocation101_spill] sm:$0xff] %v12655_v26  ;;  %15252 = vst [vmem:[#allocation104_spill] sm:$0xff] %v12668_v62 }
0x126d   :  { %5911 = vmatpush1.bf16.msra.mxu1 %v12625_v4  ;;  %15250 = vst [vmem:[#allocation102_spill] sm:$0xff] %v12657_v59  ;;  %v15254_v4 = vsub.s32 1, %v15253_v49 }
0x126e   :  { %5912 = vmatprep.subr.bf16.mxu1 %v12630_v63  ;;  %v12660_v63 = vcombine.high %v4800_v9, %v4804_v18  ;;  %v15256_v18 = vsub.s32 2, %v15253_v49 }
0x126f   :  { %5874 = vmatpush1.bf16.msra.mxu0 %v12651_v30  ;;  %v4523_v7 = vrot.slane %v4514_v0, %v15254_v4 }
0x1270   :  { %15251 = vst [vmem:[#allocation103_spill] sm:$0xff] %v12660_v63  ;;  %5925 = vmatprep.subr.bf16.mxu0 %v12657_v59 }
0x1271   :  { %5913 = vmatpush1.bf16.msra.mxu1 %v12639_v1 }
0x1272   :  { %5914 = vmatprep.subr.bf16.mxu1 %v12646_v40 }
0x1275   :  { %5915 = vmatpush1.bf16.msra.mxu1 %v12655_v26  ;;  %v4519_v26 = vrot.slane %v4514_v0, %v14682_v39  ;;  %v4527_v39 = vrot.slane %v4514_v0, %v15256_v18 }
0x1276   :  { %5966 = vmatprep.subr.bf16.mxu1 %v12660_v63 }
0x12db   :  { %v4653_v38 = vpop.f32.mrb[80].mxu1 }
0x12dc   :  { %v4655_v14 = vpop.f32.mrb[81].mxu1  ;;  %v12675_v34 = vadd.f32 %v4653_v38, %v4519_v26 }
0x12dd   :  { %v4657_v48 = vpop.f32.mrb[82].mxu1  ;;  %v12673_v33 = vadd.f32 %v4655_v14, %v4523_v7  ;;  %v15257_v7 = vsub.s32 3, %v15253_v49 }
0x12de   :  { %v4658_v1 = vpop.f32.mrb[83].mxu1  ;;  %v5173_v48 = vadd.f32 %v12459_v41, %v12675_v34 }
0x12df   :  { %15255 = vst [vmem:[#allocation105_spill] sm:$0xff] %v12673_v33  ;;  %v5174_v20 = vadd.f32 %v12461_v15, %v12673_v33 }
0x12e0   :  { %v8879_v9 = vmul.f32 -1.442695, %v5173_v48 }
0x12e1   :  { %v8880_v1 = vmul.f32 -1.442695, %v5174_v20 }
0x12e3   :  { %9848 = vpow2.f32 %v8880_v1 }
0x12e4   :  { %9850 = vpow2.f32 %v8879_v9 }
0x12eb   :  { %v4694_v40 = vpop.f32.mrb[84].mxu1 }
0x12ec   :  { %v4696_v30 = vpop.f32.mrb[85].mxu1  ;;  %v12685_v14 = vadd.f32 %v4694_v40, %v4527_v39 }
0x12ed   :  { %v4698_v36 = vpop.f32.mrb[86].mxu1  ;;  %v9849_v4 = vpop.eup %9848 }
0x12ee   :  { %v4699_v59 = vpop.f32.mrb[87].mxu1  ;;  %v9851_v36 = vpop.eup %9850  ;;  %v5187_v26 = vadd.f32 1.0, %v9849_v4  ;;  %15259 = vst [vmem:[#allocation106_spill] sm:$0xff] %v12685_v14 }
0x12ef   :  { %v4531_v59 = vrot.slane %v4514_v0, %v15257_v7  ;;  %v5186_v38 = vadd.f32 1.0, %v9851_v36  ;;  %v4927_v0 = vld [vmem:[%s15258_s18] sm:$0x1] }
0x12f0   :  { %9852 = vrcp.f32 %v5187_v26 }
0x12f1   :  { %v12687_v15 = vadd.f32 %v4696_v30, %v4531_v59  ;;  %9854 = vrcp.f32 %v5186_v38 }
0x12f3   :  { %15260 = vst [vmem:[#allocation107_spill] sm:$0xff] %v12687_v15 }
0x12fa   :  { %v9853_v49 = vpop.eup %9852 }
0x12fb   :  { %v9855_v4 = vpop.eup %9854  ;;  %v5196_v30 = vmul.f32 %v9853_v49, %v4927_v0  ;;  %v4815_v49 = vld [vmem:[#allocation31 + $0x90] sm:$0xff] }
0x12fc   :  { %v4819_v0 = vld [vmem:[#allocation31 + $0xb0] sm:$0xff] }
0x130b   :  { %v5166_v41 = vpop.f32.mrb[88].mxu1 }
0x130c   :  { %v5175_v20 = vadd.f32 %v5166_v41, %v12685_v14  ;;  %v5168_v48 = vpop.f32.mrb[89].mxu1  ;;  %v4807_v41 = vld [vmem:[#allocation31 + $0x50] sm:$0xff] }
0x130d   :  { %v5176_v1 = vadd.f32 %v5168_v48, %v12687_v15  ;;  %v5170_v9 = vpop.f32.mrb[90].mxu1  ;;  %v4812_v48 = vld [vmem:[#allocation31 + $0x78] sm:$0xff] }
0x130e   :  { %v8881_v18 = vmul.f32 -1.442695, %v5175_v20  ;;  %v5171_v33 = vpop.f32.mrb[91].mxu1  ;;  %v4811_v20 = vld [vmem:[#allocation31 + $0x70] sm:$0xff] }
0x130f   :  { %9856 = vtanh.f32 %v5176_v1  ;;  %v4808_v33 = vld [vmem:[#allocation31 + $0x58] sm:$0xff] }
0x1310   :  { %9858 = vpow2.f32 %v8881_v18  ;;  %v12697_v18 = vcombine.high %v4807_v41, %v4811_v20  ;;  %v12699_v15 = vcombine.high %v4808_v33, %v4812_v48 }
0x1312   :  { %15262 = vst [vmem:[#allocation109_spill] sm:$0xff] %v12697_v18  ;;  %15263 = vst [vmem:[#allocation110_spill] sm:$0xff] %v12699_v15 }
0x1319   :  { %v9857_v39 = vpop.eup %9856 }
0x131a   :  { %v9859_v40 = vpop.eup %9858  ;;  %v5197_v36 = vmul.f32 %v9857_v39, %v9855_v4  ;;  %v4816_v4 = vld [vmem:[#allocation31 + $0x98] sm:$0xff] }
0x131b   :  { %v5188_v7 = vadd.f32 1.0, %v9859_v40  ;;  %v4820_v39 = vld [vmem:[#allocation31 + $0xb8] sm:$0xff]  ;;  %v12705_v40 = vcombine.low %v4807_v41, %v4811_v20  ;;  %v12719_v41 = vcombine.low %v4815_v49, %v4819_v0 }
0x131c   :  { %v12692_v59 = vadd.f32 %v5197_v36, %v5196_v30  ;;  %v12707_v30 = vcombine.low %v4808_v33, %v4812_v48  ;;  %v12711_v36 = vcombine.high %v4815_v49, %v4819_v0  ;;  %v12721_v20 = vcombine.low %v4816_v4, %v4820_v39 }
0x131d   :  { %9860 = vrcp.f32 %v5188_v7  ;;  %15264 = vst [vmem:[#allocation111_spill] sm:$0xff] %v12705_v40  ;;  %v12713_v7 = vcombine.high %v4816_v4, %v4820_v39  ;;  %15268 = vst [vmem:[#allocation115_spill] sm:$0xff] %v12719_v41 }
0x131e   :  { %15261 = vst [vmem:[#allocation108_spill] sm:$0xff] %v12692_v59  ;;  %9862 = vtanh.f32 %v12692_v59  ;;  %15265 = vst [vmem:[#allocation112_spill] sm:$0xff] %v12707_v30  ;;  %v4828_v59 = vld [vmem:[#allocation31 + $0xf8] sm:$0xff] }
0x131f   :  { %15266 = vst [vmem:[#allocation113_spill] sm:$0xff] %v12711_v36  ;;  %15267 = vst [vmem:[#allocation114_spill] sm:$0xff] %v12713_v7 }
0x1320   :  { %15269 = vst [vmem:[#allocation116_spill] sm:$0xff] %v12721_v20 }
0x1327   :  { %v9861_v26 = vpop.eup %9860 }
0x1328   :  { %v9863_v38 = vpop.eup %9862 }
0x1329   :  { %v5200_v1 = vmul.f32 %v9863_v38, %v9861_v26  ;;  %v4823_v26 = vld [vmem:[#allocation31 + $0xd0] sm:$0xff] }
0x132a   :  { %v4827_v38 = vld [vmem:[#allocation31 + $0xf0] sm:$0xff] }
0x132b   :  { %v12695_v9 = vpack.c.bf16 %v5200_v1, %v5200_v1  ;;  %v4824_v1 = vld [vmem:[#allocation31 + $0xd8] sm:$0xff]  ;;  %v12725_v33 = vcombine.high %v4823_v26, %v4827_v38  ;;  %v12731_v49 = vcombine.low %v4823_v26, %v4827_v38 }
0x132c   :  { %v12727_v48 = vcombine.high %v4824_v1, %v4828_v59  ;;  %v12733_v0 = vcombine.low %v4824_v1, %v4828_v59 }
0x132d   :  { %5876 = vmatmul.mubr.bf16.vlgmr.msra.gmra.mrb[76].mxu0 %v12695_v9  ;;  %5917 = vmatmul.mubr.bf16.vlgmr.msra.gmra.mrb[92].mxu1 %v12695_v9  ;;  %15270 = vst [vmem:[#allocation117_spill] sm:$0xff] %v12725_v33  ;;  %15272 = vst [vmem:[#allocation119_spill] sm:$0xff] %v12731_v49 }
0x132e   :  { %5926 = vmatpush1.bf16.msra.mxu0 %v12666_v24  ;;  %5967 = vmatpush1.bf16.msra.mxu1 %v12668_v62  ;;  %15271 = vst [vmem:[#allocation118_spill] sm:$0xff] %v12727_v48  ;;  %v4832_v62 = vld [vmem:[#allocation31 + $0x118] sm:$0xff]  ;;  %15273 = vst [vmem:[#allocation120_spill] sm:$0xff] %v12733_v0 }
0x132f   :  { %5927 = vmatprep.subr.bf16.mxu0 %v12697_v18  ;;  %5968 = vmatprep.subr.bf16.mxu1 %v12699_v15  ;;  %v4831_v15 = vld [vmem:[#allocation31 + $0x110] sm:$0xff] }
0x1330   :  { %5957 = vmatprep.mubr.bf16.mxu0 %v12643_v6  ;;  %5998 = vmatprep.mubr.bf16.mxu1 %v12643_v6  ;;  %v4835_v18 = vld [vmem:[#allocation31 + $0x130] sm:$0xff]  ;;  %v4836_v6 = vld [vmem:[#allocation31 + $0x138] sm:$0xff] }
0x1331   :  { %v12737_v4 = vcombine.high %v4831_v15, %v4835_v18  ;;  %v12739_v39 = vcombine.high %v4832_v62, %v4836_v6  ;;  %v12743_v26 = vcombine.low %v4831_v15, %v4835_v18  ;;  %v12745_v59 = vcombine.low %v4832_v62, %v4836_v6 }
0x1332   :  { %5928 = vmatpush1.bf16.msra.mxu0 %v12705_v40  ;;  %5969 = vmatpush1.bf16.msra.mxu1 %v12707_v30  ;;  %v4840_v30 = vld [vmem:[#allocation31 + $0x158] sm:$0xff] }
0x1333   :  { %5929 = vmatprep.subr.bf16.mxu0 %v12711_v36  ;;  %5970 = vmatprep.subr.bf16.mxu1 %v12713_v7  ;;  %15274 = vst [vmem:[#allocation121_spill] sm:$0xff] %v12737_v4  ;;  %15275 = vst [vmem:[#allocation122_spill] sm:$0xff] %v12739_v39  ;;  %v4839_v7 = vld [vmem:[#allocation31 + $0x150] sm:$0xff]  ;;  %v4844_v40 = vld [vmem:[#allocation31 + $0x178] sm:$0xff] }
0x1334   :  { %v4843_v36 = vld [vmem:[#allocation31 + $0x170] sm:$0xff]  ;;  %15276 = vst [vmem:[#allocation123_spill] sm:$0xff] %v12743_v26  ;;  %15277 = vst [vmem:[#allocation124_spill] sm:$0xff] %v12745_v59  ;;  %v12751_v1 = vcombine.high %v4840_v30, %v4844_v40  ;;  %v12757_v62 = vcombine.low %v4840_v30, %v4844_v40 }
0x1335   :  { %v12749_v38 = vcombine.high %v4839_v7, %v4843_v36  ;;  %v12755_v15 = vcombine.low %v4839_v7, %v4843_v36 }
0x1336   :  { %5930 = vmatpush1.bf16.msra.mxu0 %v12719_v41  ;;  %5971 = vmatpush1.bf16.msra.mxu1 %v12721_v20  ;;  %15279 = vst [vmem:[#allocation127_spill] sm:$0xff] %v12751_v1  ;;  %v4848_v20 = vld [vmem:[#allocation31 + $0x198] sm:$0xff]  ;;  %15281 = vst [vmem:[#allocation128_spill] sm:$0xff] %v12757_v62 }
0x1337   :  { %5931 = vmatprep.subr.bf16.mxu0 %v12725_v33  ;;  %5972 = vmatprep.subr.bf16.mxu1 %v12727_v48  ;;  %15278 = vst [vmem:[#allocation125_spill] sm:$0xff] %v12749_v38  ;;  %v4847_v48 = vld [vmem:[#allocation31 + $0x190] sm:$0xff]  ;;  %v4852_v41 = vld [vmem:[#allocation31 + $0x1b8] sm:$0xff]  ;;  %15280 = vst [vmem:[#allocation126_spill] sm:$0xff] %v12755_v15 }
0x1338   :  { %v4851_v33 = vld [vmem:[#allocation31 + $0x1b0] sm:$0xff]  ;;  %v12763_v6 = vcombine.high %v4848_v20, %v4852_v41  ;;  %v12769_v40 = vcombine.low %v4848_v20, %v4852_v41 }
0x1339   :  { %v12761_v18 = vcombine.high %v4847_v48, %v4851_v33  ;;  %v12767_v36 = vcombine.low %v4847_v48, %v4851_v33 }
0x133a   :  { %5932 = vmatpush1.bf16.msra.mxu0 %v12731_v49  ;;  %5973 = vmatpush1.bf16.msra.mxu1 %v12733_v0  ;;  %15283 = vst [vmem:[#allocation130_spill] sm:$0xff] %v12763_v6  ;;  %v4856_v0 = vld [vmem:[#allocation31 + $0x1d8] sm:$0xff]  ;;  %15285 = vst [vmem:[#allocation132_spill] sm:$0xff] %v12769_v40 }
0x133b   :  { %5933 = vmatprep.subr.bf16.mxu0 %v12737_v4  ;;  %5974 = vmatprep.subr.bf16.mxu1 %v12739_v39  ;;  %15282 = vst [vmem:[#allocation129_spill] sm:$0xff] %v12761_v18  ;;  %v4855_v39 = vld [vmem:[#allocation31 + $0x1d0] sm:$0xff]  ;;  %v4860_v49 = vld [vmem:[#allocation31 + $0x1f8] sm:$0xff]  ;;  %15284 = vst [vmem:[#allocation131_spill] sm:$0xff] %v12767_v36 }
0x133c   :  { %v4859_v4 = vld [vmem:[#allocation31 + $0x1f0] sm:$0xff]  ;;  %v12775_v7 = vcombine.high %v4856_v0, %v4860_v49  ;;  %v12781_v41 = vcombine.low %v4856_v0, %v4860_v49 }
0x133d   :  { %v12773_v30 = vcombine.high %v4855_v39, %v4859_v4  ;;  %v12779_v33 = vcombine.low %v4855_v39, %v4859_v4 }
0x133e   :  { %5934 = vmatpush1.bf16.msra.mxu0 %v12743_v26  ;;  %5975 = vmatpush1.bf16.msra.mxu1 %v12745_v59  ;;  %15287 = vst [vmem:[#allocation134_spill] sm:$0xff] %v12775_v7  ;;  %v4864_v59 = vld [vmem:[#allocation31 + $0x218] sm:$0xff]  ;;  %15289 = vst [vmem:[#allocation136_spill] sm:$0xff] %v12781_v41 }
0x133f   :  { %5935 = vmatprep.subr.bf16.mxu0 %v12749_v38  ;;  %5976 = vmatprep.subr.bf16.mxu1 %v12751_v1  ;;  %15286 = vst [vmem:[#allocation133_spill] sm:$0xff] %v12773_v30  ;;  %v4863_v1 = vld [vmem:[#allocation31 + $0x210] sm:$0xff]  ;;  %v4868_v26 = vld [vmem:[#allocation31 + $0x238] sm:$0xff]  ;;  %15288 = vst [vmem:[#allocation135_spill] sm:$0xff] %v12779_v33 }
0x1340   :  { %v4867_v38 = vld [vmem:[#allocation31 + $0x230] sm:$0xff]  ;;  %v12787_v48 = vcombine.high %v4864_v59, %v4868_v26  ;;  %v12793_v49 = vcombine.low %v4864_v59, %v4868_v26 }
0x1341   :  { %v12785_v20 = vcombine.high %v4863_v1, %v4867_v38  ;;  %v12791_v4 = vcombine.low %v4863_v1, %v4867_v38 }
0x1342   :  { %5936 = vmatpush1.bf16.msra.mxu0 %v12755_v15  ;;  %5977 = vmatpush1.bf16.msra.mxu1 %v12757_v62  ;;  %15291 = vst [vmem:[#allocation138_spill] sm:$0xff] %v12787_v48  ;;  %v4872_v62 = vld [vmem:[#allocation31 + $0x258] sm:$0xff]  ;;  %15293 = vst [vmem:[#allocation180_spill] sm:$0xff] %v12793_v49 }
0x1343   :  { %5937 = vmatprep.subr.bf16.mxu0 %v12761_v18  ;;  %5978 = vmatprep.subr.bf16.mxu1 %v12763_v6  ;;  %15290 = vst [vmem:[#allocation137_spill] sm:$0xff] %v12785_v20  ;;  %v4871_v6 = vld [vmem:[#allocation31 + $0x250] sm:$0xff]  ;;  %v4876_v15 = vld [vmem:[#allocation31 + $0x278] sm:$0xff]  ;;  %15292 = vst [vmem:[#allocation146_spill] sm:$0xff] %v12791_v4 }
0x1344   :  { %v4875_v18 = vld [vmem:[#allocation31 + $0x270] sm:$0xff]  ;;  %v12799_v39 = vcombine.high %v4872_v62, %v4876_v15  ;;  %v12805_v26 = vcombine.low %v4872_v62, %v4876_v15 }
0x1345   :  { %v12797_v0 = vcombine.high %v4871_v6, %v4875_v18  ;;  %v12803_v38 = vcombine.low %v4871_v6, %v4875_v18 }
0x1346   :  { %5938 = vmatpush1.bf16.msra.mxu0 %v12767_v36  ;;  %5979 = vmatpush1.bf16.msra.mxu1 %v12769_v40  ;;  %15295 = vst [vmem:[#allocation182_spill] sm:$0xff] %v12799_v39  ;;  %v4880_v40 = vld [vmem:[#allocation31 + $0x298] sm:$0xff]  ;;  %15297 = vst [vmem:[#allocation184_spill] sm:$0xff] %v12805_v26 }
0x1347   :  { %5939 = vmatprep.subr.bf16.mxu0 %v12773_v30  ;;  %5980 = vmatprep.subr.bf16.mxu1 %v12775_v7  ;;  %15294 = vst [vmem:[#allocation181_spill] sm:$0xff] %v12797_v0  ;;  %v4879_v7 = vld [vmem:[#allocation31 + $0x290] sm:$0xff]  ;;  %v4884_v36 = vld [vmem:[#allocation31 + $0x2b8] sm:$0xff]  ;;  %15296 = vst [vmem:[#allocation183_spill] sm:$0xff] %v12803_v38 }
0x1348   :  { %v4883_v30 = vld [vmem:[#allocation31 + $0x2b0] sm:$0xff]  ;;  %v12811_v1 = vcombine.high %v4880_v40, %v4884_v36  ;;  %v12817_v15 = vcombine.low %v4880_v40, %v4884_v36 }
0x1349   :  { %v12809_v59 = vcombine.high %v4879_v7, %v4883_v30  ;;  %v12815_v18 = vcombine.low %v4879_v7, %v4883_v30 }
0x134a   :  { %5940 = vmatpush1.bf16.msra.mxu0 %v12779_v33  ;;  %5981 = vmatpush1.bf16.msra.mxu1 %v12781_v41  ;;  %15299 = vst [vmem:[#allocation186_spill] sm:$0xff] %v12811_v1  ;;  %v4888_v41 = vld [vmem:[#allocation31 + $0x2d8] sm:$0xff]  ;;  %15301 = vst [vmem:[#allocation188_spill] sm:$0xff] %v12817_v15 }
0x134b   :  { %5941 = vmatprep.subr.bf16.mxu0 %v12785_v20  ;;  %5982 = vmatprep.subr.bf16.mxu1 %v12787_v48  ;;  %15298 = vst [vmem:[#allocation185_spill] sm:$0xff] %v12809_v59  ;;  %v4887_v48 = vld [vmem:[#allocation31 + $0x2d0] sm:$0xff]  ;;  %v4892_v33 = vld [vmem:[#allocation31 + $0x2f8] sm:$0xff]  ;;  %15300 = vst [vmem:[#allocation187_spill] sm:$0xff] %v12815_v18 }
0x134c   :  { %v4891_v20 = vld [vmem:[#allocation31 + $0x2f0] sm:$0xff]  ;;  %v12823_v6 = vcombine.high %v4888_v41, %v4892_v33  ;;  %v12829_v36 = vcombine.low %v4888_v41, %v4892_v33 }
0x134d   :  { %v12821_v62 = vcombine.high %v4887_v48, %v4891_v20  ;;  %v12827_v30 = vcombine.low %v4887_v48, %v4891_v20 }
0x134e   :  { %5942 = vmatpush1.bf16.msra.mxu0 %v12791_v4  ;;  %5983 = vmatpush1.bf16.msra.mxu1 %v12793_v49  ;;  %15303 = vst [vmem:[#allocation190_spill] sm:$0xff] %v12823_v6  ;;  %v4896_v49 = vld [vmem:[#allocation31 + $0x318] sm:$0xff]  ;;  %15305 = vst [vmem:[#allocation192_spill] sm:$0xff] %v12829_v36 }
0x134f   :  { %5943 = vmatprep.subr.bf16.mxu0 %v12797_v0  ;;  %5984 = vmatprep.subr.bf16.mxu1 %v12799_v39  ;;  %15302 = vst [vmem:[#allocation189_spill] sm:$0xff] %v12821_v62  ;;  %v4895_v39 = vld [vmem:[#allocation31 + $0x310] sm:$0xff]  ;;  %v4900_v4 = vld [vmem:[#allocation31 + $0x338] sm:$0xff]  ;;  %15304 = vst [vmem:[#allocation191_spill] sm:$0xff] %v12827_v30 }
0x1350   :  { %v4899_v0 = vld [vmem:[#allocation31 + $0x330] sm:$0xff]  ;;  %v12835_v7 = vcombine.high %v4896_v49, %v4900_v4  ;;  %v12841_v33 = vcombine.low %v4896_v49, %v4900_v4 }
0x1351   :  { %v12833_v40 = vcombine.high %v4895_v39, %v4899_v0  ;;  %v12839_v20 = vcombine.low %v4895_v39, %v4899_v0 }
0x1352   :  { %5944 = vmatpush1.bf16.msra.mxu0 %v12803_v38  ;;  %5985 = vmatpush1.bf16.msra.mxu1 %v12805_v26  ;;  %15307 = vst [vmem:[#allocation194_spill] sm:$0xff] %v12835_v7  ;;  %v4904_v26 = vld [vmem:[#allocation31 + $0x358] sm:$0xff]  ;;  %15309 = vst [vmem:[#allocation196_spill] sm:$0xff] %v12841_v33 }
0x1353   :  { %5945 = vmatprep.subr.bf16.mxu0 %v12809_v59  ;;  %5986 = vmatprep.subr.bf16.mxu1 %v12811_v1  ;;  %15306 = vst [vmem:[#allocation193_spill] sm:$0xff] %v12833_v40  ;;  %v4903_v1 = vld [vmem:[#allocation31 + $0x350] sm:$0xff]  ;;  %v4908_v38 = vld [vmem:[#allocation31 + $0x378] sm:$0xff]  ;;  %15308 = vst [vmem:[#allocation195_spill] sm:$0xff] %v12839_v20 }
0x1354   :  { %v4907_v59 = vld [vmem:[#allocation31 + $0x370] sm:$0xff]  ;;  %v12847_v48 = vcombine.high %v4904_v26, %v4908_v38  ;;  %v12853_v4 = vcombine.low %v4904_v26, %v4908_v38 }
0x1355   :  { %v12845_v41 = vcombine.high %v4903_v1, %v4907_v59  ;;  %v12851_v0 = vcombine.low %v4903_v1, %v4907_v59 }
0x1356   :  { %5946 = vmatpush1.bf16.msra.mxu0 %v12815_v18  ;;  %5987 = vmatpush1.bf16.msra.mxu1 %v12817_v15  ;;  %15311 = vst [vmem:[#allocation198_spill] sm:$0xff] %v12847_v48  ;;  %v4912_v15 = vld [vmem:[#allocation31 + $0x398] sm:$0xff]  ;;  %15313 = vst [vmem:[#allocation200_spill] sm:$0xff] %v12853_v4 }
0x1357   :  { %5947 = vmatprep.subr.bf16.mxu0 %v12821_v62  ;;  %5988 = vmatprep.subr.bf16.mxu1 %v12823_v6  ;;  %15310 = vst [vmem:[#allocation197_spill] sm:$0xff] %v12845_v41  ;;  %v4911_v6 = vld [vmem:[#allocation31 + $0x390] sm:$0xff]  ;;  %v4916_v18 = vld [vmem:[#allocation31 + $0x3b8] sm:$0xff]  ;;  %15312 = vst [vmem:[#allocation199_spill] sm:$0xff] %v12851_v0 }
0x1358   :  { %v4915_v62 = vld [vmem:[#allocation31 + $0x3b0] sm:$0xff]  ;;  %v12859_v39 = vcombine.high %v4912_v15, %v4916_v18  ;;  %v12865_v38 = vcombine.low %v4912_v15, %v4916_v18  ;;  %v15323_v18 = vld [vmem:[#allocation78_spill] sm:$0xff]  ;;  %v15324_v15 = vld [vmem:[#allocation79_spill] sm:$0xff] }
0x1359   :  { %v12857_v49 = vcombine.high %v4911_v6, %v4915_v62  ;;  %v12863_v59 = vcombine.low %v4911_v6, %v4915_v62  ;;  %v15325_v62 = vld [vmem:[#allocation80_spill] sm:$0xff]  ;;  %v15326_v6 = vld [vmem:[#allocation81_spill] sm:$0xff] }
0x135a   :  { %5948 = vmatpush1.bf16.msra.mxu0 %v12827_v30  ;;  %5989 = vmatpush1.bf16.msra.mxu1 %v12829_v36  ;;  %15315 = vst [vmem:[#allocation202_spill] sm:$0xff] %v12859_v39  ;;  %v4920_v36 = vld [vmem:[#allocation31 + $0x3d8] sm:$0xff]  ;;  %15317 = vst [vmem:[#allocation204_spill] sm:$0xff] %v12865_v38 }
0x135b   :  { %5949 = vmatprep.subr.bf16.mxu0 %v12833_v40  ;;  %5990 = vmatprep.subr.bf16.mxu1 %v12835_v7  ;;  %15314 = vst [vmem:[#allocation201_spill] sm:$0xff] %v12857_v49  ;;  %v4919_v7 = vld [vmem:[#allocation31 + $0x3d0] sm:$0xff]  ;;  %v4924_v30 = vld [vmem:[#allocation31 + $0x3f8] sm:$0xff]  ;;  %15316 = vst [vmem:[#allocation203_spill] sm:$0xff] %v12863_v59 }
0x135c   :  { %v4923_v40 = vld [vmem:[#allocation31 + $0x3f0] sm:$0xff]  ;;  %v12871_v1 = vcombine.high %v4920_v36, %v4924_v30 }
0x135d   :  { %v12869_v26 = vcombine.high %v4919_v7, %v4923_v40 }
0x135e   :  { %5950 = vmatpush1.bf16.msra.mxu0 %v12839_v20  ;;  %5991 = vmatpush1.bf16.msra.mxu1 %v12841_v33  ;;  %15319 = vst [vmem:[#allocation144_spill] sm:$0xff] %v12871_v1 }
0x135f   :  { %5951 = vmatprep.subr.bf16.mxu0 %v12845_v41  ;;  %5992 = vmatprep.subr.bf16.mxu1 %v12847_v48  ;;  %15318 = vst [vmem:[#allocation143_spill] sm:$0xff] %v12869_v26  ;;  %v12875_v48 = vcombine.low %v4919_v7, %v4923_v40  ;;  %v15329_v40 = vld [vmem:[#allocation84_spill] sm:$0xff]  ;;  %v15330_v7 = vld [vmem:[#allocation85_spill] sm:$0xff] }
0x1361   :  { %15320 = vst [vmem:[#allocation147_spill] sm:$0xff] %v12875_v48 }
0x1362   :  { %5952 = vmatpush1.bf16.msra.mxu0 %v12851_v0  ;;  %5993 = vmatpush1.bf16.msra.mxu1 %v12853_v4  ;;  %v12877_v0 = vcombine.low %v4920_v36, %v4924_v30  ;;  %v15327_v30 = vld [vmem:[#allocation82_spill] sm:$0xff]  ;;  %v15328_v36 = vld [vmem:[#allocation83_spill] sm:$0xff] }
0x1363   :  { %5953 = vmatprep.subr.bf16.mxu0 %v12857_v49  ;;  %5994 = vmatprep.subr.bf16.mxu1 %v12859_v39 }
0x1364   :  { %15321 = vst [vmem:[#allocation72_spill] sm:$0xff] %v12877_v0 }
0x1366   :  { %5954 = vmatpush1.bf16.msra.mxu0 %v12863_v59  ;;  %5995 = vmatpush1.bf16.msra.mxu1 %v12865_v38 }
0x1367   :  { %5955 = vmatprep.subr.bf16.mxu0 %v12869_v26  ;;  %5996 = vmatprep.subr.bf16.mxu1 %v12871_v1 }
0x136a   :  { %5956 = vmatpush1.bf16.msra.mxu0 %v12875_v48  ;;  %5997 = vmatpush1.bf16.msra.mxu1 %v12877_v0 }
0x136b   :  { %6116 = vmatprep.subr.bf16.mxu0 %v12463_v51  ;;  %6157 = vmatprep.subr.bf16.mxu1 %v12465_v29 }
0x136d   :  { %5958 = vmatmul.mubr.bf16.vlgmr.msra.gmra.mrb[80].mxu0 %v12695_v9  ;;  %5999 = vmatmul.mubr.bf16.vlgmr.msra.gmra.mrb[96].mxu1 %v12695_v9  ;;  %v15322_v9 = vld [vmem:[#allocation77_spill] sm:$0xff] }
0x136e   :  { %6117 = vmatpush1.bf16.msra.mxu0 %v12467_v12  ;;  %6158 = vmatpush1.bf16.msra.mxu1 %v12469_v60 }
0x136f   :  { %6118 = vmatprep.subr.bf16.mxu0 %v12475_v44  ;;  %6159 = vmatprep.subr.bf16.mxu1 %v12477_v47 }
0x1372   :  { %6119 = vmatpush1.bf16.msra.mxu0 %v12479_v5  ;;  %6160 = vmatpush1.bf16.msra.mxu1 %v12481_v37 }
0x1373   :  { %6120 = vmatprep.subr.bf16.mxu0 %v12487_v50  ;;  %6161 = vmatprep.subr.bf16.mxu1 %v12489_v42 }
0x1376   :  { %6121 = vmatpush1.bf16.msra.mxu0 %v12491_v22  ;;  %6162 = vmatpush1.bf16.msra.mxu1 %v12493_v23 }
0x1377   :  { %6122 = vmatprep.subr.bf16.mxu0 %v12499_v19  ;;  %6163 = vmatprep.subr.bf16.mxu1 %v12501_v54 }
0x137a   :  { %6123 = vmatpush1.bf16.msra.mxu0 %v12503_v55  ;;  %6164 = vmatpush1.bf16.msra.mxu1 %v12505_v52 }
0x137b   :  { %6124 = vmatprep.subr.bf16.mxu0 %v12511_v10  ;;  %6165 = vmatprep.subr.bf16.mxu1 %v12513_v27 }
0x137e   :  { %6125 = vmatpush1.bf16.msra.mxu0 %v12515_v11  ;;  %6166 = vmatpush1.bf16.msra.mxu1 %v12517_v2 }
0x137f   :  { %6126 = vmatprep.subr.bf16.mxu0 %v12520_v13  ;;  %6167 = vmatprep.subr.bf16.mxu1 %v12524_v28 }
0x1382   :  { %6127 = vmatpush1.bf16.msra.mxu0 %v12526_v8  ;;  %6168 = vmatpush1.bf16.msra.mxu1 %v12530_v32 }
0x1383   :  { %6128 = vmatprep.subr.bf16.mxu0 %v12532_v45  ;;  %6169 = vmatprep.subr.bf16.mxu1 %v12535_v3 }
0x1386   :  { %6129 = vmatpush1.bf16.msra.mxu0 %v12538_v46  ;;  %6170 = vmatpush1.bf16.msra.mxu1 %v12542_v35 }
0x1387   :  { %6130 = vmatprep.subr.bf16.mxu0 %v12544_v25  ;;  %6171 = vmatprep.subr.bf16.mxu1 %v12547_v57 }
0x138a   :  { %6131 = vmatpush1.bf16.msra.mxu0 %v12550_v43  ;;  %6172 = vmatpush1.bf16.msra.mxu1 %v12554_v56 }
0x138b   :  { %6132 = vmatprep.subr.bf16.mxu0 %v12559_v61  ;;  %6173 = vmatprep.subr.bf16.mxu1 %v12561_v31  ;;  %v15348_v31 = vld [vmem:[#allocation105_spill] sm:$0xff] }
0x138e   :  { %6133 = vmatpush1.bf16.msra.mxu0 %v12563_v21  ;;  %6174 = vmatpush1.bf16.msra.mxu1 %v12565_v53 }
0x138f   :  { %6134 = vmatprep.subr.bf16.mxu0 %v12571_v58  ;;  %6175 = vmatprep.subr.bf16.mxu1 %v12573_v17  ;;  %v15331_v17 = vld [vmem:[#allocation86_spill] sm:$0xff] }
0x1392   :  { %6135 = vmatpush1.bf16.msra.mxu0 %v12575_v16  ;;  %6176 = vmatpush1.bf16.msra.mxu1 %v15322_v9  ;;  %v15332_v16 = vld [vmem:[#allocation87_spill] sm:$0xff]  ;;  %v15333_v9 = vld [vmem:[#allocation88_spill] sm:$0xff] }
0x1393   :  { %6136 = vmatprep.subr.bf16.mxu0 %v15323_v18  ;;  %6177 = vmatprep.subr.bf16.mxu1 %v15324_v15  ;;  %v15334_v18 = vld [vmem:[#allocation89_spill] sm:$0xff]  ;;  %v15335_v15 = vld [vmem:[#allocation90_spill] sm:$0xff] }
0x1396   :  { %6137 = vmatpush1.bf16.msra.mxu0 %v15325_v62  ;;  %6178 = vmatpush1.bf16.msra.mxu1 %v15326_v6  ;;  %v15336_v62 = vld [vmem:[#allocation92_spill] sm:$0xff]  ;;  %v15337_v6 = vld [vmem:[#allocation91_spill] sm:$0xff] }
0x1397   :  { %6138 = vmatprep.subr.bf16.mxu0 %v15327_v30  ;;  %6179 = vmatprep.subr.bf16.mxu1 %v15328_v36  ;;  %v15338_v30 = vld [vmem:[#allocation93_spill] sm:$0xff]  ;;  %v15339_v36 = vld [vmem:[#allocation94_spill] sm:$0xff] }
0x139a   :  { %6139 = vmatpush1.bf16.msra.mxu0 %v15329_v40  ;;  %6180 = vmatpush1.bf16.msra.mxu1 %v15330_v7  ;;  %v15340_v40 = vld [vmem:[#allocation95_spill] sm:$0xff]  ;;  %v15341_v7 = vld [vmem:[#allocation96_spill] sm:$0xff] }
0x139b   :  { %6140 = vmatprep.subr.bf16.mxu0 %v15331_v17  ;;  %6181 = vmatprep.subr.bf16.mxu1 %v15332_v16  ;;  %v15342_v17 = vld [vmem:[#allocation97_spill] sm:$0xff]  ;;  %v15343_v16 = vld [vmem:[#allocation98_spill] sm:$0xff] }
0x139e   :  { %6141 = vmatpush1.bf16.msra.mxu0 %v15333_v9  ;;  %6182 = vmatpush1.bf16.msra.mxu1 %v15334_v18  ;;  %v15344_v9 = vld [vmem:[#allocation99_spill] sm:$0xff]  ;;  %v15345_v18 = vld [vmem:[#allocation100_spill] sm:$0xff] }
0x139f   :  { %6142 = vmatprep.subr.bf16.mxu0 %v15335_v15  ;;  %6183 = vmatprep.subr.bf16.mxu1 %v15336_v62  ;;  %v15346_v15 = vld [vmem:[#allocation101_spill] sm:$0xff]  ;;  %v15347_v62 = vld [vmem:[#allocation102_spill] sm:$0xff] }
0x13a2   :  { %6143 = vmatpush1.bf16.msra.mxu0 %v15337_v6  ;;  %6184 = vmatpush1.bf16.msra.mxu1 %v15338_v30 }
0x13a3   :  { %6144 = vmatprep.subr.bf16.mxu0 %v15339_v36  ;;  %6185 = vmatprep.subr.bf16.mxu1 %v15340_v40 }
0x13a6   :  { %6145 = vmatpush1.bf16.msra.mxu0 %v15341_v7  ;;  %6186 = vmatpush1.bf16.msra.mxu1 %v15342_v17 }
0x13a7   :  { %6146 = vmatprep.subr.bf16.mxu0 %v15343_v16  ;;  %6187 = vmatprep.subr.bf16.mxu1 %v15344_v9 }
0x13aa   :  { %6147 = vmatpush1.bf16.msra.mxu0 %v15345_v18  ;;  %6188 = vmatpush1.bf16.msra.mxu1 %v15346_v15 }
0x13ab   :  { %6198 = vmatprep.subr.bf16.mxu0 %v15347_v62  ;;  %6239 = vmatprep.subr.bf16.mxu1 %v12660_v63 }
0x1400   :  { %v5877_v30 = vpop.f32.mrb[76].mxu0  ;;  %v5918_v36 = vpop.f32.mrb[92].mxu1 }
0x1401   :  { %v6011_v6 = vrot.slane %v5877_v30, 7  ;;  %v5879_v40 = vpop.f32.mrb[77].mxu0  ;;  %v5920_v58 = vpop.f32.mrb[93].mxu1  ;;  %v6013_v62 = vrot.slane %v5918_v36, 7  ;;  %v15349_v30 = vld [vmem:[#allocation107_spill] sm:$0xff] }
0x1402   :  { %v6012_v7 = vrot.slane %v5879_v40, 7  ;;  %v5881_v53 = vpop.f32.mrb[78].mxu0  ;;  %v5922_v17 = vpop.f32.mrb[94].mxu1  ;;  %v6014_v63 = vrot.slane %v5920_v58, 7 }
0x1403   :  { %v6019_v16 = vadd.f32 %v6011_v6, %v12675_v34  ;;  %v5882_v21 = vpop.f32.mrb[79].mxu0  ;;  %v5923_v9 = vpop.f32.mrb[95].mxu1  ;;  %v6021_v56 = vadd.f32 %v6013_v62, %v12685_v14 }
0x1404   :  { %v6020_v18 = vadd.f32 %v6012_v7, %v15348_v31  ;;  %v6022_v43 = vadd.f32 %v6014_v63, %v15349_v30 }
0x1405   :  { %v9010_v61 = vmul.f32 -1.442695, %v6019_v16  ;;  %v9012_v57 = vmul.f32 -1.442695, %v6021_v56 }
0x1406   :  { %v9011_v15 = vmul.f32 -1.442695, %v6020_v18 }
0x1407   :  { %9864 = vpow2.f32 %v9010_v61  ;;  %v15350_v61 = vld [vmem:[#allocation108_spill] sm:$0xff] }
0x1408   :  { %9866 = vpow2.f32 %v9011_v15  ;;  %v6073_v6 = vrot.slane %v15350_v61, 7 }
0x1409   :  { %9868 = vtanh.f32 %v6022_v43 }
0x140a   :  { %9870 = vpow2.f32 %v9012_v57 }
0x1411   :  { %v9865_v40 = vpop.eup %9864 }
0x1412   :  { %v6062_v53 = vadd.f32 1.0, %v9865_v40  ;;  %v9867_v17 = vpop.eup %9866 }
0x1413   :  { %v6063_v21 = vadd.f32 1.0, %v9867_v17  ;;  %v9869_v9 = vpop.eup %9868 }
0x1414   :  { %9872 = vrcp.f32 %v6062_v53  ;;  %v9871_v16 = vpop.eup %9870 }
0x1415   :  { %9874 = vrcp.f32 %v6063_v21  ;;  %v6064_v36 = vadd.f32 1.0, %v9871_v16 }
0x1417   :  { %9876 = vrcp.f32 %v6064_v36  ;;  %v12961_v36 = vld [vmem:[#allocation32] sm:$0xf] }
0x141e   :  { %v9873_v18 = vpop.eup %9872 }
0x141f   :  { %v6076_v15 = vmul.f32 %v9873_v18, %v9869_v9  ;;  %v9875_v58 = vpop.eup %9874  ;;  %v15351_v18 = vld [vmem:[#allocation205_spill] sm:$0xff] }
0x1420   :  { %v6075_v62 = vmul.f32 %v9875_v58, %v6073_v6 }
0x1421   :  { %v9877_v43 = vpop.eup %9876 }
0x1422   :  { %v12956_v7 = vadd.f32 %v6076_v15, %v6075_v62 }
0x1424   :  { %9878 = vtanh.f32 %v12956_v7 }
0x142e   :  { %v9879_v56 = vpop.eup %9878 }
0x142f   :  { %v6079_v57 = vmul.f32 %v9879_v56, %v9877_v43 }
0x1440   :  { %v5959_v63 = vpop.f32.mrb[80].mxu0  ;;  %v6000_v40 = vpop.f32.mrb[96].mxu1 }
0x1441   :  { %v5961_v53 = vpop.f32.mrb[81].mxu0  ;;  %v6002_v17 = vpop.f32.mrb[97].mxu1 }
0x1442   :  { %v6027_v21 = vcombine.low %v5959_v63, %v5961_v53  ;;  %v6028_v30 = vcombine.low %v6000_v40, %v6002_v17  ;;  %v5963_v14 = vpop.f32.mrb[82].mxu0  ;;  %v6004_v61 = vpop.f32.mrb[98].mxu1  ;;  %v4929_v17 = vld [vmem:[%s15258_s18 + $0x1] sm:$0x1] }
0x1443   :  { %v5964_v9 = vpop.f32.mrb[83].mxu0  ;;  %v6005_v16 = vpop.f32.mrb[99].mxu1 }
0x1444   :  { %v6035_v6 = vrot.slane %v6027_v21, %v15351_v18  ;;  %v6042_v15 = vrot.slane %v6028_v30, %v15351_v18 }
0x1446   :  { %v6043_v58 = vcombine.low %v6035_v6, %v6042_v15 }
0x1448   :  { %v6050_v62 = vrot.slane %v6043_v58, %v15351_v18 }
0x144a   :  { %v6052_v43 = vadd.f32 %v6050_v62, %v12961_v36  ;;  %v15353_v62 = vld [vmem:[#allocation141_spill] sm:$0xff] }
0x144c   :  { %v9013_v56 = vmul.f32 -1.442695, %v6052_v43  ;;  %v6087_v14 = vrot.slane %v6052_v43, 3  ;;  %v6106_v43 = vpack.c.bf16 %v6079_v57, %v6079_v57  ;;  %v15357_v57 = vld [vmem:[#allocation111_spill] sm:$0xff] }
0x144e   :  { %9880 = vpow2.f32 %v9013_v56 }
0x1458   :  { %v9881_v63 = vpop.eup %9880 }
0x1459   :  { %v6083_v40 = vadd.f32 1.0, %v9881_v63 }
0x145b   :  { %9882 = vrcp.f32 %v6083_v40 }
0x145c   :  { %9884 = vtanh.f32 %v6087_v14  ;;  %v12973_v14 = vshrl.u32 %v6106_v43, 16  ;;  %v15364_v43 = vld [vmem:[#allocation118_spill] sm:$0xff] }
0x1465   :  { %v9883_v53 = vpop.eup %9882 }
0x1466   :  { %v6091_v61 = vrot.slane %v9883_v53, 1  ;;  %v9885_v21 = vpop.eup %9884  ;;  %v6097_v6 = vrot.slane %v9883_v53, 2 }
0x1467   :  { %v6094_v9 = vmul.f32 %v9885_v21, %v9883_v53  ;;  %v15354_v53 = vld [vmem:[#allocation104_spill] sm:$0xff] }
0x1468   :  { %v6093_v30 = vmul.f32 %v6091_v61, %v4929_v17  ;;  %v15355_v17 = vld [vmem:[#allocation109_spill] sm:$0xff]  ;;  %v15356_v61 = vld [vmem:[#allocation110_spill] sm:$0xff]  ;;  %v15358_v21 = vld [vmem:[#allocation112_spill] sm:$0xff] }
0x146a   :  { %v12966_v16 = vadd.f32 %v6094_v9, %v6093_v30  ;;  %v15359_v9 = vld [vmem:[#allocation113_spill] sm:$0xff]  ;;  %v15360_v30 = vld [vmem:[#allocation114_spill] sm:$0xff] }
0x146c   :  { %9886 = vtanh.f32 %v12966_v16 }
0x1476   :  { %v9887_v15 = vpop.eup %9886 }
0x1477   :  { %v12969_v58 = vmul.f32 %v9887_v15, %v6097_v6  ;;  %v15361_v6 = vld [vmem:[#allocation115_spill] sm:$0xff]  ;;  %v15362_v15 = vld [vmem:[#allocation116_spill] sm:$0xff] }
0x1479   :  { %15352 = vst [vmem:[#allocation140_spill] sm:$0xff] %v12969_v58  ;;  %v6104_v56 = vrot.slane %v12969_v58, %v15353_v62  ;;  %v15367_v58 = vld [vmem:[#allocation121_spill] sm:$0xff] }
0x147b   :  { %v6107_v63 = vpack.c.bf16 %v6104_v56, %v6104_v56  ;;  %v15363_v56 = vld [vmem:[#allocation117_spill] sm:$0xff] }
0x147d   :  { %v6112_v40 = vshrl.u32 %v6107_v63, 16  ;;  %v15365_v63 = vld [vmem:[#allocation119_spill] sm:$0xff] }
0x147f   :  { %6148 = vmatprep.mubr.bf16.mxu0 %v6112_v40  ;;  %6189 = vmatprep.mubr.bf16.mxu1 %v6112_v40 }
0x1480   :  { %6149 = vmatmul.mubr.bf16.vlgmr.msra.gmra.mrb[84].mxu0 %v12973_v14  ;;  %6190 = vmatmul.mubr.bf16.vlgmr.msra.gmra.mrb[100].mxu1 %v12973_v14 }
0x1481   :  { %6199 = vmatpush1.bf16.msra.mxu0 %v12666_v24  ;;  %6240 = vmatpush1.bf16.msra.mxu1 %v15354_v53 }
0x1482   :  { %6230 = vmatprep.mubr.bf16.mxu0 %v6112_v40  ;;  %6271 = vmatprep.mubr.bf16.mxu1 %v6112_v40  ;;  %v15366_v40 = vld [vmem:[#allocation120_spill] sm:$0xff] }
0x1483   :  { %6200 = vmatprep.subr.bf16.mxu0 %v15355_v17  ;;  %6241 = vmatprep.subr.bf16.mxu1 %v15356_v61 }
0x1485   :  { %6201 = vmatpush1.bf16.msra.mxu0 %v15357_v57  ;;  %6242 = vmatpush1.bf16.msra.mxu1 %v15358_v21  ;;  %v15368_v57 = vld [vmem:[#allocation122_spill] sm:$0xff]  ;;  %v15369_v21 = vld [vmem:[#allocation123_spill] sm:$0xff] }
0x1486   :  { %6202 = vmatprep.subr.bf16.mxu0 %v15359_v9  ;;  %6243 = vmatprep.subr.bf16.mxu1 %v15360_v30  ;;  %v15370_v9 = vld [vmem:[#allocation124_spill] sm:$0xff]  ;;  %v15371_v30 = vld [vmem:[#allocation125_spill] sm:$0xff] }
0x1489   :  { %6203 = vmatpush1.bf16.msra.mxu0 %v15361_v6  ;;  %6244 = vmatpush1.bf16.msra.mxu1 %v15362_v15  ;;  %v15372_v6 = vld [vmem:[#allocation127_spill] sm:$0xff]  ;;  %v15373_v15 = vld [vmem:[#allocation126_spill] sm:$0xff] }
0x148a   :  { %6204 = vmatprep.subr.bf16.mxu0 %v15363_v56  ;;  %6245 = vmatprep.subr.bf16.mxu1 %v15364_v43  ;;  %v15374_v56 = vld [vmem:[#allocation128_spill] sm:$0xff]  ;;  %v15375_v43 = vld [vmem:[#allocation129_spill] sm:$0xff] }
0x148d   :  { %6205 = vmatpush1.bf16.msra.mxu0 %v15365_v63  ;;  %6246 = vmatpush1.bf16.msra.mxu1 %v15366_v40  ;;  %v15376_v63 = vld [vmem:[#allocation130_spill] sm:$0xff]  ;;  %v15377_v40 = vld [vmem:[#allocation131_spill] sm:$0xff] }
0x148e   :  { %6206 = vmatprep.subr.bf16.mxu0 %v15367_v58  ;;  %6247 = vmatprep.subr.bf16.mxu1 %v15368_v57  ;;  %v15378_v58 = vld [vmem:[#allocation132_spill] sm:$0xff]  ;;  %v15379_v57 = vld [vmem:[#allocation133_spill] sm:$0xff] }
0x1491   :  { %6207 = vmatpush1.bf16.msra.mxu0 %v15369_v21  ;;  %6248 = vmatpush1.bf16.msra.mxu1 %v15370_v9  ;;  %v15380_v21 = vld [vmem:[#allocation134_spill] sm:$0xff]  ;;  %v15381_v9 = vld [vmem:[#allocation135_spill] sm:$0xff] }
0x1492   :  { %6208 = vmatprep.subr.bf16.mxu0 %v15371_v30  ;;  %6249 = vmatprep.subr.bf16.mxu1 %v15372_v6  ;;  %v15382_v30 = vld [vmem:[#allocation136_spill] sm:$0xff]  ;;  %v15383_v6 = vld [vmem:[#allocation137_spill] sm:$0xff] }
0x1495   :  { %6209 = vmatpush1.bf16.msra.mxu0 %v15373_v15  ;;  %6250 = vmatpush1.bf16.msra.mxu1 %v15374_v56  ;;  %v15384_v15 = vld [vmem:[#allocation138_spill] sm:$0xff] }
0x1496   :  { %6210 = vmatprep.subr.bf16.mxu0 %v15375_v43  ;;  %6251 = vmatprep.subr.bf16.mxu1 %v15376_v63  ;;  %v15385_v56 = vld [vmem:[#allocation146_spill] sm:$0xff]  ;;  %v15386_v43 = vld [vmem:[#allocation180_spill] sm:$0xff]  ;;  %v15387_v63 = vld [vmem:[#allocation181_spill] sm:$0xff] }
0x1499   :  { %6211 = vmatpush1.bf16.msra.mxu0 %v15377_v40  ;;  %6252 = vmatpush1.bf16.msra.mxu1 %v15378_v58  ;;  %v15388_v40 = vld [vmem:[#allocation182_spill] sm:$0xff]  ;;  %v15389_v58 = vld [vmem:[#allocation183_spill] sm:$0xff] }
0x149a   :  { %6212 = vmatprep.subr.bf16.mxu0 %v15379_v57  ;;  %6253 = vmatprep.subr.bf16.mxu1 %v15380_v21  ;;  %v15390_v57 = vld [vmem:[#allocation184_spill] sm:$0xff]  ;;  %v15391_v21 = vld [vmem:[#allocation185_spill] sm:$0xff] }
0x149d   :  { %6213 = vmatpush1.bf16.msra.mxu0 %v15381_v9  ;;  %6254 = vmatpush1.bf16.msra.mxu1 %v15382_v30  ;;  %v15392_v9 = vld [vmem:[#allocation186_spill] sm:$0xff]  ;;  %v15393_v30 = vld [vmem:[#allocation187_spill] sm:$0xff] }
0x149e   :  { %6214 = vmatprep.subr.bf16.mxu0 %v15383_v6  ;;  %6255 = vmatprep.subr.bf16.mxu1 %v15384_v15  ;;  %v15394_v6 = vld [vmem:[#allocation188_spill] sm:$0xff]  ;;  %v15395_v15 = vld [vmem:[#allocation189_spill] sm:$0xff] }
0x14a1   :  { %6215 = vmatpush1.bf16.msra.mxu0 %v15385_v56  ;;  %6256 = vmatpush1.bf16.msra.mxu1 %v15386_v43  ;;  %v15396_v56 = vld [vmem:[#allocation190_spill] sm:$0xff]  ;;  %v15397_v43 = vld [vmem:[#allocation191_spill] sm:$0xff] }
0x14a2   :  { %6216 = vmatprep.subr.bf16.mxu0 %v15387_v63  ;;  %6257 = vmatprep.subr.bf16.mxu1 %v15388_v40  ;;  %v15398_v63 = vld [vmem:[#allocation192_spill] sm:$0xff]  ;;  %v15399_v40 = vld [vmem:[#allocation193_spill] sm:$0xff] }
0x14a5   :  { %6217 = vmatpush1.bf16.msra.mxu0 %v15389_v58  ;;  %6258 = vmatpush1.bf16.msra.mxu1 %v15390_v57  ;;  %v15400_v58 = vld [vmem:[#allocation194_spill] sm:$0xff] }
0x14a6   :  { %6218 = vmatprep.subr.bf16.mxu0 %v15391_v21  ;;  %6259 = vmatprep.subr.bf16.mxu1 %v15392_v9 }
0x14a9   :  { %6219 = vmatpush1.bf16.msra.mxu0 %v15393_v30  ;;  %6260 = vmatpush1.bf16.msra.mxu1 %v15394_v6  ;;  %v15401_v30 = vld [vmem:[#allocation198_spill] sm:$0xff]  ;;  %v15402_v6 = vld [vmem:[#allocation199_spill] sm:$0xff] }
0x14aa   :  { %6220 = vmatprep.subr.bf16.mxu0 %v15395_v15  ;;  %6261 = vmatprep.subr.bf16.mxu1 %v15396_v56 }
0x14ad   :  { %6221 = vmatpush1.bf16.msra.mxu0 %v15397_v43  ;;  %6262 = vmatpush1.bf16.msra.mxu1 %v15398_v63 }
0x14ae   :  { %6222 = vmatprep.subr.bf16.mxu0 %v15399_v40  ;;  %6263 = vmatprep.subr.bf16.mxu1 %v15400_v58 }
0x14b1   :  { %6223 = vmatpush1.bf16.msra.mxu0 %v12839_v20  ;;  %6264 = vmatpush1.bf16.msra.mxu1 %v12841_v33 }
0x14b2   :  { %6224 = vmatprep.subr.bf16.mxu0 %v12845_v41  ;;  %6265 = vmatprep.subr.bf16.mxu1 %v15401_v30 }
0x14b5   :  { %6225 = vmatpush1.bf16.msra.mxu0 %v15402_v6  ;;  %6266 = vmatpush1.bf16.msra.mxu1 %v12853_v4 }
0x14b6   :  { %6226 = vmatprep.subr.bf16.mxu0 %v12857_v49  ;;  %6267 = vmatprep.subr.bf16.mxu1 %v12859_v39 }
0x14b9   :  { %6227 = vmatpush1.bf16.msra.mxu0 %v12863_v59  ;;  %6268 = vmatpush1.bf16.msra.mxu1 %v12865_v38 }
0x14ba   :  { %6228 = vmatprep.subr.bf16.mxu0 %v12869_v26  ;;  %6269 = vmatprep.subr.bf16.mxu1 %v12871_v1 }
0x14bd   :  { %6229 = vmatpush1.bf16.msra.mxu0 %v12875_v48  ;;  %6270 = vmatpush1.bf16.msra.mxu1 %v12877_v0 }
0x14be   :  { %6387 = vmatprep.subr.bf16.mxu0 %v12463_v51  ;;  %6428 = vmatprep.subr.bf16.mxu1 %v12465_v29 }
0x14c0   :  { %6231 = vmatmul.mubr.bf16.vlgmr.msra.gmra.mrb[88].mxu0 %v12973_v14  ;;  %6272 = vmatmul.mubr.bf16.vlgmr.msra.gmra.mrb[104].mxu1 %v12973_v14  ;;  %v15403_v14 = vld [vmem:[#allocation167_spill] sm:$0xff] }
0x14c1   :  { %6388 = vmatpush1.bf16.msra.mxu0 %v12467_v12  ;;  %6429 = vmatpush1.bf16.msra.mxu1 %v12469_v60 }
0x14c2   :  { %6389 = vmatprep.subr.bf16.mxu0 %v12475_v44  ;;  %6430 = vmatprep.subr.bf16.mxu1 %v12477_v47 }
0x14c5   :  { %6390 = vmatpush1.bf16.msra.mxu0 %v12479_v5  ;;  %6431 = vmatpush1.bf16.msra.mxu1 %v12481_v37 }
0x14c6   :  { %6391 = vmatprep.subr.bf16.mxu0 %v12487_v50  ;;  %6432 = vmatprep.subr.bf16.mxu1 %v12489_v42 }
0x14c9   :  { %6392 = vmatpush1.bf16.msra.mxu0 %v12491_v22  ;;  %6433 = vmatpush1.bf16.msra.mxu1 %v12493_v23 }
0x14ca   :  { %6393 = vmatprep.subr.bf16.mxu0 %v12499_v19  ;;  %6434 = vmatprep.subr.bf16.mxu1 %v12501_v54  ;;  %v15440_v54 = vld [vmem:[#allocation106_spill] sm:$0xff] }
0x14cd   :  { %6394 = vmatpush1.bf16.msra.mxu0 %v12503_v55  ;;  %6435 = vmatpush1.bf16.msra.mxu1 %v12505_v52 }
0x14ce   :  { %6395 = vmatprep.subr.bf16.mxu0 %v12511_v10  ;;  %6436 = vmatprep.subr.bf16.mxu1 %v12513_v27 }
0x14d1   :  { %6396 = vmatpush1.bf16.msra.mxu0 %v12515_v11  ;;  %6437 = vmatpush1.bf16.msra.mxu1 %v12517_v2  ;;  %v15404_v2 = vld [vmem:[#allocation168_spill] sm:$0xff] }
0x14d2   :  { %6397 = vmatprep.subr.bf16.mxu0 %v12520_v13  ;;  %6438 = vmatprep.subr.bf16.mxu1 %v12524_v28  ;;  %v15405_v13 = vld [vmem:[#allocation172_spill] sm:$0xff]  ;;  %v15406_v28 = vld [vmem:[#allocation173_spill] sm:$0xff] }
0x14d5   :  { %6398 = vmatpush1.bf16.msra.mxu0 %v12526_v8  ;;  %6439 = vmatpush1.bf16.msra.mxu1 %v12530_v32  ;;  %v15407_v8 = vld [vmem:[#allocation145_spill] sm:$0xff]  ;;  %v15408_v32 = vld [vmem:[#allocation179_spill] sm:$0xff] }
0x14d6   :  { %6399 = vmatprep.subr.bf16.mxu0 %v12532_v45  ;;  %6440 = vmatprep.subr.bf16.mxu1 %v12535_v3  ;;  %v15409_v45 = vld [vmem:[#allocation73_spill] sm:$0xff]  ;;  %v15410_v3 = vld [vmem:[#allocation75_spill] sm:$0xff] }
0x14d9   :  { %6400 = vmatpush1.bf16.msra.mxu0 %v12538_v46  ;;  %6441 = vmatpush1.bf16.msra.mxu1 %v12542_v35  ;;  %v15411_v46 = vld [vmem:[#allocation74_spill] sm:$0xff]  ;;  %v15412_v35 = vld [vmem:[#allocation76_spill] sm:$0xff] }
0x14da   :  { %6401 = vmatprep.subr.bf16.mxu0 %v12544_v25  ;;  %6442 = vmatprep.subr.bf16.mxu1 %v15403_v14  ;;  %v15413_v25 = vld [vmem:[#allocation77_spill] sm:$0xff]  ;;  %v15414_v14 = vld [vmem:[#allocation78_spill] sm:$0xff] }
0x14dd   :  { %6402 = vmatpush1.bf16.msra.mxu0 %v15404_v2  ;;  %6443 = vmatpush1.bf16.msra.mxu1 %v15405_v13  ;;  %v15415_v2 = vld [vmem:[#allocation79_spill] sm:$0xff]  ;;  %v15416_v13 = vld [vmem:[#allocation80_spill] sm:$0xff] }
0x14de   :  { %6403 = vmatprep.subr.bf16.mxu0 %v15406_v28  ;;  %6444 = vmatprep.subr.bf16.mxu1 %v15407_v8  ;;  %v15417_v28 = vld [vmem:[#allocation81_spill] sm:$0xff]  ;;  %v15418_v8 = vld [vmem:[#allocation82_spill] sm:$0xff] }
0x14e1   :  { %6404 = vmatpush1.bf16.msra.mxu0 %v15408_v32  ;;  %6445 = vmatpush1.bf16.msra.mxu1 %v15409_v45  ;;  %v15419_v32 = vld [vmem:[#allocation83_spill] sm:$0xff]  ;;  %v15420_v45 = vld [vmem:[#allocation84_spill] sm:$0xff] }
0x14e2   :  { %6405 = vmatprep.subr.bf16.mxu0 %v15410_v3  ;;  %6446 = vmatprep.subr.bf16.mxu1 %v15411_v46  ;;  %v15421_v3 = vld [vmem:[#allocation85_spill] sm:$0xff]  ;;  %v15422_v46 = vld [vmem:[#allocation86_spill] sm:$0xff] }
0x14e5   :  { %6406 = vmatpush1.bf16.msra.mxu0 %v15412_v35  ;;  %6447 = vmatpush1.bf16.msra.mxu1 %v15413_v25  ;;  %v15423_v35 = vld [vmem:[#allocation87_spill] sm:$0xff]  ;;  %v15424_v25 = vld [vmem:[#allocation88_spill] sm:$0xff] }
0x14e6   :  { %6407 = vmatprep.subr.bf16.mxu0 %v15414_v14  ;;  %6448 = vmatprep.subr.bf16.mxu1 %v15415_v2  ;;  %v15425_v14 = vld [vmem:[#allocation89_spill] sm:$0xff]  ;;  %v15426_v2 = vld [vmem:[#allocation90_spill] sm:$0xff] }
0x14e9   :  { %6408 = vmatpush1.bf16.msra.mxu0 %v15416_v13  ;;  %6449 = vmatpush1.bf16.msra.mxu1 %v15417_v28  ;;  %v15427_v13 = vld [vmem:[#allocation92_spill] sm:$0xff]  ;;  %v15428_v28 = vld [vmem:[#allocation91_spill] sm:$0xff] }
0x14ea   :  { %6409 = vmatprep.subr.bf16.mxu0 %v15418_v8  ;;  %6450 = vmatprep.subr.bf16.mxu1 %v15419_v32  ;;  %v15429_v8 = vld [vmem:[#allocation93_spill] sm:$0xff]  ;;  %v15430_v32 = vld [vmem:[#allocation94_spill] sm:$0xff] }
0x14ed   :  { %6410 = vmatpush1.bf16.msra.mxu0 %v15420_v45  ;;  %6451 = vmatpush1.bf16.msra.mxu1 %v15421_v3  ;;  %v15431_v45 = vld [vmem:[#allocation95_spill] sm:$0xff]  ;;  %v15432_v3 = vld [vmem:[#allocation96_spill] sm:$0xff] }
0x14ee   :  { %6411 = vmatprep.subr.bf16.mxu0 %v15422_v46  ;;  %6452 = vmatprep.subr.bf16.mxu1 %v15423_v35  ;;  %v15433_v46 = vld [vmem:[#allocation97_spill] sm:$0xff]  ;;  %v15434_v35 = vld [vmem:[#allocation98_spill] sm:$0xff] }
0x14f1   :  { %6412 = vmatpush1.bf16.msra.mxu0 %v15424_v25  ;;  %6453 = vmatpush1.bf16.msra.mxu1 %v15425_v14  ;;  %v15435_v25 = vld [vmem:[#allocation99_spill] sm:$0xff]  ;;  %v15436_v14 = vld [vmem:[#allocation100_spill] sm:$0xff] }
0x14f2   :  { %6413 = vmatprep.subr.bf16.mxu0 %v15426_v2  ;;  %6454 = vmatprep.subr.bf16.mxu1 %v15427_v13  ;;  %v15437_v2 = vld [vmem:[#allocation101_spill] sm:$0xff]  ;;  %v15438_v13 = vld [vmem:[#allocation102_spill] sm:$0xff] }
0x14f5   :  { %6414 = vmatpush1.bf16.msra.mxu0 %v15428_v28  ;;  %6455 = vmatpush1.bf16.msra.mxu1 %v15429_v8  ;;  %v15439_v28 = vld [vmem:[#allocation103_spill] sm:$0xff] }
0x14f6   :  { %6415 = vmatprep.subr.bf16.mxu0 %v15430_v32  ;;  %6456 = vmatprep.subr.bf16.mxu1 %v15431_v45 }
0x14f9   :  { %6416 = vmatpush1.bf16.msra.mxu0 %v15432_v3  ;;  %6457 = vmatpush1.bf16.msra.mxu1 %v15433_v46 }
0x14fa   :  { %6417 = vmatprep.subr.bf16.mxu0 %v15434_v35  ;;  %6458 = vmatprep.subr.bf16.mxu1 %v15435_v25 }
0x14fd   :  { %6418 = vmatpush1.bf16.msra.mxu0 %v15436_v14  ;;  %6459 = vmatpush1.bf16.msra.mxu1 %v15437_v2 }
0x14fe   :  { %6469 = vmatprep.subr.bf16.mxu0 %v15438_v13  ;;  %6510 = vmatprep.subr.bf16.mxu1 %v15439_v28 }
0x1553   :  { %v6150_v8 = vpop.f32.mrb[84].mxu0  ;;  %v6191_v32 = vpop.f32.mrb[100].mxu1 }
0x1554   :  { %v6284_v11 = vrot.slane %v6150_v8, 6  ;;  %v6152_v45 = vpop.f32.mrb[85].mxu0  ;;  %v6193_v27 = vpop.f32.mrb[101].mxu1  ;;  %v6286_v13 = vrot.slane %v6191_v32, 6  ;;  %v15441_v8 = vld [vmem:[#allocation107_spill] sm:$0xff] }
0x1555   :  { %v6285_v3 = vrot.slane %v6152_v45, 6  ;;  %v6154_v10 = vpop.f32.mrb[86].mxu0  ;;  %v6195_v46 = vpop.f32.mrb[102].mxu1  ;;  %v6287_v28 = vrot.slane %v6193_v27, 6 }
0x1556   :  { %v6292_v35 = vadd.f32 %v6284_v11, %v12675_v34  ;;  %v6155_v52 = vpop.f32.mrb[87].mxu0  ;;  %v6196_v25 = vpop.f32.mrb[103].mxu1  ;;  %v6294_v19 = vadd.f32 %v6286_v13, %v15440_v54 }
0x1557   :  { %v6293_v14 = vadd.f32 %v6285_v3, %v15348_v31  ;;  %v6295_v23 = vadd.f32 %v6287_v28, %v15441_v8 }
0x1558   :  { %v9014_v55 = vmul.f32 -1.442695, %v6292_v35  ;;  %v9016_v22 = vmul.f32 -1.442695, %v6294_v19 }
0x1559   :  { %v9015_v2 = vmul.f32 -1.442695, %v6293_v14 }
0x155a   :  { %9888 = vpow2.f32 %v9014_v55  ;;  %v6346_v55 = vrot.slane %v12956_v7, 7 }
0x155b   :  { %9890 = vpow2.f32 %v9015_v2 }
0x155c   :  { %9892 = vtanh.f32 %v6295_v23 }
0x155d   :  { %9894 = vpow2.f32 %v9016_v22 }
0x1564   :  { %v9889_v45 = vpop.eup %9888 }
0x1565   :  { %v6335_v10 = vadd.f32 1.0, %v9889_v45  ;;  %v9891_v46 = vpop.eup %9890 }
0x1566   :  { %v6336_v52 = vadd.f32 1.0, %v9891_v46  ;;  %v9893_v11 = vpop.eup %9892 }
0x1567   :  { %9896 = vrcp.f32 %v6335_v10  ;;  %v9895_v3 = vpop.eup %9894 }
0x1568   :  { %9898 = vrcp.f32 %v6336_v52  ;;  %v6337_v32 = vadd.f32 1.0, %v9895_v3 }
0x156a   :  { %9900 = vrcp.f32 %v6337_v32 }
0x1571   :  { %v9897_v35 = vpop.eup %9896 }
0x1572   :  { %v6349_v2 = vmul.f32 %v9897_v35, %v9893_v11  ;;  %v9899_v27 = vpop.eup %9898 }
0x1573   :  { %v6348_v13 = vmul.f32 %v9899_v27, %v6346_v55 }
0x1574   :  { %v9901_v23 = vpop.eup %9900 }
0x1575   :  { %v13112_v25 = vadd.f32 %v6349_v2, %v6348_v13 }
0x1577   :  { %15442 = vst [vmem:[#allocation105_spill] sm:$0xff] %v13112_v25  ;;  %9902 = vtanh.f32 %v13112_v25 }
0x1581   :  { %v9903_v19 = vpop.eup %9902 }
0x1582   :  { %v6352_v22 = vmul.f32 %v9903_v19, %v9901_v23 }
0x1593   :  { %v6232_v28 = vpop.f32.mrb[88].mxu0  ;;  %v6273_v14 = vpop.f32.mrb[104].mxu1 }
0x1594   :  { %v6234_v45 = vpop.f32.mrb[89].mxu0  ;;  %v6275_v10 = vpop.f32.mrb[105].mxu1 }
0x1595   :  { %v6300_v46 = vcombine.low %v6232_v28, %v6234_v45  ;;  %v6301_v52 = vcombine.low %v6273_v14, %v6275_v10  ;;  %v6236_v8 = vpop.f32.mrb[90].mxu0  ;;  %v6277_v7 = vpop.f32.mrb[106].mxu1 }
0x1596   :  { %v6237_v11 = vpop.f32.mrb[91].mxu0  ;;  %v6278_v35 = vpop.f32.mrb[107].mxu1 }
0x1597   :  { %v6308_v3 = vrot.slane %v6300_v46, %v15351_v18  ;;  %v6315_v55 = vrot.slane %v6301_v52, %v15351_v18 }
0x1599   :  { %v6316_v2 = vcombine.low %v6308_v3, %v6315_v55  ;;  %v6379_v3 = vpack.c.bf16 %v6352_v22, %v6352_v22  ;;  %v15444_v22 = vld [vmem:[#allocation112_spill] sm:$0xff] }
0x159b   :  { %v6323_v27 = vrot.slane %v6316_v2, %v15351_v18  ;;  %v13128_v2 = vrot.slane %v6379_v3, 1  ;;  %v15458_v3 = vld [vmem:[#allocation127_spill] sm:$0xff] }
0x159d   :  { %v6325_v32 = vadd.f32 %v6323_v27, %v12961_v36  ;;  %v15445_v27 = vld [vmem:[#allocation113_spill] sm:$0xff] }
0x159f   :  { %v9017_v13 = vmul.f32 -1.442695, %v6325_v32  ;;  %v6360_v25 = vrot.slane %v6325_v32, 3  ;;  %v15446_v32 = vld [vmem:[#allocation114_spill] sm:$0xff] }
0x15a1   :  { %9904 = vpow2.f32 %v9017_v13  ;;  %v15447_v13 = vld [vmem:[#allocation115_spill] sm:$0xff] }
0x15ab   :  { %v9905_v23 = vpop.eup %9904 }
0x15ac   :  { %v6356_v19 = vadd.f32 1.0, %v9905_v23  ;;  %v15448_v23 = vld [vmem:[#allocation116_spill] sm:$0xff] }
0x15ae   :  { %9906 = vrcp.f32 %v6356_v19  ;;  %v15449_v19 = vld [vmem:[#allocation117_spill] sm:$0xff] }
0x15af   :  { %9908 = vtanh.f32 %v6360_v25 }
0x15b8   :  { %v9907_v8 = vpop.eup %9906 }
0x15b9   :  { %v6364_v28 = vrot.slane %v9907_v8, 1  ;;  %v9909_v14 = vpop.eup %9908  ;;  %v6370_v52 = vrot.slane %v9907_v8, 2 }
0x15ba   :  { %v6367_v10 = vmul.f32 %v9909_v14, %v9907_v8  ;;  %v15450_v8 = vld [vmem:[#allocation118_spill] sm:$0xff]  ;;  %v15452_v14 = vld [vmem:[#allocation120_spill] sm:$0xff] }
0x15bb   :  { %v6366_v45 = vmul.f32 %v6364_v28, %v12966_v16  ;;  %v15443_v16 = vld [vmem:[#allocation111_spill] sm:$0xff] }
0x15bc   :  { %v15451_v28 = vld [vmem:[#allocation119_spill] sm:$0xff] }
0x15bd   :  { %v13120_v46 = vadd.f32 %v6367_v10, %v6366_v45  ;;  %v15453_v45 = vld [vmem:[#allocation121_spill] sm:$0xff]  ;;  %v15454_v10 = vld [vmem:[#allocation122_spill] sm:$0xff] }
0x15bf   :  { %9910 = vtanh.f32 %v13120_v46 }
0x15c9   :  { %v9911_v7 = vpop.eup %9910 }
0x15ca   :  { %v6372_v11 = vmul.f32 %v9911_v7, %v6370_v52  ;;  %v15455_v52 = vld [vmem:[#allocation123_spill] sm:$0xff]  ;;  %v15456_v7 = vld [vmem:[#allocation124_spill] sm:$0xff] }
0x15cc   :  { %v13124_v35 = vrot.slane %v6372_v11, %v15353_v62  ;;  %v15457_v11 = vld [vmem:[#allocation125_spill] sm:$0xff] }
0x15ce   :  { %v6380_v25 = vpack.c.bf16 %v13124_v35, %v13124_v35 }
0x15d0   :  { %v6384_v55 = vrot.slane %v6380_v25, 1  ;;  %v15459_v25 = vld [vmem:[#allocation126_spill] sm:$0xff] }
0x15d2   :  { %6419 = vmatprep.mubr.bf16.mxu0 %v6384_v55  ;;  %6460 = vmatprep.mubr.bf16.mxu1 %v6384_v55 }
0x15d3   :  { %6420 = vmatmul.mubr.bf16.vlgmr.msra.gmra.mrb[92].mxu0 %v13128_v2  ;;  %6461 = vmatmul.mubr.bf16.vlgmr.msra.gmra.mrb[108].mxu1 %v13128_v2 }
0x15d4   :  { %6470 = vmatpush1.bf16.msra.mxu0 %v12666_v24  ;;  %6511 = vmatpush1.bf16.msra.mxu1 %v15354_v53 }
0x15d5   :  { %6501 = vmatprep.mubr.bf16.mxu0 %v6384_v55  ;;  %6542 = vmatprep.mubr.bf16.mxu1 %v6384_v55  ;;  %v15460_v55 = vld [vmem:[#allocation128_spill] sm:$0xff] }
0x15d6   :  { %6471 = vmatprep.subr.bf16.mxu0 %v15355_v17  ;;  %6512 = vmatprep.subr.bf16.mxu1 %v15356_v61 }
0x15d8   :  { %6472 = vmatpush1.bf16.msra.mxu0 %v15443_v16  ;;  %6513 = vmatpush1.bf16.msra.mxu1 %v15444_v22 }
0x15d9   :  { %6473 = vmatprep.subr.bf16.mxu0 %v15445_v27  ;;  %6514 = vmatprep.subr.bf16.mxu1 %v15446_v32 }
0x15dc   :  { %6474 = vmatpush1.bf16.msra.mxu0 %v15447_v13  ;;  %6515 = vmatpush1.bf16.msra.mxu1 %v15448_v23 }
0x15dd   :  { %6475 = vmatprep.subr.bf16.mxu0 %v15449_v19  ;;  %6516 = vmatprep.subr.bf16.mxu1 %v15450_v8  ;;  %v15461_v8 = vld [vmem:[#allocation129_spill] sm:$0xff] }
0x15e0   :  { %6476 = vmatpush1.bf16.msra.mxu0 %v15451_v28  ;;  %6517 = vmatpush1.bf16.msra.mxu1 %v15452_v14  ;;  %v15462_v28 = vld [vmem:[#allocation130_spill] sm:$0xff]  ;;  %v15463_v14 = vld [vmem:[#allocation131_spill] sm:$0xff] }
0x15e1   :  { %6477 = vmatprep.subr.bf16.mxu0 %v15453_v45  ;;  %6518 = vmatprep.subr.bf16.mxu1 %v15454_v10  ;;  %v15464_v45 = vld [vmem:[#allocation132_spill] sm:$0xff]  ;;  %v15465_v10 = vld [vmem:[#allocation133_spill] sm:$0xff] }
0x15e4   :  { %6478 = vmatpush1.bf16.msra.mxu0 %v15455_v52  ;;  %6519 = vmatpush1.bf16.msra.mxu1 %v15456_v7  ;;  %v15466_v52 = vld [vmem:[#allocation134_spill] sm:$0xff]  ;;  %v15467_v7 = vld [vmem:[#allocation135_spill] sm:$0xff] }
0x15e5   :  { %6479 = vmatprep.subr.bf16.mxu0 %v15457_v11  ;;  %6520 = vmatprep.subr.bf16.mxu1 %v15458_v3  ;;  %v15468_v11 = vld [vmem:[#allocation136_spill] sm:$0xff]  ;;  %v15469_v3 = vld [vmem:[#allocation137_spill] sm:$0xff] }
0x15e8   :  { %6480 = vmatpush1.bf16.msra.mxu0 %v15459_v25  ;;  %6521 = vmatpush1.bf16.msra.mxu1 %v15460_v55  ;;  %v15470_v25 = vld [vmem:[#allocation138_spill] sm:$0xff] }
0x15e9   :  { %6481 = vmatprep.subr.bf16.mxu0 %v15461_v8  ;;  %6522 = vmatprep.subr.bf16.mxu1 %v15462_v28  ;;  %v15471_v55 = vld [vmem:[#allocation146_spill] sm:$0xff]  ;;  %v15472_v8 = vld [vmem:[#allocation180_spill] sm:$0xff]  ;;  %v15473_v28 = vld [vmem:[#allocation181_spill] sm:$0xff] }
0x15ec   :  { %6482 = vmatpush1.bf16.msra.mxu0 %v15463_v14  ;;  %6523 = vmatpush1.bf16.msra.mxu1 %v15464_v45  ;;  %v15474_v14 = vld [vmem:[#allocation182_spill] sm:$0xff]  ;;  %v15475_v45 = vld [vmem:[#allocation183_spill] sm:$0xff] }
0x15ed   :  { %6483 = vmatprep.subr.bf16.mxu0 %v15465_v10  ;;  %6524 = vmatprep.subr.bf16.mxu1 %v15466_v52 }
0x15f0   :  { %6484 = vmatpush1.bf16.msra.mxu0 %v15467_v7  ;;  %6525 = vmatpush1.bf16.msra.mxu1 %v15468_v11  ;;  %v15476_v11 = vld [vmem:[#allocation187_spill] sm:$0xff] }
0x15f1   :  { %6485 = vmatprep.subr.bf16.mxu0 %v15469_v3  ;;  %6526 = vmatprep.subr.bf16.mxu1 %v15470_v25  ;;  %v15477_v3 = vld [vmem:[#allocation188_spill] sm:$0xff] }
0x15f4   :  { %6486 = vmatpush1.bf16.msra.mxu0 %v15471_v55  ;;  %6527 = vmatpush1.bf16.msra.mxu1 %v15472_v8 }
0x15f5   :  { %6487 = vmatprep.subr.bf16.mxu0 %v15473_v28  ;;  %6528 = vmatprep.subr.bf16.mxu1 %v15474_v14 }
0x15f8   :  { %6488 = vmatpush1.bf16.msra.mxu0 %v15475_v45  ;;  %6529 = vmatpush1.bf16.msra.mxu1 %v15390_v57 }
0x15f9   :  { %6489 = vmatprep.subr.bf16.mxu0 %v15391_v21  ;;  %6530 = vmatprep.subr.bf16.mxu1 %v15392_v9 }
0x15fc   :  { %6490 = vmatpush1.bf16.msra.mxu0 %v15476_v11  ;;  %6531 = vmatpush1.bf16.msra.mxu1 %v15477_v3 }
0x15fd   :  { %6491 = vmatprep.subr.bf16.mxu0 %v15395_v15  ;;  %6532 = vmatprep.subr.bf16.mxu1 %v15396_v56 }
0x1600   :  { %6492 = vmatpush1.bf16.msra.mxu0 %v15397_v43  ;;  %6533 = vmatpush1.bf16.msra.mxu1 %v15398_v63 }
0x1601   :  { %6493 = vmatprep.subr.bf16.mxu0 %v15399_v40  ;;  %6534 = vmatprep.subr.bf16.mxu1 %v15400_v58 }
0x1604   :  { %6494 = vmatpush1.bf16.msra.mxu0 %v12839_v20  ;;  %6535 = vmatpush1.bf16.msra.mxu1 %v12841_v33 }
0x1605   :  { %6495 = vmatprep.subr.bf16.mxu0 %v12845_v41  ;;  %6536 = vmatprep.subr.bf16.mxu1 %v15401_v30 }
0x1608   :  { %6496 = vmatpush1.bf16.msra.mxu0 %v15402_v6  ;;  %6537 = vmatpush1.bf16.msra.mxu1 %v12853_v4 }
0x1609   :  { %6497 = vmatprep.subr.bf16.mxu0 %v12857_v49  ;;  %6538 = vmatprep.subr.bf16.mxu1 %v12859_v39 }
0x160c   :  { %6498 = vmatpush1.bf16.msra.mxu0 %v12863_v59  ;;  %6539 = vmatpush1.bf16.msra.mxu1 %v12865_v38 }
0x160d   :  { %6499 = vmatprep.subr.bf16.mxu0 %v12869_v26  ;;  %6540 = vmatprep.subr.bf16.mxu1 %v12871_v1 }
0x1610   :  { %6500 = vmatpush1.bf16.msra.mxu0 %v12875_v48  ;;  %6541 = vmatpush1.bf16.msra.mxu1 %v12877_v0 }
0x1611   :  { %6662 = vmatprep.subr.bf16.mxu0 %v12463_v51  ;;  %6703 = vmatprep.subr.bf16.mxu1 %v12465_v29  ;;  %v15478_v29 = vld [vmem:[#allocation174_spill] sm:$0xff]  ;;  %v15479_v51 = vld [vmem:[#allocation175_spill] sm:$0xff] }
0x1613   :  { %6502 = vmatmul.mubr.bf16.vlgmr.msra.gmra.mrb[96].mxu0 %v13128_v2  ;;  %6543 = vmatmul.mubr.bf16.vlgmr.msra.gmra.mrb[112].mxu1 %v13128_v2  ;;  %v15480_v2 = vld [vmem:[#allocation176_spill] sm:$0xff] }
0x1614   :  { %6663 = vmatpush1.bf16.msra.mxu0 %v12467_v12  ;;  %6704 = vmatpush1.bf16.msra.mxu1 %v12469_v60  ;;  %v15481_v12 = vld [vmem:[#allocation177_spill] sm:$0xff]  ;;  %v15482_v60 = vld [vmem:[#allocation178_spill] sm:$0xff] }
0x1615   :  { %6664 = vmatprep.subr.bf16.mxu0 %v12475_v44  ;;  %6705 = vmatprep.subr.bf16.mxu1 %v12477_v47  ;;  %v15483_v44 = vld [vmem:[#allocation139_spill] sm:$0xff]  ;;  %v15484_v47 = vld [vmem:[#allocation206_spill] sm:$0xff] }
0x1618   :  { %6665 = vmatpush1.bf16.msra.mxu0 %v12479_v5  ;;  %6706 = vmatpush1.bf16.msra.mxu1 %v12481_v37  ;;  %v15485_v5 = vld [vmem:[#allocation155_spill] sm:$0xff]  ;;  %v15486_v37 = vld [vmem:[#allocation156_spill] sm:$0xff] }
0x1619   :  { %6666 = vmatprep.subr.bf16.mxu0 %v12487_v50  ;;  %6707 = vmatprep.subr.bf16.mxu1 %v12489_v42  ;;  %v15487_v50 = vld [vmem:[#allocation157_spill] sm:$0xff]  ;;  %v15488_v42 = vld [vmem:[#allocation158_spill] sm:$0xff] }
0x161c   :  { %6667 = vmatpush1.bf16.msra.mxu0 %v15478_v29  ;;  %6708 = vmatpush1.bf16.msra.mxu1 %v15479_v51  ;;  %v15489_v29 = vld [vmem:[#allocation159_spill] sm:$0xff]  ;;  %v15490_v51 = vld [vmem:[#allocation160_spill] sm:$0xff] }
0x161d   :  { %6668 = vmatprep.subr.bf16.mxu0 %v15480_v2  ;;  %6709 = vmatprep.subr.bf16.mxu1 %v15481_v12  ;;  %v15491_v2 = vld [vmem:[#allocation161_spill] sm:$0xff]  ;;  %v15492_v12 = vld [vmem:[#allocation162_spill] sm:$0xff] }
0x1620   :  { %6669 = vmatpush1.bf16.msra.mxu0 %v15482_v60  ;;  %6710 = vmatpush1.bf16.msra.mxu1 %v15483_v44  ;;  %v15493_v60 = vld [vmem:[#allocation163_spill] sm:$0xff]  ;;  %v15494_v44 = vld [vmem:[#allocation164_spill] sm:$0xff] }
0x1621   :  { %6670 = vmatprep.subr.bf16.mxu0 %v15484_v47  ;;  %6711 = vmatprep.subr.bf16.mxu1 %v15485_v5  ;;  %v15495_v47 = vld [vmem:[#allocation165_spill] sm:$0xff]  ;;  %v15496_v5 = vld [vmem:[#allocation166_spill] sm:$0xff] }
0x1624   :  { %6671 = vmatpush1.bf16.msra.mxu0 %v15486_v37  ;;  %6712 = vmatpush1.bf16.msra.mxu1 %v15487_v50  ;;  %v15497_v37 = vld [vmem:[#allocation167_spill] sm:$0xff]  ;;  %v15498_v50 = vld [vmem:[#allocation168_spill] sm:$0xff] }
0x1625   :  { %6672 = vmatprep.subr.bf16.mxu0 %v15488_v42  ;;  %6713 = vmatprep.subr.bf16.mxu1 %v15489_v29  ;;  %v15499_v42 = vld [vmem:[#allocation172_spill] sm:$0xff]  ;;  %v15500_v29 = vld [vmem:[#allocation173_spill] sm:$0xff] }
0x1628   :  { %6673 = vmatpush1.bf16.msra.mxu0 %v15490_v51  ;;  %6714 = vmatpush1.bf16.msra.mxu1 %v15491_v2  ;;  %v15501_v51 = vld [vmem:[#allocation145_spill] sm:$0xff]  ;;  %v15502_v2 = vld [vmem:[#allocation179_spill] sm:$0xff] }
0x1629   :  { %6674 = vmatprep.subr.bf16.mxu0 %v15492_v12  ;;  %6715 = vmatprep.subr.bf16.mxu1 %v15493_v60  ;;  %v15503_v12 = vld [vmem:[#allocation73_spill] sm:$0xff]  ;;  %v15504_v60 = vld [vmem:[#allocation75_spill] sm:$0xff] }
0x162c   :  { %6675 = vmatpush1.bf16.msra.mxu0 %v15494_v44  ;;  %6716 = vmatpush1.bf16.msra.mxu1 %v15495_v47  ;;  %v15505_v44 = vld [vmem:[#allocation74_spill] sm:$0xff]  ;;  %v15506_v47 = vld [vmem:[#allocation76_spill] sm:$0xff] }
0x162d   :  { %6676 = vmatprep.subr.bf16.mxu0 %v15496_v5  ;;  %6717 = vmatprep.subr.bf16.mxu1 %v15497_v37  ;;  %v15507_v5 = vld [vmem:[#allocation77_spill] sm:$0xff]  ;;  %v15508_v37 = vld [vmem:[#allocation78_spill] sm:$0xff] }
0x1630   :  { %6677 = vmatpush1.bf16.msra.mxu0 %v15498_v50  ;;  %6718 = vmatpush1.bf16.msra.mxu1 %v15499_v42  ;;  %v15509_v50 = vld [vmem:[#allocation79_spill] sm:$0xff]  ;;  %v15510_v42 = vld [vmem:[#allocation80_spill] sm:$0xff] }
0x1631   :  { %6678 = vmatprep.subr.bf16.mxu0 %v15500_v29  ;;  %6719 = vmatprep.subr.bf16.mxu1 %v15501_v51  ;;  %v15511_v29 = vld [vmem:[#allocation81_spill] sm:$0xff]  ;;  %v15512_v51 = vld [vmem:[#allocation82_spill] sm:$0xff] }
0x1634   :  { %6679 = vmatpush1.bf16.msra.mxu0 %v15502_v2  ;;  %6720 = vmatpush1.bf16.msra.mxu1 %v15503_v12  ;;  %v15513_v2 = vld [vmem:[#allocation83_spill] sm:$0xff]  ;;  %v15514_v12 = vld [vmem:[#allocation84_spill] sm:$0xff] }
0x1635   :  { %6680 = vmatprep.subr.bf16.mxu0 %v15504_v60  ;;  %6721 = vmatprep.subr.bf16.mxu1 %v15505_v44  ;;  %v15515_v60 = vld [vmem:[#allocation85_spill] sm:$0xff]  ;;  %v15516_v44 = vld [vmem:[#allocation86_spill] sm:$0xff] }
0x1638   :  { %6681 = vmatpush1.bf16.msra.mxu0 %v15506_v47  ;;  %6722 = vmatpush1.bf16.msra.mxu1 %v15507_v5  ;;  %v15517_v47 = vld [vmem:[#allocation87_spill] sm:$0xff]  ;;  %v15518_v5 = vld [vmem:[#allocation88_spill] sm:$0xff] }
0x1639   :  { %6682 = vmatprep.subr.bf16.mxu0 %v15508_v37  ;;  %6723 = vmatprep.subr.bf16.mxu1 %v15509_v50  ;;  %v15519_v37 = vld [vmem:[#allocation89_spill] sm:$0xff]  ;;  %v15520_v50 = vld [vmem:[#allocation90_spill] sm:$0xff] }
0x163c   :  { %6683 = vmatpush1.bf16.msra.mxu0 %v15510_v42  ;;  %6724 = vmatpush1.bf16.msra.mxu1 %v15511_v29  ;;  %v15521_v42 = vld [vmem:[#allocation92_spill] sm:$0xff]  ;;  %v15522_v29 = vld [vmem:[#allocation91_spill] sm:$0xff] }
0x163d   :  { %6684 = vmatprep.subr.bf16.mxu0 %v15512_v51  ;;  %6725 = vmatprep.subr.bf16.mxu1 %v15513_v2  ;;  %v15523_v51 = vld [vmem:[#allocation93_spill] sm:$0xff]  ;;  %v15524_v2 = vld [vmem:[#allocation94_spill] sm:$0xff] }
0x1640   :  { %6685 = vmatpush1.bf16.msra.mxu0 %v15514_v12  ;;  %6726 = vmatpush1.bf16.msra.mxu1 %v15515_v60  ;;  %v15525_v12 = vld [vmem:[#allocation95_spill] sm:$0xff]  ;;  %v15526_v60 = vld [vmem:[#allocation96_spill] sm:$0xff] }
0x1641   :  { %6686 = vmatprep.subr.bf16.mxu0 %v15516_v44  ;;  %6727 = vmatprep.subr.bf16.mxu1 %v15517_v47  ;;  %v15527_v44 = vld [vmem:[#allocation97_spill] sm:$0xff]  ;;  %v15528_v47 = vld [vmem:[#allocation98_spill] sm:$0xff] }
0x1644   :  { %6687 = vmatpush1.bf16.msra.mxu0 %v15518_v5  ;;  %6728 = vmatpush1.bf16.msra.mxu1 %v15519_v37  ;;  %v15529_v5 = vld [vmem:[#allocation99_spill] sm:$0xff]  ;;  %v15530_v37 = vld [vmem:[#allocation100_spill] sm:$0xff] }
0x1645   :  { %6688 = vmatprep.subr.bf16.mxu0 %v15520_v50  ;;  %6729 = vmatprep.subr.bf16.mxu1 %v15521_v42  ;;  %v15531_v50 = vld [vmem:[#allocation101_spill] sm:$0xff]  ;;  %v15532_v42 = vld [vmem:[#allocation102_spill] sm:$0xff] }
0x1648   :  { %6689 = vmatpush1.bf16.msra.mxu0 %v15522_v29  ;;  %6730 = vmatpush1.bf16.msra.mxu1 %v15523_v51  ;;  %v15533_v29 = vld [vmem:[#allocation103_spill] sm:$0xff] }
0x1649   :  { %6690 = vmatprep.subr.bf16.mxu0 %v15524_v2  ;;  %6731 = vmatprep.subr.bf16.mxu1 %v15525_v12 }
0x164c   :  { %6691 = vmatpush1.bf16.msra.mxu0 %v15526_v60  ;;  %6732 = vmatpush1.bf16.msra.mxu1 %v15527_v44 }
0x164d   :  { %6692 = vmatprep.subr.bf16.mxu0 %v15528_v47  ;;  %6733 = vmatprep.subr.bf16.mxu1 %v15529_v5 }
0x1650   :  { %6693 = vmatpush1.bf16.msra.mxu0 %v15530_v37  ;;  %6734 = vmatpush1.bf16.msra.mxu1 %v15531_v50 }
0x1651   :  { %6744 = vmatprep.subr.bf16.mxu0 %v15532_v42  ;;  %6785 = vmatprep.subr.bf16.mxu1 %v15533_v29 }
0x16a6   :  { %v6421_v51 = vpop.f32.mrb[92].mxu0  ;;  %v6462_v2 = vpop.f32.mrb[108].mxu1 }
0x16a7   :  { %v6555_v0 = vrot.slane %v6421_v51, 5  ;;  %v6423_v12 = vpop.f32.mrb[93].mxu0  ;;  %v6464_v48 = vpop.f32.mrb[109].mxu1  ;;  %v6557_v42 = vrot.slane %v6462_v2, 5  ;;  %v15534_v51 = vld [vmem:[#allocation107_spill] sm:$0xff] }
0x16a8   :  { %v6556_v60 = vrot.slane %v6423_v12, 5  ;;  %v6425_v1 = vpop.f32.mrb[94].mxu0  ;;  %v6466_v44 = vpop.f32.mrb[110].mxu1  ;;  %v6558_v29 = vrot.slane %v6464_v48, 5 }
0x16a9   :  { %v6563_v47 = vadd.f32 %v6555_v0, %v12675_v34  ;;  %v6426_v26 = vpop.f32.mrb[95].mxu0  ;;  %v6467_v5 = vpop.f32.mrb[111].mxu1  ;;  %v6565_v59 = vadd.f32 %v6557_v42, %v15440_v54  ;;  %v15535_v0 = vld [vmem:[#allocation105_spill] sm:$0xff] }
0x16aa   :  { %v6564_v37 = vadd.f32 %v6556_v60, %v15348_v31  ;;  %v6566_v39 = vadd.f32 %v6558_v29, %v15534_v51 }
0x16ab   :  { %v9018_v38 = vmul.f32 -1.442695, %v6563_v47  ;;  %v9020_v49 = vmul.f32 -1.442695, %v6565_v59 }
0x16ac   :  { %v9019_v50 = vmul.f32 -1.442695, %v6564_v37 }
0x16ad   :  { %9912 = vpow2.f32 %v9018_v38  ;;  %v6617_v38 = vrot.slane %v15535_v0, 7 }
0x16ae   :  { %9914 = vpow2.f32 %v9019_v50 }
0x16af   :  { %9916 = vtanh.f32 %v6566_v39 }
0x16b0   :  { %9918 = vpow2.f32 %v9020_v49 }
0x16b7   :  { %v9913_v12 = vpop.eup %9912 }
0x16b8   :  { %v6606_v1 = vadd.f32 1.0, %v9913_v12  ;;  %v9915_v44 = vpop.eup %9914 }
0x16b9   :  { %v6607_v5 = vadd.f32 1.0, %v9915_v44  ;;  %v9917_v60 = vpop.eup %9916 }
0x16ba   :  { %9920 = vrcp.f32 %v6606_v1  ;;  %v9919_v47 = vpop.eup %9918 }
0x16bb   :  { %9922 = vrcp.f32 %v6607_v5  ;;  %v6608_v26 = vadd.f32 1.0, %v9919_v47 }
0x16bd   :  { %9924 = vrcp.f32 %v6608_v26 }
0x16c4   :  { %v9921_v37 = vpop.eup %9920 }
0x16c5   :  { %v6620_v50 = vmul.f32 %v9921_v37, %v9917_v60  ;;  %v9923_v48 = vpop.eup %9922 }
0x16c6   :  { %v6619_v42 = vmul.f32 %v9923_v48, %v6617_v38 }
0x16c7   :  { %v9925_v29 = vpop.eup %9924 }
0x16c8   :  { %v13267_v2 = vadd.f32 %v6620_v50, %v6619_v42 }
0x16ca   :  { %15536 = vst [vmem:[#allocation108_spill] sm:$0xff] %v13267_v2  ;;  %9926 = vtanh.f32 %v13267_v2 }
0x16d4   :  { %v9927_v39 = vpop.eup %9926 }
0x16d5   :  { %v6623_v49 = vmul.f32 %v9927_v39, %v9925_v29 }
0x16e6   :  { %v6503_v59 = vpop.f32.mrb[96].mxu0  ;;  %v6544_v12 = vpop.f32.mrb[112].mxu1 }
0x16e7   :  { %v6505_v1 = vpop.f32.mrb[97].mxu0  ;;  %v6546_v44 = vpop.f32.mrb[113].mxu1 }
0x16e8   :  { %v6571_v5 = vcombine.low %v6503_v59, %v6505_v1  ;;  %v6572_v51 = vcombine.low %v6544_v12, %v6546_v44  ;;  %v6507_v54 = vpop.f32.mrb[98].mxu0  ;;  %v6548_v0 = vpop.f32.mrb[114].mxu1 }
0x16e9   :  { %v6508_v60 = vpop.f32.mrb[99].mxu0  ;;  %v6549_v37 = vpop.f32.mrb[115].mxu1 }
0x16ea   :  { %v6579_v47 = vrot.slane %v6571_v5, %v15351_v18  ;;  %v6586_v38 = vrot.slane %v6572_v51, %v15351_v18  ;;  %v6650_v60 = vpack.c.bf16 %v6623_v49, %v6623_v49  ;;  %v15539_v49 = vld [vmem:[#allocation119_spill] sm:$0xff] }
0x16ec   :  { %v6587_v50 = vcombine.low %v6579_v47, %v6586_v38  ;;  %v15537_v47 = vld [vmem:[#allocation140_spill] sm:$0xff] }
0x16ee   :  { %v6594_v48 = vrot.slane %v6587_v50, %v15351_v18 }
0x16f0   :  { %v6596_v26 = vadd.f32 %v6594_v48, %v12961_v36 }
0x16f2   :  { %v9021_v42 = vmul.f32 -1.442695, %v6596_v26  ;;  %v6631_v2 = vrot.slane %v6596_v26, 3 }
0x16f4   :  { %9928 = vpow2.f32 %v9021_v42 }
0x16fe   :  { %v9929_v29 = vpop.eup %9928 }
0x16ff   :  { %v6627_v39 = vadd.f32 1.0, %v9929_v29  ;;  %v15540_v29 = vld [vmem:[#allocation120_spill] sm:$0xff] }
0x1701   :  { %9930 = vrcp.f32 %v6627_v39  ;;  %v15541_v39 = vld [vmem:[#allocation121_spill] sm:$0xff] }
0x1702   :  { %9932 = vtanh.f32 %v6631_v2  ;;  %v8212_v2 = vsel %vm4294_vm5, %v15537_v47, %v13124_v35  ;;  %v15538_v35 = vld [vmem:[#allocation118_spill] sm:$0xff]  ;;  %v15552_v47 = vld [vmem:[#allocation132_spill] sm:$0xff] }
0x170b   :  { %v9931_v54 = vpop.eup %9930 }
0x170c   :  { %v6635_v59 = vrot.slane %v9931_v54, 1  ;;  %v9933_v12 = vpop.eup %9932  ;;  %v6641_v51 = vrot.slane %v9931_v54, 2 }
0x170d   :  { %v6638_v44 = vmul.f32 %v9933_v12, %v9931_v54  ;;  %v15542_v54 = vld [vmem:[#allocation122_spill] sm:$0xff]  ;;  %v15544_v12 = vld [vmem:[#allocation124_spill] sm:$0xff] }
0x170e   :  { %v6637_v1 = vmul.f32 %v6635_v59, %v13120_v46  ;;  %v6653_v46 = vshrl.u32 %v6650_v60, 16  ;;  %v15543_v59 = vld [vmem:[#allocation123_spill] sm:$0xff]  ;;  %v15550_v60 = vld [vmem:[#allocation130_spill] sm:$0xff] }
0x1710   :  { %v13275_v5 = vadd.f32 %v6638_v44, %v6637_v1  ;;  %v13285_v42 = vrot.slane %v6653_v46, 1  ;;  %v15545_v1 = vld [vmem:[#allocation125_spill] sm:$0xff]  ;;  %v15546_v44 = vld [vmem:[#allocation127_spill] sm:$0xff] }
0x1711   :  { %v15555_v46 = vld [vmem:[#allocation201_spill] sm:$0xff] }
0x1712   :  { %9934 = vtanh.f32 %v13275_v5 }
0x171c   :  { %v9935_v0 = vpop.eup %9934 }
0x171d   :  { %v6643_v36 = vmul.f32 %v9935_v0, %v6641_v51  ;;  %v15547_v51 = vld [vmem:[#allocation126_spill] sm:$0xff]  ;;  %v15548_v0 = vld [vmem:[#allocation128_spill] sm:$0xff] }
0x171f   :  { %v6648_v37 = vrot.slane %v6643_v36, %v15353_v62  ;;  %v15549_v36 = vld [vmem:[#allocation129_spill] sm:$0xff] }
0x1721   :  { %v6651_v38 = vpack.c.bf16 %v6648_v37, %v6648_v37  ;;  %v13283_v50 = vsel %vm4296_vm6, %v8212_v2, %v6648_v37  ;;  %v15551_v37 = vld [vmem:[#allocation131_spill] sm:$0xff]  ;;  %v15553_v2 = vld [vmem:[#allocation136_spill] sm:$0xff] }
0x1723   :  { %v6657_v48 = vshrl.u32 %v6651_v38, 16  ;;  %v15554_v38 = vld [vmem:[#allocation137_spill] sm:$0xff] }
0x1725   :  { %v6659_v26 = vrot.slane %v6657_v48, 1  ;;  %v15556_v48 = vld [vmem:[#allocation202_spill] sm:$0xff] }
0x1727   :  { %6694 = vmatprep.mubr.bf16.mxu0 %v6659_v26  ;;  %6735 = vmatprep.mubr.bf16.mxu1 %v6659_v26 }
0x1728   :  { %6695 = vmatmul.mubr.bf16.vlgmr.msra.gmra.mrb[100].mxu0 %v13285_v42  ;;  %6736 = vmatmul.mubr.bf16.vlgmr.msra.gmra.mrb[116].mxu1 %v13285_v42 }
0x1729   :  { %6745 = vmatpush1.bf16.msra.mxu0 %v12666_v24  ;;  %6786 = vmatpush1.bf16.msra.mxu1 %v15354_v53 }
0x172a   :  { %6776 = vmatprep.mubr.bf16.mxu0 %v6659_v26  ;;  %6817 = vmatprep.mubr.bf16.mxu1 %v6659_v26  ;;  %v15557_v26 = vld [vmem:[#allocation203_spill] sm:$0xff] }
0x172b   :  { %6746 = vmatprep.subr.bf16.mxu0 %v15355_v17  ;;  %6787 = vmatprep.subr.bf16.mxu1 %v15356_v61 }
0x172d   :  { %6747 = vmatpush1.bf16.msra.mxu0 %v15443_v16  ;;  %6788 = vmatpush1.bf16.msra.mxu1 %v15444_v22 }
0x172e   :  { %6748 = vmatprep.subr.bf16.mxu0 %v15445_v27  ;;  %6789 = vmatprep.subr.bf16.mxu1 %v15446_v32 }
0x1731   :  { %6749 = vmatpush1.bf16.msra.mxu0 %v15447_v13  ;;  %6790 = vmatpush1.bf16.msra.mxu1 %v15448_v23 }
0x1732   :  { %6750 = vmatprep.subr.bf16.mxu0 %v15449_v19  ;;  %6791 = vmatprep.subr.bf16.mxu1 %v15538_v35 }
0x1735   :  { %6751 = vmatpush1.bf16.msra.mxu0 %v15539_v49  ;;  %6792 = vmatpush1.bf16.msra.mxu1 %v15540_v29 }
0x1736   :  { %6752 = vmatprep.subr.bf16.mxu0 %v15541_v39  ;;  %6793 = vmatprep.subr.bf16.mxu1 %v15542_v54 }
0x1739   :  { %6753 = vmatpush1.bf16.msra.mxu0 %v15543_v59  ;;  %6794 = vmatpush1.bf16.msra.mxu1 %v15544_v12 }
0x173a   :  { %6754 = vmatprep.subr.bf16.mxu0 %v15545_v1  ;;  %6795 = vmatprep.subr.bf16.mxu1 %v15546_v44 }
0x173d   :  { %6755 = vmatpush1.bf16.msra.mxu0 %v15547_v51  ;;  %6796 = vmatpush1.bf16.msra.mxu1 %v15548_v0 }
0x173e   :  { %6756 = vmatprep.subr.bf16.mxu0 %v15549_v36  ;;  %6797 = vmatprep.subr.bf16.mxu1 %v15550_v60 }
0x1741   :  { %6757 = vmatpush1.bf16.msra.mxu0 %v15551_v37  ;;  %6798 = vmatpush1.bf16.msra.mxu1 %v15552_v47 }
0x1742   :  { %6758 = vmatprep.subr.bf16.mxu0 %v15465_v10  ;;  %6799 = vmatprep.subr.bf16.mxu1 %v15466_v52 }
0x1745   :  { %6759 = vmatpush1.bf16.msra.mxu0 %v15467_v7  ;;  %6800 = vmatpush1.bf16.msra.mxu1 %v15553_v2 }
0x1746   :  { %6760 = vmatprep.subr.bf16.mxu0 %v15554_v38  ;;  %6801 = vmatprep.subr.bf16.mxu1 %v15470_v25 }
0x1749   :  { %6761 = vmatpush1.bf16.msra.mxu0 %v15471_v55  ;;  %6802 = vmatpush1.bf16.msra.mxu1 %v15472_v8 }
0x174a   :  { %6762 = vmatprep.subr.bf16.mxu0 %v15473_v28  ;;  %6803 = vmatprep.subr.bf16.mxu1 %v15474_v14 }
0x174d   :  { %6763 = vmatpush1.bf16.msra.mxu0 %v15475_v45  ;;  %6804 = vmatpush1.bf16.msra.mxu1 %v15390_v57 }
0x174e   :  { %6764 = vmatprep.subr.bf16.mxu0 %v15391_v21  ;;  %6805 = vmatprep.subr.bf16.mxu1 %v15392_v9 }
0x1751   :  { %6765 = vmatpush1.bf16.msra.mxu0 %v15476_v11  ;;  %6806 = vmatpush1.bf16.msra.mxu1 %v15477_v3  ;;  %v15629_v3 = vld [vmem:[#allocation106_spill] sm:$0xff] }
0x1752   :  { %6766 = vmatprep.subr.bf16.mxu0 %v15395_v15  ;;  %6807 = vmatprep.subr.bf16.mxu1 %v15396_v56 }
0x1755   :  { %6767 = vmatpush1.bf16.msra.mxu0 %v15397_v43  ;;  %6808 = vmatpush1.bf16.msra.mxu1 %v15398_v63 }
0x1756   :  { %6768 = vmatprep.subr.bf16.mxu0 %v15399_v40  ;;  %6809 = vmatprep.subr.bf16.mxu1 %v15400_v58  ;;  %v15558_v40 = vld [vmem:[#allocation204_spill] sm:$0xff]  ;;  %v15559_v58 = vld [vmem:[#allocation143_spill] sm:$0xff] }
0x1759   :  { %6769 = vmatpush1.bf16.msra.mxu0 %v12839_v20  ;;  %6810 = vmatpush1.bf16.msra.mxu1 %v12841_v33  ;;  %v15560_v20 = vld [vmem:[#allocation144_spill] sm:$0xff]  ;;  %v15561_v33 = vld [vmem:[#allocation147_spill] sm:$0xff] }
0x175a   :  { %6770 = vmatprep.subr.bf16.mxu0 %v12845_v41  ;;  %6811 = vmatprep.subr.bf16.mxu1 %v15401_v30  ;;  %v15562_v41 = vld [vmem:[#allocation72_spill] sm:$0xff] }
0x175b   :  { %v15563_v30 = vld [vmem:[#allocation148_spill] sm:$0xff] }
0x175d   :  { %6771 = vmatpush1.bf16.msra.mxu0 %v15402_v6  ;;  %6812 = vmatpush1.bf16.msra.mxu1 %v12853_v4  ;;  %v15564_v6 = vld [vmem:[#allocation149_spill] sm:$0xff] }
0x175e   :  { %6772 = vmatprep.subr.bf16.mxu0 %v15555_v46  ;;  %6813 = vmatprep.subr.bf16.mxu1 %v15556_v48  ;;  %v15565_v48 = vld [vmem:[#allocation150_spill] sm:$0xff]  ;;  %v15574_v46 = vld [vmem:[#allocation175_spill] sm:$0xff] }
0x1761   :  { %6773 = vmatpush1.bf16.msra.mxu0 %v15557_v26  ;;  %6814 = vmatpush1.bf16.msra.mxu1 %v15558_v40  ;;  %v15566_v26 = vld [vmem:[#allocation151_spill] sm:$0xff]  ;;  %v15567_v40 = vld [vmem:[#allocation152_spill] sm:$0xff] }
0x1762   :  { %6774 = vmatprep.subr.bf16.mxu0 %v15559_v58  ;;  %6815 = vmatprep.subr.bf16.mxu1 %v15560_v20  ;;  %v15568_v58 = vld [vmem:[#allocation153_spill] sm:$0xff]  ;;  %v15569_v20 = vld [vmem:[#allocation154_spill] sm:$0xff] }
0x1765   :  { %6775 = vmatpush1.bf16.msra.mxu0 %v15561_v33  ;;  %6816 = vmatpush1.bf16.msra.mxu1 %v15562_v41  ;;  %v15570_v33 = vld [vmem:[#allocation169_spill] sm:$0xff]  ;;  %v15571_v41 = vld [vmem:[#allocation170_spill] sm:$0xff] }
0x1766   :  { %6933 = vmatprep.subr.bf16.mxu0 %v15563_v30  ;;  %6974 = vmatprep.subr.bf16.mxu1 %v15564_v6  ;;  %v15572_v30 = vld [vmem:[#allocation171_spill] sm:$0xff]  ;;  %v15573_v6 = vld [vmem:[#allocation174_spill] sm:$0xff] }
0x1768   :  { %6777 = vmatmul.mubr.bf16.vlgmr.msra.gmra.mrb[104].mxu0 %v13285_v42  ;;  %6818 = vmatmul.mubr.bf16.vlgmr.msra.gmra.mrb[120].mxu1 %v13285_v42  ;;  %v15575_v42 = vld [vmem:[#allocation176_spill] sm:$0xff] }
0x1769   :  { %6934 = vmatpush1.bf16.msra.mxu0 %v15565_v48  ;;  %6975 = vmatpush1.bf16.msra.mxu1 %v15566_v26  ;;  %v15576_v48 = vld [vmem:[#allocation177_spill] sm:$0xff]  ;;  %v15577_v26 = vld [vmem:[#allocation178_spill] sm:$0xff] }
0x176a   :  { %6935 = vmatprep.subr.bf16.mxu0 %v15567_v40  ;;  %6976 = vmatprep.subr.bf16.mxu1 %v15568_v58  ;;  %v15578_v40 = vld [vmem:[#allocation139_spill] sm:$0xff]  ;;  %v15579_v58 = vld [vmem:[#allocation206_spill] sm:$0xff] }
0x176d   :  { %6936 = vmatpush1.bf16.msra.mxu0 %v15569_v20  ;;  %6977 = vmatpush1.bf16.msra.mxu1 %v15570_v33  ;;  %v15580_v20 = vld [vmem:[#allocation155_spill] sm:$0xff]  ;;  %v15581_v33 = vld [vmem:[#allocation156_spill] sm:$0xff] }
0x176e   :  { %6937 = vmatprep.subr.bf16.mxu0 %v15571_v41  ;;  %6978 = vmatprep.subr.bf16.mxu1 %v15572_v30  ;;  %v15582_v41 = vld [vmem:[#allocation157_spill] sm:$0xff]  ;;  %v15583_v30 = vld [vmem:[#allocation158_spill] sm:$0xff] }
0x1771   :  { %6938 = vmatpush1.bf16.msra.mxu0 %v15573_v6  ;;  %6979 = vmatpush1.bf16.msra.mxu1 %v15574_v46  ;;  %v15584_v6 = vld [vmem:[#allocation159_spill] sm:$0xff]  ;;  %v15585_v46 = vld [vmem:[#allocation160_spill] sm:$0xff] }
0x1772   :  { %6939 = vmatprep.subr.bf16.mxu0 %v15575_v42  ;;  %6980 = vmatprep.subr.bf16.mxu1 %v15576_v48  ;;  %v15586_v42 = vld [vmem:[#allocation161_spill] sm:$0xff]  ;;  %v15587_v48 = vld [vmem:[#allocation162_spill] sm:$0xff] }
0x1775   :  { %6940 = vmatpush1.bf16.msra.mxu0 %v15577_v26  ;;  %6981 = vmatpush1.bf16.msra.mxu1 %v15578_v40  ;;  %v15588_v26 = vld [vmem:[#allocation163_spill] sm:$0xff]  ;;  %v15589_v40 = vld [vmem:[#allocation164_spill] sm:$0xff] }
0x1776   :  { %6941 = vmatprep.subr.bf16.mxu0 %v15579_v58  ;;  %6982 = vmatprep.subr.bf16.mxu1 %v15580_v20  ;;  %v15590_v58 = vld [vmem:[#allocation165_spill] sm:$0xff]  ;;  %v15591_v20 = vld [vmem:[#allocation166_spill] sm:$0xff] }
0x1779   :  { %6942 = vmatpush1.bf16.msra.mxu0 %v15581_v33  ;;  %6983 = vmatpush1.bf16.msra.mxu1 %v15582_v41  ;;  %v15592_v33 = vld [vmem:[#allocation167_spill] sm:$0xff]  ;;  %v15593_v41 = vld [vmem:[#allocation168_spill] sm:$0xff] }
0x177a   :  { %6943 = vmatprep.subr.bf16.mxu0 %v15583_v30  ;;  %6984 = vmatprep.subr.bf16.mxu1 %v15584_v6  ;;  %v15594_v30 = vld [vmem:[#allocation172_spill] sm:$0xff]  ;;  %v15595_v6 = vld [vmem:[#allocation173_spill] sm:$0xff] }
0x177d   :  { %6944 = vmatpush1.bf16.msra.mxu0 %v15585_v46  ;;  %6985 = vmatpush1.bf16.msra.mxu1 %v15586_v42  ;;  %v15596_v46 = vld [vmem:[#allocation145_spill] sm:$0xff]  ;;  %v15597_v42 = vld [vmem:[#allocation179_spill] sm:$0xff] }
0x177e   :  { %6945 = vmatprep.subr.bf16.mxu0 %v15587_v48  ;;  %6986 = vmatprep.subr.bf16.mxu1 %v15588_v26  ;;  %v15598_v48 = vld [vmem:[#allocation73_spill] sm:$0xff]  ;;  %v15599_v26 = vld [vmem:[#allocation75_spill] sm:$0xff] }
0x1781   :  { %6946 = vmatpush1.bf16.msra.mxu0 %v15589_v40  ;;  %6987 = vmatpush1.bf16.msra.mxu1 %v15590_v58  ;;  %v15600_v40 = vld [vmem:[#allocation74_spill] sm:$0xff]  ;;  %v15601_v58 = vld [vmem:[#allocation76_spill] sm:$0xff] }
0x1782   :  { %6947 = vmatprep.subr.bf16.mxu0 %v15591_v20  ;;  %6988 = vmatprep.subr.bf16.mxu1 %v15592_v33  ;;  %v15602_v20 = vld [vmem:[#allocation77_spill] sm:$0xff]  ;;  %v15603_v33 = vld [vmem:[#allocation78_spill] sm:$0xff] }
0x1785   :  { %6948 = vmatpush1.bf16.msra.mxu0 %v15593_v41  ;;  %6989 = vmatpush1.bf16.msra.mxu1 %v15594_v30  ;;  %v15604_v41 = vld [vmem:[#allocation79_spill] sm:$0xff]  ;;  %v15605_v30 = vld [vmem:[#allocation80_spill] sm:$0xff] }
0x1786   :  { %6949 = vmatprep.subr.bf16.mxu0 %v15595_v6  ;;  %6990 = vmatprep.subr.bf16.mxu1 %v15596_v46  ;;  %v15606_v6 = vld [vmem:[#allocation81_spill] sm:$0xff]  ;;  %v15607_v46 = vld [vmem:[#allocation82_spill] sm:$0xff] }
0x1789   :  { %6950 = vmatpush1.bf16.msra.mxu0 %v15597_v42  ;;  %6991 = vmatpush1.bf16.msra.mxu1 %v15598_v48  ;;  %v15608_v42 = vld [vmem:[#allocation83_spill] sm:$0xff]  ;;  %v15609_v48 = vld [vmem:[#allocation84_spill] sm:$0xff] }
0x178a   :  { %6951 = vmatprep.subr.bf16.mxu0 %v15599_v26  ;;  %6992 = vmatprep.subr.bf16.mxu1 %v15600_v40  ;;  %v15610_v26 = vld [vmem:[#allocation85_spill] sm:$0xff]  ;;  %v15611_v40 = vld [vmem:[#allocation86_spill] sm:$0xff] }
0x178d   :  { %6952 = vmatpush1.bf16.msra.mxu0 %v15601_v58  ;;  %6993 = vmatpush1.bf16.msra.mxu1 %v15602_v20  ;;  %v15612_v58 = vld [vmem:[#allocation87_spill] sm:$0xff]  ;;  %v15613_v20 = vld [vmem:[#allocation88_spill] sm:$0xff] }
0x178e   :  { %6953 = vmatprep.subr.bf16.mxu0 %v15603_v33  ;;  %6994 = vmatprep.subr.bf16.mxu1 %v15604_v41  ;;  %v15614_v33 = vld [vmem:[#allocation89_spill] sm:$0xff]  ;;  %v15615_v41 = vld [vmem:[#allocation90_spill] sm:$0xff] }
0x1791   :  { %6954 = vmatpush1.bf16.msra.mxu0 %v15605_v30  ;;  %6995 = vmatpush1.bf16.msra.mxu1 %v15606_v6  ;;  %v15616_v30 = vld [vmem:[#allocation92_spill] sm:$0xff]  ;;  %v15617_v6 = vld [vmem:[#allocation91_spill] sm:$0xff] }
0x1792   :  { %6955 = vmatprep.subr.bf16.mxu0 %v15607_v46  ;;  %6996 = vmatprep.subr.bf16.mxu1 %v15608_v42  ;;  %v15618_v46 = vld [vmem:[#allocation93_spill] sm:$0xff]  ;;  %v15619_v42 = vld [vmem:[#allocation94_spill] sm:$0xff] }
0x1795   :  { %6956 = vmatpush1.bf16.msra.mxu0 %v15609_v48  ;;  %6997 = vmatpush1.bf16.msra.mxu1 %v15610_v26  ;;  %v15620_v48 = vld [vmem:[#allocation95_spill] sm:$0xff]  ;;  %v15621_v26 = vld [vmem:[#allocation96_spill] sm:$0xff] }
0x1796   :  { %6957 = vmatprep.subr.bf16.mxu0 %v15611_v40  ;;  %6998 = vmatprep.subr.bf16.mxu1 %v15612_v58  ;;  %v15622_v40 = vld [vmem:[#allocation97_spill] sm:$0xff]  ;;  %v15623_v58 = vld [vmem:[#allocation98_spill] sm:$0xff] }
0x1799   :  { %6958 = vmatpush1.bf16.msra.mxu0 %v15613_v20  ;;  %6999 = vmatpush1.bf16.msra.mxu1 %v15614_v33  ;;  %v15624_v20 = vld [vmem:[#allocation99_spill] sm:$0xff]  ;;  %v15625_v33 = vld [vmem:[#allocation100_spill] sm:$0xff] }
0x179a   :  { %6959 = vmatprep.subr.bf16.mxu0 %v15615_v41  ;;  %7000 = vmatprep.subr.bf16.mxu1 %v15616_v30  ;;  %v15626_v41 = vld [vmem:[#allocation101_spill] sm:$0xff]  ;;  %v15627_v30 = vld [vmem:[#allocation102_spill] sm:$0xff] }
0x179d   :  { %6960 = vmatpush1.bf16.msra.mxu0 %v15617_v6  ;;  %7001 = vmatpush1.bf16.msra.mxu1 %v15618_v46  ;;  %v15628_v6 = vld [vmem:[#allocation103_spill] sm:$0xff] }
0x179e   :  { %6961 = vmatprep.subr.bf16.mxu0 %v15619_v42  ;;  %7002 = vmatprep.subr.bf16.mxu1 %v15620_v48 }
0x17a1   :  { %6962 = vmatpush1.bf16.msra.mxu0 %v15621_v26  ;;  %7003 = vmatpush1.bf16.msra.mxu1 %v15622_v40 }
0x17a2   :  { %6963 = vmatprep.subr.bf16.mxu0 %v15623_v58  ;;  %7004 = vmatprep.subr.bf16.mxu1 %v15624_v20 }
0x17a5   :  { %6964 = vmatpush1.bf16.msra.mxu0 %v15625_v33  ;;  %7005 = vmatpush1.bf16.msra.mxu1 %v15626_v41 }
0x17a6   :  { %7015 = vmatprep.subr.bf16.mxu0 %v15627_v30  ;;  %7056 = vmatprep.subr.bf16.mxu1 %v15628_v6 }
0x17fb   :  { %v6696_v46 = vpop.f32.mrb[100].mxu0  ;;  %v6737_v42 = vpop.f32.mrb[116].mxu1 }
0x17fc   :  { %v6830_v4 = vrot.slane %v6696_v46, 4  ;;  %v6698_v48 = vpop.f32.mrb[101].mxu0  ;;  %v6739_v63 = vpop.f32.mrb[117].mxu1  ;;  %v6832_v30 = vrot.slane %v6737_v42, 4  ;;  %v15630_v46 = vld [vmem:[#allocation107_spill] sm:$0xff] }
0x17fd   :  { %v6831_v26 = vrot.slane %v6698_v48, 4  ;;  %v6700_v43 = vpop.f32.mrb[102].mxu0  ;;  %v6741_v40 = vpop.f32.mrb[118].mxu1  ;;  %v6833_v6 = vrot.slane %v6739_v63, 4 }
0x17fe   :  { %v6838_v58 = vadd.f32 %v6830_v4, %v12675_v34  ;;  %v6701_v56 = vpop.f32.mrb[103].mxu0  ;;  %v6742_v20 = vpop.f32.mrb[119].mxu1  ;;  %v6840_v11 = vadd.f32 %v6832_v30, %v15629_v3 }
0x17ff   :  { %v6839_v33 = vadd.f32 %v6831_v26, %v15348_v31  ;;  %v6841_v9 = vadd.f32 %v6833_v6, %v15630_v46 }
0x1800   :  { %v9022_v15 = vmul.f32 -1.442695, %v6838_v58  ;;  %v9024_v21 = vmul.f32 -1.442695, %v6840_v11 }
0x1801   :  { %v9023_v41 = vmul.f32 -1.442695, %v6839_v33 }
0x1802   :  { %9936 = vpow2.f32 %v9022_v15  ;;  %v15631_v15 = vld [vmem:[#allocation108_spill] sm:$0xff] }
0x1803   :  { %9938 = vpow2.f32 %v9023_v41  ;;  %v6892_v56 = vrot.slane %v15631_v15, 7 }
0x1804   :  { %9940 = vtanh.f32 %v6841_v9 }
0x1805   :  { %9942 = vpow2.f32 %v9024_v21 }
0x180c   :  { %v9937_v48 = vpop.eup %9936 }
0x180d   :  { %v6881_v43 = vadd.f32 1.0, %v9937_v48  ;;  %v9939_v40 = vpop.eup %9938 }
0x180e   :  { %v6882_v20 = vadd.f32 1.0, %v9939_v40  ;;  %v9941_v4 = vpop.eup %9940 }
0x180f   :  { %9944 = vrcp.f32 %v6881_v43  ;;  %v9943_v58 = vpop.eup %9942 }
0x1810   :  { %9946 = vrcp.f32 %v6882_v20  ;;  %v6883_v26 = vadd.f32 1.0, %v9943_v58 }
0x1812   :  { %9948 = vrcp.f32 %v6883_v26  ;;  %v13430_v26 = vld [vmem:[#allocation32] sm:$0xf] }
0x1819   :  { %v9945_v33 = vpop.eup %9944 }
0x181a   :  { %v6895_v41 = vmul.f32 %v9945_v33, %v9941_v4  ;;  %v9947_v63 = vpop.eup %9946 }
0x181b   :  { %v6894_v30 = vmul.f32 %v9947_v63, %v6892_v56 }
0x181c   :  { %v9949_v9 = vpop.eup %9948 }
0x181d   :  { %v13424_v42 = vadd.f32 %v6895_v41, %v6894_v30 }
0x181f   :  { %9950 = vtanh.f32 %v13424_v42 }
0x1829   :  { %v9951_v6 = vpop.eup %9950 }
0x182a   :  { %v6898_v21 = vmul.f32 %v9951_v6, %v9949_v9 }
0x183b   :  { %v6778_v11 = vpop.f32.mrb[104].mxu0  ;;  %v6819_v48 = vpop.f32.mrb[120].mxu1 }
0x183c   :  { %v6780_v43 = vpop.f32.mrb[105].mxu0  ;;  %v6821_v40 = vpop.f32.mrb[121].mxu1 }
0x183d   :  { %v6846_v20 = vcombine.low %v6778_v11, %v6780_v43  ;;  %v6847_v46 = vcombine.low %v6819_v48, %v6821_v40  ;;  %v6782_v3 = vpop.f32.mrb[106].mxu0  ;;  %v6823_v15 = vpop.f32.mrb[122].mxu1 }
0x183e   :  { %v6783_v4 = vpop.f32.mrb[107].mxu0  ;;  %v6824_v33 = vpop.f32.mrb[123].mxu1 }
0x183f   :  { %v6854_v58 = vrot.slane %v6846_v20, %v15351_v18  ;;  %v6861_v56 = vrot.slane %v6847_v46, %v15351_v18 }
0x1841   :  { %v6862_v41 = vcombine.low %v6854_v58, %v6861_v56 }
0x1843   :  { %v6869_v63 = vrot.slane %v6862_v41, %v15351_v18  ;;  %v6925_v41 = vpack.c.bf16 %v6898_v21, %v6898_v21  ;;  %v15634_v21 = vld [vmem:[#allocation187_spill] sm:$0xff] }
0x1845   :  { %v6871_v30 = vadd.f32 %v13430_v26, %v6869_v63 }
0x1847   :  { %v9025_v9 = vmul.f32 -1.442695, %v6871_v30  ;;  %v6906_v48 = vrot.slane %v6871_v30, 3 }
0x1849   :  { %9952 = vpow2.f32 %v9025_v9 }
0x1853   :  { %v9953_v6 = vpop.eup %9952 }
0x1854   :  { %v6902_v11 = vadd.f32 1.0, %v9953_v6  ;;  %v13442_v6 = vrot.slane %v6925_v41, 2  ;;  %v15646_v41 = vld [vmem:[#allocation199_spill] sm:$0xff] }
0x1856   :  { %9954 = vrcp.f32 %v6902_v11  ;;  %v15635_v11 = vld [vmem:[#allocation188_spill] sm:$0xff] }
0x1857   :  { %9956 = vtanh.f32 %v6906_v48  ;;  %v15636_v48 = vld [vmem:[#allocation189_spill] sm:$0xff] }
0x1860   :  { %v9955_v3 = vpop.eup %9954 }
0x1861   :  { %v6910_v43 = vrot.slane %v9955_v3, 1  ;;  %v9957_v40 = vpop.eup %9956  ;;  %v6916_v4 = vrot.slane %v9955_v3, 2 }
0x1862   :  { %v6913_v46 = vmul.f32 %v9957_v40, %v9955_v3  ;;  %v15637_v3 = vld [vmem:[#allocation190_spill] sm:$0xff]  ;;  %v15639_v40 = vld [vmem:[#allocation192_spill] sm:$0xff] }
0x1863   :  { %v6912_v20 = vmul.f32 %v6910_v43, %v13275_v5  ;;  %v15632_v5 = vld [vmem:[#allocation185_spill] sm:$0xff]  ;;  %v15638_v43 = vld [vmem:[#allocation191_spill] sm:$0xff] }
0x1865   :  { %v13434_v15 = vadd.f32 %v6913_v46, %v6912_v20  ;;  %v15640_v20 = vld [vmem:[#allocation193_spill] sm:$0xff]  ;;  %v15641_v46 = vld [vmem:[#allocation194_spill] sm:$0xff] }
0x1867   :  { %9958 = vtanh.f32 %v13434_v15 }
0x1871   :  { %v9959_v33 = vpop.eup %9958 }
0x1872   :  { %v6918_v58 = vmul.f32 %v9959_v33, %v6916_v4  ;;  %v15642_v4 = vld [vmem:[#allocation195_spill] sm:$0xff]  ;;  %v15643_v33 = vld [vmem:[#allocation196_spill] sm:$0xff] }
0x1874   :  { %v6923_v56 = vrot.slane %v6918_v58, %v15353_v62  ;;  %v15644_v58 = vld [vmem:[#allocation197_spill] sm:$0xff] }
0x1876   :  { %v6926_v63 = vpack.c.bf16 %v6923_v56, %v6923_v56  ;;  %v13440_v30 = vsel %vm4298_vm7, %v13283_v50, %v6923_v56  ;;  %v15633_v50 = vld [vmem:[#allocation186_spill] sm:$0xff] }
0x1877   :  { %v15645_v56 = vld [vmem:[#allocation198_spill] sm:$0xff] }
0x1878   :  { %v6930_v9 = vrot.slane %v6926_v63, 2  ;;  %v15647_v63 = vld [vmem:[#allocation200_spill] sm:$0xff] }
0x187a   :  { %6965 = vmatprep.mubr.bf16.mxu0 %v6930_v9  ;;  %7006 = vmatprep.mubr.bf16.mxu1 %v6930_v9 }
0x187b   :  { %6966 = vmatmul.mubr.bf16.vlgmr.msra.gmra.mrb[108].mxu0 %v13442_v6  ;;  %7007 = vmatmul.mubr.bf16.vlgmr.msra.gmra.mrb[124].mxu1 %v13442_v6 }
0x187c   :  { %7016 = vmatpush1.bf16.msra.mxu0 %v12666_v24  ;;  %7057 = vmatpush1.bf16.msra.mxu1 %v15354_v53 }
0x187d   :  { %7047 = vmatprep.mubr.bf16.mxu0 %v6930_v9  ;;  %7088 = vmatprep.mubr.bf16.mxu1 %v6930_v9  ;;  %v15648_v9 = vld [vmem:[#allocation201_spill] sm:$0xff] }
0x187e   :  { %7017 = vmatprep.subr.bf16.mxu0 %v15355_v17  ;;  %7058 = vmatprep.subr.bf16.mxu1 %v15356_v61 }
0x1880   :  { %7018 = vmatpush1.bf16.msra.mxu0 %v15443_v16  ;;  %7059 = vmatpush1.bf16.msra.mxu1 %v15444_v22 }
0x1881   :  { %7019 = vmatprep.subr.bf16.mxu0 %v15445_v27  ;;  %7060 = vmatprep.subr.bf16.mxu1 %v15446_v32 }
0x1884   :  { %7020 = vmatpush1.bf16.msra.mxu0 %v15447_v13  ;;  %7061 = vmatpush1.bf16.msra.mxu1 %v15448_v23 }
0x1885   :  { %7021 = vmatprep.subr.bf16.mxu0 %v15449_v19  ;;  %7062 = vmatprep.subr.bf16.mxu1 %v15538_v35 }
0x1888   :  { %7022 = vmatpush1.bf16.msra.mxu0 %v15539_v49  ;;  %7063 = vmatpush1.bf16.msra.mxu1 %v15540_v29 }
0x1889   :  { %7023 = vmatprep.subr.bf16.mxu0 %v15541_v39  ;;  %7064 = vmatprep.subr.bf16.mxu1 %v15542_v54 }
0x188c   :  { %7024 = vmatpush1.bf16.msra.mxu0 %v15543_v59  ;;  %7065 = vmatpush1.bf16.msra.mxu1 %v15544_v12 }
0x188d   :  { %7025 = vmatprep.subr.bf16.mxu0 %v15545_v1  ;;  %7066 = vmatprep.subr.bf16.mxu1 %v15546_v44 }
0x1890   :  { %7026 = vmatpush1.bf16.msra.mxu0 %v15547_v51  ;;  %7067 = vmatpush1.bf16.msra.mxu1 %v15548_v0 }
0x1891   :  { %7027 = vmatprep.subr.bf16.mxu0 %v15549_v36  ;;  %7068 = vmatprep.subr.bf16.mxu1 %v15550_v60 }
0x1894   :  { %7028 = vmatpush1.bf16.msra.mxu0 %v15551_v37  ;;  %7069 = vmatpush1.bf16.msra.mxu1 %v15552_v47 }
0x1895   :  { %7029 = vmatprep.subr.bf16.mxu0 %v15465_v10  ;;  %7070 = vmatprep.subr.bf16.mxu1 %v15466_v52 }
0x1898   :  { %7030 = vmatpush1.bf16.msra.mxu0 %v15467_v7  ;;  %7071 = vmatpush1.bf16.msra.mxu1 %v15553_v2 }
0x1899   :  { %7031 = vmatprep.subr.bf16.mxu0 %v15554_v38  ;;  %7072 = vmatprep.subr.bf16.mxu1 %v15470_v25 }
0x189c   :  { %7032 = vmatpush1.bf16.msra.mxu0 %v15471_v55  ;;  %7073 = vmatpush1.bf16.msra.mxu1 %v15472_v8 }
0x189d   :  { %7033 = vmatprep.subr.bf16.mxu0 %v15473_v28  ;;  %7074 = vmatprep.subr.bf16.mxu1 %v15474_v14 }
0x18a0   :  { %7034 = vmatpush1.bf16.msra.mxu0 %v15475_v45  ;;  %7075 = vmatpush1.bf16.msra.mxu1 %v15390_v57 }
0x18a1   :  { %7035 = vmatprep.subr.bf16.mxu0 %v15632_v5  ;;  %7076 = vmatprep.subr.bf16.mxu1 %v15633_v50  ;;  %v15722_v50 = vld [vmem:[#allocation106_spill] sm:$0xff] }
0x18a4   :  { %7036 = vmatpush1.bf16.msra.mxu0 %v15634_v21  ;;  %7077 = vmatpush1.bf16.msra.mxu1 %v15635_v11 }
0x18a5   :  { %7037 = vmatprep.subr.bf16.mxu0 %v15636_v48  ;;  %7078 = vmatprep.subr.bf16.mxu1 %v15637_v3 }
0x18a8   :  { %7038 = vmatpush1.bf16.msra.mxu0 %v15638_v43  ;;  %7079 = vmatpush1.bf16.msra.mxu1 %v15639_v40  ;;  %v15649_v43 = vld [vmem:[#allocation202_spill] sm:$0xff]  ;;  %v15650_v40 = vld [vmem:[#allocation203_spill] sm:$0xff] }
0x18a9   :  { %7039 = vmatprep.subr.bf16.mxu0 %v15640_v20  ;;  %7080 = vmatprep.subr.bf16.mxu1 %v15641_v46  ;;  %v15651_v20 = vld [vmem:[#allocation204_spill] sm:$0xff]  ;;  %v15652_v46 = vld [vmem:[#allocation143_spill] sm:$0xff] }
0x18ac   :  { %7040 = vmatpush1.bf16.msra.mxu0 %v15642_v4  ;;  %7081 = vmatpush1.bf16.msra.mxu1 %v15643_v33  ;;  %v15653_v4 = vld [vmem:[#allocation144_spill] sm:$0xff]  ;;  %v15654_v33 = vld [vmem:[#allocation147_spill] sm:$0xff] }
0x18ad   :  { %7041 = vmatprep.subr.bf16.mxu0 %v15644_v58  ;;  %7082 = vmatprep.subr.bf16.mxu1 %v15645_v56  ;;  %v15655_v58 = vld [vmem:[#allocation72_spill] sm:$0xff] }
0x18ae   :  { %v15656_v56 = vld [vmem:[#allocation148_spill] sm:$0xff] }
0x18b0   :  { %7042 = vmatpush1.bf16.msra.mxu0 %v15646_v41  ;;  %7083 = vmatpush1.bf16.msra.mxu1 %v15647_v63  ;;  %v15657_v41 = vld [vmem:[#allocation149_spill] sm:$0xff] }
0x18b1   :  { %7043 = vmatprep.subr.bf16.mxu0 %v15648_v9  ;;  %7084 = vmatprep.subr.bf16.mxu1 %v15649_v43  ;;  %v15658_v43 = vld [vmem:[#allocation150_spill] sm:$0xff]  ;;  %v15667_v9 = vld [vmem:[#allocation175_spill] sm:$0xff] }
0x18b4   :  { %7044 = vmatpush1.bf16.msra.mxu0 %v15650_v40  ;;  %7085 = vmatpush1.bf16.msra.mxu1 %v15651_v20  ;;  %v15659_v40 = vld [vmem:[#allocation151_spill] sm:$0xff]  ;;  %v15660_v20 = vld [vmem:[#allocation152_spill] sm:$0xff] }
0x18b5   :  { %7045 = vmatprep.subr.bf16.mxu0 %v15652_v46  ;;  %7086 = vmatprep.subr.bf16.mxu1 %v15653_v4  ;;  %v15661_v46 = vld [vmem:[#allocation153_spill] sm:$0xff]  ;;  %v15662_v4 = vld [vmem:[#allocation154_spill] sm:$0xff] }
0x18b8   :  { %7046 = vmatpush1.bf16.msra.mxu0 %v15654_v33  ;;  %7087 = vmatpush1.bf16.msra.mxu1 %v15655_v58  ;;  %v15663_v33 = vld [vmem:[#allocation169_spill] sm:$0xff]  ;;  %v15664_v58 = vld [vmem:[#allocation170_spill] sm:$0xff] }
0x18b9   :  { %7208 = vmatprep.subr.bf16.mxu0 %v15656_v56  ;;  %7249 = vmatprep.subr.bf16.mxu1 %v15657_v41  ;;  %v15665_v56 = vld [vmem:[#allocation171_spill] sm:$0xff]  ;;  %v15666_v41 = vld [vmem:[#allocation174_spill] sm:$0xff] }
0x18bb   :  { %7048 = vmatmul.mubr.bf16.vlgmr.msra.gmra.mrb[112].mxu0 %v13442_v6  ;;  %7089 = vmatmul.mubr.bf16.vlgmr.msra.gmra.mrb[128].mxu1 %v13442_v6  ;;  %v15668_v6 = vld [vmem:[#allocation176_spill] sm:$0xff] }
0x18bc   :  { %7209 = vmatpush1.bf16.msra.mxu0 %v15658_v43  ;;  %7250 = vmatpush1.bf16.msra.mxu1 %v15659_v40  ;;  %v15669_v43 = vld [vmem:[#allocation177_spill] sm:$0xff]  ;;  %v15670_v40 = vld [vmem:[#allocation178_spill] sm:$0xff] }
0x18bd   :  { %7210 = vmatprep.subr.bf16.mxu0 %v15660_v20  ;;  %7251 = vmatprep.subr.bf16.mxu1 %v15661_v46  ;;  %v15671_v20 = vld [vmem:[#allocation139_spill] sm:$0xff]  ;;  %v15672_v46 = vld [vmem:[#allocation206_spill] sm:$0xff] }
0x18c0   :  { %7211 = vmatpush1.bf16.msra.mxu0 %v15662_v4  ;;  %7252 = vmatpush1.bf16.msra.mxu1 %v15663_v33  ;;  %v15673_v4 = vld [vmem:[#allocation155_spill] sm:$0xff]  ;;  %v15674_v33 = vld [vmem:[#allocation156_spill] sm:$0xff] }
0x18c1   :  { %7212 = vmatprep.subr.bf16.mxu0 %v15664_v58  ;;  %7253 = vmatprep.subr.bf16.mxu1 %v15665_v56  ;;  %v15675_v58 = vld [vmem:[#allocation157_spill] sm:$0xff]  ;;  %v15676_v56 = vld [vmem:[#allocation158_spill] sm:$0xff] }
0x18c4   :  { %7213 = vmatpush1.bf16.msra.mxu0 %v15666_v41  ;;  %7254 = vmatpush1.bf16.msra.mxu1 %v15667_v9  ;;  %v15677_v41 = vld [vmem:[#allocation159_spill] sm:$0xff]  ;;  %v15678_v9 = vld [vmem:[#allocation160_spill] sm:$0xff] }
0x18c5   :  { %7214 = vmatprep.subr.bf16.mxu0 %v15668_v6  ;;  %7255 = vmatprep.subr.bf16.mxu1 %v15669_v43  ;;  %v15679_v6 = vld [vmem:[#allocation161_spill] sm:$0xff]  ;;  %v15680_v43 = vld [vmem:[#allocation162_spill] sm:$0xff] }
0x18c8   :  { %7215 = vmatpush1.bf16.msra.mxu0 %v15670_v40  ;;  %7256 = vmatpush1.bf16.msra.mxu1 %v15671_v20  ;;  %v15681_v40 = vld [vmem:[#allocation163_spill] sm:$0xff]  ;;  %v15682_v20 = vld [vmem:[#allocation164_spill] sm:$0xff] }
0x18c9   :  { %7216 = vmatprep.subr.bf16.mxu0 %v15672_v46  ;;  %7257 = vmatprep.subr.bf16.mxu1 %v15673_v4  ;;  %v15683_v46 = vld [vmem:[#allocation165_spill] sm:$0xff]  ;;  %v15684_v4 = vld [vmem:[#allocation166_spill] sm:$0xff] }
0x18cc   :  { %7217 = vmatpush1.bf16.msra.mxu0 %v15674_v33  ;;  %7258 = vmatpush1.bf16.msra.mxu1 %v15675_v58  ;;  %v15685_v33 = vld [vmem:[#allocation167_spill] sm:$0xff]  ;;  %v15686_v58 = vld [vmem:[#allocation168_spill] sm:$0xff] }
0x18cd   :  { %7218 = vmatprep.subr.bf16.mxu0 %v15676_v56  ;;  %7259 = vmatprep.subr.bf16.mxu1 %v15677_v41  ;;  %v15687_v56 = vld [vmem:[#allocation172_spill] sm:$0xff]  ;;  %v15688_v41 = vld [vmem:[#allocation173_spill] sm:$0xff] }
0x18d0   :  { %7219 = vmatpush1.bf16.msra.mxu0 %v15678_v9  ;;  %7260 = vmatpush1.bf16.msra.mxu1 %v15679_v6  ;;  %v15689_v9 = vld [vmem:[#allocation145_spill] sm:$0xff]  ;;  %v15690_v6 = vld [vmem:[#allocation179_spill] sm:$0xff] }
0x18d1   :  { %7220 = vmatprep.subr.bf16.mxu0 %v15680_v43  ;;  %7261 = vmatprep.subr.bf16.mxu1 %v15681_v40  ;;  %v15691_v43 = vld [vmem:[#allocation73_spill] sm:$0xff]  ;;  %v15692_v40 = vld [vmem:[#allocation75_spill] sm:$0xff] }
0x18d4   :  { %7221 = vmatpush1.bf16.msra.mxu0 %v15682_v20  ;;  %7262 = vmatpush1.bf16.msra.mxu1 %v15683_v46  ;;  %v15693_v20 = vld [vmem:[#allocation74_spill] sm:$0xff]  ;;  %v15694_v46 = vld [vmem:[#allocation76_spill] sm:$0xff] }
0x18d5   :  { %7222 = vmatprep.subr.bf16.mxu0 %v15684_v4  ;;  %7263 = vmatprep.subr.bf16.mxu1 %v15685_v33  ;;  %v15695_v4 = vld [vmem:[#allocation77_spill] sm:$0xff]  ;;  %v15696_v33 = vld [vmem:[#allocation78_spill] sm:$0xff] }
0x18d8   :  { %7223 = vmatpush1.bf16.msra.mxu0 %v15686_v58  ;;  %7264 = vmatpush1.bf16.msra.mxu1 %v15687_v56  ;;  %v15697_v58 = vld [vmem:[#allocation79_spill] sm:$0xff]  ;;  %v15698_v56 = vld [vmem:[#allocation80_spill] sm:$0xff] }
0x18d9   :  { %7224 = vmatprep.subr.bf16.mxu0 %v15688_v41  ;;  %7265 = vmatprep.subr.bf16.mxu1 %v15689_v9  ;;  %v15699_v41 = vld [vmem:[#allocation81_spill] sm:$0xff]  ;;  %v15700_v9 = vld [vmem:[#allocation82_spill] sm:$0xff] }
0x18dc   :  { %7225 = vmatpush1.bf16.msra.mxu0 %v15690_v6  ;;  %7266 = vmatpush1.bf16.msra.mxu1 %v15691_v43  ;;  %v15701_v6 = vld [vmem:[#allocation83_spill] sm:$0xff]  ;;  %v15702_v43 = vld [vmem:[#allocation84_spill] sm:$0xff] }
0x18dd   :  { %7226 = vmatprep.subr.bf16.mxu0 %v15692_v40  ;;  %7267 = vmatprep.subr.bf16.mxu1 %v15693_v20  ;;  %v15703_v40 = vld [vmem:[#allocation85_spill] sm:$0xff]  ;;  %v15704_v20 = vld [vmem:[#allocation86_spill] sm:$0xff] }
0x18e0   :  { %7227 = vmatpush1.bf16.msra.mxu0 %v15694_v46  ;;  %7268 = vmatpush1.bf16.msra.mxu1 %v15695_v4  ;;  %v15705_v46 = vld [vmem:[#allocation87_spill] sm:$0xff]  ;;  %v15706_v4 = vld [vmem:[#allocation88_spill] sm:$0xff] }
0x18e1   :  { %7228 = vmatprep.subr.bf16.mxu0 %v15696_v33  ;;  %7269 = vmatprep.subr.bf16.mxu1 %v15697_v58  ;;  %v15707_v33 = vld [vmem:[#allocation89_spill] sm:$0xff]  ;;  %v15708_v58 = vld [vmem:[#allocation90_spill] sm:$0xff] }
0x18e4   :  { %7229 = vmatpush1.bf16.msra.mxu0 %v15698_v56  ;;  %7270 = vmatpush1.bf16.msra.mxu1 %v15699_v41  ;;  %v15709_v56 = vld [vmem:[#allocation92_spill] sm:$0xff]  ;;  %v15710_v41 = vld [vmem:[#allocation91_spill] sm:$0xff] }
0x18e5   :  { %7230 = vmatprep.subr.bf16.mxu0 %v15700_v9  ;;  %7271 = vmatprep.subr.bf16.mxu1 %v15701_v6  ;;  %v15711_v9 = vld [vmem:[#allocation93_spill] sm:$0xff]  ;;  %v15712_v6 = vld [vmem:[#allocation94_spill] sm:$0xff] }
0x18e8   :  { %7231 = vmatpush1.bf16.msra.mxu0 %v15702_v43  ;;  %7272 = vmatpush1.bf16.msra.mxu1 %v15703_v40  ;;  %v15713_v43 = vld [vmem:[#allocation95_spill] sm:$0xff]  ;;  %v15714_v40 = vld [vmem:[#allocation96_spill] sm:$0xff] }
0x18e9   :  { %7232 = vmatprep.subr.bf16.mxu0 %v15704_v20  ;;  %7273 = vmatprep.subr.bf16.mxu1 %v15705_v46  ;;  %v15715_v20 = vld [vmem:[#allocation97_spill] sm:$0xff]  ;;  %v15716_v46 = vld [vmem:[#allocation98_spill] sm:$0xff] }
0x18ec   :  { %7233 = vmatpush1.bf16.msra.mxu0 %v15706_v4  ;;  %7274 = vmatpush1.bf16.msra.mxu1 %v15707_v33  ;;  %v15717_v4 = vld [vmem:[#allocation99_spill] sm:$0xff]  ;;  %v15718_v33 = vld [vmem:[#allocation100_spill] sm:$0xff] }
0x18ed   :  { %7234 = vmatprep.subr.bf16.mxu0 %v15708_v58  ;;  %7275 = vmatprep.subr.bf16.mxu1 %v15709_v56  ;;  %v15719_v58 = vld [vmem:[#allocation101_spill] sm:$0xff]  ;;  %v15720_v56 = vld [vmem:[#allocation102_spill] sm:$0xff] }
0x18f0   :  { %7235 = vmatpush1.bf16.msra.mxu0 %v15710_v41  ;;  %7276 = vmatpush1.bf16.msra.mxu1 %v15711_v9  ;;  %v15721_v41 = vld [vmem:[#allocation103_spill] sm:$0xff] }
0x18f1   :  { %7236 = vmatprep.subr.bf16.mxu0 %v15712_v6  ;;  %7277 = vmatprep.subr.bf16.mxu1 %v15713_v43 }
0x18f4   :  { %7237 = vmatpush1.bf16.msra.mxu0 %v15714_v40  ;;  %7278 = vmatpush1.bf16.msra.mxu1 %v15715_v20 }
0x18f5   :  { %7238 = vmatprep.subr.bf16.mxu0 %v15716_v46  ;;  %7279 = vmatprep.subr.bf16.mxu1 %v15717_v4 }
0x18f8   :  { %7239 = vmatpush1.bf16.msra.mxu0 %v15718_v33  ;;  %7280 = vmatpush1.bf16.msra.mxu1 %v15719_v58 }
0x18f9   :  { %7290 = vmatprep.subr.bf16.mxu0 %v15720_v56  ;;  %7331 = vmatprep.subr.bf16.mxu1 %v15721_v41 }
0x194e   :  { %v6967_v9 = vpop.f32.mrb[108].mxu0  ;;  %v7008_v6 = vpop.f32.mrb[124].mxu1 }
0x194f   :  { %v7101_v63 = vrot.slane %v6967_v9, 3  ;;  %v6969_v43 = vpop.f32.mrb[109].mxu0  ;;  %v7010_v3 = vpop.f32.mrb[125].mxu1  ;;  %v7103_v56 = vrot.slane %v7008_v6, 3  ;;  %v15723_v9 = vld [vmem:[#allocation107_spill] sm:$0xff] }
0x1950   :  { %v7102_v40 = vrot.slane %v6969_v43, 3  ;;  %v6971_v48 = vpop.f32.mrb[110].mxu0  ;;  %v7012_v20 = vpop.f32.mrb[126].mxu1  ;;  %v7104_v41 = vrot.slane %v7010_v3, 3 }
0x1951   :  { %v7109_v46 = vadd.f32 %v7101_v63, %v12675_v34  ;;  %v6972_v11 = vpop.f32.mrb[111].mxu0  ;;  %v7013_v4 = vpop.f32.mrb[127].mxu1  ;;  %v7111_v5 = vadd.f32 %v7103_v56, %v15722_v50 }
0x1952   :  { %v7110_v33 = vadd.f32 %v7102_v40, %v15348_v31  ;;  %v7112_v57 = vadd.f32 %v7104_v41, %v15723_v9 }
0x1953   :  { %v9026_v21 = vmul.f32 -1.442695, %v7109_v46  ;;  %v9028_v45 = vmul.f32 -1.442695, %v7111_v5 }
0x1954   :  { %v9027_v58 = vmul.f32 -1.442695, %v7110_v33 }
0x1955   :  { %9960 = vpow2.f32 %v9026_v21  ;;  %v7163_v21 = vrot.slane %v13424_v42, 7 }
0x1956   :  { %9962 = vpow2.f32 %v9027_v58 }
0x1957   :  { %9964 = vtanh.f32 %v7112_v57 }
0x1958   :  { %9966 = vpow2.f32 %v9028_v45 }
0x195f   :  { %v9961_v43 = vpop.eup %9960 }
0x1960   :  { %v7152_v48 = vadd.f32 1.0, %v9961_v43  ;;  %v9963_v20 = vpop.eup %9962 }
0x1961   :  { %v7153_v11 = vadd.f32 1.0, %v9963_v20  ;;  %v9965_v40 = vpop.eup %9964 }
0x1962   :  { %9968 = vrcp.f32 %v7152_v48  ;;  %v9967_v46 = vpop.eup %9966 }
0x1963   :  { %9970 = vrcp.f32 %v7153_v11  ;;  %v7154_v58 = vadd.f32 1.0, %v9967_v46 }
0x1965   :  { %9972 = vrcp.f32 %v7154_v58 }
0x196c   :  { %v9969_v4 = vpop.eup %9968 }
0x196d   :  { %v7166_v33 = vmul.f32 %v9969_v4, %v9965_v40  ;;  %v9971_v3 = vpop.eup %9970 }
0x196e   :  { %v7165_v56 = vmul.f32 %v9971_v3, %v7163_v21 }
0x196f   :  { %v9973_v57 = vpop.eup %9972 }
0x1970   :  { %v13581_v63 = vadd.f32 %v7166_v33, %v7165_v56 }
0x1972   :  { %15724 = vst [vmem:[#allocation205_spill] sm:$0xff] %v13581_v63  ;;  %9974 = vtanh.f32 %v13581_v63 }
0x197c   :  { %v9975_v5 = vpop.eup %9974 }
0x197d   :  { %v7169_v45 = vmul.f32 %v9975_v5, %v9973_v57 }
0x198e   :  { %v7049_v41 = vpop.f32.mrb[112].mxu0  ;;  %v7090_v6 = vpop.f32.mrb[128].mxu1 }
0x198f   :  { %v7051_v43 = vpop.f32.mrb[113].mxu0  ;;  %v7092_v48 = vpop.f32.mrb[129].mxu1 }
0x1990   :  { %v7117_v20 = vcombine.low %v7049_v41, %v7051_v43  ;;  %v7118_v11 = vcombine.low %v7090_v6, %v7092_v48  ;;  %v7053_v9 = vpop.f32.mrb[114].mxu0  ;;  %v7094_v42 = vpop.f32.mrb[130].mxu1 }
0x1991   :  { %v7054_v40 = vpop.f32.mrb[115].mxu0  ;;  %v7095_v4 = vpop.f32.mrb[131].mxu1 }
0x1992   :  { %v7125_v46 = vrot.slane %v7117_v20, %v15351_v18  ;;  %v7132_v21 = vrot.slane %v7118_v11, %v15351_v18  ;;  %v7196_v4 = vpack.c.bf16 %v7169_v45, %v7169_v45  ;;  %v15726_v45 = vld [vmem:[#allocation184_spill] sm:$0xff] }
0x1994   :  { %v7133_v33 = vcombine.low %v7125_v46, %v7132_v21 }
0x1996   :  { %v7140_v3 = vrot.slane %v7133_v33, %v15351_v18  ;;  %v7199_v33 = vshrl.u32 %v7196_v4, 16  ;;  %v15738_v4 = vld [vmem:[#allocation196_spill] sm:$0xff] }
0x1998   :  { %v7142_v58 = vadd.f32 %v13430_v26, %v7140_v3 }
0x199a   :  { %v9029_v56 = vmul.f32 -1.442695, %v7142_v58  ;;  %v7177_v63 = vrot.slane %v7142_v58, 3 }
0x199c   :  { %9976 = vpow2.f32 %v9029_v56  ;;  %v15727_v56 = vld [vmem:[#allocation185_spill] sm:$0xff] }
0x19a6   :  { %v9977_v57 = vpop.eup %9976 }
0x19a7   :  { %v7173_v5 = vadd.f32 1.0, %v9977_v57  ;;  %v15728_v57 = vld [vmem:[#allocation186_spill] sm:$0xff] }
0x19a9   :  { %9978 = vrcp.f32 %v7173_v5  ;;  %v15729_v5 = vld [vmem:[#allocation187_spill] sm:$0xff] }
0x19aa   :  { %9980 = vtanh.f32 %v7177_v63 }
0x19b3   :  { %v9979_v9 = vpop.eup %9978 }
0x19b4   :  { %v7181_v41 = vrot.slane %v9979_v9, 1  ;;  %v9981_v6 = vpop.eup %9980  ;;  %v7187_v11 = vrot.slane %v9979_v9, 2 }
0x19b5   :  { %v7184_v48 = vmul.f32 %v9981_v6, %v9979_v9  ;;  %v15730_v9 = vld [vmem:[#allocation188_spill] sm:$0xff]  ;;  %v15732_v6 = vld [vmem:[#allocation190_spill] sm:$0xff] }
0x19b6   :  { %v7183_v43 = vmul.f32 %v7181_v41, %v13434_v15  ;;  %v13597_v15 = vrot.slane %v7199_v33, 2  ;;  %v15731_v41 = vld [vmem:[#allocation189_spill] sm:$0xff]  ;;  %v15741_v33 = vld [vmem:[#allocation199_spill] sm:$0xff] }
0x19b8   :  { %v13589_v20 = vadd.f32 %v7184_v48, %v7183_v43  ;;  %v15733_v43 = vld [vmem:[#allocation191_spill] sm:$0xff]  ;;  %v15734_v48 = vld [vmem:[#allocation192_spill] sm:$0xff] }
0x19ba   :  { %9982 = vtanh.f32 %v13589_v20 }
0x19c4   :  { %v9983_v42 = vpop.eup %9982 }
0x19c5   :  { %v7189_v40 = vmul.f32 %v9983_v42, %v7187_v11  ;;  %v15735_v11 = vld [vmem:[#allocation193_spill] sm:$0xff]  ;;  %v15736_v42 = vld [vmem:[#allocation194_spill] sm:$0xff] }
0x19c7   :  { %v7194_v46 = vrot.slane %v7189_v40, %v15353_v62  ;;  %v15737_v40 = vld [vmem:[#allocation195_spill] sm:$0xff] }
0x19c9   :  { %v7197_v21 = vpack.c.bf16 %v7194_v46, %v7194_v46  ;;  %v13595_v63 = vsel %vm401_vm1, %v13440_v30, %v7194_v46  ;;  %v15725_v30 = vld [vmem:[#allocation183_spill] sm:$0xff]  ;;  %v15739_v46 = vld [vmem:[#allocation197_spill] sm:$0xff] }
0x19cb   :  { %v7203_v3 = vshrl.u32 %v7197_v21, 16  ;;  %v15740_v21 = vld [vmem:[#allocation198_spill] sm:$0xff] }
0x19cd   :  { %v7205_v58 = vrot.slane %v7203_v3, 2  ;;  %v15742_v3 = vld [vmem:[#allocation200_spill] sm:$0xff] }
0x19cf   :  { %7240 = vmatprep.mubr.bf16.mxu0 %v7205_v58  ;;  %7281 = vmatprep.mubr.bf16.mxu1 %v7205_v58 }
0x19d0   :  { %7241 = vmatmul.mubr.bf16.vlgmr.msra.gmra.mrb[116].mxu0 %v13597_v15  ;;  %7282 = vmatmul.mubr.bf16.vlgmr.msra.gmra.mrb[132].mxu1 %v13597_v15 }
0x19d1   :  { %7291 = vmatpush1.bf16.msra.mxu0 %v12666_v24  ;;  %7332 = vmatpush1.bf16.msra.mxu1 %v15354_v53 }
0x19d2   :  { %7322 = vmatprep.mubr.bf16.mxu0 %v7205_v58  ;;  %7363 = vmatprep.mubr.bf16.mxu1 %v7205_v58  ;;  %v15743_v58 = vld [vmem:[#allocation201_spill] sm:$0xff] }
0x19d3   :  { %7292 = vmatprep.subr.bf16.mxu0 %v15355_v17  ;;  %7333 = vmatprep.subr.bf16.mxu1 %v15356_v61 }
0x19d5   :  { %7293 = vmatpush1.bf16.msra.mxu0 %v15443_v16  ;;  %7334 = vmatpush1.bf16.msra.mxu1 %v15444_v22 }
0x19d6   :  { %7294 = vmatprep.subr.bf16.mxu0 %v15445_v27  ;;  %7335 = vmatprep.subr.bf16.mxu1 %v15446_v32 }
0x19d9   :  { %7295 = vmatpush1.bf16.msra.mxu0 %v15447_v13  ;;  %7336 = vmatpush1.bf16.msra.mxu1 %v15448_v23 }
0x19da   :  { %7296 = vmatprep.subr.bf16.mxu0 %v15449_v19  ;;  %7337 = vmatprep.subr.bf16.mxu1 %v15538_v35 }
0x19dd   :  { %7297 = vmatpush1.bf16.msra.mxu0 %v15539_v49  ;;  %7338 = vmatpush1.bf16.msra.mxu1 %v15540_v29 }
0x19de   :  { %7298 = vmatprep.subr.bf16.mxu0 %v15541_v39  ;;  %7339 = vmatprep.subr.bf16.mxu1 %v15542_v54 }
0x19e1   :  { %7299 = vmatpush1.bf16.msra.mxu0 %v15543_v59  ;;  %7340 = vmatpush1.bf16.msra.mxu1 %v15544_v12 }
0x19e2   :  { %7300 = vmatprep.subr.bf16.mxu0 %v15545_v1  ;;  %7341 = vmatprep.subr.bf16.mxu1 %v15546_v44 }
0x19e5   :  { %7301 = vmatpush1.bf16.msra.mxu0 %v15547_v51  ;;  %7342 = vmatpush1.bf16.msra.mxu1 %v15548_v0 }
0x19e6   :  { %7302 = vmatprep.subr.bf16.mxu0 %v15549_v36  ;;  %7343 = vmatprep.subr.bf16.mxu1 %v15550_v60 }
0x19e9   :  { %7303 = vmatpush1.bf16.msra.mxu0 %v15551_v37  ;;  %7344 = vmatpush1.bf16.msra.mxu1 %v15552_v47 }
0x19ea   :  { %7304 = vmatprep.subr.bf16.mxu0 %v15465_v10  ;;  %7345 = vmatprep.subr.bf16.mxu1 %v15466_v52 }
0x19ed   :  { %7305 = vmatpush1.bf16.msra.mxu0 %v15467_v7  ;;  %7346 = vmatpush1.bf16.msra.mxu1 %v15553_v2 }
0x19ee   :  { %7306 = vmatprep.subr.bf16.mxu0 %v15554_v38  ;;  %7347 = vmatprep.subr.bf16.mxu1 %v15470_v25 }
0x19f1   :  { %7307 = vmatpush1.bf16.msra.mxu0 %v15471_v55  ;;  %7348 = vmatpush1.bf16.msra.mxu1 %v15472_v8 }
0x19f2   :  { %7308 = vmatprep.subr.bf16.mxu0 %v15473_v28  ;;  %7349 = vmatprep.subr.bf16.mxu1 %v15474_v14 }
0x19f5   :  { %7309 = vmatpush1.bf16.msra.mxu0 %v15725_v30  ;;  %7350 = vmatpush1.bf16.msra.mxu1 %v15726_v45 }
0x19f6   :  { %7310 = vmatprep.subr.bf16.mxu0 %v15727_v56  ;;  %7351 = vmatprep.subr.bf16.mxu1 %v15728_v57 }
0x19f9   :  { %7311 = vmatpush1.bf16.msra.mxu0 %v15729_v5  ;;  %7352 = vmatpush1.bf16.msra.mxu1 %v15730_v9 }
0x19fa   :  { %7312 = vmatprep.subr.bf16.mxu0 %v15731_v41  ;;  %7353 = vmatprep.subr.bf16.mxu1 %v15732_v6 }
0x19fd   :  { %7313 = vmatpush1.bf16.msra.mxu0 %v15733_v43  ;;  %7354 = vmatpush1.bf16.msra.mxu1 %v15734_v48  ;;  %v15744_v43 = vld [vmem:[#allocation202_spill] sm:$0xff]  ;;  %v15745_v48 = vld [vmem:[#allocation203_spill] sm:$0xff] }
0x19fe   :  { %7314 = vmatprep.subr.bf16.mxu0 %v15735_v11  ;;  %7355 = vmatprep.subr.bf16.mxu1 %v15736_v42  ;;  %v15746_v11 = vld [vmem:[#allocation204_spill] sm:$0xff]  ;;  %v15747_v42 = vld [vmem:[#allocation143_spill] sm:$0xff] }
0x1a01   :  { %7315 = vmatpush1.bf16.msra.mxu0 %v15737_v40  ;;  %7356 = vmatpush1.bf16.msra.mxu1 %v15738_v4  ;;  %v15748_v40 = vld [vmem:[#allocation144_spill] sm:$0xff]  ;;  %v15749_v4 = vld [vmem:[#allocation147_spill] sm:$0xff] }
0x1a02   :  { %7316 = vmatprep.subr.bf16.mxu0 %v15739_v46  ;;  %7357 = vmatprep.subr.bf16.mxu1 %v15740_v21  ;;  %v15750_v46 = vld [vmem:[#allocation72_spill] sm:$0xff] }
0x1a03   :  { %v15751_v21 = vld [vmem:[#allocation148_spill] sm:$0xff] }
0x1a05   :  { %7317 = vmatpush1.bf16.msra.mxu0 %v15741_v33  ;;  %7358 = vmatpush1.bf16.msra.mxu1 %v15742_v3  ;;  %v15752_v33 = vld [vmem:[#allocation149_spill] sm:$0xff] }
0x1a06   :  { %7318 = vmatprep.subr.bf16.mxu0 %v15743_v58  ;;  %7359 = vmatprep.subr.bf16.mxu1 %v15744_v43  ;;  %v15753_v43 = vld [vmem:[#allocation150_spill] sm:$0xff]  ;;  %v15762_v58 = vld [vmem:[#allocation175_spill] sm:$0xff] }
0x1a09   :  { %7319 = vmatpush1.bf16.msra.mxu0 %v15745_v48  ;;  %7360 = vmatpush1.bf16.msra.mxu1 %v15746_v11  ;;  %v15754_v48 = vld [vmem:[#allocation151_spill] sm:$0xff]  ;;  %v15755_v11 = vld [vmem:[#allocation152_spill] sm:$0xff] }
0x1a0a   :  { %7320 = vmatprep.subr.bf16.mxu0 %v15747_v42  ;;  %7361 = vmatprep.subr.bf16.mxu1 %v15748_v40  ;;  %v15756_v42 = vld [vmem:[#allocation153_spill] sm:$0xff]  ;;  %v15757_v40 = vld [vmem:[#allocation154_spill] sm:$0xff] }
0x1a0d   :  { %7321 = vmatpush1.bf16.msra.mxu0 %v15749_v4  ;;  %7362 = vmatpush1.bf16.msra.mxu1 %v15750_v46  ;;  %v15758_v4 = vld [vmem:[#allocation169_spill] sm:$0xff]  ;;  %v15759_v46 = vld [vmem:[#allocation170_spill] sm:$0xff] }
0x1a0e   :  { %7479 = vmatprep.subr.bf16.mxu0 %v15751_v21  ;;  %7520 = vmatprep.subr.bf16.mxu1 %v15752_v33  ;;  %v15760_v21 = vld [vmem:[#allocation171_spill] sm:$0xff]  ;;  %v15761_v33 = vld [vmem:[#allocation174_spill] sm:$0xff] }
0x1a10   :  { %7323 = vmatmul.mubr.bf16.vlgmr.msra.gmra.mrb[120].mxu0 %v13597_v15  ;;  %7364 = vmatmul.mubr.bf16.vlgmr.msra.gmra.mrb[136].mxu1 %v13597_v15  ;;  %v15763_v15 = vld [vmem:[#allocation176_spill] sm:$0xff] }
0x1a11   :  { %7480 = vmatpush1.bf16.msra.mxu0 %v15753_v43  ;;  %7521 = vmatpush1.bf16.msra.mxu1 %v15754_v48  ;;  %v15764_v43 = vld [vmem:[#allocation177_spill] sm:$0xff]  ;;  %v15765_v48 = vld [vmem:[#allocation178_spill] sm:$0xff] }
0x1a12   :  { %7481 = vmatprep.subr.bf16.mxu0 %v15755_v11  ;;  %7522 = vmatprep.subr.bf16.mxu1 %v15756_v42  ;;  %v15766_v11 = vld [vmem:[#allocation139_spill] sm:$0xff]  ;;  %v15767_v42 = vld [vmem:[#allocation206_spill] sm:$0xff] }
0x1a15   :  { %7482 = vmatpush1.bf16.msra.mxu0 %v15757_v40  ;;  %7523 = vmatpush1.bf16.msra.mxu1 %v15758_v4  ;;  %v15768_v40 = vld [vmem:[#allocation155_spill] sm:$0xff]  ;;  %v15769_v4 = vld [vmem:[#allocation156_spill] sm:$0xff] }
0x1a16   :  { %7483 = vmatprep.subr.bf16.mxu0 %v15759_v46  ;;  %7524 = vmatprep.subr.bf16.mxu1 %v15760_v21  ;;  %v15770_v46 = vld [vmem:[#allocation157_spill] sm:$0xff]  ;;  %v15771_v21 = vld [vmem:[#allocation158_spill] sm:$0xff] }
0x1a19   :  { %7484 = vmatpush1.bf16.msra.mxu0 %v15761_v33  ;;  %7525 = vmatpush1.bf16.msra.mxu1 %v15762_v58  ;;  %v15772_v33 = vld [vmem:[#allocation159_spill] sm:$0xff]  ;;  %v15773_v58 = vld [vmem:[#allocation160_spill] sm:$0xff] }
0x1a1a   :  { %7485 = vmatprep.subr.bf16.mxu0 %v15763_v15  ;;  %7526 = vmatprep.subr.bf16.mxu1 %v15764_v43  ;;  %v15774_v15 = vld [vmem:[#allocation161_spill] sm:$0xff]  ;;  %v15775_v43 = vld [vmem:[#allocation162_spill] sm:$0xff] }
0x1a1d   :  { %7486 = vmatpush1.bf16.msra.mxu0 %v15765_v48  ;;  %7527 = vmatpush1.bf16.msra.mxu1 %v15766_v11  ;;  %v15776_v48 = vld [vmem:[#allocation163_spill] sm:$0xff]  ;;  %v15777_v11 = vld [vmem:[#allocation164_spill] sm:$0xff] }
0x1a1e   :  { %7487 = vmatprep.subr.bf16.mxu0 %v15767_v42  ;;  %7528 = vmatprep.subr.bf16.mxu1 %v15768_v40  ;;  %v15778_v42 = vld [vmem:[#allocation165_spill] sm:$0xff]  ;;  %v15779_v40 = vld [vmem:[#allocation166_spill] sm:$0xff] }
0x1a21   :  { %7488 = vmatpush1.bf16.msra.mxu0 %v15769_v4  ;;  %7529 = vmatpush1.bf16.msra.mxu1 %v15770_v46  ;;  %v15780_v4 = vld [vmem:[#allocation167_spill] sm:$0xff]  ;;  %v15781_v46 = vld [vmem:[#allocation168_spill] sm:$0xff] }
0x1a22   :  { %7489 = vmatprep.subr.bf16.mxu0 %v15771_v21  ;;  %7530 = vmatprep.subr.bf16.mxu1 %v15772_v33  ;;  %v15782_v21 = vld [vmem:[#allocation172_spill] sm:$0xff]  ;;  %v15783_v33 = vld [vmem:[#allocation173_spill] sm:$0xff] }
0x1a25   :  { %7490 = vmatpush1.bf16.msra.mxu0 %v15773_v58  ;;  %7531 = vmatpush1.bf16.msra.mxu1 %v15774_v15  ;;  %v15784_v58 = vld [vmem:[#allocation145_spill] sm:$0xff]  ;;  %v15785_v15 = vld [vmem:[#allocation179_spill] sm:$0xff] }
0x1a26   :  { %7491 = vmatprep.subr.bf16.mxu0 %v15775_v43  ;;  %7532 = vmatprep.subr.bf16.mxu1 %v15776_v48  ;;  %v15786_v43 = vld [vmem:[#allocation73_spill] sm:$0xff]  ;;  %v15787_v48 = vld [vmem:[#allocation75_spill] sm:$0xff] }
0x1a29   :  { %7492 = vmatpush1.bf16.msra.mxu0 %v15777_v11  ;;  %7533 = vmatpush1.bf16.msra.mxu1 %v15778_v42  ;;  %v15788_v11 = vld [vmem:[#allocation74_spill] sm:$0xff]  ;;  %v15789_v42 = vld [vmem:[#allocation76_spill] sm:$0xff] }
0x1a2a   :  { %7493 = vmatprep.subr.bf16.mxu0 %v15779_v40  ;;  %7534 = vmatprep.subr.bf16.mxu1 %v15780_v4  ;;  %v15790_v40 = vld [vmem:[#allocation77_spill] sm:$0xff]  ;;  %v15791_v4 = vld [vmem:[#allocation78_spill] sm:$0xff] }
0x1a2d   :  { %7494 = vmatpush1.bf16.msra.mxu0 %v15781_v46  ;;  %7535 = vmatpush1.bf16.msra.mxu1 %v15782_v21  ;;  %v15792_v46 = vld [vmem:[#allocation79_spill] sm:$0xff]  ;;  %v15793_v21 = vld [vmem:[#allocation80_spill] sm:$0xff] }
0x1a2e   :  { %7495 = vmatprep.subr.bf16.mxu0 %v15783_v33  ;;  %7536 = vmatprep.subr.bf16.mxu1 %v15784_v58  ;;  %v15794_v33 = vld [vmem:[#allocation81_spill] sm:$0xff]  ;;  %v15795_v58 = vld [vmem:[#allocation82_spill] sm:$0xff] }
0x1a31   :  { %7496 = vmatpush1.bf16.msra.mxu0 %v15785_v15  ;;  %7537 = vmatpush1.bf16.msra.mxu1 %v15786_v43  ;;  %v15796_v15 = vld [vmem:[#allocation83_spill] sm:$0xff]  ;;  %v15797_v43 = vld [vmem:[#allocation84_spill] sm:$0xff] }
0x1a32   :  { %7497 = vmatprep.subr.bf16.mxu0 %v15787_v48  ;;  %7538 = vmatprep.subr.bf16.mxu1 %v15788_v11  ;;  %v15798_v48 = vld [vmem:[#allocation85_spill] sm:$0xff]  ;;  %v15799_v11 = vld [vmem:[#allocation86_spill] sm:$0xff] }
0x1a35   :  { %7498 = vmatpush1.bf16.msra.mxu0 %v15789_v42  ;;  %7539 = vmatpush1.bf16.msra.mxu1 %v15790_v40  ;;  %v15800_v42 = vld [vmem:[#allocation87_spill] sm:$0xff]  ;;  %v15801_v40 = vld [vmem:[#allocation88_spill] sm:$0xff] }
0x1a36   :  { %7499 = vmatprep.subr.bf16.mxu0 %v15791_v4  ;;  %7540 = vmatprep.subr.bf16.mxu1 %v15792_v46  ;;  %v15802_v4 = vld [vmem:[#allocation89_spill] sm:$0xff]  ;;  %v15803_v46 = vld [vmem:[#allocation90_spill] sm:$0xff] }
0x1a39   :  { %7500 = vmatpush1.bf16.msra.mxu0 %v15793_v21  ;;  %7541 = vmatpush1.bf16.msra.mxu1 %v15794_v33  ;;  %v15804_v21 = vld [vmem:[#allocation92_spill] sm:$0xff]  ;;  %v15805_v33 = vld [vmem:[#allocation91_spill] sm:$0xff] }
0x1a3a   :  { %7501 = vmatprep.subr.bf16.mxu0 %v15795_v58  ;;  %7542 = vmatprep.subr.bf16.mxu1 %v15796_v15  ;;  %v15806_v58 = vld [vmem:[#allocation93_spill] sm:$0xff]  ;;  %v15807_v15 = vld [vmem:[#allocation94_spill] sm:$0xff] }
0x1a3d   :  { %7502 = vmatpush1.bf16.msra.mxu0 %v15797_v43  ;;  %7543 = vmatpush1.bf16.msra.mxu1 %v15798_v48  ;;  %v15808_v43 = vld [vmem:[#allocation95_spill] sm:$0xff]  ;;  %v15809_v48 = vld [vmem:[#allocation96_spill] sm:$0xff] }
0x1a3e   :  { %7503 = vmatprep.subr.bf16.mxu0 %v15799_v11  ;;  %7544 = vmatprep.subr.bf16.mxu1 %v15800_v42  ;;  %v15810_v11 = vld [vmem:[#allocation97_spill] sm:$0xff]  ;;  %v15811_v42 = vld [vmem:[#allocation98_spill] sm:$0xff] }
0x1a41   :  { %7504 = vmatpush1.bf16.msra.mxu0 %v15801_v40  ;;  %7545 = vmatpush1.bf16.msra.mxu1 %v15802_v4  ;;  %v15812_v40 = vld [vmem:[#allocation99_spill] sm:$0xff]  ;;  %v15813_v4 = vld [vmem:[#allocation100_spill] sm:$0xff] }
0x1a42   :  { %7505 = vmatprep.subr.bf16.mxu0 %v15803_v46  ;;  %7546 = vmatprep.subr.bf16.mxu1 %v15804_v21  ;;  %v15814_v46 = vld [vmem:[#allocation101_spill] sm:$0xff]  ;;  %v15815_v21 = vld [vmem:[#allocation102_spill] sm:$0xff] }
0x1a45   :  { %7506 = vmatpush1.bf16.msra.mxu0 %v15805_v33  ;;  %7547 = vmatpush1.bf16.msra.mxu1 %v15806_v58  ;;  %v15816_v33 = vld [vmem:[#allocation103_spill] sm:$0xff] }
0x1a46   :  { %7507 = vmatprep.subr.bf16.mxu0 %v15807_v15  ;;  %7548 = vmatprep.subr.bf16.mxu1 %v15808_v43 }
0x1a49   :  { %7508 = vmatpush1.bf16.msra.mxu0 %v15809_v48  ;;  %7549 = vmatpush1.bf16.msra.mxu1 %v15810_v11 }
0x1a4a   :  { %7509 = vmatprep.subr.bf16.mxu0 %v15811_v42  ;;  %7550 = vmatprep.subr.bf16.mxu1 %v15812_v40 }
0x1a4d   :  { %7510 = vmatpush1.bf16.msra.mxu0 %v15813_v4  ;;  %7551 = vmatpush1.bf16.msra.mxu1 %v15814_v46 }
0x1a4e   :  { %7561 = vmatprep.subr.bf16.mxu0 %v15815_v21  ;;  %7602 = vmatprep.subr.bf16.mxu1 %v15816_v33 }
0x1aa3   :  { %v7242_v58 = vpop.f32.mrb[116].mxu0  ;;  %v7283_v15 = vpop.f32.mrb[132].mxu1 }
0x1aa4   :  { %v7376_v3 = vrot.slane %v7242_v58, 2  ;;  %v7244_v43 = vpop.f32.mrb[117].mxu0  ;;  %v7285_v6 = vpop.f32.mrb[133].mxu1  ;;  %v7378_v21 = vrot.slane %v7283_v15, 2  ;;  %v15817_v58 = vld [vmem:[#allocation107_spill] sm:$0xff] }
0x1aa5   :  { %v7377_v48 = vrot.slane %v7244_v43, 2  ;;  %v7246_v41 = vpop.f32.mrb[118].mxu0  ;;  %v7287_v11 = vpop.f32.mrb[134].mxu1  ;;  %v7379_v33 = vrot.slane %v7285_v6, 2 }
0x1aa6   :  { %v7384_v42 = vadd.f32 %v7376_v3, %v12675_v34  ;;  %v7247_v9 = vpop.f32.mrb[119].mxu0  ;;  %v7288_v40 = vpop.f32.mrb[135].mxu1  ;;  %v7386_v57 = vadd.f32 %v7378_v21, %v15722_v50 }
0x1aa7   :  { %v7385_v4 = vadd.f32 %v7377_v48, %v15348_v31  ;;  %v7387_v56 = vadd.f32 %v7379_v33, %v15817_v58 }
0x1aa8   :  { %v9030_v5 = vmul.f32 -1.442695, %v7384_v42  ;;  %v9032_v45 = vmul.f32 -1.442695, %v7386_v57 }
0x1aa9   :  { %v9031_v46 = vmul.f32 -1.442695, %v7385_v4 }
0x1aaa   :  { %9984 = vpow2.f32 %v9030_v5  ;;  %v15818_v5 = vld [vmem:[#allocation205_spill] sm:$0xff] }
0x1aab   :  { %9986 = vpow2.f32 %v9031_v46  ;;  %v7438_v15 = vrot.slane %v15818_v5, 7 }
0x1aac   :  { %9988 = vtanh.f32 %v7387_v56 }
0x1aad   :  { %9990 = vpow2.f32 %v9032_v45 }
0x1ab4   :  { %v9985_v43 = vpop.eup %9984 }
0x1ab5   :  { %v7427_v41 = vadd.f32 1.0, %v9985_v43  ;;  %v9987_v11 = vpop.eup %9986 }
0x1ab6   :  { %v7428_v9 = vadd.f32 1.0, %v9987_v11  ;;  %v9989_v3 = vpop.eup %9988 }
0x1ab7   :  { %9992 = vrcp.f32 %v7427_v41  ;;  %v9991_v48 = vpop.eup %9990 }
0x1ab8   :  { %9994 = vrcp.f32 %v7428_v9  ;;  %v7429_v4 = vadd.f32 1.0, %v9991_v48 }
0x1aba   :  { %9996 = vrcp.f32 %v7429_v4 }
0x1ac1   :  { %v9993_v42 = vpop.eup %9992 }
0x1ac2   :  { %v7441_v40 = vmul.f32 %v9993_v42, %v9989_v3  ;;  %v9995_v6 = vpop.eup %9994 }
0x1ac3   :  { %v7440_v46 = vmul.f32 %v9995_v6, %v7438_v15 }
0x1ac4   :  { %v9997_v56 = vpop.eup %9996 }
0x1ac5   :  { %v13736_v21 = vadd.f32 %v7441_v40, %v7440_v46 }
0x1ac7   :  { %15819 = vst [vmem:[#allocation141_spill] sm:$0xff] %v13736_v21  ;;  %9998 = vtanh.f32 %v13736_v21 }
0x1ad1   :  { %v9999_v57 = vpop.eup %9998 }
0x1ad2   :  { %v7444_v45 = vmul.f32 %v9999_v57, %v9997_v56 }
0x1ae3   :  { %v7324_v33 = vpop.f32.mrb[120].mxu0  ;;  %v7365_v43 = vpop.f32.mrb[136].mxu1 }
0x1ae4   :  { %v7326_v41 = vpop.f32.mrb[121].mxu0  ;;  %v7367_v11 = vpop.f32.mrb[137].mxu1 }
0x1ae5   :  { %v7392_v9 = vcombine.low %v7324_v33, %v7326_v41  ;;  %v7393_v58 = vcombine.low %v7365_v43, %v7367_v11  ;;  %v7328_v50 = vpop.f32.mrb[122].mxu0  ;;  %v7369_v5 = vpop.f32.mrb[138].mxu1 }
0x1ae6   :  { %v7329_v3 = vpop.f32.mrb[123].mxu0  ;;  %v7370_v42 = vpop.f32.mrb[139].mxu1 }
0x1ae7   :  { %v7400_v48 = vrot.slane %v7392_v9, %v15351_v18  ;;  %v7407_v15 = vrot.slane %v7393_v58, %v15351_v18  ;;  %v7471_v42 = vpack.c.bf16 %v7444_v45, %v7444_v45  ;;  %v9562_v45 = vld [vmem:[#allocation29 + $0x60] ss:$16 sps:$4 sm:$0xff]  }
0x1ae9   :  { %v7408_v40 = vcombine.low %v7400_v48, %v7407_v15 }
0x1aeb   :  { %v7415_v6 = vrot.slane %v7408_v40, %v15351_v18  ;;  %v13752_v40 = vrot.slane %v7471_v42, 3  ;;  %v9591_v42 = vld [vmem:[#allocation29 + $0xec] ss:$16 sps:$4 sm:$0xff]  }
0x1aed   :  { %v7417_v4 = vadd.f32 %v13430_v26, %v7415_v6  ;;  %v9565_v6 = vld [vmem:[#allocation29 + $0x68] ss:$16 sps:$4 sm:$0xff]  }
0x1aef   :  { %v9033_v46 = vmul.f32 -1.442695, %v7417_v4  ;;  %v7452_v21 = vrot.slane %v7417_v4, 3  ;;  %v9570_v4 = vld [vmem:[#allocation29 + $0x84] ss:$16 sps:$4 sm:$0xff]  }
0x1af1   :  { %10000 = vpow2.f32 %v9033_v46  ;;  %v9573_v46 = vld [vmem:[#allocation29 + $0x8c] ss:$16 sps:$4 sm:$0xff]  }
0x1afb   :  { %v10001_v56 = vpop.eup %10000 }
0x1afc   :  { %v7448_v57 = vadd.f32 1.0, %v10001_v56  ;;  %v9568_v56 = vld [vmem:[#allocation29 + $0x80] ss:$16 sps:$4 sm:$0xff]  }
0x1afe   :  { %10002 = vrcp.f32 %v7448_v57  ;;  %v9571_v57 = vld [vmem:[#allocation29 + $0x88] ss:$16 sps:$4 sm:$0xff]  }
0x1aff   :  { %10004 = vtanh.f32 %v7452_v21 }
0x1b08   :  { %v10003_v50 = vpop.eup %10002 }
0x1b09   :  { %v7456_v33 = vrot.slane %v10003_v50, 1  ;;  %v10005_v43 = vpop.eup %10004  ;;  %v7462_v58 = vrot.slane %v10003_v50, 2 }
0x1b0a   :  { %v7459_v11 = vmul.f32 %v10005_v43, %v10003_v50  ;;  %v9576_v50 = vld [vmem:[#allocation29 + $0xa4] ss:$16 sps:$4 sm:$0xff]   ;;  %v9574_v43 = vld [vmem:[#allocation29 + $0xa0] ss:$16 sps:$4 sm:$0xff]  }
0x1b0b   :  { %v7458_v41 = vmul.f32 %v7456_v33, %v13589_v20  ;;  %v9559_v20 = vld [vmem:[#allocation29 + $0x48] ss:$16 sps:$4 sm:$0xff]   ;;  %v9579_v33 = vld [vmem:[#allocation29 + $0xac] ss:$16 sps:$4 sm:$0xff]  }
0x1b0d   :  { %v13744_v9 = vadd.f32 %v7459_v11, %v7458_v41  ;;  %v9577_v41 = vld [vmem:[#allocation29 + $0xa8] ss:$16 sps:$4 sm:$0xff]   ;;  %v9582_v11 = vld [vmem:[#allocation29 + $0xc4] ss:$16 sps:$4 sm:$0xff]  }
0x1b0f   :  { %10006 = vtanh.f32 %v13744_v9 }
0x1b19   :  { %v10007_v5 = vpop.eup %10006 }
0x1b1a   :  { %v7464_v26 = vmul.f32 %v10007_v5, %v7462_v58  ;;  %v9585_v58 = vld [vmem:[#allocation29 + $0xcc] ss:$16 sps:$4 sm:$0xff]   ;;  %v9580_v5 = vld [vmem:[#allocation29 + $0xc0] ss:$16 sps:$4 sm:$0xff]  }
0x1b1c   :  { %v7469_v3 = vrot.slane %v7464_v26, %v15353_v62  ;;  %v9583_v26 = vld [vmem:[#allocation29 + $0xc8] ss:$16 sps:$4 sm:$0xff]  }
0x1b1e   :  { %v7472_v48 = vpack.c.bf16 %v7469_v3, %v7469_v3  ;;  %v13750_v21 = vsel %vm4301_vm8, %v13595_v63, %v7469_v3  ;;  %v9564_v63 = vld [vmem:[#allocation29 + $0x64] ss:$16 sps:$4 sm:$0xff]  }
0x1b1f   :  { %v9588_v3 = vld [vmem:[#allocation29 + $0xe4] ss:$16 sps:$4 sm:$0xff]  }
0x1b20   :  { %v7476_v15 = vrot.slane %v7472_v48, 3  ;;  %v9586_v48 = vld [vmem:[#allocation29 + $0xe0] ss:$16 sps:$4 sm:$0xff]  }
0x1b22   :  { %7511 = vmatprep.mubr.bf16.mxu0 %v7476_v15  ;;  %7552 = vmatprep.mubr.bf16.mxu1 %v7476_v15 }
0x1b23   :  { %7512 = vmatmul.mubr.bf16.vlgmr.msra.gmra.mrb[124].mxu0 %v13752_v40  ;;  %7553 = vmatmul.mubr.bf16.vlgmr.msra.gmra.mrb[140].mxu1 %v13752_v40 }
0x1b24   :  { %7562 = vmatpush1.bf16.msra.mxu0 %v12666_v24  ;;  %7603 = vmatpush1.bf16.msra.mxu1 %v15354_v53  ;;  %v15820_v24 = vld [vmem:[#allocation184_spill] sm:$0xff]  ;;  %v15821_v53 = vld [vmem:[#allocation185_spill] sm:$0xff] }
0x1b25   :  { %7593 = vmatprep.mubr.bf16.mxu0 %v7476_v15  ;;  %7634 = vmatprep.mubr.bf16.mxu1 %v7476_v15  ;;  %v9589_v15 = vld [vmem:[#allocation29 + $0xe8] ss:$16 sps:$4 sm:$0xff]  }
0x1b26   :  { %7563 = vmatprep.subr.bf16.mxu0 %v15355_v17  ;;  %7604 = vmatprep.subr.bf16.mxu1 %v15356_v61  ;;  %v15822_v17 = vld [vmem:[#allocation186_spill] sm:$0xff]  ;;  %v15823_v61 = vld [vmem:[#allocation187_spill] sm:$0xff] }
0x1b28   :  { %7564 = vmatpush1.bf16.msra.mxu0 %v15443_v16  ;;  %7605 = vmatpush1.bf16.msra.mxu1 %v15444_v22  ;;  %v15824_v16 = vld [vmem:[#allocation188_spill] sm:$0xff]  ;;  %v15825_v22 = vld [vmem:[#allocation189_spill] sm:$0xff] }
0x1b29   :  { %7565 = vmatprep.subr.bf16.mxu0 %v15445_v27  ;;  %7606 = vmatprep.subr.bf16.mxu1 %v15446_v32  ;;  %v15826_v27 = vld [vmem:[#allocation190_spill] sm:$0xff]  ;;  %v15827_v32 = vld [vmem:[#allocation191_spill] sm:$0xff] }
0x1b2c   :  { %7566 = vmatpush1.bf16.msra.mxu0 %v15447_v13  ;;  %7607 = vmatpush1.bf16.msra.mxu1 %v15448_v23  ;;  %v15828_v13 = vld [vmem:[#allocation192_spill] sm:$0xff]  ;;  %v15829_v23 = vld [vmem:[#allocation193_spill] sm:$0xff] }
0x1b2d   :  { %7567 = vmatprep.subr.bf16.mxu0 %v15449_v19  ;;  %7608 = vmatprep.subr.bf16.mxu1 %v15538_v35  ;;  %v15830_v19 = vld [vmem:[#allocation194_spill] sm:$0xff]  ;;  %v15839_v35 = vld [vmem:[#allocation203_spill] sm:$0xff] }
0x1b30   :  { %7568 = vmatpush1.bf16.msra.mxu0 %v15539_v49  ;;  %7609 = vmatpush1.bf16.msra.mxu1 %v15540_v29  ;;  %v15840_v49 = vld [vmem:[#allocation204_spill] sm:$0xff]  ;;  %v15841_v29 = vld [vmem:[#allocation143_spill] sm:$0xff] }
0x1b31   :  { %7569 = vmatprep.subr.bf16.mxu0 %v15541_v39  ;;  %7610 = vmatprep.subr.bf16.mxu1 %v15542_v54  ;;  %v15842_v39 = vld [vmem:[#allocation144_spill] sm:$0xff]  ;;  %v15843_v54 = vld [vmem:[#allocation147_spill] sm:$0xff] }
0x1b34   :  { %7570 = vmatpush1.bf16.msra.mxu0 %v15543_v59  ;;  %7611 = vmatpush1.bf16.msra.mxu1 %v15544_v12  ;;  %v15844_v59 = vld [vmem:[#allocation72_spill] sm:$0xff]  ;;  %v9546_v12 = vld [vmem:[#allocation29 + $0x4] ss:$16 sps:$4 sm:$0xff]  }
0x1b35   :  { %7571 = vmatprep.subr.bf16.mxu0 %v15545_v1  ;;  %7612 = vmatprep.subr.bf16.mxu1 %v15546_v44  ;;  %v9549_v1 = vld [vmem:[#allocation29 + $0xc] ss:$16 sps:$4 sm:$0xff]   ;;  %v9544_v44 = vld [vmem:[#allocation29] ss:$16 sps:$4 sm:$0xff]  }
0x1b38   :  { %7572 = vmatpush1.bf16.msra.mxu0 %v15547_v51  ;;  %7613 = vmatpush1.bf16.msra.mxu1 %v15548_v0  ;;  %v9547_v51 = vld [vmem:[#allocation29 + $0x8] ss:$16 sps:$4 sm:$0xff]   ;;  %v9552_v0 = vld [vmem:[#allocation29 + $0x24] ss:$16 sps:$4 sm:$0xff]  }
0x1b39   :  { %7573 = vmatprep.subr.bf16.mxu0 %v15549_v36  ;;  %7614 = vmatprep.subr.bf16.mxu1 %v15550_v60  ;;  %v9555_v36 = vld [vmem:[#allocation29 + $0x2c] ss:$16 sps:$4 sm:$0xff]   ;;  %v9550_v60 = vld [vmem:[#allocation29 + $0x20] ss:$16 sps:$4 sm:$0xff]  }
0x1b3c   :  { %7574 = vmatpush1.bf16.msra.mxu0 %v15551_v37  ;;  %7615 = vmatpush1.bf16.msra.mxu1 %v15552_v47  ;;  %v9553_v37 = vld [vmem:[#allocation29 + $0x28] ss:$16 sps:$4 sm:$0xff]   ;;  %v9558_v47 = vld [vmem:[#allocation29 + $0x44] ss:$16 sps:$4 sm:$0xff]  }
0x1b3d   :  { %7575 = vmatprep.subr.bf16.mxu0 %v15465_v10  ;;  %7616 = vmatprep.subr.bf16.mxu1 %v15466_v52  ;;  %v15834_v10 = vld [vmem:[#allocation198_spill] sm:$0xff]  ;;  %v15835_v52 = vld [vmem:[#allocation199_spill] sm:$0xff] }
0x1b40   :  { %7576 = vmatpush1.bf16.msra.mxu0 %v15467_v7  ;;  %7617 = vmatpush1.bf16.msra.mxu1 %v15553_v2  ;;  %v15836_v7 = vld [vmem:[#allocation200_spill] sm:$0xff] }
0x1b41   :  { %7577 = vmatprep.subr.bf16.mxu0 %v15554_v38  ;;  %7618 = vmatprep.subr.bf16.mxu1 %v15470_v25  ;;  %v15837_v25 = vld [vmem:[#allocation201_spill] sm:$0xff]  ;;  %v9561_v2 = vld [vmem:[#allocation29 + $0x4c] ss:$16 sps:$4 sm:$0xff]   ;;  %v9556_v38 = vld [vmem:[#allocation29 + $0x40] ss:$16 sps:$4 sm:$0xff]  }
0x1b44   :  { %7578 = vmatpush1.bf16.msra.mxu0 %v15471_v55  ;;  %7619 = vmatpush1.bf16.msra.mxu1 %v15472_v8  ;;  %v15831_v8 = vld [vmem:[#allocation195_spill] sm:$0xff]  ;;  %v15838_v55 = vld [vmem:[#allocation202_spill] sm:$0xff] }
0x1b45   :  { %7579 = vmatprep.subr.bf16.mxu0 %v15473_v28  ;;  %7620 = vmatprep.subr.bf16.mxu1 %v15474_v14  ;;  %v15832_v28 = vld [vmem:[#allocation196_spill] sm:$0xff]  ;;  %v15833_v14 = vld [vmem:[#allocation197_spill] sm:$0xff] }
0x1b48   :  { %7580 = vmatpush1.bf16.msra.mxu0 %v15725_v30  ;;  %7621 = vmatpush1.bf16.msra.mxu1 %v15820_v24  ;;  %v9567_v30 = vld [vmem:[#allocation29 + $0x6c] ss:$16 sps:$4 sm:$0xff]  }
0x1b49   :  { %7581 = vmatprep.subr.bf16.mxu0 %v15821_v53  ;;  %7622 = vmatprep.subr.bf16.mxu1 %v15822_v17  ;;  %v9597_v24 = vld [vmem:[#allocation29 + $0x10c] ss:$16 sps:$4 sm:$0xff]   ;;  %v9592_v53 = vld [vmem:[#allocation29 + $0x100] ss:$16 sps:$4 sm:$0xff]   ;;  %v9595_v17 = vld [vmem:[#allocation29 + $0x108] ss:$16 sps:$4 sm:$0xff]  }
0x1b4c   :  { %7582 = vmatpush1.bf16.msra.mxu0 %v15823_v61  ;;  %7623 = vmatpush1.bf16.msra.mxu1 %v15824_v16  ;;  %v9600_v61 = vld [vmem:[#allocation29 + $0x124] ss:$16 sps:$4 sm:$0xff]   ;;  %v9603_v16 = vld [vmem:[#allocation29 + $0x12c] ss:$16 sps:$4 sm:$0xff]  }
0x1b4d   :  { %7583 = vmatprep.subr.bf16.mxu0 %v15825_v22  ;;  %7624 = vmatprep.subr.bf16.mxu1 %v15826_v27  ;;  %v9598_v22 = vld [vmem:[#allocation29 + $0x120] ss:$16 sps:$4 sm:$0xff]   ;;  %v9601_v27 = vld [vmem:[#allocation29 + $0x128] ss:$16 sps:$4 sm:$0xff]  }
0x1b50   :  { %7584 = vmatpush1.bf16.msra.mxu0 %v15827_v32  ;;  %7625 = vmatpush1.bf16.msra.mxu1 %v15828_v13  ;;  %v9606_v32 = vld [vmem:[#allocation29 + $0x144] ss:$16 sps:$4 sm:$0xff]   ;;  %v9609_v13 = vld [vmem:[#allocation29 + $0x14c] ss:$16 sps:$4 sm:$0xff]  }
0x1b51   :  { %7585 = vmatprep.subr.bf16.mxu0 %v15829_v23  ;;  %7626 = vmatprep.subr.bf16.mxu1 %v15830_v19  ;;  %v9604_v23 = vld [vmem:[#allocation29 + $0x140] ss:$16 sps:$4 sm:$0xff]   ;;  %v9607_v19 = vld [vmem:[#allocation29 + $0x148] ss:$16 sps:$4 sm:$0xff]  }
0x1b54   :  { %7586 = vmatpush1.bf16.msra.mxu0 %v15831_v8  ;;  %7627 = vmatpush1.bf16.msra.mxu1 %v15832_v28  ;;  %v9612_v8 = vld [vmem:[#allocation29 + $0x164] ss:$16 sps:$4 sm:$0xff]   ;;  %v9615_v28 = vld [vmem:[#allocation29 + $0x16c] ss:$16 sps:$4 sm:$0xff]  }
0x1b55   :  { %7587 = vmatprep.subr.bf16.mxu0 %v15833_v14  ;;  %7628 = vmatprep.subr.bf16.mxu1 %v15834_v10  ;;  %v9610_v14 = vld [vmem:[#allocation29 + $0x160] ss:$16 sps:$4 sm:$0xff]   ;;  %v9613_v10 = vld [vmem:[#allocation29 + $0x168] ss:$16 sps:$4 sm:$0xff]  }
0x1b58   :  { %7588 = vmatpush1.bf16.msra.mxu0 %v15835_v52  ;;  %7629 = vmatpush1.bf16.msra.mxu1 %v15836_v7  ;;  %v9618_v52 = vld [vmem:[#allocation29 + $0x184] ss:$16 sps:$4 sm:$0xff]   ;;  %v9621_v7 = vld [vmem:[#allocation29 + $0x18c] ss:$16 sps:$4 sm:$0xff]  }
0x1b59   :  { %7589 = vmatprep.subr.bf16.mxu0 %v15837_v25  ;;  %7630 = vmatprep.subr.bf16.mxu1 %v15838_v55  ;;  %v9616_v25 = vld [vmem:[#allocation29 + $0x180] ss:$16 sps:$4 sm:$0xff]   ;;  %v9619_v55 = vld [vmem:[#allocation29 + $0x188] ss:$16 sps:$4 sm:$0xff]  }
0x1b5c   :  { %7590 = vmatpush1.bf16.msra.mxu0 %v15839_v35  ;;  %7631 = vmatpush1.bf16.msra.mxu1 %v15840_v49  ;;  %v9624_v35 = vld [vmem:[#allocation29 + $0x1a4] ss:$16 sps:$4 sm:$0xff]   ;;  %v9627_v49 = vld [vmem:[#allocation29 + $0x1ac] ss:$16 sps:$4 sm:$0xff]  }
0x1b5d   :  { %7591 = vmatprep.subr.bf16.mxu0 %v15841_v29  ;;  %7632 = vmatprep.subr.bf16.mxu1 %v15842_v39  ;;  %v9622_v29 = vld [vmem:[#allocation29 + $0x1a0] ss:$16 sps:$4 sm:$0xff]   ;;  %v9625_v39 = vld [vmem:[#allocation29 + $0x1a8] ss:$16 sps:$4 sm:$0xff]  }
0x1b60   :  { %7592 = vmatpush1.bf16.msra.mxu0 %v15843_v54  ;;  %7633 = vmatpush1.bf16.msra.mxu1 %v15844_v59  ;;  %v9630_v54 = vld [vmem:[#allocation29 + $0x1c4] ss:$16 sps:$4 sm:$0xff]   ;;  %v9633_v59 = vld [vmem:[#allocation29 + $0x1cc] ss:$16 sps:$4 sm:$0xff]  }
0x1b61   :  { %8074 = vmatprep.subr.bf16.mxu0 %v9546_v12  ;;  %8115 = vmatprep.subr.bf16.mxu1 %v9549_v1  ;;  %v9628_v12 = vld [vmem:[#allocation29 + $0x1c0] ss:$16 sps:$4 sm:$0xff]   ;;  %v9631_v1 = vld [vmem:[#allocation29 + $0x1c8] ss:$16 sps:$4 sm:$0xff]  }
0x1b63   :  { %7594 = vmatmul.mubr.bf16.vlgmr.msra.gmra.mrb[128].mxu0 %v13752_v40  ;;  %7635 = vmatmul.mubr.bf16.vlgmr.msra.gmra.mrb[144].mxu1 %v13752_v40  ;;  %v9594_v40 = vld [vmem:[#allocation29 + $0x104] ss:$16 sps:$4 sm:$0xff]  }
0x1b64   :  { %8075 = vmatpush1.bf16.msra.mxu0 %v9544_v44  ;;  %8116 = vmatpush1.bf16.msra.mxu1 %v9547_v51  ;;  %v9636_v44 = vld [vmem:[#allocation29 + $0x1e4] ss:$16 sps:$4 sm:$0xff]   ;;  %v9639_v51 = vld [vmem:[#allocation29 + $0x1ec] ss:$16 sps:$4 sm:$0xff]  }
0x1b65   :  { %8076 = vmatprep.subr.bf16.mxu0 %v9552_v0  ;;  %8117 = vmatprep.subr.bf16.mxu1 %v9555_v36  ;;  %v9634_v0 = vld [vmem:[#allocation29 + $0x1e0] ss:$16 sps:$4 sm:$0xff]   ;;  %v9637_v36 = vld [vmem:[#allocation29 + $0x1e8] ss:$16 sps:$4 sm:$0xff]  }
0x1b68   :  { %8077 = vmatpush1.bf16.msra.mxu0 %v9550_v60  ;;  %8118 = vmatpush1.bf16.msra.mxu1 %v9553_v37 }
0x1b69   :  { %8078 = vmatprep.subr.bf16.mxu0 %v9558_v47  ;;  %8119 = vmatprep.subr.bf16.mxu1 %v9561_v2 }
0x1b6c   :  { %8079 = vmatpush1.bf16.msra.mxu0 %v9556_v38  ;;  %8120 = vmatpush1.bf16.msra.mxu1 %v9559_v20  ;;  %v15845_v20 = vmov 0.0  }
0x1b6d   :  { %8080 = vmatprep.subr.bf16.mxu0 %v9564_v63  ;;  %8121 = vmatprep.subr.bf16.mxu1 %v9567_v30 }
0x1b70   :  { %8081 = vmatpush1.bf16.msra.mxu0 %v9562_v45  ;;  %8122 = vmatpush1.bf16.msra.mxu1 %v9565_v6 }
0x1b71   :  { %8082 = vmatprep.subr.bf16.mxu0 %v9570_v4  ;;  %8123 = vmatprep.subr.bf16.mxu1 %v9573_v46 }
0x1b74   :  { %8083 = vmatpush1.bf16.msra.mxu0 %v9568_v56  ;;  %8124 = vmatpush1.bf16.msra.mxu1 %v9571_v57 }
0x1b75   :  { %8084 = vmatprep.subr.bf16.mxu0 %v9576_v50  ;;  %8125 = vmatprep.subr.bf16.mxu1 %v9579_v33 }
0x1b78   :  { %8085 = vmatpush1.bf16.msra.mxu0 %v9574_v43  ;;  %8126 = vmatpush1.bf16.msra.mxu1 %v9577_v41  ;;  %v15846_v41 = vld [vmem:[#allocation106_spill] sm:$0xff] }
0x1b79   :  { %8086 = vmatprep.subr.bf16.mxu0 %v9582_v11  ;;  %8127 = vmatprep.subr.bf16.mxu1 %v9585_v58  ;;  %v15847_v58 = vld [vmem:[#allocation107_spill] sm:$0xff] }
0x1b7c   :  { %8087 = vmatpush1.bf16.msra.mxu0 %v9580_v5  ;;  %8128 = vmatpush1.bf16.msra.mxu1 %v9583_v26 }
0x1b7d   :  { %8088 = vmatprep.subr.bf16.mxu0 %v9588_v3  ;;  %8129 = vmatprep.subr.bf16.mxu1 %v9591_v42 }
0x1b80   :  { %8089 = vmatpush1.bf16.msra.mxu0 %v9586_v48  ;;  %8130 = vmatpush1.bf16.msra.mxu1 %v9589_v15 }
0x1b81   :  { %8090 = vmatprep.subr.bf16.mxu0 %v9594_v40  ;;  %8131 = vmatprep.subr.bf16.mxu1 %v9597_v24  ;;  %v15848_v24 = vld [vmem:[#allocation141_spill] sm:$0xff] }
0x1b84   :  { %8091 = vmatpush1.bf16.msra.mxu0 %v9592_v53  ;;  %8132 = vmatpush1.bf16.msra.mxu1 %v9595_v17  ;;  %v7709_v53 = vrot.slane %v15848_v24, 7 }
0x1b85   :  { %8092 = vmatprep.subr.bf16.mxu0 %v9600_v61  ;;  %8133 = vmatprep.subr.bf16.mxu1 %v9603_v16 }
0x1b88   :  { %8093 = vmatpush1.bf16.msra.mxu0 %v9598_v22  ;;  %8134 = vmatpush1.bf16.msra.mxu1 %v9601_v27 }
0x1b89   :  { %8094 = vmatprep.subr.bf16.mxu0 %v9606_v32  ;;  %8135 = vmatprep.subr.bf16.mxu1 %v9609_v13 }
0x1b8c   :  { %8095 = vmatpush1.bf16.msra.mxu0 %v9604_v23  ;;  %8136 = vmatpush1.bf16.msra.mxu1 %v9607_v19 }
0x1b8d   :  { %8096 = vmatprep.subr.bf16.mxu0 %v9612_v8  ;;  %8137 = vmatprep.subr.bf16.mxu1 %v9615_v28 }
0x1b90   :  { %8097 = vmatpush1.bf16.msra.mxu0 %v9610_v14  ;;  %8138 = vmatpush1.bf16.msra.mxu1 %v9613_v10 }
0x1b91   :  { %8098 = vmatprep.subr.bf16.mxu0 %v9618_v52  ;;  %8139 = vmatprep.subr.bf16.mxu1 %v9621_v7 }
0x1b94   :  { %8099 = vmatpush1.bf16.msra.mxu0 %v9616_v25  ;;  %8140 = vmatpush1.bf16.msra.mxu1 %v9619_v55 }
0x1b95   :  { %8100 = vmatprep.subr.bf16.mxu0 %v9624_v35  ;;  %8141 = vmatprep.subr.bf16.mxu1 %v9627_v49 }
0x1b98   :  { %8101 = vmatpush1.bf16.msra.mxu0 %v9622_v29  ;;  %8142 = vmatpush1.bf16.msra.mxu1 %v9625_v39 }
0x1b99   :  { %8102 = vmatprep.subr.bf16.mxu0 %v9630_v54  ;;  %8143 = vmatprep.subr.bf16.mxu1 %v9633_v59  ;;  %v13829_v59 = vld [vmem:[#allocation32] sm:$0xf] }
0x1b9c   :  { %8103 = vmatpush1.bf16.msra.mxu0 %v9628_v12  ;;  %8144 = vmatpush1.bf16.msra.mxu1 %v9631_v1 }
0x1b9d   :  { %8104 = vmatprep.subr.bf16.mxu0 %v9636_v44  ;;  %8145 = vmatprep.subr.bf16.mxu1 %v9639_v51 }
0x1ba0   :  { %8105 = vmatpush1.bf16.msra.mxu0 %v9634_v0  ;;  %8146 = vmatpush1.bf16.msra.mxu1 %v9637_v36 }
0x1ba1   :  { %9187 = vmatprep.subr.bf16.mxu0 %v15845_v20 }
0x1bf6   :  { %v7513_v60 = vpop.f32.mrb[124].mxu0  ;;  %v7554_v37 = vpop.f32.mrb[140].mxu1 }
0x1bf7   :  { %v7647_v47 = vrot.slane %v7513_v60, 1  ;;  %v7515_v2 = vpop.f32.mrb[125].mxu0  ;;  %v7556_v38 = vpop.f32.mrb[141].mxu1  ;;  %v7649_v33 = vrot.slane %v7554_v37, 1 }
0x1bf8   :  { %v7648_v63 = vrot.slane %v7515_v2, 1  ;;  %v7517_v30 = vpop.f32.mrb[126].mxu0  ;;  %v7558_v45 = vpop.f32.mrb[142].mxu1  ;;  %v7650_v43 = vrot.slane %v7556_v38, 1 }
0x1bf9   :  { %v7655_v6 = vadd.f32 %v7647_v47, %v12675_v34  ;;  %v7518_v4 = vpop.f32.mrb[127].mxu0  ;;  %v7559_v46 = vpop.f32.mrb[143].mxu1  ;;  %v7657_v11 = vadd.f32 %v7649_v33, %v15846_v41  ;;  %v9642_v41 = vld [vmem:[%s15849_s30 + $0x10] sm:$0xff]  }
0x1bfa   :  { %v7656_v56 = vadd.f32 %v7648_v63, %v15348_v31  ;;  %v7658_v5 = vadd.f32 %v7650_v43, %v15847_v58  ;;  %v9641_v43 = vld [vmem:[%s15849_s30 + $0x8] sm:$0xff]   ;;  %v9644_v58 = vld [vmem:[%s15849_s30 + $0x20] sm:$0xff]  }
0x1bfb   :  { %v9034_v57 = vmul.f32 -1.442695, %v7655_v6  ;;  %v9036_v26 = vmul.f32 -1.442695, %v7657_v11  ;;  %v9643_v11 = vld [vmem:[%s15849_s30 + $0x18] sm:$0xff]  }
0x1bfc   :  { %v9035_v50 = vmul.f32 -1.442695, %v7656_v56 }
0x1bfd   :  { %10008 = vpow2.f32 %v9034_v57 }
0x1bfe   :  { %10010 = vpow2.f32 %v9035_v50 }
0x1bff   :  { %10012 = vtanh.f32 %v7658_v5  ;;  %v9645_v5 = vld [vmem:[%s15849_s30 + $0x28] sm:$0xff]  }
0x1c00   :  { %10014 = vpow2.f32 %v9036_v26  ;;  %v9646_v26 = vld [vmem:[%s15849_s30 + $0x30] sm:$0xff]  }
0x1c07   :  { %v10009_v3 = vpop.eup %10008 }
0x1c08   :  { %v7698_v42 = vadd.f32 1.0, %v10009_v3  ;;  %v10011_v48 = vpop.eup %10010  ;;  %v9647_v3 = vld [vmem:[%s15849_s30 + $0x38] sm:$0xff]  }
0x1c09   :  { %v7699_v34 = vadd.f32 1.0, %v10011_v48  ;;  %v10013_v31 = vpop.eup %10012 }
0x1c0a   :  { %10016 = vrcp.f32 %v7698_v42  ;;  %v10015_v15 = vpop.eup %10014 }
0x1c0b   :  { %10018 = vrcp.f32 %v7699_v34  ;;  %v7700_v16 = vadd.f32 1.0, %v10015_v15 }
0x1c0d   :  { %10020 = vrcp.f32 %v7700_v16 }
0x1c14   :  { %v10017_v40 = vpop.eup %10016 }
0x1c15   :  { %v7712_v17 = vmul.f32 %v10017_v40, %v10013_v31  ;;  %v10019_v61 = vpop.eup %10018 }
0x1c16   :  { %v7711_v22 = vmul.f32 %v10019_v61, %v7709_v53 }
0x1c17   :  { %v10021_v32 = vpop.eup %10020 }
0x1c18   :  { %v7713_v27 = vadd.f32 %v7712_v17, %v7711_v22 }
0x1c1a   :  { %10022 = vtanh.f32 %v7713_v27  ;;  %8340 = vst [vmem:[#allocation38 - $0x7] sm:$0x80] %v7713_v27 }
0x1c24   :  { %v10023_v13 = vpop.eup %10022 }
0x1c25   :  { %v7715_v23 = vmul.f32 %v10023_v13, %v10021_v32 }
0x1c27   :  { %8338 = vst [vmem:[#allocation37 - $0x7] sm:$0x80] %v7715_v23  ;;  %v7742_v6 = vpack.c.bf16 %v7715_v23, %v7715_v23 }
0x1c29   :  { %v7745_v57 = vshrl.u32 %v7742_v6, 16 }
0x1c2b   :  { %v7747_v33 = vrot.slane %v7745_v57, 3 }
0x1c36   :  { %v7595_v19 = vpop.f32.mrb[128].mxu0  ;;  %v7636_v8 = vpop.f32.mrb[144].mxu1 }
0x1c37   :  { %v7597_v28 = vpop.f32.mrb[129].mxu0  ;;  %v7638_v14 = vpop.f32.mrb[145].mxu1 }
0x1c38   :  { %v7663_v10 = vcombine.low %v7595_v19, %v7597_v28  ;;  %v7664_v52 = vcombine.low %v7636_v8, %v7638_v14  ;;  %v7599_v7 = vpop.f32.mrb[130].mxu0  ;;  %v7640_v25 = vpop.f32.mrb[146].mxu1 }
0x1c39   :  { %v7600_v55 = vpop.f32.mrb[131].mxu0  ;;  %v7641_v35 = vpop.f32.mrb[147].mxu1 }
0x1c3a   :  { %v7671_v49 = vrot.slane %v7663_v10, %v15351_v18  ;;  %v7678_v29 = vrot.slane %v7664_v52, %v15351_v18 }
0x1c3c   :  { %v7679_v39 = vcombine.low %v7671_v49, %v7678_v29 }
0x1c3e   :  { %v7686_v54 = vrot.slane %v7679_v39, %v15351_v18 }
0x1c40   :  { %v7688_v12 = vadd.f32 %v13829_v59, %v7686_v54  ;;  %v8342_v54 = vld [vmem:[%s15850_s9] sm:$0xff] }
0x1c42   :  { %v9037_v1 = vmul.f32 -1.442695, %v7688_v12  ;;  %v7723_v0 = vrot.slane %v7688_v12, 3  ;;  %v8344_v12 = vld [vmem:[%s15850_s9 + $0x10] sm:$0xff] }
0x1c44   :  { %10024 = vpow2.f32 %v9037_v1  ;;  %v10667_v1 = vmov 0.0|0.0  }
0x1c45   :  { %9218 = vmatprep.subr.bf16.mxu1 %v10667_v1 }
0x1c4e   :  { %v10025_v44 = vpop.eup %10024 }
0x1c4f   :  { %v7719_v51 = vadd.f32 1.0, %v10025_v44 }
0x1c51   :  { %10026 = vrcp.f32 %v7719_v51  ;;  %v8345_v51 = vld [vmem:[%s15850_s9 + $0x18] sm:$0xff] }
0x1c52   :  { %10028 = vtanh.f32 %v7723_v0  ;;  %v9222_v0 = vpack.c.bf16 %v8345_v51, %v8344_v12 }
0x1c5b   :  { %v10027_v36 = vpop.eup %10026 }
0x1c5c   :  { %v7727_v60 = vrot.slane %v10027_v36, 1  ;;  %v10029_v37 = vpop.eup %10028  ;;  %v7733_v63 = vrot.slane %v10027_v36, 2 }
0x1c5d   :  { %v7730_v47 = vmul.f32 %v10029_v37, %v10027_v36  ;;  %v9103_v36 = vld [vmem:[%s15851_s22] ss:$0 sm:$0xff] }
0x1c5e   :  { %v7729_v2 = vmul.f32 %v7727_v60, %v13744_v9 }
0x1c60   :  { %v13833_v38 = vadd.f32 %v7730_v47, %v7729_v2  ;;  %v15852_v2 = vld [vmem:[#allocation142_spill] sm:$0xff] }
0x1c62   :  { %10030 = vtanh.f32 %v13833_v38 }
0x1c6c   :  { %v10031_v30 = vpop.eup %10030 }
0x1c6d   :  { %v7735_v45 = vmul.f32 %v10031_v30, %v7733_v63 }
0x1c6f   :  { %v7740_v4 = vrot.slane %v7735_v45, %v15353_v62 }
0x1c71   :  { %v7743_v46 = vpack.c.bf16 %v7740_v4, %v7740_v4  ;;  %v13839_v56 = vsel %vm4303_vm9, %v13750_v21, %v7740_v4  ;;  %v9640_v21 = vld [vmem:[%s15849_s30] sm:$0xff]  }
0x1c73   :  { %v7749_v9 = vshrl.u32 %v7743_v46, 16 }
0x1c75   :  { %v7751_v50 = vrot.slane %v7749_v9, 3 }
0x1c77   :  { %8106 = vmatprep.mubr.bf16.mxu0 %v7751_v50  ;;  %8147 = vmatprep.mubr.bf16.mxu1 %v7751_v50 }
0x1c78   :  { %8107 = vmatmul.mubr.bf16.vlgmr.msra.gmra.mrb[132].mxu0 %v7747_v33  ;;  %8148 = vmatmul.mubr.bf16.vlgmr.msra.gmra.mrb[148].mxu1 %v7747_v33 }
0x1c79   :  { %9203 = vmatprep.mubr.msk.bf16.mxu0 %vm10664_vm0, %v15845_v20  ;;  %9215 = vmatprep.mubr.msk.f32.mxu1 %vm10664_vm0, %v15845_v20 }
0x1c7a   :  { %9188 = vmatpush3.bf16.msra.mxu0 %v9640_v21 }
0x1c7b   :  { %9189 = vmatprep.subr.bf16.mxu0 %v15845_v20 }
0x1c7e   :  { %9190 = vmatpush3.bf16.msra.mxu0 %v9641_v43 }
0x1c7f   :  { %9191 = vmatprep.subr.bf16.mxu0 %v15845_v20 }
0x1c82   :  { %9192 = vmatpush3.bf16.msra.mxu0 %v9642_v41 }
0x1c83   :  { %9193 = vmatprep.subr.bf16.mxu0 %v15845_v20 }
0x1c86   :  { %9194 = vmatpush3.bf16.msra.mxu0 %v9643_v11 }
0x1c87   :  { %9195 = vmatprep.subr.bf16.mxu0 %v15845_v20 }
0x1c8a   :  { %9196 = vmatpush3.bf16.msra.mxu0 %v9644_v58 }
0x1c8b   :  { %9197 = vmatprep.subr.bf16.mxu0 %v15845_v20 }
0x1c8e   :  { %9198 = vmatpush3.bf16.msra.mxu0 %v9645_v5 }
0x1c8f   :  { %9199 = vmatprep.subr.bf16.mxu0 %v15845_v20 }
0x1c92   :  { %9200 = vmatpush3.bf16.msra.mxu0 %v9646_v26 }
0x1c93   :  { %9201 = vmatprep.subr.bf16.mxu0 %v15845_v20 }
0x1c96   :  { %9202 = vmatpush3.bf16.msra.mxu0 %v9647_v3 }
0x1d4b   :  { %v8108_v42 = vpop.f32.mrb[132].mxu0  ;;  %v8149_v48 = vpop.f32.mrb[148].mxu1 }
0x1d4c   :  { %v8110_v34 = vpop.f32.mrb[133].mxu0  ;;  %v8151_v31 = vpop.f32.mrb[149].mxu1 }
0x1d4d   :  { %v8160_v15 = vcombine.low %v8108_v42, %v8110_v34  ;;  %v8161_v40 = vcombine.low %v8149_v48, %v8151_v31  ;;  %v8112_v24 = vpop.f32.mrb[134].mxu0  ;;  %v8153_v53 = vpop.f32.mrb[150].mxu1 }
0x1d4e   :  { %v8113_v17 = vpop.f32.mrb[135].mxu0  ;;  %v8154_v61 = vpop.f32.mrb[151].mxu1 }
0x1d4f   :  { %v8168_v16 = vrot.slane %v8160_v15, %v15351_v18  ;;  %v8175_v22 = vrot.slane %v8161_v40, %v15351_v18 }
0x1d51   :  { %v8176_v27 = vcombine.low %v8168_v16, %v8175_v22 }
0x1d53   :  { %v8183_v32 = vrot.slane %v8176_v27, %v15351_v18 }
0x1d55   :  { %v8185_v20 = vadd.f32 %v13829_v59, %v8183_v32  ;;  %v8343_v59 = vld [vmem:[%s15850_s9 + $0x8] sm:$0xff] }
0x1d56   :  { %v9219_v44 = vpack.c.bf16 %v8343_v59, %v8342_v54 }
0x1d57   :  { %v9102_v13 = vmul.f32 -1.442695, %v8185_v20  ;;  %v8193_v8 = vrot.slane %v8185_v20, 3 }
0x1d58   :  { %9220 = vmatpush3.bf16.msra.mxu1 %v9219_v44 }
0x1d59   :  { %10032 = vpow2.f32 %v9102_v13  ;;  %9221 = vmatprep.subr.bf16.mxu1 %v10667_v1 }
0x1d5c   :  { %9223 = vmatpush3.bf16.msra.mxu1 %v9222_v0 }
0x1d63   :  { %v10033_v23 = vpop.eup %10032 }
0x1d64   :  { %v8189_v19 = vadd.f32 1.0, %v10033_v23 }
0x1d66   :  { %10034 = vrcp.f32 %v8189_v19 }
0x1d67   :  { %10036 = vtanh.f32 %v8193_v8 }
0x1d70   :  { %v10035_v28 = vpop.eup %10034 }
0x1d71   :  { %v8197_v14 = vrot.slane %v10035_v28, 1  ;;  %v10037_v10 = vpop.eup %10036  ;;  %v8203_v18 = vrot.slane %v10035_v28, 2 }
0x1d72   :  { %v8200_v7 = vmul.f32 %v10037_v10, %v10035_v28 }
0x1d73   :  { %v8199_v52 = vmul.f32 %v8197_v14, %v13833_v38 }
0x1d75   :  { %v8201_v25 = vadd.f32 %v8200_v7, %v8199_v52 }
0x1d77   :  { %8341 = vst [vmem:[#allocation38 + $0x1] sm:$0x1] %v8201_v25  ;;  %10038 = vtanh.f32 %v8201_v25 }
0x1d81   :  { %v10039_v55 = vpop.eup %10038 }
0x1d82   :  { %v8205_v35 = vmul.f32 %v10039_v55, %v8203_v18 }
0x1d84   :  { %v8210_v49 = vrot.slane %v8205_v35, %v15353_v62  ;;  %8339 = vst [vmem:[#allocation37 + $0x1] sm:$0x1] %v8205_v35 }
0x1d86   :  { %v8218_v29 = vsel %vm4305_vm10, %v13839_v56, %v8210_v49 }
0x1d87   :  { %v8219_v39 = vpack.c.bf16 %v8218_v29, %v8218_v29 }
0x1d89   :  { %9204 = vmatmul.mubr.bf16.vlgmr.msra.gmra.mrb[136].mxu0 %v8219_v39 }
0x1e5c   :  { %v8325_v62 = vpop.f32.mrb[136].mxu0 }
0x1e5d   :  { %v8326_v60 = vadd.f32 %v9103_v36, %v8325_v62  ;;  %v9205_v37 = vpop.f32.mrb[137].mxu0 }
0x1e5e   :  { %v8328_v47 = vpop.f32.mrb[138].mxu0 }
0x1e5f   :  { %v8331_v38 = vadd.f32 %v15852_v2, %v8326_v60  ;;  %v9206_v63 = vpop.f32.mrb[139].mxu0 }
0x1e61   :  { %v9112_v30 = vmul.f32 -1.442695, %v8331_v38 }
0x1e63   :  { %10040 = vpow2.f32 %v9112_v30 }
0x1e6d   :  { %v10041_v45 = vpop.eup %10040 }
0x1e6e   :  { %v8335_v6 = vadd.f32 1.0, %v10041_v45 }
0x1e70   :  { %10042 = vrcp.f32 %v8335_v6 }
0x1e7a   :  { %v10043_v4 = vpop.eup %10042 }
0x1e7b   :  { %9216 = vmatmul.mubr.msk.f32.vlgmr.msra.gmra.mrb[2].mxu1 %vm475_vm3, %v10043_v4 }
0x1e7c   :  { %10499 = shalt.err (!%p10496_p10)
}
0x1e7d   :  { %s10500_s25 = scalar_lea.hbm %s10845_s27, 32 }
0x1e7e   :  { %p10501_p11 = scmp.ne.s32.totalorder %s10845_s27, %s10500_s25  ;;  %p10504_p12 = scmp.lt.u32.totalorder %s10500_s25, %s10845_s27 }
0x1e80   :  { %p10506_p13 = pnand %p10504_p12, %p10501_p11 }
0x1e82   :  { %10509 = shalt.err (!%p10506_p13)
}
0x1e83   :  { %8448 = dma.vmem_to_hbm [thread:$0]  %s8446_s23, 32, %s10845_s27, [#allocation36]  }
0x1e84   :  { %s10510_s26 = scalar_lea.vmem %s8436_s12, 32  ;;  %p10515_p1 = scmp.lt.s32.totalorder %s8436_s12, %s8436_s12 }
0x1e85   :  { %p10511_p0 = scmp.ne.s32.totalorder %s8436_s12, %s10510_s26  ;;  %p10516_p2 = scmp.lt.s32.totalorder %s10510_s26, %s10510_s26 }
0x1e87   :  { %p10517_p3 = por %p10516_p2, %p10515_p1 }
0x1e89   :  { %p10518_p4 = pnand %p10517_p3, %p10511_p0 }
0x1e8b   :  { %10521 = shalt.err (!%p10518_p4)
}
0x1e8c   :  { %s10522_s29 = scalar_lea.hbm %s10840_s6, 32 }
0x1e8d   :  { %p10523_p5 = scmp.ne.s32.totalorder %s10840_s6, %s10522_s29  ;;  %p10526_p6 = scmp.lt.u32.totalorder %s10522_s29, %s10840_s6 }
0x1e8f   :  { %p10528_p7 = pnand %p10526_p6, %p10523_p5 }
0x1e91   :  { %10531 = shalt.err (!%p10528_p7)
}
0x1e92   :  { %8438 = dma.vmem_to_hbm [thread:$0]  %s8436_s12, 32, %s10840_s6, [#allocation4]  }
0x1e93   :  { %s10670_s28 = smov [#allocation37]   ;;  %s10671_s14 = smov [#allocation38]  }
0x1e94   :  { %s8455_s27 = sshll.u32 %s10670_s28, 4  ;;  %s8465_s1 = sshll.u32 %s10671_s14, 4  ;;  %s8456_s27 = int_to_ptr.vmem [resolvable:$true] %s8455_s27  ;;  %s8466_s1 = int_to_ptr.vmem [resolvable:$true] %s8465_s1 }
0x1e95   :  { %s10532_s8 = scalar_lea.vmem %s8456_s27, 32  ;;  %p10537_p9 = scmp.lt.s32.totalorder %s8456_s27, %s8456_s27 }
0x1e96   :  { %p10533_p8 = scmp.ne.s32.totalorder %s8456_s27, %s10532_s8  ;;  %p10538_p10 = scmp.lt.s32.totalorder %s10532_s8, %s10532_s8 }
0x1e98   :  { %p10539_p11 = por %p10538_p10, %p10537_p9 }
0x1e9a   :  { %p10540_p12 = pnand %p10539_p11, %p10533_p8 }
0x1e9c   :  { %10543 = shalt.err (!%p10540_p12)
}
0x1e9d   :  { %s10544_s2 = scalar_lea.hbm %s10850_s5, 32 }
0x1e9e   :  { %p10545_p13 = scmp.ne.s32.totalorder %s10850_s5, %s10544_s2  ;;  %p10548_p0 = scmp.lt.u32.totalorder %s10544_s2, %s10850_s5 }
0x1ea0   :  { %p10550_p1 = pnand %p10548_p0, %p10545_p13 }
0x1ea2   :  { %10553 = shalt.err (!%p10550_p1)
}
0x1ea3   :  { %8458 = dma.vmem_to_hbm [thread:$0]  %s8456_s27, 32, %s10850_s5, [#allocation36]  }
0x1ea4   :  { %s10554_s6 = scalar_lea.vmem %s8466_s1, 32  ;;  %p10559_p3 = scmp.lt.s32.totalorder %s8466_s1, %s8466_s1 }
0x1ea5   :  { %p10555_p2 = scmp.ne.s32.totalorder %s8466_s1, %s10554_s6  ;;  %p10560_p4 = scmp.lt.s32.totalorder %s10554_s6, %s10554_s6 }
0x1ea7   :  { %p10561_p5 = por %p10560_p4, %p10559_p3 }
0x1ea9   :  { %p10562_p6 = pnand %p10561_p5, %p10555_p2 }
0x1eab   :  { %10565 = shalt.err (!%p10562_p6)
}
0x1eac   :  { %s10566_s4 = scalar_lea.hbm %s10855_s20, 32 }
0x1ead   :  { %p10567_p7 = scmp.ne.s32.totalorder %s10855_s20, %s10566_s4  ;;  %p10570_p8 = scmp.lt.u32.totalorder %s10566_s4, %s10855_s20 }
0x1eaf   :  { %p10572_p9 = pnand %p10570_p8, %p10567_p7 }
0x1eb1   :  { %10575 = shalt.err (!%p10572_p9)
}
0x1eb2   :  { %s15853_s10 = sld [smem:[#allocation71_spill]]  ;;  %v9113_v46 = vld [vmem:[#allocation10] ss:$0 sm:$0xff] }
0x1eb3   :  { %8468 = dma.vmem_to_hbm [thread:$0]  %s8466_s1, 32, %s10855_s20, [#allocation39]  }
0x1f4e   :  { %v8422_v56 = vpop.f32.mrb[2].mxu1 }
0x1f4f   :  { %v8423_v57 = vadd.f32 %v9113_v46, %v8422_v56  ;;  %v9217_v9 = vpop.f32.mrb[3].mxu1 }
0x1f51   :  { %8426 = vst.msk [vmem:[%s15853_s10] sm:$0xff] %vm397_vm2, %v8423_v57 }
0x1f52   :  { %10598 = dma.done.wait [#allocation4], 32  }
0x1f53   :  { %10599 = vsyncadd [#allocation4], 4294967264 }
0x1f54   :  { %10600 = dma.done.wait [#allocation36], 64  }
0x1f55   :  { %10601 = vsyncadd [#allocation36], 4294967232 }
0x1f56   :  { %10602 = dma.done.wait [#allocation39], 32  }
0x1f57   :  { %10603 = vsyncadd [#allocation39], 4294967264 }
0x1f58   :  { %8483 = vsyncpa [#allocation3], 1 }
0x1f59   :  { %8484 = vsyncpa [#allocation6], 1 }
0x1f5a   :  { %8485 = vsyncpa [#allocation9], 1 }
0x1f5b   :  { %8486 = vsyncpa [#allocation12], 1 }
0x1f5c   :  { %8487 = vsyncpa [#allocation15], 1 }
0x1f5d   :  { %8488 = vsyncpa [#allocation18], 1 }
0x1f5e   :  { %8489 = vsyncpa [#allocation21], 1 }
0x1f5f   :  { %8490 = vsyncpa [#allocation24], 1 }
0x1f60   :  { %8491 = vsyncpa [#allocation27], 1 }
0x1f61   :  { %8492 = vsyncpa [#allocation30], 1 }
0x1f62   :  { %8493 = vsyncpa [#allocation33], 1 }
0x1f63   :  { %8494 = vsyncpa [#allocation4], 1 }
0x1f64   :  { %8495 = vsyncpa [#allocation36], 1 }
0x1f65   :  { %8496 = vsyncpa [#allocation39], 1 }

</bundles_post_ra>
